<compile_context>
chip_gen: v7x
topology: tpu7x:2x2x1
jax: 0.10.0
libtpu: 0.0.40
codegen_flags: <defaults>
</compile_context>

<pallas_src>
import functools

import jax
import jax.numpy as jnp
from jax.experimental import pallas as pl

BN_EPS = 1e-5


# ----------------------------- Pallas kernels ------------------------------ #

def _bn_relu_f32(y, gamma, beta):
    """Training-mode BatchNorm (biased variance, stats over rows) + ReLU."""
    mean = jnp.mean(y, axis=0, keepdims=True)
    var = jnp.mean(jnp.square(y - mean), axis=0, keepdims=True)
    y = (y - mean) * jax.lax.rsqrt(var + BN_EPS)
    return jnp.maximum(y * gamma + beta, 0.0)


def _conv_bn_relu_kernel(a_ref, w_ref, gamma_ref, beta_ref, o_ref):
    """o = relu(batchnorm(a @ w)); conv bias omitted (cancelled by BN mean)."""
    y = jnp.dot(a_ref[...], w_ref[...], preferred_element_type=jnp.float32)
    o_ref[...] = _bn_relu_f32(y, gamma_ref[...], beta_ref[...]).astype(o_ref.dtype)


def _tail_kernel(h_ref,
                 w4_ref, g4_ref, b4_ref,
                 w5_ref, g5_ref, b5_ref,
                 w1_ref, g1_ref, b1_ref,
                 w2_ref, g2_ref, b2_ref,
                 w3_ref, bias3_ref, o_ref):
    """conv4+BN+ReLU -> conv5+BN+ReLU -> avgpool(1x1)=identity ->
    linear1+BN+ReLU -> linear2+BN+ReLU -> linear3+tanh, in one kernel.

    conv4/conv5/linear1/linear2 biases are omitted (cancelled by BN mean).
    All intermediates stay in VMEM; only the (B, 3*num_vertices) result is
    written back.
    """
    y = jnp.dot(h_ref[...], w4_ref[...], preferred_element_type=jnp.float32)
    y = _bn_relu_f32(y, g4_ref[...], b4_ref[...])                     # conv4
    y = jnp.dot(y.astype(w5_ref.dtype), w5_ref[...],
                preferred_element_type=jnp.float32)
    y = _bn_relu_f32(y, g5_ref[...], b5_ref[...])                     # conv5
    # AdaptiveAvgPool2d(1) over the 1x1 spatial map is the identity.
    y = jnp.dot(y.astype(w1_ref.dtype), w1_ref[...],
                preferred_element_type=jnp.float32)
    y = _bn_relu_f32(y, g1_ref[...], b1_ref[...])                     # linear1
    y = jnp.dot(y.astype(w2_ref.dtype), w2_ref[...],
                preferred_element_type=jnp.float32)
    y = _bn_relu_f32(y, g2_ref[...], b2_ref[...])                     # linear2
    y = jnp.dot(y.astype(w3_ref.dtype), w3_ref[...],
                preferred_element_type=jnp.float32)
    o_ref[...] = jnp.tanh(y + bias3_ref[...])                         # linear3


# --------------------------- pallas_call wrappers --------------------------- #

def _rep(shape):
    """Full-array block, same block for every (single) grid step."""
    zero = (0,) * len(shape)
    return pl.BlockSpec(shape, lambda i, _z=zero: _z)


def fused_conv_bn_relu(patches, w2d, gamma, beta, out_dtype=jnp.bfloat16):
    """relu(batchnorm(patches @ w2d)); single full-array tile (grid=(1,))."""
    M, K = patches.shape
    N = w2d.shape[1]
    return pl.pallas_call(
        _conv_bn_relu_kernel,
        out_shape=jax.ShapeDtypeStruct((M, N), out_dtype),
        grid=(1,),
        in_specs=[_rep((M, K)), _rep((K, N)), _rep((1, N)), _rep((1, N))],
        out_specs=_rep((M, N)),
    )(patches, w2d, gamma, beta)


def fused_tail(h3, c4, c5, l1, l2, l3):
    """One pallas_call for conv4 -> conv5 -> pool -> linear1/2/3 -> tanh."""
    M = h3.shape[0]
    N3 = l3["w"].shape[1]
    args = (h3,
            c4["w"], c4["gamma"], c4["beta"],
            c5["w"], c5["gamma"], c5["beta"],
            l1["w"], l1["gamma"], l1["beta"],
            l2["w"], l2["gamma"], l2["beta"],
            l3["w"], l3["b"])
    return pl.pallas_call(
        _tail_kernel,
        out_shape=jax.ShapeDtypeStruct((M, N3), jnp.float32),
        grid=(1,),
        in_specs=[_rep(a.shape) for a in args],
        out_specs=_rep((M, N3)),
    )(*args)


# ------------------------------ JAX glue ----------------------------------- #

def _valid_taps(h, w, k, stride, pad):
    """Kernel taps that can touch real (non-padding) data; static shapes."""
    ho = (h + 2 * pad - k) // stride + 1
    wo = (w + 2 * pad - k) // stride + 1
    vki = [ki for ki in range(k)
           if any(0 <= oy * stride + ki - pad < h for oy in range(ho))]
    vkj = [kj for kj in range(k)
           if any(0 <= ox * stride + kj - pad < w for ox in range(wo))]
    taps = [(ki, kj) for ki in vki for kj in vkj]
    return taps, ho, wo


def im2col(x, taps, stride, pad, ho, wo):
    """x: (N,H,W,C) -> (N*Ho*Wo, T*C) patches over the given taps.
    Dead taps (dropped by _valid_taps) would only multiply padding zeros."""
    n, h, w, c = x.shape
    xp = jnp.pad(x, ((0, 0), (pad, pad), (pad, pad), (0, 0)))
    cols = [xp[:, ki:ki + (ho - 1) * stride + 1:stride,
               kj:kj + (wo - 1) * stride + 1:stride, :]
            for ki, kj in taps]
    patches = jnp.stack(cols, axis=3)                  # (N, Ho, Wo, T, C)
    return patches.reshape(n * ho * wo, len(taps) * c)


def init_params(key, nc=4, nk=5, num_vertices=8, in_hw=16):
    """Synthetic parameters; conv weights pre-sliced to valid taps and
    pre-flattened to 2-D (T*Cin, Cout) bf16 ONCE here (never per forward)."""
    chans = [nc, 32, 64, 128, 256, 512]
    keys = jax.random.split(key, 16)
    kidx = 0
    convs = []
    h = w = in_hw
    spatial_in = []
    for i in range(5):
        cin, cout = chans[i], chans[i + 1]
        wt = 0.001 * jax.random.normal(keys[kidx], (cout, cin, nk, nk),
                                       jnp.float32); kidx += 1
        _b = 0.001 * jax.random.normal(keys[kidx], (cout,), jnp.float32); kidx += 1
        # Conv bias is exactly cancelled by the following BatchNorm -> unused.
        spatial_in.append((h, w))
        taps, ho, wo = _valid_taps(h, w, nk, 2, 2)
        # Tap-major, channel-minor ordering, matching im2col's patch layout.
        w2d = jnp.stack([wt[:, :, ti, tj].T for ti, tj in taps], axis=0)
        w2d = w2d.reshape(len(taps) * cin, cout).astype(jnp.bfloat16)
        convs.append(dict(w=w2d,
                          gamma=jnp.ones((1, cout), jnp.float32),
                          beta=jnp.zeros((1, cout), jnp.float32)))
        h, w = ho, wo

    # The fused tail relies on: conv4 sees a 2x2 map (interior 2x2 taps only,
    # so its im2col == reshape) and conv5 sees a 1x1 map (single tap (2,2)).
    assert spatial_in[3] == (2, 2) and spatial_in[4] == (1, 1), spatial_in
    assert convs[3]["w"].shape[0] == 4 * chans[3]
    assert convs[4]["w"].shape[0] == 1 * chans[4]

    linears = []
    for (din, dout) in [(512, 1024), (1024, 1024)]:
        wl = 0.001 * jax.random.normal(keys[kidx], (din, dout), jnp.float32); kidx += 1
        _b = 0.001 * jax.random.normal(keys[kidx], (dout,), jnp.float32); kidx += 1
        # Linear bias cancelled by the following BatchNorm1d -> unused.
        linears.append(dict(w=wl.astype(jnp.bfloat16),
                            gamma=jnp.ones((1, dout), jnp.float32),
                            beta=jnp.zeros((1, dout), jnp.float32)))
    w3 = 0.001 * jax.random.normal(keys[kidx], (1024, num_vertices * 3),
                                   jnp.float32); kidx += 1
    b3 = 0.001 * jax.random.normal(keys[kidx], (num_vertices * 3,),
                                   jnp.float32); kidx += 1
    return dict(convs=convs, linears=linears,
                linear3=dict(w=w3.astype(jnp.bfloat16), b=b3.reshape(1, -1)))


def shape_encoder_forward(params, x, *, nk=5, num_vertices=8):
    # x: (B, C, H, W)  (PyTorch NCHW convention)
    batch_size = x.shape[0]
    x = x[:, :4]                                               # x = x[:, :4]
    h = jnp.transpose(x, (0, 2, 3, 1)).astype(jnp.bfloat16)    # -> NHWC, bf16

    # conv1..conv3: XLA im2col (boundary taps do touch zero padding) feeding
    # one fused matmul+BN+ReLU Pallas kernel each.
    for li in range(3):
        cp = params["convs"][li]
        n, hh, ww, c = h.shape
        taps, ho, wo = _valid_taps(hh, ww, nk, 2, 2)
        assert cp["w"].shape[0] == len(taps) * c
        patches = im2col(h, taps, 2, 2, ho, wo)
        y = fused_conv_bn_relu(patches, cp["w"], cp["gamma"], cp["beta"])
        h = y.reshape(n, ho, wo, cp["w"].shape[1])

    # conv4 + conv5 + AdaptiveAvgPool2d(1) + linear1 + linear2 + linear3 +
    # tanh: ONE fused kernel.  conv4's surviving im2col is exactly
    # h.reshape(B, 4*128), conv5's is the conv4 output verbatim, and the
    # 1x1 avgpool is the identity -- only reshapes, no gather needed.
    h3 = h.reshape(batch_size, -1)                              # (B, 512)
    out = fused_tail(h3,
                     params["convs"][3], params["convs"][4],
                     params["linears"][0], params["linears"][1],
                     params["linear3"])
    return out.reshape(batch_size, num_vertices, 3)


# TODO(synk): BatchNorm running-stat (running_mean/var) updates -- a
# training-time stateful side effect -- are not modeled; the forward output
# itself matches PyTorch training-mode BN.

if __name__ == "__main__":
    NC, NK, NUM_VERTICES, HW = 4, 5, 8, 16
    key = jax.random.PRNGKey(0)
    k_param, k_x = jax.random.split(key)
    params = init_params(k_param, nc=NC, nk=NK, num_vertices=NUM_VERTICES,
                         in_hw=HW)
    x = jax.random.normal(k_x, (2, NC, HW, HW), jnp.float32)

    fwd = jax.jit(functools.partial(shape_encoder_forward, nk=NK,
                                    num_vertices=NUM_VERTICES))
    delta_vertices = fwd(params, x)
    jax.block_until_ready(delta_vertices)
    assert delta_vertices.shape == (2, NUM_VERTICES, 3)
    print("KERNEL_OK")
</pallas_src>

<mosaic_0001>
module attributes {stable_mosaic.version = 11 : i64} {
  func.func @_conv_bn_relu_kernel(%arg0: i32, %arg1: memref<128x100xbf16, #tpu.memory_space<vmem>>, %arg2: memref<100x32xbf16, #tpu.memory_space<vmem>>, %arg3: memref<1x32xf32, #tpu.memory_space<vmem>>, %arg4: memref<1x32xf32, #tpu.memory_space<vmem>>, %arg5: memref<128x32xbf16, #tpu.memory_space<vmem>>) attributes {dimension_semantics = [#tpu.dimension_semantics<arbitrary>], iteration_bounds = array<i64: 1>, scalar_prefetch = 0 : i64, scratch_operands = 0 : i64, tpu.core_type = #tpu.core_type<tc>, window_params = [{pipeline_mode = #tpu.pipeline_mode<synchronous>, transform_indices = @transform_0, window_bounds = array<i64: 128, 100>}, {pipeline_mode = #tpu.pipeline_mode<synchronous>, transform_indices = @transform_1, window_bounds = array<i64: 100, 32>}, {pipeline_mode = #tpu.pipeline_mode<synchronous>, transform_indices = @transform_2, window_bounds = array<i64: 1, 32>}, {pipeline_mode = #tpu.pipeline_mode<synchronous>, transform_indices = @transform_3, window_bounds = array<i64: 1, 32>}, {pipeline_mode = #tpu.pipeline_mode<synchronous>, transform_indices = @transform_4, window_bounds = array<i64: 128, 32>}]} {
    %c0 = arith.constant 0 : index
    %c0_0 = arith.constant 0 : index
    %0 = vector.load %arg1[%c0, %c0_0] : memref<128x100xbf16, #tpu.memory_space<vmem>>, vector<128x100xbf16>
    %c0_1 = arith.constant 0 : index
    %c0_2 = arith.constant 0 : index
    %1 = vector.load %arg2[%c0_1, %c0_2] : memref<100x32xbf16, #tpu.memory_space<vmem>>, vector<100x32xbf16>
    %cst = arith.constant dense<0.000000e+00> : vector<128x32xf32>
    %2 = tpu.matmul %0, %1, %cst {dimension_numbers = #tpu.dot_dimension_numbers<[1], [0], [0], [1], [0, 0, 1, 1], [], []>} : vector<128x100xbf16>, vector<100x32xbf16>, vector<128x32xf32> -> vector<128x32xf32>
    %c0_3 = arith.constant 0 : index
    %c0_4 = arith.constant 0 : index
    %3 = vector.load %arg3[%c0_3, %c0_4] : memref<1x32xf32, #tpu.memory_space<vmem>>, vector<1x32xf32>
    %c0_5 = arith.constant 0 : index
    %c0_6 = arith.constant 0 : index
    %4 = vector.load %arg4[%c0_5, %c0_6] : memref<1x32xf32, #tpu.memory_space<vmem>>, vector<1x32xf32>
    %cst_7 = arith.constant dense<0.000000e+00> : vector<32xf32>
    %5 = vector.multi_reduction <add>, %2, %cst_7 [0] : vector<128x32xf32> to vector<32xf32>
    %6 = vector.shape_cast %5 : vector<32xf32> to vector<1x32xf32>
    %cst_8 = arith.constant 1.280000e+02 : f32
    %7 = vector.broadcast %cst_8 : f32 to vector<1x32xf32>
    %8 = arith.divf %6, %7 : vector<1x32xf32>
    %9 = vector.broadcast %8 : vector<1x32xf32> to vector<128x32xf32>
    %10 = arith.subf %2, %9 : vector<128x32xf32>
    %11 = arith.mulf %10, %10 : vector<128x32xf32>
    %cst_9 = arith.constant dense<0.000000e+00> : vector<32xf32>
    %12 = vector.multi_reduction <add>, %11, %cst_9 [0] : vector<128x32xf32> to vector<32xf32>
    %13 = vector.shape_cast %12 : vector<32xf32> to vector<1x32xf32>
    %cst_10 = arith.constant 1.280000e+02 : f32
    %14 = vector.broadcast %cst_10 : f32 to vector<1x32xf32>
    %15 = arith.divf %13, %14 : vector<1x32xf32>
    %16 = vector.broadcast %8 : vector<1x32xf32> to vector<128x32xf32>
    %17 = arith.subf %2, %16 : vector<128x32xf32>
    %cst_11 = arith.constant 9.99999974E-6 : f32
    %18 = vector.broadcast %cst_11 : f32 to vector<1x32xf32>
    %19 = arith.addf %15, %18 : vector<1x32xf32>
    %20 = math.rsqrt %19 : vector<1x32xf32>
    %21 = vector.broadcast %20 : vector<1x32xf32> to vector<128x32xf32>
    %22 = arith.mulf %17, %21 : vector<128x32xf32>
    %23 = vector.broadcast %3 : vector<1x32xf32> to vector<128x32xf32>
    %24 = arith.mulf %22, %23 : vector<128x32xf32>
    %25 = vector.broadcast %4 : vector<1x32xf32> to vector<128x32xf32>
    %26 = arith.addf %24, %25 : vector<128x32xf32>
    %cst_12 = arith.constant 0.000000e+00 : f32
    %27 = vector.broadcast %cst_12 : f32 to vector<128x32xf32>
    %28 = arith.maximumf %26, %27 : vector<128x32xf32>
    %29 = arith.truncf %28 : vector<128x32xf32> to vector<128x32xbf16>
    %c0_13 = arith.constant 0 : index
    %c0_14 = arith.constant 0 : index
    %30 = vector.load %arg5[%c0_13, %c0_14] : memref<128x32xbf16, #tpu.memory_space<vmem>>, vector<128x32xbf16>
    tpu.vector_store %arg5[%c0_13, %c0_14], %29 {strides = array<i32>} : memref<128x32xbf16, #tpu.memory_space<vmem>>, vector<128x32xbf16>,
    return
  }
  func.func @transform_0(%arg0: i32) -> (i32, i32) {
    %c0_i32 = arith.constant 0 : i32
    %c0_i32_0 = arith.constant 0 : i32
    %c0_i32_1 = arith.constant 0 : i32
    return %c0_i32, %c0_i32_0 : i32, i32
  }
  func.func @transform_1(%arg0: i32) -> (i32, i32) {
    %c0_i32 = arith.constant 0 : i32
    %c0_i32_0 = arith.constant 0 : i32
    %c0_i32_1 = arith.constant 0 : i32
    return %c0_i32, %c0_i32_0 : i32, i32
  }
  func.func @transform_2(%arg0: i32) -> (i32, i32) {
    %c0_i32 = arith.constant 0 : i32
    %c0_i32_0 = arith.constant 0 : i32
    %c0_i32_1 = arith.constant 0 : i32
    return %c0_i32, %c0_i32_0 : i32, i32
  }
  func.func @transform_3(%arg0: i32) -> (i32, i32) {
    %c0_i32 = arith.constant 0 : i32
    %c0_i32_0 = arith.constant 0 : i32
    %c0_i32_1 = arith.constant 0 : i32
    return %c0_i32, %c0_i32_0 : i32, i32
  }
  func.func @transform_4(%arg0: i32) -> (i32, i32) {
    %c0_i32 = arith.constant 0 : i32
    %c0_i32_0 = arith.constant 0 : i32
    %c0_i32_1 = arith.constant 0 : i32
    return %c0_i32, %c0_i32_0 : i32, i32
  }
}

module attributes {stable_mosaic.version = 11 : i64} {
  func.func @_conv_bn_relu_kernel(%arg0: i32, %arg1: memref<32x800xbf16, #tpu.memory_space<vmem>>, %arg2: memref<800x64xbf16, #tpu.memory_space<vmem>>, %arg3: memref<1x64xf32, #tpu.memory_space<vmem>>, %arg4: memref<1x64xf32, #tpu.memory_space<vmem>>, %arg5: memref<32x64xbf16, #tpu.memory_space<vmem>>) attributes {dimension_semantics = [#tpu.dimension_semantics<arbitrary>], iteration_bounds = array<i64: 1>, scalar_prefetch = 0 : i64, scratch_operands = 0 : i64, tpu.core_type = #tpu.core_type<tc>, window_params = [{pipeline_mode = #tpu.pipeline_mode<synchronous>, transform_indices = @transform_0, window_bounds = array<i64: 32, 800>}, {pipeline_mode = #tpu.pipeline_mode<synchronous>, transform_indices = @transform_1, window_bounds = array<i64: 800, 64>}, {pipeline_mode = #tpu.pipeline_mode<synchronous>, transform_indices = @transform_2, window_bounds = array<i64: 1, 64>}, {pipeline_mode = #tpu.pipeline_mode<synchronous>, transform_indices = @transform_3, window_bounds = array<i64: 1, 64>}, {pipeline_mode = #tpu.pipeline_mode<synchronous>, transform_indices = @transform_4, window_bounds = array<i64: 32, 64>}]} {
    %c0 = arith.constant 0 : index
    %c0_0 = arith.constant 0 : index
    %0 = vector.load %arg1[%c0, %c0_0] : memref<32x800xbf16, #tpu.memory_space<vmem>>, vector<32x800xbf16>
    %c0_1 = arith.constant 0 : index
    %c0_2 = arith.constant 0 : index
    %1 = vector.load %arg2[%c0_1, %c0_2] : memref<800x64xbf16, #tpu.memory_space<vmem>>, vector<800x64xbf16>
    %cst = arith.constant dense<0.000000e+00> : vector<32x64xf32>
    %2 = tpu.matmul %0, %1, %cst {dimension_numbers = #tpu.dot_dimension_numbers<[1], [0], [0], [1], [0, 0, 1, 1], [], []>} : vector<32x800xbf16>, vector<800x64xbf16>, vector<32x64xf32> -> vector<32x64xf32>
    %c0_3 = arith.constant 0 : index
    %c0_4 = arith.constant 0 : index
    %3 = vector.load %arg3[%c0_3, %c0_4] : memref<1x64xf32, #tpu.memory_space<vmem>>, vector<1x64xf32>
    %c0_5 = arith.constant 0 : index
    %c0_6 = arith.constant 0 : index
    %4 = vector.load %arg4[%c0_5, %c0_6] : memref<1x64xf32, #tpu.memory_space<vmem>>, vector<1x64xf32>
    %cst_7 = arith.constant dense<0.000000e+00> : vector<64xf32>
    %5 = vector.multi_reduction <add>, %2, %cst_7 [0] : vector<32x64xf32> to vector<64xf32>
    %6 = vector.shape_cast %5 : vector<64xf32> to vector<1x64xf32>
    %cst_8 = arith.constant 3.200000e+01 : f32
    %7 = vector.broadcast %cst_8 : f32 to vector<1x64xf32>
    %8 = arith.divf %6, %7 : vector<1x64xf32>
    %9 = vector.broadcast %8 : vector<1x64xf32> to vector<32x64xf32>
    %10 = arith.subf %2, %9 : vector<32x64xf32>
    %11 = arith.mulf %10, %10 : vector<32x64xf32>
    %cst_9 = arith.constant dense<0.000000e+00> : vector<64xf32>
    %12 = vector.multi_reduction <add>, %11, %cst_9 [0] : vector<32x64xf32> to vector<64xf32>
    %13 = vector.shape_cast %12 : vector<64xf32> to vector<1x64xf32>
    %cst_10 = arith.constant 3.200000e+01 : f32
    %14 = vector.broadcast %cst_10 : f32 to vector<1x64xf32>
    %15 = arith.divf %13, %14 : vector<1x64xf32>
    %16 = vector.broadcast %8 : vector<1x64xf32> to vector<32x64xf32>
    %17 = arith.subf %2, %16 : vector<32x64xf32>
    %cst_11 = arith.constant 9.99999974E-6 : f32
    %18 = vector.broadcast %cst_11 : f32 to vector<1x64xf32>
    %19 = arith.addf %15, %18 : vector<1x64xf32>
    %20 = math.rsqrt %19 : vector<1x64xf32>
    %21 = vector.broadcast %20 : vector<1x64xf32> to vector<32x64xf32>
    %22 = arith.mulf %17, %21 : vector<32x64xf32>
    %23 = vector.broadcast %3 : vector<1x64xf32> to vector<32x64xf32>
    %24 = arith.mulf %22, %23 : vector<32x64xf32>
    %25 = vector.broadcast %4 : vector<1x64xf32> to vector<32x64xf32>
    %26 = arith.addf %24, %25 : vector<32x64xf32>
    %cst_12 = arith.constant 0.000000e+00 : f32
    %27 = vector.broadcast %cst_12 : f32 to vector<32x64xf32>
    %28 = arith.maximumf %26, %27 : vector<32x64xf32>
    %29 = arith.truncf %28 : vector<32x64xf32> to vector<32x64xbf16>
    %c0_13 = arith.constant 0 : index
    %c0_14 = arith.constant 0 : index
    %30 = vector.load %arg5[%c0_13, %c0_14] : memref<32x64xbf16, #tpu.memory_space<vmem>>, vector<32x64xbf16>
    tpu.vector_store %arg5[%c0_13, %c0_14], %29 {strides = array<i32>} : memref<32x64xbf16, #tpu.memory_space<vmem>>, vector<32x64xbf16>,
    return
  }
  func.func @transform_0(%arg0: i32) -> (i32, i32) {
    %c0_i32 = arith.constant 0 : i32
    %c0_i32_0 = arith.constant 0 : i32
    %c0_i32_1 = arith.constant 0 : i32
    return %c0_i32, %c0_i32_0 : i32, i32
  }
  func.func @transform_1(%arg0: i32) -> (i32, i32) {
    %c0_i32 = arith.constant 0 : i32
    %c0_i32_0 = arith.constant 0 : i32
    %c0_i32_1 = arith.constant 0 : i32
    return %c0_i32, %c0_i32_0 : i32, i32
  }
  func.func @transform_2(%arg0: i32) -> (i32, i32) {
    %c0_i32 = arith.constant 0 : i32
    %c0_i32_0 = arith.constant 0 : i32
    %c0_i32_1 = arith.constant 0 : i32
    return %c0_i32, %c0_i32_0 : i32, i32
  }
  func.func @transform_3(%arg0: i32) -> (i32, i32) {
    %c0_i32 = arith.constant 0 : i32
    %c0_i32_0 = arith.constant 0 : i32
    %c0_i32_1 = arith.constant 0 : i32
    return %c0_i32, %c0_i32_0 : i32, i32
  }
  func.func @transform_4(%arg0: i32) -> (i32, i32) {
    %c0_i32 = arith.constant 0 : i32
    %c0_i32_0 = arith.constant 0 : i32
    %c0_i32_1 = arith.constant 0 : i32
    return %c0_i32, %c0_i32_0 : i32, i32
  }
}

module attributes {stable_mosaic.version = 11 : i64} {
  func.func @_tail_kernel(%arg0: i32, %arg1: memref<2x512xbf16, #tpu.memory_space<vmem>>, %arg2: memref<512x256xbf16, #tpu.memory_space<vmem>>, %arg3: memref<1x256xf32, #tpu.memory_space<vmem>>, %arg4: memref<1x256xf32, #tpu.memory_space<vmem>>, %arg5: memref<256x512xbf16, #tpu.memory_space<vmem>>, %arg6: memref<1x512xf32, #tpu.memory_space<vmem>>, %arg7: memref<1x512xf32, #tpu.memory_space<vmem>>, %arg8: memref<512x1024xbf16, #tpu.memory_space<vmem>>, %arg9: memref<1x1024xf32, #tpu.memory_space<vmem>>, %arg10: memref<1x1024xf32, #tpu.memory_space<vmem>>, %arg11: memref<1024x1024xbf16, #tpu.memory_space<vmem>>, %arg12: memref<1x1024xf32, #tpu.memory_space<vmem>>, %arg13: memref<1x1024xf32, #tpu.memory_space<vmem>>, %arg14: memref<1024x24xbf16, #tpu.memory_space<vmem>>, %arg15: memref<1x24xf32, #tpu.memory_space<vmem>>, %arg16: memref<2x24xf32, #tpu.memory_space<vmem>>) attributes {dimension_semantics = [#tpu.dimension_semantics<arbitrary>], iteration_bounds = array<i64: 1>, scalar_prefetch = 0 : i64, scratch_operands = 0 : i64, tpu.core_type = #tpu.core_type<tc>, window_params = [{pipeline_mode = #tpu.pipeline_mode<synchronous>, transform_indices = @transform_0, window_bounds = array<i64: 2, 512>}, {pipeline_mode = #tpu.pipeline_mode<synchronous>, transform_indices = @transform_1, window_bounds = array<i64: 512, 256>}, {pipeline_mode = #tpu.pipeline_mode<synchronous>, transform_indices = @transform_2, window_bounds = array<i64: 1, 256>}, {pipeline_mode = #tpu.pipeline_mode<synchronous>, transform_indices = @transform_3, window_bounds = array<i64: 1, 256>}, {pipeline_mode = #tpu.pipeline_mode<synchronous>, transform_indices = @transform_4, window_bounds = array<i64: 256, 512>}, {pipeline_mode = #tpu.pipeline_mode<synchronous>, transform_indices = @transform_5, window_bounds = array<i64: 1, 512>}, {pipeline_mode = #tpu.pipeline_mode<synchronous>, transform_indices = @transform_6, window_bounds = array<i64: 1, 512>}, {pipeline_mode = #tpu.pipeline_mode<synchronous>, transform_indices = @transform_7, window_bounds = array<i64: 512, 1024>}, {pipeline_mode = #tpu.pipeline_mode<synchronous>, transform_indices = @transform_8, window_bounds = array<i64: 1, 1024>}, {pipeline_mode = #tpu.pipeline_mode<synchronous>, transform_indices = @transform_9, window_bounds = array<i64: 1, 1024>}, {pipeline_mode = #tpu.pipeline_mode<synchronous>, transform_indices = @transform_10, window_bounds = array<i64: 1024, 1024>}, {pipeline_mode = #tpu.pipeline_mode<synchronous>, transform_indices = @transform_11, window_bounds = array<i64: 1, 1024>}, {pipeline_mode = #tpu.pipeline_mode<synchronous>, transform_indices = @transform_12, window_bounds = array<i64: 1, 1024>}, {pipeline_mode = #tpu.pipeline_mode<synchronous>, transform_indices = @transform_13, window_bounds = array<i64: 1024, 24>}, {pipeline_mode = #tpu.pipeline_mode<synchronous>, transform_indices = @transform_14, window_bounds = array<i64: 1, 24>}, {pipeline_mode = #tpu.pipeline_mode<synchronous>, transform_indices = @transform_15, window_bounds = array<i64: 2, 24>}]} {
    %c0 = arith.constant 0 : index
    %c0_0 = arith.constant 0 : index
    %0 = vector.load %arg1[%c0, %c0_0] : memref<2x512xbf16, #tpu.memory_space<vmem>>, vector<2x512xbf16>
    %c0_1 = arith.constant 0 : index
    %c0_2 = arith.constant 0 : index
    %1 = vector.load %arg2[%c0_1, %c0_2] : memref<512x256xbf16, #tpu.memory_space<vmem>>, vector<512x256xbf16>
    %cst = arith.constant dense<0.000000e+00> : vector<2x256xf32>
    %2 = tpu.matmul %0, %1, %cst {dimension_numbers = #tpu.dot_dimension_numbers<[1], [0], [0], [1], [0, 0, 1, 1], [], []>} : vector<2x512xbf16>, vector<512x256xbf16>, vector<2x256xf32> -> vector<2x256xf32>
    %c0_3 = arith.constant 0 : index
    %c0_4 = arith.constant 0 : index
    %3 = vector.load %arg3[%c0_3, %c0_4] : memref<1x256xf32, #tpu.memory_space<vmem>>, vector<1x256xf32>
    %c0_5 = arith.constant 0 : index
    %c0_6 = arith.constant 0 : index
    %4 = vector.load %arg4[%c0_5, %c0_6] : memref<1x256xf32, #tpu.memory_space<vmem>>, vector<1x256xf32>
    %cst_7 = arith.constant dense<0.000000e+00> : vector<256xf32>
    %5 = vector.multi_reduction <add>, %2, %cst_7 [0] : vector<2x256xf32> to vector<256xf32>
    %6 = vector.shape_cast %5 : vector<256xf32> to vector<1x256xf32>
    %cst_8 = arith.constant 2.000000e+00 : f32
    %7 = vector.broadcast %cst_8 : f32 to vector<1x256xf32>
    %8 = arith.divf %6, %7 : vector<1x256xf32>
    %9 = vector.broadcast %8 : vector<1x256xf32> to vector<2x256xf32>
    %10 = arith.subf %2, %9 : vector<2x256xf32>
    %11 = arith.mulf %10, %10 : vector<2x256xf32>
    %cst_9 = arith.constant dense<0.000000e+00> : vector<256xf32>
    %12 = vector.multi_reduction <add>, %11, %cst_9 [0] : vector<2x256xf32> to vector<256xf32>
    %13 = vector.shape_cast %12 : vector<256xf32> to vector<1x256xf32>
    %cst_10 = arith.constant 2.000000e+00 : f32
    %14 = vector.broadcast %cst_10 : f32 to vector<1x256xf32>
    %15 = arith.divf %13, %14 : vector<1x256xf32>
    %16 = vector.broadcast %8 : vector<1x256xf32> to vector<2x256xf32>
    %17 = arith.subf %2, %16 : vector<2x256xf32>
    %cst_11 = arith.constant 9.99999974E-6 : f32
    %18 = vector.broadcast %cst_11 : f32 to vector<1x256xf32>
    %19 = arith.addf %15, %18 : vector<1x256xf32>
    %20 = math.rsqrt %19 : vector<1x256xf32>
    %21 = vector.broadcast %20 : vector<1x256xf32> to vector<2x256xf32>
    %22 = arith.mulf %17, %21 : vector<2x256xf32>
    %23 = vector.broadcast %3 : vector<1x256xf32> to vector<2x256xf32>
    %24 = arith.mulf %22, %23 : vector<2x256xf32>
    %25 = vector.broadcast %4 : vector<1x256xf32> to vector<2x256xf32>
    %26 = arith.addf %24, %25 : vector<2x256xf32>
    %cst_12 = arith.constant 0.000000e+00 : f32
    %27 = vector.broadcast %cst_12 : f32 to vector<2x256xf32>
    %28 = arith.maximumf %26, %27 : vector<2x256xf32>
    %29 = arith.truncf %28 : vector<2x256xf32> to vector<2x256xbf16>
    %c0_13 = arith.constant 0 : index
    %c0_14 = arith.constant 0 : index
    %30 = vector.load %arg5[%c0_13, %c0_14] : memref<256x512xbf16, #tpu.memory_space<vmem>>, vector<256x512xbf16>
    %cst_15 = arith.constant dense<0.000000e+00> : vector<2x512xf32>
    %31 = tpu.matmul %29, %30, %cst_15 {dimension_numbers = #tpu.dot_dimension_numbers<[1], [0], [0], [1], [0, 0, 1, 1], [], []>} : vector<2x256xbf16>, vector<256x512xbf16>, vector<2x512xf32> -> vector<2x512xf32>
    %c0_16 = arith.constant 0 : index
    %c0_17 = arith.constant 0 : index
    %32 = vector.load %arg6[%c0_16, %c0_17] : memref<1x512xf32, #tpu.memory_space<vmem>>, vector<1x512xf32>
    %c0_18 = arith.constant 0 : index
    %c0_19 = arith.constant 0 : index
    %33 = vector.load %arg7[%c0_18, %c0_19] : memref<1x512xf32, #tpu.memory_space<vmem>>, vector<1x512xf32>
    %cst_20 = arith.constant dense<0.000000e+00> : vector<512xf32>
    %34 = vector.multi_reduction <add>, %31, %cst_20 [0] : vector<2x512xf32> to vector<512xf32>
    %35 = vector.shape_cast %34 : vector<512xf32> to vector<1x512xf32>
    %cst_21 = arith.constant 2.000000e+00 : f32
    %36 = vector.broadcast %cst_21 : f32 to vector<1x512xf32>
    %37 = arith.divf %35, %36 : vector<1x512xf32>
    %38 = vector.broadcast %37 : vector<1x512xf32> to vector<2x512xf32>
    %39 = arith.subf %31, %38 : vector<2x512xf32>
    %40 = arith.mulf %39, %39 : vector<2x512xf32>
    %cst_22 = arith.constant dense<0.000000e+00> : vector<512xf32>
    %41 = vector.multi_reduction <add>, %40, %cst_22 [0] : vector<2x512xf32> to vector<512xf32>
    %42 = vector.shape_cast %41 : vector<512xf32> to vector<1x512xf32>
    %cst_23 = arith.constant 2.000000e+00 : f32
    %43 = vector.broadcast %cst_23 : f32 to vector<1x512xf32>
    %44 = arith.divf %42, %43 : vector<1x512xf32>
    %45 = vector.broadcast %37 : vector<1x512xf32> to vector<2x512xf32>
    %46 = arith.subf %31, %45 : vector<2x512xf32>
    %cst_24 = arith.constant 9.99999974E-6 : f32
    %47 = vector.broadcast %cst_24 : f32 to vector<1x512xf32>
    %48 = arith.addf %44, %47 : vector<1x512xf32>
    %49 = math.rsqrt %48 : vector<1x512xf32>
    %50 = vector.broadcast %49 : vector<1x512xf32> to vector<2x512xf32>
    %51 = arith.mulf %46, %50 : vector<2x512xf32>
    %52 = vector.broadcast %32 : vector<1x512xf32> to vector<2x512xf32>
    %53 = arith.mulf %51, %52 : vector<2x512xf32>
    %54 = vector.broadcast %33 : vector<1x512xf32> to vector<2x512xf32>
    %55 = arith.addf %53, %54 : vector<2x512xf32>
    %cst_25 = arith.constant 0.000000e+00 : f32
    %56 = vector.broadcast %cst_25 : f32 to vector<2x512xf32>
    %57 = arith.maximumf %55, %56 : vector<2x512xf32>
    %58 = arith.truncf %57 : vector<2x512xf32> to vector<2x512xbf16>
    %c0_26 = arith.constant 0 : index
    %c0_27 = arith.constant 0 : index
    %59 = vector.load %arg8[%c0_26, %c0_27] : memref<512x1024xbf16, #tpu.memory_space<vmem>>, vector<512x1024xbf16>
    %cst_28 = arith.constant dense<0.000000e+00> : vector<2x1024xf32>
    %60 = tpu.matmul %58, %59, %cst_28 {dimension_numbers = #tpu.dot_dimension_numbers<[1], [0], [0], [1], [0, 0, 1, 1], [], []>} : vector<2x512xbf16>, vector<512x1024xbf16>, vector<2x1024xf32> -> vector<2x1024xf32>
    %c0_29 = arith.constant 0 : index
    %c0_30 = arith.constant 0 : index
    %61 = vector.load %arg9[%c0_29, %c0_30] : memref<1x1024xf32, #tpu.memory_space<vmem>>, vector<1x1024xf32>
    %c0_31 = arith.constant 0 : index
    %c0_32 = arith.constant 0 : index
    %62 = vector.load %arg10[%c0_31, %c0_32] : memref<1x1024xf32, #tpu.memory_space<vmem>>, vector<1x1024xf32>
    %cst_33 = arith.constant dense<0.000000e+00> : vector<1024xf32>
    %63 = vector.multi_reduction <add>, %60, %cst_33 [0] : vector<2x1024xf32> to vector<1024xf32>
    %64 = vector.shape_cast %63 : vector<1024xf32> to vector<1x1024xf32>
    %cst_34 = arith.constant 2.000000e+00 : f32
    %65 = vector.broadcast %cst_34 : f32 to vector<1x1024xf32>
    %66 = arith.divf %64, %65 : vector<1x1024xf32>
    %67 = vector.broadcast %66 : vector<1x1024xf32> to vector<2x1024xf32>
    %68 = arith.subf %60, %67 : vector<2x1024xf32>
    %69 = arith.mulf %68, %68 : vector<2x1024xf32>
    %cst_35 = arith.constant dense<0.000000e+00> : vector<1024xf32>
    %70 = vector.multi_reduction <add>, %69, %cst_35 [0] : vector<2x1024xf32> to vector<1024xf32>
    %71 = vector.shape_cast %70 : vector<1024xf32> to vector<1x1024xf32>
    %cst_36 = arith.constant 2.000000e+00 : f32
    %72 = vector.broadcast %cst_36 : f32 to vector<1x1024xf32>
    %73 = arith.divf %71, %72 : vector<1x1024xf32>
    %74 = vector.broadcast %66 : vector<1x1024xf32> to vector<2x1024xf32>
    %75 = arith.subf %60, %74 : vector<2x1024xf32>
    %cst_37 = arith.constant 9.99999974E-6 : f32
    %76 = vector.broadcast %cst_37 : f32 to vector<1x1024xf32>
    %77 = arith.addf %73, %76 : vector<1x1024xf32>
    %78 = math.rsqrt %77 : vector<1x1024xf32>
    %79 = vector.broadcast %78 : vector<1x1024xf32> to vector<2x1024xf32>
    %80 = arith.mulf %75, %79 : vector<2x1024xf32>
    %81 = vector.broadcast %61 : vector<1x1024xf32> to vector<2x1024xf32>
    %82 = arith.mulf %80, %81 : vector<2x1024xf32>
    %83 = vector.broadcast %62 : vector<1x1024xf32> to vector<2x1024xf32>
    %84 = arith.addf %82, %83 : vector<2x1024xf32>
    %cst_38 = arith.constant 0.000000e+00 : f32
    %85 = vector.broadcast %cst_38 : f32 to vector<2x1024xf32>
    %86 = arith.maximumf %84, %85 : vector<2x1024xf32>
    %87 = arith.truncf %86 : vector<2x1024xf32> to vector<2x1024xbf16>
    %c0_39 = arith.constant 0 : index
    %c0_40 = arith.constant 0 : index
    %88 = vector.load %arg11[%c0_39, %c0_40] : memref<1024x1024xbf16, #tpu.memory_space<vmem>>, vector<1024x1024xbf16>
    %cst_41 = arith.constant dense<0.000000e+00> : vector<2x1024xf32>
    %89 = tpu.matmul %87, %88, %cst_41 {dimension_numbers = #tpu.dot_dimension_numbers<[1], [0], [0], [1], [0, 0, 1, 1], [], []>} : vector<2x1024xbf16>, vector<1024x1024xbf16>, vector<2x1024xf32> -> vector<2x1024xf32>
    %c0_42 = arith.constant 0 : index
    %c0_43 = arith.constant 0 : index
    %90 = vector.load %arg12[%c0_42, %c0_43] : memref<1x1024xf32, #tpu.memory_space<vmem>>, vector<1x1024xf32>
    %c0_44 = arith.constant 0 : index
    %c0_45 = arith.constant 0 : index
    %91 = vector.load %arg13[%c0_44, %c0_45] : memref<1x1024xf32, #tpu.memory_space<vmem>>, vector<1x1024xf32>
    %cst_46 = arith.constant dense<0.000000e+00> : vector<1024xf32>
    %92 = vector.multi_reduction <add>, %89, %cst_46 [0] : vector<2x1024xf32> to vector<1024xf32>
    %93 = vector.shape_cast %92 : vector<1024xf32> to vector<1x1024xf32>
    %cst_47 = arith.constant 2.000000e+00 : f32
    %94 = vector.broadcast %cst_47 : f32 to vector<1x1024xf32>
    %95 = arith.divf %93, %94 : vector<1x1024xf32>
    %96 = vector.broadcast %95 : vector<1x1024xf32> to vector<2x1024xf32>
    %97 = arith.subf %89, %96 : vector<2x1024xf32>
    %98 = arith.mulf %97, %97 : vector<2x1024xf32>
    %cst_48 = arith.constant dense<0.000000e+00> : vector<1024xf32>
    %99 = vector.multi_reduction <add>, %98, %cst_48 [0] : vector<2x1024xf32> to vector<1024xf32>
    %100 = vector.shape_cast %99 : vector<1024xf32> to vector<1x1024xf32>
    %cst_49 = arith.constant 2.000000e+00 : f32
    %101 = vector.broadcast %cst_49 : f32 to vector<1x1024xf32>
    %102 = arith.divf %100, %101 : vector<1x1024xf32>
    %103 = vector.broadcast %95 : vector<1x1024xf32> to vector<2x1024xf32>
    %104 = arith.subf %89, %103 : vector<2x1024xf32>
    %cst_50 = arith.constant 9.99999974E-6 : f32
    %105 = vector.broadcast %cst_50 : f32 to vector<1x1024xf32>
    %106 = arith.addf %102, %105 : vector<1x1024xf32>
    %107 = math.rsqrt %106 : vector<1x1024xf32>
    %108 = vector.broadcast %107 : vector<1x1024xf32> to vector<2x1024xf32>
    %109 = arith.mulf %104, %108 : vector<2x1024xf32>
    %110 = vector.broadcast %90 : vector<1x1024xf32> to vector<2x1024xf32>
    %111 = arith.mulf %109, %110 : vector<2x1024xf32>
    %112 = vector.broadcast %91 : vector<1x1024xf32> to vector<2x1024xf32>
    %113 = arith.addf %111, %112 : vector<2x1024xf32>
    %cst_51 = arith.constant 0.000000e+00 : f32
    %114 = vector.broadcast %cst_51 : f32 to vector<2x1024xf32>
    %115 = arith.maximumf %113, %114 : vector<2x1024xf32>
    %116 = arith.truncf %115 : vector<2x1024xf32> to vector<2x1024xbf16>
    %c0_52 = arith.constant 0 : index
    %c0_53 = arith.constant 0 : index
    %117 = vector.load %arg14[%c0_52, %c0_53] : memref<1024x24xbf16, #tpu.memory_space<vmem>>, vector<1024x24xbf16>
    %cst_54 = arith.constant dense<0.000000e+00> : vector<2x24xf32>
    %118 = tpu.matmul %116, %117, %cst_54 {dimension_numbers = #tpu.dot_dimension_numbers<[1], [0], [0], [1], [0, 0, 1, 1], [], []>} : vector<2x1024xbf16>, vector<1024x24xbf16>, vector<2x24xf32> -> vector<2x24xf32>
    %c0_55 = arith.constant 0 : index
    %c0_56 = arith.constant 0 : index
    %119 = vector.load %arg15[%c0_55, %c0_56] : memref<1x24xf32, #tpu.memory_space<vmem>>, vector<1x24xf32>
    %120 = vector.broadcast %119 : vector<1x24xf32> to vector<2x24xf32>
    %121 = arith.addf %118, %120 : vector<2x24xf32>
    %122 = math.tanh %121 : vector<2x24xf32>
    %c0_57 = arith.constant 0 : index
    %c0_58 = arith.constant 0 : index
    %123 = vector.load %arg16[%c0_57, %c0_58] : memref<2x24xf32, #tpu.memory_space<vmem>>, vector<2x24xf32>
    tpu.vector_store %arg16[%c0_57, %c0_58], %122 {strides = array<i32>} : memref<2x24xf32, #tpu.memory_space<vmem>>, vector<2x24xf32>,
    return
  }
  func.func @transform_0(%arg0: i32) -> (i32, i32) {
    %c0_i32 = arith.constant 0 : i32
    %c0_i32_0 = arith.constant 0 : i32
    %c0_i32_1 = arith.constant 0 : i32
    return %c0_i32, %c0_i32_0 : i32, i32
  }
  func.func @transform_1(%arg0: i32) -> (i32, i32) {
    %c0_i32 = arith.constant 0 : i32
    %c0_i32_0 = arith.constant 0 : i32
    %c0_i32_1 = arith.constant 0 : i32
    return %c0_i32, %c0_i32_0 : i32, i32
  }
  func.func @transform_2(%arg0: i32) -> (i32, i32) {
    %c0_i32 = arith.constant 0 : i32
    %c0_i32_0 = arith.constant 0 : i32
    %c0_i32_1 = arith.constant 0 : i32
    return %c0_i32, %c0_i32_0 : i32, i32
  }
  func.func @transform_3(%arg0: i32) -> (i32, i32) {
    %c0_i32 = arith.constant 0 : i32
    %c0_i32_0 = arith.constant 0 : i32
    %c0_i32_1 = arith.constant 0 : i32
    return %c0_i32, %c0_i32_0 : i32, i32
  }
  func.func @transform_4(%arg0: i32) -> (i32, i32) {
    %c0_i32 = arith.constant 0 : i32
    %c0_i32_0 = arith.constant 0 : i32
    %c0_i32_1 = arith.constant 0 : i32
    return %c0_i32, %c0_i32_0 : i32, i32
  }
  func.func @transform_5(%arg0: i32) -> (i32, i32) {
    %c0_i32 = arith.constant 0 : i32
    %c0_i32_0 = arith.constant 0 : i32
    %c0_i32_1 = arith.constant 0 : i32
    return %c0_i32, %c0_i32_0 : i32, i32
  }
  func.func @transform_6(%arg0: i32) -> (i32, i32) {
    %c0_i32 = arith.constant 0 : i32
    %c0_i32_0 = arith.constant 0 : i32
    %c0_i32_1 = arith.constant 0 : i32
    return %c0_i32, %c0_i32_0 : i32, i32
  }
  func.func @transform_7(%arg0: i32) -> (i32, i32) {
    %c0_i32 = arith.constant 0 : i32
    %c0_i32_0 = arith.constant 0 : i32
    %c0_i32_1 = arith.constant 0 : i32
    return %c0_i32, %c0_i32_0 : i32, i32
  }
  func.func @transform_8(%arg0: i32) -> (i32, i32) {
    %c0_i32 = arith.constant 0 : i32
    %c0_i32_0 = arith.constant 0 : i32
    %c0_i32_1 = arith.constant 0 : i32
    return %c0_i32, %c0_i32_0 : i32, i32
  }
  func.func @transform_9(%arg0: i32) -> (i32, i32) {
    %c0_i32 = arith.constant 0 : i32
    %c0_i32_0 = arith.constant 0 : i32
    %c0_i32_1 = arith.constant 0 : i32
    return %c0_i32, %c0_i32_0 : i32, i32
  }
  func.func @transform_10(%arg0: i32) -> (i32, i32) {
    %c0_i32 = arith.constant 0 : i32
    %c0_i32_0 = arith.constant 0 : i32
    %c0_i32_1 = arith.constant 0 : i32
    return %c0_i32, %c0_i32_0 : i32, i32
  }
  func.func @transform_11(%arg0: i32) -> (i32, i32) {
    %c0_i32 = arith.constant 0 : i32
    %c0_i32_0 = arith.constant 0 : i32
    %c0_i32_1 = arith.constant 0 : i32
    return %c0_i32, %c0_i32_0 : i32, i32
  }
  func.func @transform_12(%arg0: i32) -> (i32, i32) {
    %c0_i32 = arith.constant 0 : i32
    %c0_i32_0 = arith.constant 0 : i32
    %c0_i32_1 = arith.constant 0 : i32
    return %c0_i32, %c0_i32_0 : i32, i32
  }
  func.func @transform_13(%arg0: i32) -> (i32, i32) {
    %c0_i32 = arith.constant 0 : i32
    %c0_i32_0 = arith.constant 0 : i32
    %c0_i32_1 = arith.constant 0 : i32
    return %c0_i32, %c0_i32_0 : i32, i32
  }
  func.func @transform_14(%arg0: i32) -> (i32, i32) {
    %c0_i32 = arith.constant 0 : i32
    %c0_i32_0 = arith.constant 0 : i32
    %c0_i32_1 = arith.constant 0 : i32
    return %c0_i32, %c0_i32_0 : i32, i32
  }
  func.func @transform_15(%arg0: i32) -> (i32, i32) {
    %c0_i32 = arith.constant 0 : i32
    %c0_i32_0 = arith.constant 0 : i32
    %c0_i32_1 = arith.constant 0 : i32
    return %c0_i32, %c0_i32_0 : i32, i32
  }
}

module attributes {stable_mosaic.version = 11 : i64} {
  func.func @_conv_bn_relu_kernel(%arg0: i32, %arg1: memref<8x1600xbf16, #tpu.memory_space<vmem>>, %arg2: memref<1600x128xbf16, #tpu.memory_space<vmem>>, %arg3: memref<1x128xf32, #tpu.memory_space<vmem>>, %arg4: memref<1x128xf32, #tpu.memory_space<vmem>>, %arg5: memref<8x128xbf16, #tpu.memory_space<vmem>>) attributes {dimension_semantics = [#tpu.dimension_semantics<arbitrary>], iteration_bounds = array<i64: 1>, scalar_prefetch = 0 : i64, scratch_operands = 0 : i64, tpu.core_type = #tpu.core_type<tc>, window_params = [{pipeline_mode = #tpu.pipeline_mode<synchronous>, transform_indices = @transform_0, window_bounds = array<i64: 8, 1600>}, {pipeline_mode = #tpu.pipeline_mode<synchronous>, transform_indices = @transform_1, window_bounds = array<i64: 1600, 128>}, {pipeline_mode = #tpu.pipeline_mode<synchronous>, transform_indices = @transform_2, window_bounds = array<i64: 1, 128>}, {pipeline_mode = #tpu.pipeline_mode<synchronous>, transform_indices = @transform_3, window_bounds = array<i64: 1, 128>}, {pipeline_mode = #tpu.pipeline_mode<synchronous>, transform_indices = @transform_4, window_bounds = array<i64: 8, 128>}]} {
    %c0 = arith.constant 0 : index
    %c0_0 = arith.constant 0 : index
    %0 = vector.load %arg1[%c0, %c0_0] : memref<8x1600xbf16, #tpu.memory_space<vmem>>, vector<8x1600xbf16>
    %c0_1 = arith.constant 0 : index
    %c0_2 = arith.constant 0 : index
    %1 = vector.load %arg2[%c0_1, %c0_2] : memref<1600x128xbf16, #tpu.memory_space<vmem>>, vector<1600x128xbf16>
    %cst = arith.constant dense<0.000000e+00> : vector<8x128xf32>
    %2 = tpu.matmul %0, %1, %cst {dimension_numbers = #tpu.dot_dimension_numbers<[1], [0], [0], [1], [0, 0, 1, 1], [], []>} : vector<8x1600xbf16>, vector<1600x128xbf16>, vector<8x128xf32> -> vector<8x128xf32>
    %c0_3 = arith.constant 0 : index
    %c0_4 = arith.constant 0 : index
    %3 = vector.load %arg3[%c0_3, %c0_4] : memref<1x128xf32, #tpu.memory_space<vmem>>, vector<1x128xf32>
    %c0_5 = arith.constant 0 : index
    %c0_6 = arith.constant 0 : index
    %4 = vector.load %arg4[%c0_5, %c0_6] : memref<1x128xf32, #tpu.memory_space<vmem>>, vector<1x128xf32>
    %cst_7 = arith.constant dense<0.000000e+00> : vector<128xf32>
    %5 = vector.multi_reduction <add>, %2, %cst_7 [0] : vector<8x128xf32> to vector<128xf32>
    %6 = vector.shape_cast %5 : vector<128xf32> to vector<1x128xf32>
    %cst_8 = arith.constant 8.000000e+00 : f32
    %7 = vector.broadcast %cst_8 : f32 to vector<1x128xf32>
    %8 = arith.divf %6, %7 : vector<1x128xf32>
    %9 = vector.broadcast %8 : vector<1x128xf32> to vector<8x128xf32>
    %10 = arith.subf %2, %9 : vector<8x128xf32>
    %11 = arith.mulf %10, %10 : vector<8x128xf32>
    %cst_9 = arith.constant dense<0.000000e+00> : vector<128xf32>
    %12 = vector.multi_reduction <add>, %11, %cst_9 [0] : vector<8x128xf32> to vector<128xf32>
    %13 = vector.shape_cast %12 : vector<128xf32> to vector<1x128xf32>
    %cst_10 = arith.constant 8.000000e+00 : f32
    %14 = vector.broadcast %cst_10 : f32 to vector<1x128xf32>
    %15 = arith.divf %13, %14 : vector<1x128xf32>
    %16 = vector.broadcast %8 : vector<1x128xf32> to vector<8x128xf32>
    %17 = arith.subf %2, %16 : vector<8x128xf32>
    %cst_11 = arith.constant 9.99999974E-6 : f32
    %18 = vector.broadcast %cst_11 : f32 to vector<1x128xf32>
    %19 = arith.addf %15, %18 : vector<1x128xf32>
    %20 = math.rsqrt %19 : vector<1x128xf32>
    %21 = vector.broadcast %20 : vector<1x128xf32> to vector<8x128xf32>
    %22 = arith.mulf %17, %21 : vector<8x128xf32>
    %23 = vector.broadcast %3 : vector<1x128xf32> to vector<8x128xf32>
    %24 = arith.mulf %22, %23 : vector<8x128xf32>
    %25 = vector.broadcast %4 : vector<1x128xf32> to vector<8x128xf32>
    %26 = arith.addf %24, %25 : vector<8x128xf32>
    %cst_12 = arith.constant 0.000000e+00 : f32
    %27 = vector.broadcast %cst_12 : f32 to vector<8x128xf32>
    %28 = arith.maximumf %26, %27 : vector<8x128xf32>
    %29 = arith.truncf %28 : vector<8x128xf32> to vector<8x128xbf16>
    %c0_13 = arith.constant 0 : index
    %c0_14 = arith.constant 0 : index
    %30 = vector.load %arg5[%c0_13, %c0_14] : memref<8x128xbf16, #tpu.memory_space<vmem>>, vector<8x128xbf16>
    tpu.vector_store %arg5[%c0_13, %c0_14], %29 {strides = array<i32>} : memref<8x128xbf16, #tpu.memory_space<vmem>>, vector<8x128xbf16>,
    return
  }
  func.func @transform_0(%arg0: i32) -> (i32, i32) {
    %c0_i32 = arith.constant 0 : i32
    %c0_i32_0 = arith.constant 0 : i32
    %c0_i32_1 = arith.constant 0 : i32
    return %c0_i32, %c0_i32_0 : i32, i32
  }
  func.func @transform_1(%arg0: i32) -> (i32, i32) {
    %c0_i32 = arith.constant 0 : i32
    %c0_i32_0 = arith.constant 0 : i32
    %c0_i32_1 = arith.constant 0 : i32
    return %c0_i32, %c0_i32_0 : i32, i32
  }
  func.func @transform_2(%arg0: i32) -> (i32, i32) {
    %c0_i32 = arith.constant 0 : i32
    %c0_i32_0 = arith.constant 0 : i32
    %c0_i32_1 = arith.constant 0 : i32
    return %c0_i32, %c0_i32_0 : i32, i32
  }
  func.func @transform_3(%arg0: i32) -> (i32, i32) {
    %c0_i32 = arith.constant 0 : i32
    %c0_i32_0 = arith.constant 0 : i32
    %c0_i32_1 = arith.constant 0 : i32
    return %c0_i32, %c0_i32_0 : i32, i32
  }
  func.func @transform_4(%arg0: i32) -> (i32, i32) {
    %c0_i32 = arith.constant 0 : i32
    %c0_i32_0 = arith.constant 0 : i32
    %c0_i32_1 = arith.constant 0 : i32
    return %c0_i32, %c0_i32_0 : i32, i32
  }
}

</mosaic_0001>

<bundles_post_ra>
// kernel: shape_encoder_forward.4
= control target key start
LH: loop header
LB: loop body
LE: loop exit
PB: predicated region body
PF: predicated region fallthrough
CT: control target
= control target key end

     0   :  { %vm126_vm0 = vcmask 818176   ;;  %vm151_vm1 = vcmask 1041408   ;;  %vm254_vm2 = vcmask 261120   ;;  %vm506_vm3 = vcmask 257024   ;;  %s926_s1 = inlined_call_operand.vmem [shape: bf16[100,32], index: 1, kind: input, shape index: {}]   ;;  %s927_s0 = inlined_call_operand.vmem [shape: bf16[128,100], index: 0, kind: input, shape index: {}]   ;;  %s928_s2 = inlined_call_operand.vmem [shape: f32[1,32], index: 2, kind: input, shape index: {}]   ;;  %s929_s3 = inlined_call_operand.vmem [shape: f32[1,32], index: 3, kind: input, shape index: {}]   ;;  %s930_s4 = inlined_call_operand.vmem [shape: bf16[128,32], index: 4, kind: output, shape index: {}]  }
   0x1   :  { %v645_v0 = vld [vmem:[%s926_s1] sm:$0xff]   ;;  %v646_v1 = vld [vmem:[%s926_s1 + $0x8] sm:$0xff]   ;;  %v647_v2 = vld [vmem:[%s926_s1 + $0x10] sm:$0xff]  }
   0x2   :  { %599 = vmatprep.subr.bf16.mxu0 %v645_v0  ;;  %629 = vmatprep.subr.bf16.mxu1 %v645_v0  ;;  %v652_v3 = vld [vmem:[%s927_s0] sm:$0xff]   ;;  %v648_v4 = vld [vmem:[%s926_s1 + $0x18] sm:$0xff]   ;;  %v650_v7 = vld [vmem:[%s926_s1 + $0x28] sm:$0xff]  }
   0x3   :  { %600 = vmatpush3.bf16.msra.mxu0 %v645_v0  ;;  %636 = vmatpush3.bf16.msra.mxu1 %v645_v0  ;;  %v656_v5 = vld [vmem:[%s927_s0 + $0x20] sm:$0xff]   ;;  %v651_v8 = vld [vmem:[%s926_s1 + $0x30] ss:$0 sps:$4 sm:$0x33]   ;;  %v653_v10 = vld [vmem:[%s927_s0 + $0x8] sm:$0xff]  }
   0x4   :  { %601 = vmatprep.subr.bf16.mxu0 %v646_v1  ;;  %630 = vmatprep.subr.bf16.mxu1 %v646_v1  ;;  %v649_v6 = vld [vmem:[%s926_s1 + $0x20] sm:$0xff]   ;;  %v153_v9 = vsel %vm151_vm1, %v651_v8, 0  ;;  %v657_v11 = vld [vmem:[%s927_s0 + $0x28] sm:$0xff]   ;;  %v654_v12 = vld [vmem:[%s927_s0 + $0x10] sm:$0xff]  }
   0x5   :  { %613 = vmatprep.mubr.msk.bf16.mxu0 %vm126_vm0, %v652_v3  ;;  %621 = vmatprep.mubr.msk.bf16.mxu1 %vm126_vm0, %v656_v5  ;;  %v658_v13 = vld [vmem:[%s927_s0 + $0x30] sm:$0xff]   ;;  %v655_v14 = vld [vmem:[%s927_s0 + $0x18] sm:$0xff]  }
   0x6   :  { %v659_v15 = vld [vmem:[%s927_s0 + $0x38] sm:$0xff]  }
   0x7   :  { %602 = vmatpush3.bf16.msra.mxu0 %v646_v1  ;;  %637 = vmatpush3.bf16.msra.mxu1 %v646_v1 }
   0x8   :  { %603 = vmatprep.subr.bf16.mxu0 %v647_v2  ;;  %631 = vmatprep.subr.bf16.mxu1 %v647_v2 }
   0xb   :  { %604 = vmatpush3.bf16.msra.mxu0 %v647_v2  ;;  %638 = vmatpush3.bf16.msra.mxu1 %v647_v2 }
   0xc   :  { %605 = vmatprep.subr.bf16.mxu0 %v648_v4  ;;  %632 = vmatprep.subr.bf16.mxu1 %v648_v4 }
   0xf   :  { %606 = vmatpush3.bf16.msra.mxu0 %v648_v4  ;;  %639 = vmatpush3.bf16.msra.mxu1 %v648_v4 }
  0x10   :  { %607 = vmatprep.subr.bf16.mxu0 %v649_v6  ;;  %633 = vmatprep.subr.bf16.mxu1 %v649_v6 }
  0x13   :  { %608 = vmatpush3.bf16.msra.mxu0 %v649_v6  ;;  %640 = vmatpush3.bf16.msra.mxu1 %v649_v6 }
  0x14   :  { %609 = vmatprep.subr.bf16.mxu0 %v650_v7  ;;  %634 = vmatprep.subr.bf16.mxu1 %v650_v7 }
  0x17   :  { %610 = vmatpush3.bf16.msra.mxu0 %v650_v7  ;;  %641 = vmatpush3.bf16.msra.mxu1 %v650_v7 }
  0x18   :  { %643 = vmatprep.subr.msk.bf16.mxu0 %vm151_vm1, %v651_v8  ;;  %644 = vmatprep.subr.msk.bf16.mxu1 %vm151_vm1, %v651_v8 }
  0x1b   :  { %612 = vmatpush3.bf16.msra.mxu0 %v153_v9  ;;  %642 = vmatpush3.bf16.msra.mxu1 %v153_v9 }
  0x1e   :  { %614 = vmatmul.mubr.msk.bf16.vlgmr.msra.gmra.mrb[0].mxu0 %vm126_vm0, %v653_v10  ;;  %622 = vmatmul.mubr.msk.bf16.vlgmr.msra.gmra.mrb[0].mxu1 %vm126_vm0, %v657_v11 }
  0x1f   :  { %617 = vmatprep.mubr.msk.bf16.mxu0 %vm126_vm0, %v654_v12  ;;  %625 = vmatprep.mubr.msk.bf16.mxu1 %vm126_vm0, %v658_v13 }
  0x26   :  { %618 = vmatmul.mubr.msk.bf16.gmra.mrb[4].mxu0 %vm126_vm0, %v655_v14  ;;  %626 = vmatmul.mubr.msk.bf16.gmra.mrb[4].mxu1 %vm126_vm0, %v659_v15 }
  0xf1   :  { %v615_v16 = vpop.f32.mrb[0].mxu0  ;;  %v740_v17 = vpop.f32.mrb[0].mxu1 }
  0xf2   :  { %v189_v18 = vpop.f32.mrb[1].mxu0  ;;  %v221_v19 = vpop.f32.mrb[1].mxu1  ;;  %v258_v27 = vsel %vm254_vm2, %v615_v16, 0.0  ;;  %v274_v51 = vsel %vm254_vm2, %v740_v17, 0.0 }
  0xf3   :  { %v616_v20 = vpop.f32.mrb[2].mxu0  ;;  %v624_v21 = vpop.f32.mrb[2].mxu1  ;;  %v255_v24 = vsel %vm254_vm2, %v189_v18, 0.0  ;;  %v270_v46 = vsel %vm254_vm2, %v221_v19, 0.0 }
  0xf4   :  { %v192_v22 = vpop.f32.mrb[3].mxu0  ;;  %v224_v23 = vpop.f32.mrb[3].mxu1  ;;  %v260_v29 = vsel %vm254_vm2, %v616_v20, 0.0  ;;  %v276_v53 = vsel %vm254_vm2, %v624_v21, 0.0 }
  0xf5   :  { %v256_v25 = vsel %vm254_vm2, %v192_v22, 0.0  ;;  %v272_v49 = vsel %vm254_vm2, %v224_v23, 0.0 }
  0xf6   :  { %v257_v26 = vadd.f32 %v256_v25, %v255_v24 }
  0xf8   :  { %v259_v28 = vadd.f32 %v258_v27, %v257_v26 }
  0xf9   :  { %v619_v30 = vpop.f32.mrb[4].mxu0  ;;  %v627_v31 = vpop.f32.mrb[4].mxu1 }
  0xfa   :  { %v205_v32 = vpop.f32.mrb[5].mxu0  ;;  %v261_v33 = vadd.f32 %v260_v29, %v259_v28  ;;  %v237_v34 = vpop.f32.mrb[5].mxu1  ;;  %v266_v43 = vsel %vm254_vm2, %v619_v30, 0.0  ;;  %v282_v59 = vsel %vm254_vm2, %v627_v31, 0.0 }
  0xfb   :  { %v262_v35 = vsel %vm254_vm2, %v205_v32, 0.0  ;;  %v620_v36 = vpop.f32.mrb[6].mxu0  ;;  %v628_v37 = vpop.f32.mrb[6].mxu1  ;;  %v278_v54 = vsel %vm254_vm2, %v237_v34, 0.0 }
  0xfc   :  { %v263_v38 = vadd.f32 %v262_v35, %v261_v33  ;;  %v208_v39 = vpop.f32.mrb[7].mxu0  ;;  %v240_v40 = vpop.f32.mrb[7].mxu1  ;;  %v268_v45 = vsel %vm254_vm2, %v620_v36, 0.0  ;;  %v284_v61 = vsel %vm254_vm2, %v628_v37, 0.0 }
  0xfd   :  { %v264_v41 = vsel %vm254_vm2, %v208_v39, 0.0  ;;  %v280_v57 = vsel %vm254_vm2, %v240_v40, 0.0 }
  0xfe   :  { %v265_v42 = vadd.f32 %v264_v41, %v263_v38 }
 0x100   :  { %v267_v44 = vadd.f32 %v266_v43, %v265_v42 }
 0x102   :  { %v269_v47 = vadd.f32 %v268_v45, %v267_v44 }
 0x104   :  { %v271_v48 = vadd.f32 %v270_v46, %v269_v47 }
 0x106   :  { %v273_v50 = vadd.f32 %v272_v49, %v271_v48 }
 0x108   :  { %v275_v52 = vadd.f32 %v274_v51, %v273_v50 }
 0x10a   :  { %v277_v55 = vadd.f32 %v276_v53, %v275_v52 }
 0x10c   :  { %v279_v56 = vadd.f32 %v278_v54, %v277_v55 }
 0x10e   :  { %v281_v58 = vadd.f32 %v280_v57, %v279_v56 }
 0x110   :  { %v283_v60 = vadd.f32 %v282_v59, %v281_v58 }
 0x112   :  { %v285_v62 = vadd.f32 %v284_v61, %v283_v60 }
 0x114   :  { %v286_v63 = vrot.slane %v285_v62, 4 }
 0x116   :  { %v287_v0 = vadd.f32 %v286_v63, %v285_v62 }
 0x118   :  { %v288_v1 = vrot.slane %v287_v0, 2 }
 0x11a   :  { %v289_v2 = vadd.f32 %v288_v1, %v287_v0 }
 0x11c   :  { %v290_v3 = vrot.slane %v289_v2, 1 }
 0x11e   :  { %v291_v4 = vadd.f32 %v290_v3, %v289_v2 }
 0x120   :  { %v293_v5 = vmul.f32 0.0078125, %v291_v4 }
 0x122   :  { %v759_v6 = vsub.f32 %v189_v18, %v293_v5  ;;  %v761_v7 = vsub.f32 %v192_v22, %v293_v5  ;;  %v763_v8 = vsub.f32 %v615_v16, %v293_v5  ;;  %v765_v9 = vsub.f32 %v616_v20, %v293_v5 }
 0x123   :  { %v767_v10 = vsub.f32 %v205_v32, %v293_v5  ;;  %v769_v11 = vsub.f32 %v208_v39, %v293_v5  ;;  %v771_v12 = vsub.f32 %v619_v30, %v293_v5  ;;  %v773_v13 = vsub.f32 %v620_v36, %v293_v5 }
 0x124   :  { %v775_v14 = vsub.f32 %v221_v19, %v293_v5  ;;  %v777_v15 = vsub.f32 %v224_v23, %v293_v5  ;;  %v780_v18 = vsub.f32 %v740_v17, %v293_v5  ;;  %v782_v22 = vsub.f32 %v624_v21, %v293_v5 }
 0x125   :  { %v784_v16 = vsub.f32 %v237_v34, %v293_v5  ;;  %v786_v20 = vsub.f32 %v240_v40, %v293_v5  ;;  %v788_v24 = vsub.f32 %v627_v31, %v293_v5  ;;  %v790_v25 = vsub.f32 %v628_v37, %v293_v5 }
 0x126   :  { %v310_v26 = vmul.f32 %v759_v6, %v759_v6  ;;  %v311_v19 = vmul.f32 %v761_v7, %v761_v7  ;;  %v312_v17 = vmul.f32 %v763_v8, %v763_v8  ;;  %v319_v21 = vmul.f32 %v777_v15, %v777_v15 }
 0x127   :  { %v320_v23 = vmul.f32 %v780_v18, %v780_v18  ;;  %v313_v27 = vmul.f32 %v765_v9, %v765_v9  ;;  %v321_v28 = vmul.f32 %v782_v22, %v782_v22  ;;  %v322_v29 = vmul.f32 %v784_v16, %v784_v16 }
 0x128   :  { %v323_v30 = vmul.f32 %v786_v20, %v786_v20  ;;  %v324_v31 = vmul.f32 %v788_v24, %v788_v24  ;;  %v325_v32 = vmul.f32 %v790_v25, %v790_v25  ;;  %v326_v33 = vsel %vm254_vm2, %v310_v26, 0.0 }
 0x129   :  { %v327_v34 = vsel %vm254_vm2, %v311_v19, 0.0  ;;  %v314_v36 = vmul.f32 %v767_v10, %v767_v10  ;;  %v329_v37 = vsel %vm254_vm2, %v312_v17, 0.0  ;;  %v343_v38 = vsel %vm254_vm2, %v319_v21, 0.0 }
 0x12a   :  { %v328_v35 = vadd.f32 %v327_v34, %v326_v33  ;;  %v345_v39 = vsel %vm254_vm2, %v320_v23, 0.0  ;;  %v347_v41 = vsel %vm254_vm2, %v321_v28, 0.0  ;;  %v349_v42 = vsel %vm254_vm2, %v322_v29, 0.0  ;;  %v550_v34 = vld [vmem:[%s928_s2] ss:$0 sm:$0xff] }
 0x12b   :  { %v351_v43 = vsel %vm254_vm2, %v323_v30, 0.0  ;;  %v315_v44 = vmul.f32 %v769_v11, %v769_v11  ;;  %v331_v45 = vsel %vm254_vm2, %v313_v27, 0.0  ;;  %v353_v46 = vsel %vm254_vm2, %v324_v31, 0.0 }
 0x12c   :  { %v330_v40 = vadd.f32 %v329_v37, %v328_v35  ;;  %v355_v47 = vsel %vm254_vm2, %v325_v32, 0.0  ;;  %v316_v49 = vmul.f32 %v771_v12, %v771_v12  ;;  %v333_v50 = vsel %vm254_vm2, %v314_v36, 0.0 }
 0x12d   :  { %v317_v52 = vmul.f32 %v773_v13, %v773_v13  ;;  %v335_v53 = vsel %vm254_vm2, %v315_v44, 0.0  ;;  %v318_v55 = vmul.f32 %v775_v14, %v775_v14 }
 0x12e   :  { %v332_v48 = vadd.f32 %v331_v45, %v330_v40  ;;  %v337_v56 = vsel %vm254_vm2, %v316_v49, 0.0 }
 0x12f   :  { %v339_v58 = vsel %vm254_vm2, %v317_v52, 0.0  ;;  %v341_v60 = vsel %vm254_vm2, %v318_v55, 0.0 }
 0x130   :  { %v334_v51 = vadd.f32 %v333_v50, %v332_v48 }
 0x132   :  { %v336_v54 = vadd.f32 %v335_v53, %v334_v51 }
 0x134   :  { %v338_v57 = vadd.f32 %v337_v56, %v336_v54 }
 0x136   :  { %v340_v59 = vadd.f32 %v339_v58, %v338_v57 }
 0x138   :  { %v342_v61 = vadd.f32 %v341_v60, %v340_v59 }
 0x13a   :  { %v344_v62 = vadd.f32 %v343_v38, %v342_v61 }
 0x13c   :  { %v346_v63 = vadd.f32 %v345_v39, %v344_v62 }
 0x13e   :  { %v348_v0 = vadd.f32 %v347_v41, %v346_v63 }
 0x140   :  { %v350_v1 = vadd.f32 %v349_v42, %v348_v0 }
 0x142   :  { %v352_v2 = vadd.f32 %v351_v43, %v350_v1 }
 0x144   :  { %v354_v3 = vadd.f32 %v353_v46, %v352_v2 }
 0x146   :  { %v356_v4 = vadd.f32 %v355_v47, %v354_v3 }
 0x148   :  { %v357_v5 = vrot.slane %v356_v4, 4 }
 0x14a   :  { %v358_v26 = vadd.f32 %v357_v5, %v356_v4 }
 0x14c   :  { %v359_v19 = vrot.slane %v358_v26, 2 }
 0x14e   :  { %v360_v17 = vadd.f32 %v359_v19, %v358_v26 }
 0x150   :  { %v361_v21 = vrot.slane %v360_v17, 1 }
 0x152   :  { %v362_v23 = vadd.f32 %v361_v21, %v360_v17 }
 0x154   :  { %v363_v27 = vmul.f32 0.0078125, %v362_v23 }
 0x156   :  { %v364_v28 = vadd.f32 1e-05, %v363_v27 }
 0x158   :  { %660 = vrsqrt.f32 %v364_v28 }
 0x162   :  { %v661_v29 = vpop.eup %660 }
 0x163   :  { %v366_v30 = vmul.f32 %v661_v29, %v759_v6  ;;  %v367_v31 = vmul.f32 %v661_v29, %v761_v7  ;;  %v368_v32 = vmul.f32 %v661_v29, %v763_v8  ;;  %v369_v33 = vmul.f32 %v661_v29, %v765_v9 }
 0x164   :  { %v370_v35 = vmul.f32 %v661_v29, %v767_v10  ;;  %v371_v36 = vmul.f32 %v661_v29, %v769_v11  ;;  %v372_v37 = vmul.f32 %v661_v29, %v771_v12  ;;  %v373_v38 = vmul.f32 %v661_v29, %v773_v13 }
 0x165   :  { %v374_v6 = vmul.f32 %v661_v29, %v775_v14  ;;  %v375_v7 = vmul.f32 %v661_v29, %v777_v15  ;;  %v376_v8 = vmul.f32 %v661_v29, %v780_v18  ;;  %v377_v9 = vmul.f32 %v661_v29, %v782_v22  ;;  %v551_v14 = vld [vmem:[%s929_s3] ss:$0 sm:$0xff] }
 0x166   :  { %v378_v39 = vmul.f32 %v661_v29, %v784_v16  ;;  %v379_v40 = vmul.f32 %v661_v29, %v786_v20  ;;  %v380_v10 = vmul.f32 %v661_v29, %v788_v24  ;;  %v381_v11 = vmul.f32 %v661_v29, %v790_v25 }
 0x167   :  { %v388_v41 = vmul.f32 %v550_v34, %v366_v30  ;;  %v389_v12 = vmul.f32 %v550_v34, %v367_v31  ;;  %v390_v42 = vmul.f32 %v550_v34, %v368_v32  ;;  %v391_v13 = vmul.f32 %v550_v34, %v369_v33 }
 0x168   :  { %v392_v15 = vmul.f32 %v550_v34, %v370_v35  ;;  %v393_v18 = vmul.f32 %v550_v34, %v371_v36  ;;  %v394_v43 = vmul.f32 %v550_v34, %v372_v37  ;;  %v395_v22 = vmul.f32 %v550_v34, %v373_v38 }
 0x169   :  { %v396_v44 = vmul.f32 %v550_v34, %v374_v6  ;;  %v397_v16 = vmul.f32 %v550_v34, %v375_v7  ;;  %v398_v45 = vmul.f32 %v550_v34, %v376_v8  ;;  %v399_v20 = vmul.f32 %v550_v34, %v377_v9 }
 0x16a   :  { %v400_v46 = vmul.f32 %v550_v34, %v378_v39  ;;  %v401_v24 = vmul.f32 %v550_v34, %v379_v40  ;;  %v402_v47 = vmul.f32 %v550_v34, %v380_v10  ;;  %v403_v25 = vmul.f32 %v550_v34, %v381_v11 }
 0x16b   :  { %v410_v48 = vadd.f32 %v551_v14, %v388_v41  ;;  %v411_v49 = vadd.f32 %v551_v14, %v389_v12  ;;  %v412_v50 = vadd.f32 %v551_v14, %v390_v42  ;;  %v413_v51 = vadd.f32 %v551_v14, %v391_v13 }
 0x16c   :  { %v414_v52 = vadd.f32 %v551_v14, %v392_v15  ;;  %v415_v53 = vadd.f32 %v551_v14, %v393_v18  ;;  %v416_v54 = vadd.f32 %v551_v14, %v394_v43  ;;  %v417_v55 = vadd.f32 %v551_v14, %v395_v22 }
 0x16d   :  { %v418_v56 = vadd.f32 %v551_v14, %v396_v44  ;;  %v419_v57 = vadd.f32 %v551_v14, %v397_v16  ;;  %v420_v58 = vadd.f32 %v551_v14, %v398_v45  ;;  %v421_v59 = vadd.f32 %v551_v14, %v399_v20 }
 0x16e   :  { %v422_v60 = vadd.f32 %v551_v14, %v400_v46  ;;  %v423_v61 = vadd.f32 %v551_v14, %v401_v24  ;;  %v424_v62 = vadd.f32 %v551_v14, %v402_v47  ;;  %v425_v63 = vadd.f32 %v551_v14, %v403_v25 }
 0x16f   :  { %v426_v0 = vmax.f32 %v410_v48, 0.0  ;;  %v427_v1 = vmax.f32 %v411_v49, 0.0  ;;  %v428_v2 = vmax.f32 %v412_v50, 0.0  ;;  %v429_v3 = vmax.f32 %v413_v51, 0.0 }
 0x170   :  { %v430_v4 = vmax.f32 %v414_v52, 0.0  ;;  %v431_v5 = vmax.f32 %v415_v53, 0.0  ;;  %v432_v26 = vmax.f32 %v416_v54, 0.0  ;;  %v433_v19 = vmax.f32 %v417_v55, 0.0 }
 0x171   :  { %v434_v17 = vmax.f32 %v418_v56, 0.0  ;;  %v435_v21 = vmax.f32 %v419_v57, 0.0  ;;  %v436_v23 = vmax.f32 %v420_v58, 0.0  ;;  %v437_v27 = vmax.f32 %v421_v59, 0.0 }
 0x172   :  { %v438_v28 = vmax.f32 %v422_v60, 0.0  ;;  %v439_v29 = vmax.f32 %v423_v61, 0.0  ;;  %v440_v30 = vmax.f32 %v424_v62, 0.0  ;;  %v441_v31 = vmax.f32 %v425_v63, 0.0 }
 0x173   :  { %v568_v32 = vpack.c.bf16 %v426_v0, %v426_v0  ;;  %v569_v33 = vpack.c.bf16 %v427_v1, %v427_v1  ;;  %v570_v34 = vpack.c.bf16 %v428_v2, %v428_v2  ;;  %v571_v35 = vpack.c.bf16 %v429_v3, %v429_v3 }
 0x174   :  { %v572_v36 = vpack.c.bf16 %v430_v4, %v430_v4  ;;  %v573_v37 = vpack.c.bf16 %v431_v5, %v431_v5  ;;  %v574_v38 = vpack.c.bf16 %v432_v26, %v432_v26  ;;  %v575_v6 = vpack.c.bf16 %v433_v19, %v433_v19 }
 0x175   :  { %v576_v7 = vpack.c.bf16 %v434_v17, %v434_v17  ;;  %v577_v8 = vpack.c.bf16 %v435_v21, %v435_v21  ;;  %v578_v9 = vpack.c.bf16 %v436_v23, %v436_v23  ;;  %v579_v39 = vpack.c.bf16 %v437_v27, %v437_v27  ;;  %507 = vst.msk [vmem:[%s930_s4] sm:$0xf] %vm506_vm3, %v568_v32 }
 0x176   :  { %508 = vst.msk [vmem:[%s930_s4 + $0x4] sm:$0xf] %vm506_vm3, %v569_v33  ;;  %509 = vst.msk [vmem:[%s930_s4 + $0x8] sm:$0xf] %vm506_vm3, %v570_v34  ;;  %v580_v40 = vpack.c.bf16 %v438_v28, %v438_v28  ;;  %v581_v10 = vpack.c.bf16 %v439_v29, %v439_v29  ;;  %v582_v11 = vpack.c.bf16 %v440_v30, %v440_v30 }
 0x177   :  { %510 = vst.msk [vmem:[%s930_s4 + $0xc] sm:$0xf] %vm506_vm3, %v571_v35  ;;  %v583_v41 = vpack.c.bf16 %v441_v31, %v441_v31  ;;  %511 = vst.msk [vmem:[%s930_s4 + $0x10] sm:$0xf] %vm506_vm3, %v572_v36 }
 0x178   :  { %512 = vst.msk [vmem:[%s930_s4 + $0x14] sm:$0xf] %vm506_vm3, %v573_v37  ;;  %513 = vst.msk [vmem:[%s930_s4 + $0x18] sm:$0xf] %vm506_vm3, %v574_v38 }
 0x179   :  { %514 = vst.msk [vmem:[%s930_s4 + $0x1c] sm:$0xf] %vm506_vm3, %v575_v6  ;;  %515 = vst.msk [vmem:[%s930_s4 + $0x20] sm:$0xf] %vm506_vm3, %v576_v7 }
 0x17a   :  { %516 = vst.msk [vmem:[%s930_s4 + $0x24] sm:$0xf] %vm506_vm3, %v577_v8  ;;  %517 = vst.msk [vmem:[%s930_s4 + $0x28] sm:$0xf] %vm506_vm3, %v578_v9 }
 0x17b   :  { %518 = vst.msk [vmem:[%s930_s4 + $0x2c] sm:$0xf] %vm506_vm3, %v579_v39  ;;  %519 = vst.msk [vmem:[%s930_s4 + $0x30] sm:$0xf] %vm506_vm3, %v580_v40 }
 0x17c   :  { %520 = vst.msk [vmem:[%s930_s4 + $0x34] sm:$0xf] %vm506_vm3, %v581_v10  ;;  %521 = vst.msk [vmem:[%s930_s4 + $0x38] sm:$0xf] %vm506_vm3, %v582_v11 }
 0x17d   :  { %522 = vst.msk [vmem:[%s930_s4 + $0x3c] sm:$0xf] %vm506_vm3, %v583_v41 }

// kernel: shape_encoder_forward.5
= control target key start
LH: loop header
LB: loop body
LE: loop exit
PB: predicated region body
PF: predicated region fallthrough
CT: control target
= control target key end

     0   :  { %vm504_vm0 = vcmask 261120   ;;  %vm709_vm1 = vcmask 523264   ;;  %vm793_vm2 = vcmask 519168   ;;  %s1289_s1 = inlined_call_operand.vmem [shape: bf16[800,64], index: 1, kind: input, shape index: {}]   ;;  %s1290_s0 = inlined_call_operand.vmem [shape: bf16[32,800], index: 0, kind: input, shape index: {}]   ;;  %s1291_s2 = inlined_call_operand.vmem [shape: f32[1,64], index: 2, kind: input, shape index: {}]   ;;  %s1292_s3 = inlined_call_operand.vmem [shape: f32[1,64], index: 3, kind: input, shape index: {}]   ;;  %s1293_s4 = inlined_call_operand.vmem [shape: bf16[32,64], index: 4, kind: output, shape index: {}]  }
   0x1   :  { %v974_v0 = vld [vmem:[%s1289_s1 + $0x40] sm:$0xff]   ;;  %v978_v4 = vld [vmem:[%s1289_s1 + $0x48] sm:$0xff]   ;;  %v982_v8 = vld [vmem:[%s1289_s1 + $0x50] sm:$0xff]  }
   0x2   :  { %v975_v1 = vld [vmem:[%s1289_s1 + $0xc0] sm:$0xff]   ;;  %878 = vmatprep.subr.bf16.mxu0 %v974_v0  ;;  %v979_v5 = vld [vmem:[%s1289_s1 + $0xc8] sm:$0xff]   ;;  %v983_v9 = vld [vmem:[%s1289_s1 + $0xd0] sm:$0xff]  }
   0x3   :  { %v976_v2 = vld [vmem:[%s1289_s1] sm:$0xff]   ;;  %906 = vmatprep.subr.bf16.mxu1 %v975_v1  ;;  %v980_v6 = vld [vmem:[%s1289_s1 + $0x8] sm:$0xff]   ;;  %v984_v10 = vld [vmem:[%s1289_s1 + $0x10] sm:$0xff]  }
   0x4   :  { %v977_v3 = vld [vmem:[%s1289_s1 + $0x80] sm:$0xff]   ;;  %879 = vmatpush3.bf16.msra.mxu0 %v976_v2  ;;  %v981_v7 = vld [vmem:[%s1289_s1 + $0x88] sm:$0xff]   ;;  %v985_v11 = vld [vmem:[%s1289_s1 + $0x90] sm:$0xff]  }
   0x5   :  { %907 = vmatpush3.bf16.msra.mxu1 %v977_v3  ;;  %880 = vmatprep.subr.bf16.mxu0 %v978_v4  ;;  %v986_v12 = vld [vmem:[%s1289_s1 + $0x58] sm:$0xff]   ;;  %v990_v16 = vld [vmem:[%s1289_s1 + $0x60] sm:$0xff]   ;;  %v994_v20 = vld [vmem:[%s1289_s1 + $0x68] sm:$0xff]  }
   0x6   :  { %908 = vmatprep.subr.bf16.mxu1 %v979_v5  ;;  %v987_v13 = vld [vmem:[%s1289_s1 + $0xd8] sm:$0xff]   ;;  %v991_v17 = vld [vmem:[%s1289_s1 + $0xe0] sm:$0xff]   ;;  %v995_v21 = vld [vmem:[%s1289_s1 + $0xe8] sm:$0xff]  }
   0x7   :  { %v988_v14 = vld [vmem:[%s1289_s1 + $0x18] sm:$0xff]   ;;  %v992_v18 = vld [vmem:[%s1289_s1 + $0x20] sm:$0xff]   ;;  %v996_v22 = vld [vmem:[%s1289_s1 + $0x28] sm:$0xff]  }
   0x8   :  { %881 = vmatpush3.bf16.msra.mxu0 %v980_v6  ;;  %v989_v15 = vld [vmem:[%s1289_s1 + $0x98] sm:$0xff]   ;;  %v993_v19 = vld [vmem:[%s1289_s1 + $0xa0] sm:$0xff]   ;;  %v997_v23 = vld [vmem:[%s1289_s1 + $0xa8] sm:$0xff]  }
   0x9   :  { %909 = vmatpush3.bf16.msra.mxu1 %v981_v7  ;;  %882 = vmatprep.subr.bf16.mxu0 %v982_v8  ;;  %v998_v24 = vld [vmem:[%s1289_s1 + $0x70] sm:$0xff]   ;;  %v1002_v28 = vld [vmem:[%s1289_s1 + $0x78] sm:$0xff]   ;;  %v1008_v33 = vld [vmem:[%s1290_s0 + $0x4] ss:$28 sps:$4 sm:$0xff]  }
   0xa   :  { %910 = vmatprep.subr.bf16.mxu1 %v983_v9  ;;  %v999_v25 = vld [vmem:[%s1289_s1 + $0xf0] sm:$0xff]   ;;  %v1003_v29 = vld [vmem:[%s1289_s1 + $0xf8] sm:$0xff]   ;;  %v1009_v34 = vld [vmem:[%s1290_s0 + $0x8] ss:$28 sps:$4 sm:$0xff]   ;;  %543 = vmatprep.mubr.bf16.mxu0 %v1008_v33 }
   0xb   :  { %v1000_v26 = vld [vmem:[%s1289_s1 + $0x30] sm:$0xff]   ;;  %v1004_v30 = vld [vmem:[%s1289_s1 + $0x38] sm:$0xff]   ;;  %v1011_v35 = vld [vmem:[%s1290_s0 + $0xc] ss:$28 sps:$4 sm:$0xff]  }
   0xc   :  { %883 = vmatpush3.bf16.msra.mxu0 %v984_v10  ;;  %v1001_v27 = vld [vmem:[%s1289_s1 + $0xb0] sm:$0xff]   ;;  %v1005_v31 = vld [vmem:[%s1289_s1 + $0xb8] sm:$0xff]   ;;  %v1012_v36 = vld [vmem:[%s1289_s1 + $0x140] sm:$0xff]   ;;  %592 = vmatprep.mubr.bf16.mxu1 %v1011_v35 }
   0xd   :  { %911 = vmatpush3.bf16.msra.mxu1 %v985_v11  ;;  %884 = vmatprep.subr.bf16.mxu0 %v986_v12  ;;  %v1006_v32 = vld [vmem:[%s1290_s0] ss:$28 sps:$4 sm:$0xff]   ;;  %v1014_v38 = vld [vmem:[%s1289_s1 + $0x148] sm:$0xff]   ;;  %v1016_v40 = vld [vmem:[%s1289_s1 + $0x150] sm:$0xff]  }
   0xe   :  { %912 = vmatprep.subr.bf16.mxu1 %v987_v13  ;;  %v1013_v37 = vld [vmem:[%s1289_s1 + $0x100] sm:$0xff]   ;;  %v1015_v39 = vld [vmem:[%s1289_s1 + $0x108] sm:$0xff]   ;;  %v1017_v41 = vld [vmem:[%s1289_s1 + $0x110] sm:$0xff]  }
   0xf   :  { %v1018_v42 = vld [vmem:[%s1289_s1 + $0x158] sm:$0xff]   ;;  %v1024_v45 = vld [vmem:[%s1290_s0 + $0x44] ss:$28 sps:$4 sm:$0xff]   ;;  %v1026_v51 = vld [vmem:[%s1289_s1 + $0x168] sm:$0xff]  }
  0x10   :  { %885 = vmatpush3.bf16.msra.mxu0 %v988_v14  ;;  %v1019_v43 = vld [vmem:[%s1289_s1 + $0x118] sm:$0xff]   ;;  %v1020_v46 = vld [vmem:[%s1289_s1 + $0x160] sm:$0xff]   ;;  %v1029_v52 = vld [vmem:[%s1289_s1 + $0x128] sm:$0xff]  }
  0x11   :  { %913 = vmatpush3.bf16.msra.mxu1 %v989_v15  ;;  %886 = vmatprep.subr.bf16.mxu0 %v990_v16  ;;  %v1022_v44 = vld [vmem:[%s1290_s0 + $0x3c] ss:$28 sps:$4 sm:$0xff]   ;;  %v1021_v49 = vld [vmem:[%s1289_s1 + $0x120] sm:$0xff]   ;;  %v1031_v53 = vld [vmem:[%s1289_s1 + $0x170] sm:$0xff]  }
  0x12   :  { %914 = vmatprep.subr.bf16.mxu1 %v991_v17  ;;  %v1027_v47 = vld [vmem:[%s1290_s0 + $0x38] ss:$28 sps:$4 sm:$0xff]   ;;  %v1028_v48 = vld [vmem:[%s1290_s0 + $0x40] ss:$28 sps:$4 sm:$0xff]   ;;  %v1038_v56 = vld [vmem:[%s1289_s1 + $0x188] sm:$0xff]  }
  0x13   :  { %v1030_v50 = vld [vmem:[%s1289_s1 + $0x180] sm:$0xff]   ;;  %v1037_v54 = vld [vmem:[%s1290_s0 + $0x14] ss:$28 sps:$4 sm:$0xff]   ;;  %v1033_v59 = vld [vmem:[%s1289_s1 + $0x178] sm:$0xff]  }
  0x14   :  { %887 = vmatpush3.bf16.msra.mxu0 %v992_v18  ;;  %v1032_v55 = vld [vmem:[%s1289_s1 + $0x130] sm:$0xff]   ;;  %v1034_v60 = vld [vmem:[%s1289_s1 + $0x138] sm:$0xff]   ;;  %v1041_v62 = vld [vmem:[%s1290_s0 + $0x4c] ss:$28 sps:$4 sm:$0xff]  }
  0x15   :  { %915 = vmatpush3.bf16.msra.mxu1 %v993_v19  ;;  %888 = vmatprep.subr.bf16.mxu0 %v994_v20  ;;  %v1039_v57 = vld [vmem:[%s1290_s0 + $0x18] ss:$28 sps:$4 sm:$0xff]   ;;  %v1040_v58 = vld [vmem:[%s1290_s0 + $0x50] ss:$28 sps:$4 sm:$0xff]   ;;  %v1043_v63 = vld [vmem:[%s1290_s0 + $0x48] ss:$28 sps:$4 sm:$0xff]  }
  0x16   :  { %916 = vmatprep.subr.bf16.mxu1 %v995_v21  ;;  %v1035_v61 = vld [vmem:[%s1290_s0 + $0x10] ss:$28 sps:$4 sm:$0xff]  }
  0x18   :  { %889 = vmatpush3.bf16.msra.mxu0 %v996_v22 }
  0x19   :  { %917 = vmatpush3.bf16.msra.mxu1 %v997_v23  ;;  %890 = vmatprep.subr.bf16.mxu0 %v998_v24 }
  0x1a   :  { %918 = vmatprep.subr.bf16.mxu1 %v999_v25 }
  0x1c   :  { %891 = vmatpush3.bf16.msra.mxu0 %v1000_v26 }
  0x1d   :  { %919 = vmatpush3.bf16.msra.mxu1 %v1001_v27  ;;  %892 = vmatprep.subr.bf16.mxu0 %v1002_v28 }
  0x1e   :  { %920 = vmatprep.subr.bf16.mxu1 %v1003_v29 }
  0x20   :  { %893 = vmatpush3.bf16.msra.mxu0 %v1004_v30 }
  0x21   :  { %921 = vmatpush3.bf16.msra.mxu1 %v1005_v31  ;;  %934 = vmatprep.subr.bf16.mxu0 %v1012_v36 }
  0x22   :  { %966 = vmatprep.subr.bf16.mxu1 %v1030_v50 }
  0x23   :  { %544 = vmatmul.mubr.bf16.vlgmr.msra.gmra.mrb[0].mxu0 %v1006_v32 }
  0x24   :  { %593 = vmatmul.mubr.bf16.vlgmr.msra.gmra.mrb[0].mxu1 %v1009_v34  ;;  %935 = vmatpush3.bf16.msra.mxu0 %v1013_v37 }
  0x25   :  { %936 = vmatprep.subr.bf16.mxu0 %v1014_v38  ;;  %551 = vmatprep.mubr.bf16.mxu0 %v1022_v44 }
  0x26   :  { %600 = vmatprep.mubr.bf16.mxu1 %v1024_v45  ;;  %967 = vmatpush3.bf16.msra.mxu1 %v1030_v50 }
  0x27   :  { %968 = vmatprep.subr.bf16.mxu1 %v1038_v56 }
  0x28   :  { %937 = vmatpush3.bf16.msra.mxu0 %v1015_v39 }
  0x29   :  { %938 = vmatprep.subr.bf16.mxu0 %v1016_v40 }
  0x2a   :  { %969 = vmatpush3.bf16.msra.mxu1 %v1038_v56 }
  0x2b   :  { %552 = vmatmul.mubr.bf16.gmra.mrb[4].mxu0 %v1027_v47 }
  0x2c   :  { %939 = vmatpush3.bf16.msra.mxu0 %v1017_v41  ;;  %601 = vmatmul.mubr.bf16.gmra.mrb[4].mxu1 %v1028_v48 }
  0x2d   :  { %940 = vmatprep.subr.bf16.mxu0 %v1018_v42  ;;  %641 = vmatprep.mubr.bf16.mxu0 %v1037_v54 }
  0x2e   :  { %970 = vmatprep.mubr.msk.bf16.mxu1 %vm504_vm0, %v1039_v57 }
  0x30   :  { %941 = vmatpush3.bf16.msra.mxu0 %v1019_v43 }
  0x31   :  { %942 = vmatprep.subr.bf16.mxu0 %v1020_v46 }
  0x34   :  { %943 = vmatpush3.bf16.msra.mxu0 %v1021_v49  ;;  %971 = vmatmul.mubr.msk.bf16.vlgmr.msra.gmra.mrb[8].mxu1 %vm504_vm0, %v1040_v58 }
  0x35   :  { %944 = vmatprep.subr.bf16.mxu0 %v1026_v51 }
  0x38   :  { %945 = vmatpush3.bf16.msra.mxu0 %v1029_v52 }
  0x39   :  { %946 = vmatprep.subr.bf16.mxu0 %v1031_v53 }
  0x3c   :  { %947 = vmatpush3.bf16.msra.mxu0 %v1032_v55 }
  0x3d   :  { %948 = vmatprep.subr.bf16.mxu0 %v1033_v59 }
  0x40   :  { %949 = vmatpush3.bf16.msra.mxu0 %v1034_v60 }
  0x43   :  { %642 = vmatmul.mubr.bf16.vlgmr.msra.gmra.mrb[8].mxu0 %v1035_v61 }
  0x44   :  { %649 = vmatprep.mubr.bf16.mxu0 %v1041_v62 }
  0x4b   :  { %650 = vmatmul.mubr.bf16.gmra.mrb[12].mxu0 %v1043_v63 }
  0xf6   :  { %v894_v0 = vpop.f32.mrb[0].mxu0 }
  0xf7   :  { %v922_v1 = vpop.f32.mrb[0].mxu1  ;;  %v895_v2 = vpop.f32.mrb[1].mxu0 }
  0xf8   :  { %v896_v3 = vadd.f32 %v895_v2, %v894_v0  ;;  %v923_v4 = vpop.f32.mrb[1].mxu1  ;;  %v897_v5 = vpop.f32.mrb[2].mxu0 }
  0xf9   :  { %v924_v6 = vadd.f32 %v923_v4, %v922_v1  ;;  %v925_v7 = vpop.f32.mrb[2].mxu1  ;;  %v898_v8 = vpop.f32.mrb[3].mxu0 }
  0xfa   :  { %v899_v9 = vadd.f32 %v898_v8, %v897_v5  ;;  %v926_v10 = vpop.f32.mrb[3].mxu1 }
  0xfb   :  { %v595_v11 = vadd.f32 %v924_v6, %v896_v3  ;;  %v927_v12 = vadd.f32 %v926_v10, %v925_v7 }
  0xfd   :  { %v598_v13 = vadd.f32 %v927_v12, %v899_v9 }
  0xfe   :  { %v900_v14 = vpop.f32.mrb[4].mxu0 }
  0xff   :  { %v928_v15 = vpop.f32.mrb[4].mxu1  ;;  %v901_v16 = vpop.f32.mrb[5].mxu0 }
 0x100   :  { %v902_v17 = vadd.f32 %v901_v16, %v900_v14  ;;  %v929_v18 = vpop.f32.mrb[5].mxu1  ;;  %v903_v19 = vpop.f32.mrb[6].mxu0 }
 0x101   :  { %v930_v20 = vadd.f32 %v929_v18, %v928_v15  ;;  %v931_v21 = vpop.f32.mrb[6].mxu1  ;;  %v904_v22 = vpop.f32.mrb[7].mxu0 }
 0x102   :  { %v905_v23 = vadd.f32 %v904_v22, %v903_v19  ;;  %v932_v24 = vpop.f32.mrb[7].mxu1 }
 0x103   :  { %v603_v25 = vadd.f32 %v930_v20, %v902_v17  ;;  %v933_v26 = vadd.f32 %v932_v24, %v931_v21 }
 0x105   :  { %v606_v27 = vadd.f32 %v933_v26, %v905_v23  ;;  %v868_v26 = vld [vmem:[%s1291_s2] ss:$0 sm:$0xff] }
 0x107   :  { %v972_v28 = vpop.f32.mrb[8].mxu1 }
 0x108   :  { %v692_v29 = vpop.f32.mrb[9].mxu1 }
 0x109   :  { %v973_v30 = vpop.f32.mrb[10].mxu1 }
 0x10a   :  { %v695_v31 = vpop.f32.mrb[11].mxu1 }
 0x116   :  { %v950_v32 = vpop.f32.mrb[8].mxu0 }
 0x117   :  { %v951_v33 = vpop.f32.mrb[9].mxu0 }
 0x118   :  { %v952_v34 = vadd.f32 %v951_v33, %v950_v32  ;;  %v953_v35 = vpop.f32.mrb[10].mxu0 }
 0x119   :  { %v954_v36 = vpop.f32.mrb[11].mxu0 }
 0x11a   :  { %v955_v37 = vadd.f32 %v954_v36, %v953_v35  ;;  %v644_v38 = vadd.f32 %v952_v34, %v595_v11 }
 0x11c   :  { %v693_v39 = vadd.f32 %v692_v29, %v644_v38  ;;  %v647_v40 = vadd.f32 %v955_v37, %v598_v13 }
 0x11e   :  { %v696_v41 = vadd.f32 %v695_v31, %v647_v40  ;;  %v956_v42 = vpop.f32.mrb[12].mxu0  ;;  %v710_v44 = vsel %vm709_vm1, %v693_v39, 0.0  ;;  %v869_v31 = vld [vmem:[%s1292_s3] ss:$0 sm:$0xff] }
 0x11f   :  { %v957_v43 = vpop.f32.mrb[13].mxu0 }
 0x120   :  { %v711_v45 = vsel %vm709_vm1, %v696_v41, 0.0  ;;  %v958_v46 = vadd.f32 %v957_v43, %v956_v42  ;;  %v959_v47 = vpop.f32.mrb[14].mxu0 }
 0x121   :  { %v712_v48 = vadd.f32 %v711_v45, %v710_v44  ;;  %v960_v49 = vpop.f32.mrb[15].mxu0 }
 0x122   :  { %v652_v50 = vadd.f32 %v958_v46, %v603_v25  ;;  %v961_v51 = vadd.f32 %v960_v49, %v959_v47 }
 0x124   :  { %v701_v52 = vadd.f32 %v972_v28, %v652_v50  ;;  %v655_v53 = vadd.f32 %v961_v51, %v606_v27 }
 0x126   :  { %v713_v54 = vsel %vm709_vm1, %v701_v52, 0.0  ;;  %v704_v55 = vadd.f32 %v973_v30, %v655_v53 }
 0x127   :  { %v714_v56 = vadd.f32 %v713_v54, %v712_v48 }
 0x128   :  { %v715_v57 = vsel %vm709_vm1, %v704_v55, 0.0 }
 0x129   :  { %v716_v58 = vadd.f32 %v715_v57, %v714_v56 }
 0x12b   :  { %v717_v59 = vrot.slane %v716_v58, 4 }
 0x12d   :  { %v718_v60 = vadd.f32 %v717_v59, %v716_v58 }
 0x12f   :  { %v719_v61 = vrot.slane %v718_v60, 2 }
 0x131   :  { %v720_v62 = vadd.f32 %v719_v61, %v718_v60 }
 0x133   :  { %v721_v63 = vrot.slane %v720_v62, 1 }
 0x135   :  { %v722_v0 = vadd.f32 %v721_v63, %v720_v62 }
 0x137   :  { %v724_v1 = vmul.f32 0.03125, %v722_v0 }
 0x139   :  { %v725_v2 = vsub.f32 %v693_v39, %v724_v1  ;;  %v726_v3 = vsub.f32 %v696_v41, %v724_v1  ;;  %v727_v4 = vsub.f32 %v701_v52, %v724_v1  ;;  %v728_v5 = vsub.f32 %v704_v55, %v724_v1 }
 0x13b   :  { %v729_v6 = vmul.f32 %v725_v2, %v725_v2  ;;  %v730_v7 = vmul.f32 %v726_v3, %v726_v3  ;;  %v731_v8 = vmul.f32 %v727_v4, %v727_v4  ;;  %v732_v9 = vmul.f32 %v728_v5, %v728_v5 }
 0x13d   :  { %v733_v10 = vsel %vm709_vm1, %v729_v6, 0.0  ;;  %v734_v11 = vsel %vm709_vm1, %v730_v7, 0.0  ;;  %v736_v13 = vsel %vm709_vm1, %v731_v8, 0.0  ;;  %v738_v15 = vsel %vm709_vm1, %v732_v9, 0.0 }
 0x13e   :  { %v735_v12 = vadd.f32 %v734_v11, %v733_v10 }
 0x140   :  { %v737_v14 = vadd.f32 %v736_v13, %v735_v12 }
 0x142   :  { %v739_v16 = vadd.f32 %v738_v15, %v737_v14 }
 0x144   :  { %v740_v17 = vrot.slane %v739_v16, 4 }
 0x146   :  { %v741_v18 = vadd.f32 %v740_v17, %v739_v16 }
 0x148   :  { %v742_v19 = vrot.slane %v741_v18, 2 }
 0x14a   :  { %v743_v20 = vadd.f32 %v742_v19, %v741_v18 }
 0x14c   :  { %v744_v21 = vrot.slane %v743_v20, 1 }
 0x14e   :  { %v745_v22 = vadd.f32 %v744_v21, %v743_v20 }
 0x150   :  { %v746_v23 = vmul.f32 0.03125, %v745_v22 }
 0x152   :  { %v747_v24 = vadd.f32 1e-05, %v746_v23 }
 0x154   :  { %1044 = vrsqrt.f32 %v747_v24 }
 0x15e   :  { %v1045_v25 = vpop.eup %1044 }
 0x15f   :  { %v749_v27 = vmul.f32 %v1045_v25, %v725_v2  ;;  %v750_v28 = vmul.f32 %v1045_v25, %v726_v3  ;;  %v751_v29 = vmul.f32 %v1045_v25, %v727_v4  ;;  %v752_v30 = vmul.f32 %v1045_v25, %v728_v5 }
 0x161   :  { %v759_v32 = vmul.f32 %v868_v26, %v749_v27  ;;  %v760_v33 = vmul.f32 %v868_v26, %v750_v28  ;;  %v761_v34 = vmul.f32 %v868_v26, %v751_v29  ;;  %v762_v35 = vmul.f32 %v868_v26, %v752_v30 }
 0x163   :  { %v769_v36 = vadd.f32 %v869_v31, %v759_v32  ;;  %v770_v37 = vadd.f32 %v869_v31, %v760_v33  ;;  %v771_v38 = vadd.f32 %v869_v31, %v761_v34  ;;  %v772_v39 = vadd.f32 %v869_v31, %v762_v35 }
 0x165   :  { %v773_v40 = vmax.f32 %v769_v36, 0.0  ;;  %v774_v41 = vmax.f32 %v770_v37, 0.0  ;;  %v775_v42 = vmax.f32 %v771_v38, 0.0  ;;  %v776_v43 = vmax.f32 %v772_v39, 0.0 }
 0x167   :  { %v874_v44 = vpack.c.bf16 %v773_v40, %v773_v40  ;;  %v875_v45 = vpack.c.bf16 %v774_v41, %v774_v41  ;;  %v876_v46 = vpack.c.bf16 %v775_v42, %v775_v42  ;;  %v877_v47 = vpack.c.bf16 %v776_v43, %v776_v43 }
 0x169   :  { %794 = vst.msk [vmem:[%s1293_s4] sm:$0xf] %vm793_vm2, %v874_v44  ;;  %795 = vst.msk [vmem:[%s1293_s4 + $0x4] sm:$0xf] %vm793_vm2, %v875_v45 }
 0x16a   :  { %796 = vst.msk [vmem:[%s1293_s4 + $0x8] sm:$0xf] %vm793_vm2, %v876_v46  ;;  %797 = vst.msk [vmem:[%s1293_s4 + $0xc] sm:$0xf] %vm793_vm2, %v877_v47 }

// kernel: shape_encoder_forward.6
= control target key start
LH: loop header
LB: loop body
LE: loop exit
PB: predicated region body
PF: predicated region fallthrough
CT: control target
= control target key end

     0   :  { %vm1580_vm0 = vmmov 0   ;;  %vm870_vm1 = vcmask 523264   ;;  %s1936_s1 = inlined_call_operand.vmem [shape: bf16[1600,128], index: 1, kind: input, shape index: {}]   ;;  %s1937_s0 = inlined_call_operand.vmem [shape: bf16[8,1600], index: 0, kind: input, shape index: {}]   ;;  %s1938_s2 = inlined_call_operand.vmem [shape: f32[1,128], index: 2, kind: input, shape index: {}]   ;;  %s1939_s3 = inlined_call_operand.vmem [shape: f32[1,128], index: 3, kind: input, shape index: {}]   ;;  %s1940_s4 = inlined_call_operand.vmem [shape: bf16[8,128], index: 4, kind: output, shape index: {}]  }
   0x1   :  { %v1464_v0 = vld [vmem:[%s1936_s1 + $0x40] sm:$0xff]   ;;  %v1468_v4 = vld [vmem:[%s1936_s1 + $0x48] sm:$0xff]   ;;  %v1472_v8 = vld [vmem:[%s1936_s1 + $0x50] sm:$0xff]  }
   0x2   :  { %v1465_v1 = vld [vmem:[%s1936_s1 + $0xc0] sm:$0xff]   ;;  %1313 = vmatprep.subr.bf16.mxu0 %v1464_v0  ;;  %v1469_v5 = vld [vmem:[%s1936_s1 + $0xc8] sm:$0xff]   ;;  %v1473_v9 = vld [vmem:[%s1936_s1 + $0xd0] sm:$0xff]  }
   0x3   :  { %v1466_v2 = vld [vmem:[%s1936_s1] sm:$0xff]   ;;  %1335 = vmatprep.subr.bf16.mxu1 %v1465_v1  ;;  %v1470_v6 = vld [vmem:[%s1936_s1 + $0x8] sm:$0xff]   ;;  %v1474_v10 = vld [vmem:[%s1936_s1 + $0x10] sm:$0xff]  }
   0x4   :  { %v1467_v3 = vld [vmem:[%s1936_s1 + $0x80] sm:$0xff]   ;;  %1314 = vmatpush3.bf16.msra.mxu0 %v1466_v2  ;;  %v1471_v7 = vld [vmem:[%s1936_s1 + $0x88] sm:$0xff]   ;;  %v1475_v11 = vld [vmem:[%s1936_s1 + $0x90] sm:$0xff]  }
   0x5   :  { %1336 = vmatpush3.bf16.msra.mxu1 %v1467_v3  ;;  %1315 = vmatprep.subr.bf16.mxu0 %v1468_v4  ;;  %v1476_v12 = vld [vmem:[%s1936_s1 + $0x58] sm:$0xff]   ;;  %v1480_v16 = vld [vmem:[%s1936_s1 + $0x60] sm:$0xff]   ;;  %v1484_v20 = vld [vmem:[%s1936_s1 + $0x68] sm:$0xff]  }
   0x6   :  { %1337 = vmatprep.subr.bf16.mxu1 %v1469_v5  ;;  %v1477_v13 = vld [vmem:[%s1936_s1 + $0xd8] sm:$0xff]   ;;  %v1481_v17 = vld [vmem:[%s1936_s1 + $0xe0] sm:$0xff]   ;;  %v1485_v21 = vld [vmem:[%s1936_s1 + $0xe8] sm:$0xff]  }
   0x7   :  { %v1478_v14 = vld [vmem:[%s1936_s1 + $0x18] sm:$0xff]   ;;  %v1482_v18 = vld [vmem:[%s1936_s1 + $0x20] sm:$0xff]   ;;  %v1486_v22 = vld [vmem:[%s1936_s1 + $0x28] sm:$0xff]  }
   0x8   :  { %1316 = vmatpush3.bf16.msra.mxu0 %v1470_v6  ;;  %v1479_v15 = vld [vmem:[%s1936_s1 + $0x98] sm:$0xff]   ;;  %v1483_v19 = vld [vmem:[%s1936_s1 + $0xa0] sm:$0xff]   ;;  %v1487_v23 = vld [vmem:[%s1936_s1 + $0xa8] sm:$0xff]  }
   0x9   :  { %1338 = vmatpush3.bf16.msra.mxu1 %v1471_v7  ;;  %1317 = vmatprep.subr.bf16.mxu0 %v1472_v8  ;;  %v1488_v24 = vld [vmem:[%s1936_s1 + $0x70] sm:$0xff]   ;;  %v1492_v28 = vld [vmem:[%s1936_s1 + $0x78] sm:$0xff]   ;;  %v18_v32 = vld [vmem:[%s1937_s0] sm:$0xff] }
   0xa   :  { %1339 = vmatprep.subr.bf16.mxu1 %v1473_v9  ;;  %v1489_v25 = vld [vmem:[%s1936_s1 + $0xf0] sm:$0xff]   ;;  %v1493_v29 = vld [vmem:[%s1936_s1 + $0xf8] sm:$0xff]   ;;  %v19_v33 = vld [vmem:[%s1937_s0 + $0x8] sm:$0xff]  ;;  %v1197_v34 = vcombine.low %v18_v32, %v18_v32  ;;  %v1198_v35 = vcombine.high %v18_v32, %v18_v32 }
   0xb   :  { %v1490_v26 = vld [vmem:[%s1936_s1 + $0x30] sm:$0xff]   ;;  %v1494_v30 = vld [vmem:[%s1936_s1 + $0x38] sm:$0xff]   ;;  %v1199_v36 = vcombine.low %v19_v33, %v19_v33  ;;  %v1200_v37 = vcombine.high %v19_v33, %v19_v33  ;;  %v1500_v38 = vld [vmem:[%s1936_s1 + $0x140] sm:$0xff]  }
   0xc   :  { %1318 = vmatpush3.bf16.msra.mxu0 %v1474_v10  ;;  %v1491_v27 = vld [vmem:[%s1936_s1 + $0xb0] sm:$0xff]   ;;  %v1495_v31 = vld [vmem:[%s1936_s1 + $0xb8] sm:$0xff]   ;;  %v1501_v39 = vld [vmem:[%s1936_s1 + $0x100] sm:$0xff]   ;;  %906 = vmatprep.mubr.bf16.mxu0 %v1198_v35 }
   0xd   :  { %1340 = vmatpush3.bf16.msra.mxu1 %v1475_v11  ;;  %1319 = vmatprep.subr.bf16.mxu0 %v1476_v12  ;;  %v1502_v40 = vld [vmem:[%s1936_s1 + $0x1c0] sm:$0xff]   ;;  %v1504_v42 = vld [vmem:[%s1936_s1 + $0x148] sm:$0xff]   ;;  %v1508_v46 = vld [vmem:[%s1936_s1 + $0x150] sm:$0xff]  }
   0xe   :  { %1341 = vmatprep.subr.bf16.mxu1 %v1477_v13  ;;  %946 = vmatprep.mubr.bf16.mxu1 %v1200_v37  ;;  %v1503_v41 = vld [vmem:[%s1936_s1 + $0x180] sm:$0xff]   ;;  %v1505_v43 = vld [vmem:[%s1936_s1 + $0x108] sm:$0xff]   ;;  %v1509_v47 = vld [vmem:[%s1936_s1 + $0x110] sm:$0xff]  }
   0xf   :  { %v1506_v44 = vld [vmem:[%s1936_s1 + $0x1c8] sm:$0xff]   ;;  %v1510_v48 = vld [vmem:[%s1936_s1 + $0x1d0] sm:$0xff]   ;;  %v1512_v50 = vld [vmem:[%s1936_s1 + $0x158] sm:$0xff]  }
  0x10   :  { %1320 = vmatpush3.bf16.msra.mxu0 %v1478_v14  ;;  %v1507_v45 = vld [vmem:[%s1936_s1 + $0x188] sm:$0xff]   ;;  %v1511_v49 = vld [vmem:[%s1936_s1 + $0x190] sm:$0xff]   ;;  %v1513_v51 = vld [vmem:[%s1936_s1 + $0x118] sm:$0xff]  }
  0x11   :  { %1342 = vmatpush3.bf16.msra.mxu1 %v1479_v15  ;;  %1321 = vmatprep.subr.bf16.mxu0 %v1480_v16  ;;  %v1514_v52 = vld [vmem:[%s1936_s1 + $0x1d8] sm:$0xff]   ;;  %v1516_v54 = vld [vmem:[%s1936_s1 + $0x160] sm:$0xff]   ;;  %v1520_v58 = vld [vmem:[%s1936_s1 + $0x168] sm:$0xff]  }
  0x12   :  { %1343 = vmatprep.subr.bf16.mxu1 %v1481_v17  ;;  %v1515_v53 = vld [vmem:[%s1936_s1 + $0x198] sm:$0xff]   ;;  %v1517_v55 = vld [vmem:[%s1936_s1 + $0x120] sm:$0xff]   ;;  %v1521_v59 = vld [vmem:[%s1936_s1 + $0x128] sm:$0xff]  }
  0x13   :  { %v1518_v56 = vld [vmem:[%s1936_s1 + $0x1e0] sm:$0xff]   ;;  %v1522_v60 = vld [vmem:[%s1936_s1 + $0x1e8] sm:$0xff]   ;;  %v1524_v62 = vld [vmem:[%s1936_s1 + $0x170] sm:$0xff]  }
  0x14   :  { %1322 = vmatpush3.bf16.msra.mxu0 %v1482_v18  ;;  %v1519_v57 = vld [vmem:[%s1936_s1 + $0x1a0] sm:$0xff]   ;;  %v1523_v61 = vld [vmem:[%s1936_s1 + $0x1a8] sm:$0xff]   ;;  %v1525_v63 = vld [vmem:[%s1936_s1 + $0x130] sm:$0xff]  }
  0x15   :  { %1344 = vmatpush3.bf16.msra.mxu1 %v1483_v19  ;;  %1323 = vmatprep.subr.bf16.mxu0 %v1484_v20  ;;  %v1526_v0 = vld [vmem:[%s1936_s1 + $0x1f0] sm:$0xff]   ;;  %v1528_v2 = vld [vmem:[%s1936_s1 + $0x178] sm:$0xff]   ;;  %v1534_v9 = vld [vmem:[%s1936_s1 + $0x240] sm:$0xff]  }
  0x16   :  { %1345 = vmatprep.subr.bf16.mxu1 %v1485_v21  ;;  %v1527_v1 = vld [vmem:[%s1936_s1 + $0x1b0] sm:$0xff]   ;;  %v1529_v3 = vld [vmem:[%s1936_s1 + $0x138] sm:$0xff]   ;;  %v1537_v13 = vld [vmem:[%s1936_s1 + $0x200] sm:$0xff]  }
  0x17   :  { %v1530_v4 = vld [vmem:[%s1936_s1 + $0x1f8] sm:$0xff]   ;;  %v20_v5 = vld [vmem:[%s1937_s0 + $0x10] sm:$0xff]  ;;  %v1538_v14 = vld [vmem:[%s1936_s1 + $0x2c0] sm:$0xff]  }
  0x18   :  { %1324 = vmatpush3.bf16.msra.mxu0 %v1486_v22  ;;  %v1202_v6 = vcombine.high %v20_v5, %v20_v5  ;;  %v1533_v7 = vld [vmem:[%s1936_s1 + $0x1b8] sm:$0xff]   ;;  %v1201_v8 = vcombine.low %v20_v5, %v20_v5  ;;  %v1539_v15 = vld [vmem:[%s1936_s1 + $0x280] sm:$0xff]   ;;  %v1540_v16 = vld [vmem:[%s1936_s1 + $0x248] sm:$0xff]  }
  0x19   :  { %1346 = vmatpush3.bf16.msra.mxu1 %v1487_v23  ;;  %1325 = vmatprep.subr.bf16.mxu0 %v1488_v24  ;;  %v21_v10 = vld [vmem:[%s1937_s0 + $0x18] sm:$0xff]  ;;  %v1541_v17 = vld [vmem:[%s1936_s1 + $0x208] sm:$0xff]   ;;  %v1544_v20 = vld [vmem:[%s1936_s1 + $0x250] sm:$0xff]  }
  0x1a   :  { %1347 = vmatprep.subr.bf16.mxu1 %v1489_v25  ;;  %v1203_v11 = vcombine.low %v21_v10, %v21_v10  ;;  %v1204_v12 = vcombine.high %v21_v10, %v21_v10  ;;  %v1542_v18 = vld [vmem:[%s1936_s1 + $0x2c8] sm:$0xff]   ;;  %v1545_v21 = vld [vmem:[%s1936_s1 + $0x210] sm:$0xff]   ;;  %v1548_v24 = vld [vmem:[%s1936_s1 + $0x258] sm:$0xff]  }
  0x1b   :  { %v1543_v19 = vld [vmem:[%s1936_s1 + $0x288] sm:$0xff]   ;;  %v1546_v22 = vld [vmem:[%s1936_s1 + $0x2d0] sm:$0xff]   ;;  %v1549_v25 = vld [vmem:[%s1936_s1 + $0x218] sm:$0xff]  }
  0x1c   :  { %1326 = vmatpush3.bf16.msra.mxu0 %v1490_v26  ;;  %v1547_v23 = vld [vmem:[%s1936_s1 + $0x290] sm:$0xff]   ;;  %v1550_v26 = vld [vmem:[%s1936_s1 + $0x2d8] sm:$0xff]   ;;  %v1556_v32 = vld [vmem:[%s1936_s1 + $0x268] sm:$0xff]  }
  0x1d   :  { %1348 = vmatpush3.bf16.msra.mxu1 %v1491_v27  ;;  %1327 = vmatprep.subr.bf16.mxu0 %v1492_v28  ;;  %v1551_v27 = vld [vmem:[%s1936_s1 + $0x298] sm:$0xff]   ;;  %v1552_v28 = vld [vmem:[%s1936_s1 + $0x260] sm:$0xff]   ;;  %v1557_v33 = vld [vmem:[%s1936_s1 + $0x228] sm:$0xff]  }
  0x1e   :  { %1349 = vmatprep.subr.bf16.mxu1 %v1493_v29  ;;  %v1553_v29 = vld [vmem:[%s1936_s1 + $0x220] sm:$0xff]   ;;  %v1559_v35 = vld [vmem:[%s1936_s1 + $0x2a8] sm:$0xff]   ;;  %v1561_v37 = vld [vmem:[%s1936_s1 + $0x230] sm:$0xff]  }
  0x20   :  { %1328 = vmatpush3.bf16.msra.mxu0 %v1494_v30  ;;  %v1554_v30 = vld [vmem:[%s1936_s1 + $0x2e0] sm:$0xff]  }
  0x21   :  { %1350 = vmatpush3.bf16.msra.mxu1 %v1495_v31  ;;  %1357 = vmatprep.subr.bf16.mxu0 %v1500_v38  ;;  %v1555_v31 = vld [vmem:[%s1936_s1 + $0x2a0] sm:$0xff]   ;;  %v1562_v38 = vld [vmem:[%s1936_s1 + $0x2f0] sm:$0xff]  }
  0x22   :  { %1379 = vmatprep.subr.bf16.mxu1 %v1502_v40  ;;  %v1564_v40 = vld [vmem:[%s1936_s1 + $0x278] sm:$0xff]  }
  0x23   :  { %907 = vmatmul.mubr.bf16.vlgmr.msra.gmra.mrb[0].mxu0 %v1197_v34  ;;  %v1558_v34 = vld [vmem:[%s1936_s1 + $0x2e8] sm:$0xff]  }
  0x24   :  { %947 = vmatmul.mubr.bf16.vlgmr.msra.gmra.mrb[0].mxu1 %v1199_v36  ;;  %1358 = vmatpush3.bf16.msra.mxu0 %v1501_v39  ;;  %v1560_v36 = vld [vmem:[%s1936_s1 + $0x270] sm:$0xff]  }
  0x25   :  { %1380 = vmatpush3.bf16.msra.mxu1 %v1503_v41  ;;  %1359 = vmatprep.subr.bf16.mxu0 %v1504_v42  ;;  %v1563_v39 = vld [vmem:[%s1936_s1 + $0x2b0] sm:$0xff]   ;;  %v1565_v41 = vld [vmem:[%s1936_s1 + $0x238] sm:$0xff]  }
  0x26   :  { %1381 = vmatprep.subr.bf16.mxu1 %v1506_v44  ;;  %986 = vmatprep.mubr.bf16.mxu0 %v1202_v6  ;;  %v1566_v42 = vld [vmem:[%s1936_s1 + $0x2f8] sm:$0xff]  }
  0x27   :  { %1026 = vmatprep.mubr.bf16.mxu1 %v1204_v12 }
  0x28   :  { %1360 = vmatpush3.bf16.msra.mxu0 %v1505_v43  ;;  %v22_v43 = vld [vmem:[%s1937_s0 + $0x20] sm:$0xff] }
  0x29   :  { %1382 = vmatpush3.bf16.msra.mxu1 %v1507_v45  ;;  %1361 = vmatprep.subr.bf16.mxu0 %v1508_v46  ;;  %v1205_v44 = vcombine.low %v22_v43, %v22_v43  ;;  %v1206_v45 = vcombine.high %v22_v43, %v22_v43  ;;  %v1569_v46 = vld [vmem:[%s1936_s1 + $0x2b8] sm:$0xff]  }
  0x2a   :  { %1383 = vmatprep.subr.bf16.mxu1 %v1510_v48 }
  0x2c   :  { %1362 = vmatpush3.bf16.msra.mxu0 %v1509_v47  ;;  %v23_v47 = vld [vmem:[%s1937_s0 + $0x28] sm:$0xff] }
  0x2d   :  { %1384 = vmatpush3.bf16.msra.mxu1 %v1511_v49  ;;  %1363 = vmatprep.subr.bf16.mxu0 %v1512_v50  ;;  %v1208_v48 = vcombine.high %v23_v47, %v23_v47  ;;  %v1572_v49 = vld [vmem:[%s1936_s1 + $0x300] sm:$0xff]   ;;  %v1579_v50 = vmov 0.0  }
  0x2e   :  { %1385 = vmatprep.subr.bf16.mxu1 %v1514_v52  ;;  %v1573_v52 = vld [vmem:[%s1936_s1 + $0x308] sm:$0xff]  }
  0x30   :  { %1364 = vmatpush3.bf16.msra.mxu0 %v1513_v51  ;;  %v1207_v51 = vcombine.low %v23_v47, %v23_v47 }
  0x31   :  { %1386 = vmatpush3.bf16.msra.mxu1 %v1515_v53  ;;  %1365 = vmatprep.subr.bf16.mxu0 %v1516_v54  ;;  %v1574_v53 = vld [vmem:[%s1936_s1 + $0x310] sm:$0xff]   ;;  %v1575_v54 = vld [vmem:[%s1936_s1 + $0x318] sm:$0xff]  }
  0x32   :  { %1387 = vmatprep.subr.bf16.mxu1 %v1518_v56 }
  0x34   :  { %1366 = vmatpush3.bf16.msra.mxu0 %v1517_v55  ;;  %v1576_v55 = vld [vmem:[%s1937_s0 + $0x30] ss:$0 sps:$4 sm:$0xff]  }
  0x35   :  { %1388 = vmatpush3.bf16.msra.mxu1 %v1519_v57  ;;  %1367 = vmatprep.subr.bf16.mxu0 %v1520_v58 }
  0x36   :  { %1389 = vmatprep.subr.bf16.mxu1 %v1522_v60 }
  0x38   :  { %1368 = vmatpush3.bf16.msra.mxu0 %v1521_v59 }
  0x39   :  { %1390 = vmatpush3.bf16.msra.mxu1 %v1523_v61  ;;  %1369 = vmatprep.subr.bf16.mxu0 %v1524_v62 }
  0x3a   :  { %1391 = vmatprep.subr.bf16.mxu1 %v1526_v0 }
  0x3c   :  { %1370 = vmatpush3.bf16.msra.mxu0 %v1525_v63 }
  0x3d   :  { %1392 = vmatpush3.bf16.msra.mxu1 %v1527_v1  ;;  %1371 = vmatprep.subr.bf16.mxu0 %v1528_v2 }
  0x3e   :  { %1393 = vmatprep.subr.bf16.mxu1 %v1530_v4 }
  0x40   :  { %1372 = vmatpush3.bf16.msra.mxu0 %v1529_v3 }
  0x41   :  { %1394 = vmatpush3.bf16.msra.mxu1 %v1533_v7  ;;  %1401 = vmatprep.subr.bf16.mxu0 %v1534_v9 }
  0x42   :  { %1423 = vmatprep.subr.bf16.mxu1 %v1538_v14 }
  0x43   :  { %987 = vmatmul.mubr.bf16.vlgmr.msra.gmra.mrb[4].mxu0 %v1201_v8 }
  0x44   :  { %1402 = vmatpush3.bf16.msra.mxu0 %v1537_v13  ;;  %1027 = vmatmul.mubr.bf16.vlgmr.msra.gmra.mrb[4].mxu1 %v1203_v11 }
  0x45   :  { %1424 = vmatpush3.bf16.msra.mxu1 %v1539_v15  ;;  %1403 = vmatprep.subr.bf16.mxu0 %v1540_v16 }
  0x46   :  { %1425 = vmatprep.subr.bf16.mxu1 %v1542_v18  ;;  %1066 = vmatprep.mubr.bf16.mxu0 %v1206_v45 }
  0x47   :  { %1106 = vmatprep.mubr.bf16.mxu1 %v1208_v48 }
  0x48   :  { %1404 = vmatpush3.bf16.msra.mxu0 %v1541_v17 }
  0x49   :  { %1426 = vmatpush3.bf16.msra.mxu1 %v1543_v19  ;;  %1405 = vmatprep.subr.bf16.mxu0 %v1544_v20 }
  0x4a   :  { %1427 = vmatprep.subr.bf16.mxu1 %v1546_v22 }
  0x4c   :  { %1406 = vmatpush3.bf16.msra.mxu0 %v1545_v21 }
  0x4d   :  { %1428 = vmatpush3.bf16.msra.mxu1 %v1547_v23  ;;  %1407 = vmatprep.subr.bf16.mxu0 %v1548_v24 }
  0x4e   :  { %1429 = vmatprep.subr.bf16.mxu1 %v1550_v26 }
  0x50   :  { %1408 = vmatpush3.bf16.msra.mxu0 %v1549_v25 }
  0x51   :  { %1430 = vmatpush3.bf16.msra.mxu1 %v1551_v27  ;;  %1409 = vmatprep.subr.bf16.mxu0 %v1552_v28 }
  0x52   :  { %1431 = vmatprep.subr.bf16.mxu1 %v1554_v30 }
  0x54   :  { %1410 = vmatpush3.bf16.msra.mxu0 %v1553_v29 }
  0x55   :  { %1432 = vmatpush3.bf16.msra.mxu1 %v1555_v31  ;;  %1411 = vmatprep.subr.bf16.mxu0 %v1556_v32 }
  0x56   :  { %1433 = vmatprep.subr.bf16.mxu1 %v1558_v34 }
  0x58   :  { %1412 = vmatpush3.bf16.msra.mxu0 %v1557_v33 }
  0x59   :  { %1434 = vmatpush3.bf16.msra.mxu1 %v1559_v35  ;;  %1413 = vmatprep.subr.bf16.mxu0 %v1560_v36 }
  0x5a   :  { %1435 = vmatprep.subr.bf16.mxu1 %v1562_v38 }
  0x5c   :  { %1414 = vmatpush3.bf16.msra.mxu0 %v1561_v37 }
  0x5d   :  { %1436 = vmatpush3.bf16.msra.mxu1 %v1563_v39  ;;  %1415 = vmatprep.subr.bf16.mxu0 %v1564_v40 }
  0x5e   :  { %1437 = vmatprep.subr.bf16.mxu1 %v1566_v42 }
  0x60   :  { %1416 = vmatpush3.bf16.msra.mxu0 %v1565_v41 }
  0x61   :  { %1450 = vmatprep.subr.bf16.mxu0 %v1579_v50  ;;  %1438 = vmatpush3.bf16.msra.mxu1 %v1569_v46 }
  0x63   :  { %1067 = vmatmul.mubr.bf16.vlgmr.msra.gmra.mrb[8].mxu0 %v1205_v44 }
  0x64   :  { %1451 = vmatpush3.bf16.msra.mxu0 %v1572_v49  ;;  %1458 = vmatprep.mubr.msk.bf16.mxu0 %vm1580_vm0, %v1579_v50 }
  0x65   :  { %1107 = vmatmul.mubr.bf16.vlgmr.msra.gmra.mrb[8].mxu1 %v1207_v51  ;;  %1452 = vmatprep.subr.bf16.mxu0 %v1579_v50 }
  0x68   :  { %1453 = vmatpush3.bf16.msra.mxu0 %v1573_v52  ;;  %v1312_v52 = vld [vmem:[%s1939_s3] ss:$0 sm:$0xff] }
  0x69   :  { %1454 = vmatprep.subr.bf16.mxu0 %v1579_v50 }
  0x6c   :  { %1455 = vmatpush3.bf16.msra.mxu0 %v1574_v53 }
  0x6d   :  { %1456 = vmatprep.subr.bf16.mxu0 %v1579_v50  ;;  %v1311_v50 = vld [vmem:[%s1938_s2] ss:$0 sm:$0xff] }
  0x70   :  { %1457 = vmatpush3.bf16.msra.mxu0 %v1575_v54 }
  0x73   :  { %1459 = vmatmul.mubr.msk.bf16.vlgmr.msra.gmra.mrb[12].mxu0 %vm870_vm1, %v1576_v55 }
  0xf6   :  { %v1329_v56 = vpop.f32.mrb[0].mxu0 }
  0xf7   :  { %v1351_v57 = vpop.f32.mrb[0].mxu1  ;;  %v1330_v58 = vpop.f32.mrb[1].mxu0 }
  0xf8   :  { %v1352_v59 = vpop.f32.mrb[1].mxu1  ;;  %v1331_v60 = vadd.f32 %v1330_v58, %v1329_v56  ;;  %v1332_v62 = vpop.f32.mrb[2].mxu0 }
  0xf9   :  { %v1353_v61 = vadd.f32 %v1352_v59, %v1351_v57  ;;  %v1354_v63 = vpop.f32.mrb[2].mxu1  ;;  %v1333_v0 = vpop.f32.mrb[3].mxu0 }
  0xfa   :  { %v1355_v1 = vpop.f32.mrb[3].mxu1 }
  0xfb   :  { %v949_v2 = vadd.f32 %v1353_v61, %v1331_v60 }
 0x116   :  { %v1373_v3 = vpop.f32.mrb[4].mxu0 }
 0x117   :  { %v1374_v4 = vpop.f32.mrb[5].mxu0  ;;  %v1395_v5 = vpop.f32.mrb[4].mxu1 }
 0x118   :  { %v1375_v6 = vadd.f32 %v1374_v4, %v1373_v3  ;;  %v1376_v7 = vpop.f32.mrb[6].mxu0  ;;  %v1396_v8 = vpop.f32.mrb[5].mxu1 }
 0x119   :  { %v1377_v9 = vpop.f32.mrb[7].mxu0  ;;  %v1397_v10 = vadd.f32 %v1396_v8, %v1395_v5  ;;  %v1398_v11 = vpop.f32.mrb[6].mxu1 }
 0x11a   :  { %v989_v12 = vadd.f32 %v1375_v6, %v949_v2  ;;  %v1399_v13 = vpop.f32.mrb[7].mxu1 }
 0x11c   :  { %v1029_v14 = vadd.f32 %v1397_v10, %v989_v12 }
 0x136   :  { %v1417_v15 = vpop.f32.mrb[8].mxu0 }
 0x137   :  { %v1418_v16 = vpop.f32.mrb[9].mxu0 }
 0x138   :  { %v1419_v17 = vadd.f32 %v1418_v16, %v1417_v15  ;;  %v1420_v18 = vpop.f32.mrb[10].mxu0  ;;  %v1439_v19 = vpop.f32.mrb[8].mxu1 }
 0x139   :  { %v1421_v20 = vpop.f32.mrb[11].mxu0  ;;  %v1440_v21 = vpop.f32.mrb[9].mxu1 }
 0x13a   :  { %v1069_v22 = vadd.f32 %v1419_v17, %v1029_v14  ;;  %v1441_v23 = vadd.f32 %v1440_v21, %v1439_v19  ;;  %v1442_v24 = vpop.f32.mrb[10].mxu1 }
 0x13b   :  { %v1443_v25 = vpop.f32.mrb[11].mxu1 }
 0x13c   :  { %v1109_v26 = vadd.f32 %v1441_v23, %v1069_v22 }
 0x146   :  { %v1148_v27 = vpop.f32.mrb[12].mxu0 }
 0x147   :  { %v1149_v28 = vadd.f32 %v1148_v27, %v1109_v26  ;;  %v1460_v29 = vpop.f32.mrb[13].mxu0 }
 0x148   :  { %v1151_v30 = vpop.f32.mrb[14].mxu0 }
 0x149   :  { %v1156_v31 = vrot.slane %v1149_v28, 4  ;;  %v1461_v32 = vpop.f32.mrb[15].mxu0 }
 0x14b   :  { %v1157_v33 = vadd.f32 %v1156_v31, %v1149_v28 }
 0x14d   :  { %v1158_v34 = vrot.slane %v1157_v33, 2 }
 0x14f   :  { %v1159_v35 = vadd.f32 %v1158_v34, %v1157_v33 }
 0x151   :  { %v1160_v36 = vrot.slane %v1159_v35, 1 }
 0x153   :  { %v1161_v37 = vadd.f32 %v1160_v36, %v1159_v35 }
 0x155   :  { %v1163_v38 = vmul.f32 0.125, %v1161_v37 }
 0x157   :  { %v1164_v39 = vsub.f32 %v1149_v28, %v1163_v38 }
 0x159   :  { %v1165_v40 = vmul.f32 %v1164_v39, %v1164_v39 }
 0x15b   :  { %v1166_v41 = vrot.slane %v1165_v40, 4 }
 0x15d   :  { %v1167_v42 = vadd.f32 %v1166_v41, %v1165_v40 }
 0x15f   :  { %v1168_v43 = vrot.slane %v1167_v42, 2 }
 0x161   :  { %v1169_v44 = vadd.f32 %v1168_v43, %v1167_v42 }
 0x163   :  { %v1170_v45 = vrot.slane %v1169_v44, 1 }
 0x165   :  { %v1171_v46 = vadd.f32 %v1170_v45, %v1169_v44 }
 0x167   :  { %v1172_v47 = vmul.f32 0.125, %v1171_v46 }
 0x169   :  { %v1173_v48 = vadd.f32 1e-05, %v1172_v47 }
 0x16b   :  { %1577 = vrsqrt.f32 %v1173_v48 }
 0x175   :  { %v1578_v49 = vpop.eup %1577 }
 0x176   :  { %v1175_v51 = vmul.f32 %v1578_v49, %v1164_v39 }
 0x178   :  { %v1182_v53 = vmul.f32 %v1311_v50, %v1175_v51 }
 0x17a   :  { %v1189_v54 = vadd.f32 %v1312_v52, %v1182_v53 }
 0x17c   :  { %v1190_v55 = vmax.f32 %v1189_v54, 0.0 }
 0x17e   :  { %v1191_v56 = vpack.c.bf16 %v1190_v55, %v1190_v55 }
 0x180   :  { %1192 = vst [vmem:[%s1940_s4] sm:$0xf] %v1191_v56 }

// kernel: shape_encoder_forward.7
= control target key start
LH: loop header
LB: loop body
LE: loop exit
PB: predicated region body
PF: predicated region fallthrough
CT: control target
= control target key end

     0   :  { %v9502_v9 = vmov 1966171168   ;;  %v128_v11 = vlaneseq  ;;  %vm549_vm0 = vcmask 1041408   ;;  %vm8073_vm1 = vcmask 189440   ;;  %s12911_s1 = inlined_call_operand.vmem [shape: bf16[512,256], index: 1, kind: input, shape index: {}]   ;;  %s12912_s0 = inlined_call_operand.vmem [shape: bf16[2,512], index: 0, kind: input, shape index: {}]   ;;  %s12913_s4 = inlined_call_operand.vmem [shape: bf16[256,512], index: 4, kind: input, shape index: {}]   ;;  %s12914_s7 = inlined_call_operand.vmem [shape: bf16[512,1024], index: 7, kind: input, shape index: {}]   ;;  %s12915_s2 = inlined_call_operand.vmem [shape: f32[1,256], index: 2, kind: input, shape index: {}]   ;;  %s12916_s3 = inlined_call_operand.vmem [shape: f32[1,256], index: 3, kind: input, shape index: {}]   ;;  %s12917_s5 = inlined_call_operand.vmem [shape: f32[1,512], index: 5, kind: input, shape index: {}]   ;;  %s12918_s6 = inlined_call_operand.vmem [shape: f32[1,512], index: 6, kind: input, shape index: {}]   ;;  %s12919_s10 = inlined_call_operand.vmem [shape: bf16[1024,1024], index: 10, kind: input, shape index: {}]   ;;  %s12920_s8 = inlined_call_operand.vmem [shape: f32[1,1024], index: 8, kind: input, shape index: {}]   ;;  %s12921_s9 = inlined_call_operand.vmem [shape: f32[1,1024], index: 9, kind: input, shape index: {}]   ;;  %s12922_s13 = inlined_call_operand.vmem [shape: bf16[1024,24], index: 13, kind: input, shape index: {}]   ;;  %s12923_s11 = inlined_call_operand.vmem [shape: f32[1,1024], index: 11, kind: input, shape index: {}]   ;;  %s12924_s12 = inlined_call_operand.vmem [shape: f32[1,1024], index: 12, kind: input, shape index: {}]   ;;  %s12925_s14 = inlined_call_operand.vmem [shape: f32[1,24], index: 14, kind: input, shape index: {}]   ;;  %s12926_s15 = inlined_call_operand.vmem [shape: f32[2,24], index: 15, kind: output, shape index: {}]  }
   0x1   :  { %v9198_v0 = vld [vmem:[%s12911_s1 + $0x4] ss:$8 sps:$4 sm:$0xff]   ;;  %v9200_v1 = vld [vmem:[%s12911_s1] ss:$8 sps:$4 sm:$0xff]   ;;  %v9201_v2 = vld [vmem:[%s12911_s1 + $0x14] ss:$8 sps:$4 sm:$0xff]   ;;  %v126_v10 = vunpack.c.l.s4 %v9502_v9 }
   0x2   :  { %465 = vmatprep.subr.bf16.mxu0 %v9198_v0  ;;  %v9203_v3 = vld [vmem:[%s12911_s1 + $0x10] ss:$8 sps:$4 sm:$0xff]   ;;  %v9204_v4 = vld [vmem:[%s12911_s1 + $0x24] ss:$8 sps:$4 sm:$0xff]   ;;  %v9206_v5 = vld [vmem:[%s12911_s1 + $0x20] ss:$8 sps:$4 sm:$0xff]  }
   0x3   :  { %466 = vmatpush1.bf16.msra.mxu0 %v9200_v1  ;;  %v9207_v6 = vld [vmem:[%s12911_s1 + $0x34] ss:$8 sps:$4 sm:$0xff]   ;;  %v9209_v7 = vld [vmem:[%s12911_s1 + $0x30] ss:$8 sps:$4 sm:$0xff]   ;;  %v9210_v8 = vld [vmem:[%s12911_s1 + $0x44] ss:$8 sps:$4 sm:$0xff]   ;;  %v127_v14 = vunpack.c.0.s8 %v126_v10 }
   0x4   :  { %467 = vmatprep.subr.bf16.mxu0 %v9201_v2  ;;  %v9212_v12 = vld [vmem:[%s12911_s1 + $0x40] ss:$8 sps:$4 sm:$0xff]   ;;  %v9213_v13 = vld [vmem:[%s12911_s1 + $0x54] ss:$8 sps:$4 sm:$0xff]   ;;  %v9616_v15 = vshrl.u32 %v128_v11, 7 }
   0x5   :  { %v9215_v16 = vld [vmem:[%s12911_s1 + $0x50] ss:$8 sps:$4 sm:$0xff]   ;;  %v9216_v17 = vld [vmem:[%s12911_s1 + $0x64] ss:$8 sps:$4 sm:$0xff]   ;;  %v9218_v21 = vld [vmem:[%s12911_s1 + $0x60] ss:$8 sps:$4 sm:$0xff]  }
   0x6   :  { %v130_v18 = vsub.s32 %v127_v14, %v9616_v15  ;;  %v8079_v19 = vld.sshfl [vmem:[%s12912_s0] sm:$0x33 pattern:$0x75316420]  ;;  %v9219_v22 = vld [vmem:[%s12911_s1 + $0x74] ss:$8 sps:$4 sm:$0xff]  }
   0x7   :  { %468 = vmatpush1.bf16.msra.mxu0 %v9203_v3  ;;  %v124_v20 = vcombine.high %v8079_v19, %v8079_v19  ;;  %v9221_v24 = vld [vmem:[%s12911_s1 + $0x70] ss:$8 sps:$4 sm:$0xff]   ;;  %v9222_v25 = vld [vmem:[%s12911_s1 + $0x84] ss:$8 sps:$4 sm:$0xff]   ;;  %v9224_v26 = vld [vmem:[%s12911_s1 + $0x80] ss:$8 sps:$4 sm:$0xff]  }
   0x8   :  { %469 = vmatprep.subr.bf16.mxu0 %v9204_v4  ;;  %v9225_v27 = vld [vmem:[%s12911_s1 + $0x94] ss:$8 sps:$4 sm:$0xff]   ;;  %v9227_v28 = vld [vmem:[%s12911_s1 + $0x90] ss:$8 sps:$4 sm:$0xff]   ;;  %v9228_v29 = vld [vmem:[%s12911_s1 + $0xa4] ss:$8 sps:$4 sm:$0xff]   ;;  %v9700_v46 = vrot.slane %v8079_v19, %v130_v18 }
   0x9   :  { %v138_v23 = vrot.slane %v124_v20, %v130_v18  ;;  %v9230_v30 = vld [vmem:[%s12911_s1 + $0xa0] ss:$8 sps:$4 sm:$0xff]   ;;  %v9231_v31 = vld [vmem:[%s12911_s1 + $0xb4] ss:$8 sps:$4 sm:$0xff]   ;;  %v9233_v32 = vld [vmem:[%s12911_s1 + $0xb0] ss:$8 sps:$4 sm:$0xff]  }
   0xa   :  { %v9234_v33 = vld [vmem:[%s12911_s1 + $0xc4] ss:$8 sps:$4 sm:$0xff]   ;;  %v9296_v35 = vld [vmem:[%s12913_s4] ss:$16 sps:$4 sm:$0xff]   ;;  %v9237_v38 = vld [vmem:[%s12911_s1 + $0xd4] ss:$8 sps:$4 sm:$0xff]   ;;  %v139_v14 = vcombine.high %v9700_v46, %v9700_v46 }
   0xb   :  { %470 = vmatpush1.bf16.msra.mxu0 %v9206_v5  ;;  %497 = vmatprep.mubr.bf16.mxu0 %v138_v23  ;;  %v9294_v34 = vld [vmem:[%s12913_s4 + $0x4] ss:$16 sps:$4 sm:$0xff]   ;;  %v9236_v36 = vld [vmem:[%s12911_s1 + $0xc0] ss:$8 sps:$4 sm:$0xff]   ;;  %v9239_v39 = vld [vmem:[%s12911_s1 + $0xd0] ss:$8 sps:$4 sm:$0xff]   ;;  %v140_v48 = vcombine.high %v138_v23, %v138_v23 }
   0xc   :  { %471 = vmatprep.subr.bf16.mxu0 %v9207_v6  ;;  %v9297_v37 = vld [vmem:[%s12913_s4 + $0x24] ss:$16 sps:$4 sm:$0xff]   ;;  %1007 = vmatprep.subr.bf16.mxu1 %v9294_v34  ;;  %v9242_v41 = vld [vmem:[%s12911_s1 + $0xe0] ss:$8 sps:$4 sm:$0xff]   ;;  %v9245_v43 = vld [vmem:[%s12911_s1 + $0xf0] ss:$8 sps:$4 sm:$0xff]  }
   0xd   :  { %1008 = vmatpush1.bf16.msra.mxu1 %v9296_v35  ;;  %v9240_v40 = vld [vmem:[%s12911_s1 + $0xe4] ss:$8 sps:$4 sm:$0xff]   ;;  %v9243_v42 = vld [vmem:[%s12911_s1 + $0xf4] ss:$8 sps:$4 sm:$0xff]   ;;  %v9246_v45 = vld [vmem:[%s12911_s1 + $0x100] ss:$8 sps:$4 sm:$0xff]  }
   0xe   :  { %1009 = vmatprep.subr.bf16.mxu1 %v9297_v37  ;;  %v9248_v44 = vld [vmem:[%s12911_s1 + $0x104] ss:$8 sps:$4 sm:$0xff]   ;;  %v9251_v47 = vld [vmem:[%s12911_s1 + $0x114] ss:$8 sps:$4 sm:$0xff]   ;;  %v9249_v49 = vld [vmem:[%s12911_s1 + $0x110] ss:$8 sps:$4 sm:$0xff]  }
   0xf   :  { %472 = vmatpush1.bf16.msra.mxu0 %v9209_v7  ;;  %v9254_v50 = vld [vmem:[%s12911_s1 + $0x124] ss:$8 sps:$4 sm:$0xff]   ;;  %v9252_v51 = vld [vmem:[%s12911_s1 + $0x120] ss:$8 sps:$4 sm:$0xff]   ;;  %v9257_v52 = vld [vmem:[%s12911_s1 + $0x134] ss:$8 sps:$4 sm:$0xff]  }
  0x10   :  { %473 = vmatprep.subr.bf16.mxu0 %v9210_v8  ;;  %v9255_v53 = vld [vmem:[%s12911_s1 + $0x130] ss:$8 sps:$4 sm:$0xff]   ;;  %v9260_v54 = vld [vmem:[%s12911_s1 + $0x144] ss:$8 sps:$4 sm:$0xff]   ;;  %v9258_v55 = vld [vmem:[%s12911_s1 + $0x140] ss:$8 sps:$4 sm:$0xff]  }
  0x11   :  { %v9263_v56 = vld [vmem:[%s12911_s1 + $0x154] ss:$8 sps:$4 sm:$0xff]   ;;  %v9261_v57 = vld [vmem:[%s12911_s1 + $0x150] ss:$8 sps:$4 sm:$0xff]   ;;  %v9266_v58 = vld [vmem:[%s12911_s1 + $0x164] ss:$8 sps:$4 sm:$0xff]  }
  0x12   :  { %v9264_v59 = vld [vmem:[%s12911_s1 + $0x160] ss:$8 sps:$4 sm:$0xff]   ;;  %v9269_v60 = vld [vmem:[%s12911_s1 + $0x174] ss:$8 sps:$4 sm:$0xff]   ;;  %v9267_v61 = vld [vmem:[%s12911_s1 + $0x170] ss:$8 sps:$4 sm:$0xff]  }
  0x13   :  { %474 = vmatpush1.bf16.msra.mxu0 %v9212_v12  ;;  %v9272_v62 = vld [vmem:[%s12911_s1 + $0x184] ss:$8 sps:$4 sm:$0xff]   ;;  %v9270_v63 = vld [vmem:[%s12911_s1 + $0x180] ss:$8 sps:$4 sm:$0xff]   ;;  %v9275_v0 = vld [vmem:[%s12911_s1 + $0x194] ss:$8 sps:$4 sm:$0xff]  }
  0x14   :  { %475 = vmatprep.subr.bf16.mxu0 %v9213_v13  ;;  %v9273_v1 = vld [vmem:[%s12911_s1 + $0x190] ss:$8 sps:$4 sm:$0xff]   ;;  %v9278_v2 = vld [vmem:[%s12911_s1 + $0x1a4] ss:$8 sps:$4 sm:$0xff]   ;;  %v9276_v3 = vld [vmem:[%s12911_s1 + $0x1a0] ss:$8 sps:$4 sm:$0xff]  }
  0x15   :  { %v9281_v4 = vld [vmem:[%s12911_s1 + $0x1b4] ss:$8 sps:$4 sm:$0xff]   ;;  %v9279_v5 = vld [vmem:[%s12911_s1 + $0x1b0] ss:$8 sps:$4 sm:$0xff]   ;;  %v9284_v6 = vld [vmem:[%s12911_s1 + $0x1c4] ss:$8 sps:$4 sm:$0xff]  }
  0x16   :  { %v9282_v7 = vld [vmem:[%s12911_s1 + $0x1c0] ss:$8 sps:$4 sm:$0xff]   ;;  %v9287_v8 = vld [vmem:[%s12911_s1 + $0x1d4] ss:$8 sps:$4 sm:$0xff]   ;;  %v9285_v9 = vld [vmem:[%s12911_s1 + $0x1d0] ss:$8 sps:$4 sm:$0xff]  }
  0x17   :  { %476 = vmatpush1.bf16.msra.mxu0 %v9215_v16  ;;  %v9290_v10 = vld [vmem:[%s12911_s1 + $0x1e4] ss:$8 sps:$4 sm:$0xff]   ;;  %v9288_v11 = vld [vmem:[%s12911_s1 + $0x1e0] ss:$8 sps:$4 sm:$0xff]   ;;  %v9293_v12 = vld [vmem:[%s12911_s1 + $0x1f4] ss:$8 sps:$4 sm:$0xff]  }
  0x18   :  { %477 = vmatprep.subr.bf16.mxu0 %v9216_v17  ;;  %v9291_v13 = vld [vmem:[%s12911_s1 + $0x1f0] ss:$8 sps:$4 sm:$0xff]   ;;  %v9300_v17 = vld [vmem:[%s12913_s4 + $0x44] ss:$16 sps:$4 sm:$0xff]  }
  0x19   :  { %v9299_v16 = vld [vmem:[%s12913_s4 + $0x20] ss:$16 sps:$4 sm:$0xff]   ;;  %v9303_v19 = vld [vmem:[%s12913_s4 + $0x64] ss:$16 sps:$4 sm:$0xff]  }
  0x1a   :  { %1010 = vmatpush1.bf16.msra.mxu1 %v9299_v16  ;;  %v9302_v18 = vld [vmem:[%s12913_s4 + $0x40] ss:$16 sps:$4 sm:$0xff]   ;;  %v9309_v23 = vld [vmem:[%s12913_s4 + $0xa4] ss:$16 sps:$4 sm:$0xff]  }
  0x1b   :  { %478 = vmatpush1.bf16.msra.mxu0 %v9218_v21  ;;  %1011 = vmatprep.subr.bf16.mxu1 %v9300_v17  ;;  %v9305_v20 = vld [vmem:[%s12913_s4 + $0x60] ss:$16 sps:$4 sm:$0xff]   ;;  %v9306_v21 = vld [vmem:[%s12913_s4 + $0x84] ss:$16 sps:$4 sm:$0xff]  }
  0x1c   :  { %479 = vmatprep.subr.bf16.mxu0 %v9219_v22  ;;  %v9308_v22 = vld [vmem:[%s12913_s4 + $0x80] ss:$16 sps:$4 sm:$0xff]   ;;  %v9327_v35 = vld [vmem:[%s12913_s4 + $0x164] ss:$16 sps:$4 sm:$0xff]  }
  0x1d   :  { %v9326_v34 = vld [vmem:[%s12913_s4 + $0x140] ss:$16 sps:$4 sm:$0xff]   ;;  %v9330_v37 = vld [vmem:[%s12913_s4 + $0x184] ss:$16 sps:$4 sm:$0xff]  }
  0x1e   :  { %1012 = vmatpush1.bf16.msra.mxu1 %v9302_v18 }
  0x1f   :  { %480 = vmatpush1.bf16.msra.mxu0 %v9221_v24  ;;  %1013 = vmatprep.subr.bf16.mxu1 %v9303_v19  ;;  %v9311_v24 = vld [vmem:[%s12913_s4 + $0xa0] ss:$16 sps:$4 sm:$0xff]  }
  0x20   :  { %481 = vmatprep.subr.bf16.mxu0 %v9222_v25  ;;  %v9312_v25 = vld [vmem:[%s12913_s4 + $0xc4] ss:$16 sps:$4 sm:$0xff]  }
  0x22   :  { %1014 = vmatpush1.bf16.msra.mxu1 %v9305_v20 }
  0x23   :  { %482 = vmatpush1.bf16.msra.mxu0 %v9224_v26  ;;  %1015 = vmatprep.subr.bf16.mxu1 %v9306_v21  ;;  %v9314_v26 = vld [vmem:[%s12913_s4 + $0xc0] ss:$16 sps:$4 sm:$0xff]  }
  0x24   :  { %483 = vmatprep.subr.bf16.mxu0 %v9225_v27  ;;  %v9315_v27 = vld [vmem:[%s12913_s4 + $0xe4] ss:$16 sps:$4 sm:$0xff]  }
  0x26   :  { %1016 = vmatpush1.bf16.msra.mxu1 %v9308_v22 }
  0x27   :  { %484 = vmatpush1.bf16.msra.mxu0 %v9227_v28  ;;  %1017 = vmatprep.subr.bf16.mxu1 %v9309_v23  ;;  %v9317_v28 = vld [vmem:[%s12913_s4 + $0xe0] ss:$16 sps:$4 sm:$0xff]  }
  0x28   :  { %485 = vmatprep.subr.bf16.mxu0 %v9228_v29  ;;  %v9318_v29 = vld [vmem:[%s12913_s4 + $0x104] ss:$16 sps:$4 sm:$0xff]  }
  0x2a   :  { %1018 = vmatpush1.bf16.msra.mxu1 %v9311_v24 }
  0x2b   :  { %486 = vmatpush1.bf16.msra.mxu0 %v9230_v30  ;;  %1019 = vmatprep.subr.bf16.mxu1 %v9312_v25  ;;  %v9320_v30 = vld [vmem:[%s12913_s4 + $0x100] ss:$16 sps:$4 sm:$0xff]  }
  0x2c   :  { %487 = vmatprep.subr.bf16.mxu0 %v9231_v31  ;;  %v9321_v31 = vld [vmem:[%s12913_s4 + $0x124] ss:$16 sps:$4 sm:$0xff]  }
  0x2e   :  { %1020 = vmatpush1.bf16.msra.mxu1 %v9314_v26 }
  0x2f   :  { %488 = vmatpush1.bf16.msra.mxu0 %v9233_v32  ;;  %1021 = vmatprep.subr.bf16.mxu1 %v9315_v27  ;;  %v9323_v32 = vld [vmem:[%s12913_s4 + $0x120] ss:$16 sps:$4 sm:$0xff]  }
  0x30   :  { %489 = vmatprep.subr.bf16.mxu0 %v9234_v33  ;;  %v9324_v33 = vld [vmem:[%s12913_s4 + $0x144] ss:$16 sps:$4 sm:$0xff]  }
  0x32   :  { %1022 = vmatpush1.bf16.msra.mxu1 %v9317_v28 }
  0x33   :  { %490 = vmatpush1.bf16.msra.mxu0 %v9236_v36  ;;  %1023 = vmatprep.subr.bf16.mxu1 %v9318_v29  ;;  %v9329_v36 = vld [vmem:[%s12913_s4 + $0x160] ss:$16 sps:$4 sm:$0xff]  }
  0x34   :  { %491 = vmatprep.subr.bf16.mxu0 %v9237_v38  ;;  %v9332_v38 = vld [vmem:[%s12913_s4 + $0x180] ss:$16 sps:$4 sm:$0xff]  }
  0x36   :  { %1024 = vmatpush1.bf16.msra.mxu1 %v9320_v30 }
  0x37   :  { %492 = vmatpush1.bf16.msra.mxu0 %v9239_v39  ;;  %1025 = vmatprep.subr.bf16.mxu1 %v9321_v31  ;;  %v9333_v39 = vld [vmem:[%s12913_s4 + $0x1a4] ss:$16 sps:$4 sm:$0xff]  }
  0x38   :  { %493 = vmatprep.subr.bf16.mxu0 %v9240_v40  ;;  %v9335_v40 = vld [vmem:[%s12913_s4 + $0x1a0] ss:$16 sps:$4 sm:$0xff]  }
  0x3a   :  { %1026 = vmatpush1.bf16.msra.mxu1 %v9323_v32 }
  0x3b   :  { %494 = vmatpush1.bf16.msra.mxu0 %v9242_v41  ;;  %1027 = vmatprep.subr.bf16.mxu1 %v9324_v33  ;;  %v9336_v41 = vld [vmem:[%s12913_s4 + $0x1c4] ss:$16 sps:$4 sm:$0xff]   ;;  %v9902_v33 = vsub.s32 0, %v9616_v15 }
  0x3c   :  { %495 = vmatprep.subr.bf16.mxu0 %v9243_v42  ;;  %v9338_v42 = vld [vmem:[%s12913_s4 + $0x1c0] ss:$16 sps:$4 sm:$0xff]  }
  0x3e   :  { %1028 = vmatpush1.bf16.msra.mxu1 %v9326_v34  ;;  %v547_v34 = vld [vmem:[%s12915_s2] sm:$0x3] }
  0x3f   :  { %496 = vmatpush1.bf16.msra.mxu0 %v9245_v43  ;;  %1029 = vmatprep.subr.bf16.mxu1 %v9327_v35  ;;  %v9339_v43 = vld [vmem:[%s12913_s4 + $0x1e4] ss:$16 sps:$4 sm:$0xff]   ;;  %v9908_v35 = vsub.s32 1, %v9616_v15 }
  0x40   :  { %506 = vmatprep.subr.bf16.mxu0 %v9248_v44  ;;  %v9341_v44 = vld [vmem:[%s12913_s4 + $0x1e0] ss:$16 sps:$4 sm:$0xff]  }
  0x42   :  { %498 = vmatmul.mubr.bf16.vlgmr.msra.gmra.mrb[0].mxu0 %v9700_v46  ;;  %1030 = vmatpush1.bf16.msra.mxu1 %v9329_v36  ;;  %v1233_v46 = vld [vmem:[%s12914_s7] sm:$0xff] }
  0x43   :  { %507 = vmatpush1.bf16.msra.mxu0 %v9246_v45  ;;  %538 = vmatprep.mubr.bf16.mxu0 %v140_v48  ;;  %v9344_v45 = vld [vmem:[%s12913_s4 + $0xc] ss:$16 sps:$4 sm:$0xff]   ;;  %v548_v36 = vld [vmem:[%s12916_s3] sm:$0x3] }
  0x44   :  { %508 = vmatprep.subr.bf16.mxu0 %v9251_v47  ;;  %1031 = vmatprep.subr.bf16.mxu1 %v9330_v37  ;;  %v1237_v47 = vld [vmem:[%s12914_s7 + $0x20] sm:$0xff]  ;;  %v597_v37 = vrot.slane %v547_v34, %v9902_v33 }
  0x45   :  { %v8208_v48 = vcombine.low %v1233_v46, %v1237_v47 }
  0x46   :  { %1032 = vmatpush1.bf16.msra.mxu1 %v9332_v38 }
  0x47   :  { %509 = vmatpush1.bf16.msra.mxu0 %v9249_v49  ;;  %1033 = vmatprep.subr.bf16.mxu1 %v9333_v39  ;;  %v8209_v49 = vcombine.high %v1233_v46, %v1237_v47  ;;  %v601_v39 = vrot.slane %v547_v34, %v9908_v35  ;;  %v1254_v34 = vld [vmem:[%s12914_s7 + $0xa8] sm:$0xff] }
  0x48   :  { %510 = vmatprep.subr.bf16.mxu0 %v9254_v50  ;;  %v1241_v50 = vld [vmem:[%s12914_s7 + $0x40] sm:$0xff] }
  0x4a   :  { %1034 = vmatpush1.bf16.msra.mxu1 %v9335_v40 }
  0x4b   :  { %511 = vmatpush1.bf16.msra.mxu0 %v9252_v51  ;;  %1035 = vmatprep.subr.bf16.mxu1 %v9336_v41  ;;  %v1245_v51 = vld [vmem:[%s12914_s7 + $0x60] sm:$0xff] }
  0x4c   :  { %512 = vmatprep.subr.bf16.mxu0 %v9257_v52  ;;  %v8217_v52 = vcombine.high %v1241_v50, %v1245_v51 }
  0x4e   :  { %1036 = vmatpush1.bf16.msra.mxu1 %v9338_v42  ;;  %v610_v42 = vrot.slane %v548_v36, %v9902_v33 }
  0x4f   :  { %513 = vmatpush1.bf16.msra.mxu0 %v9255_v53  ;;  %1037 = vmatprep.subr.bf16.mxu1 %v9339_v43 }
  0x50   :  { %514 = vmatprep.subr.bf16.mxu0 %v9260_v54 }
  0x52   :  { %1038 = vmatpush1.bf16.msra.mxu1 %v9341_v44  ;;  %v614_v44 = vrot.slane %v548_v36, %v9908_v35 }
  0x53   :  { %515 = vmatpush1.bf16.msra.mxu0 %v9258_v55  ;;  %1048 = vmatprep.subr.bf16.mxu1 %v9344_v45 }
  0x54   :  { %516 = vmatprep.subr.bf16.mxu0 %v9263_v56  ;;  %v8216_v56 = vcombine.low %v1241_v50, %v1245_v51 }
  0x57   :  { %517 = vmatpush1.bf16.msra.mxu0 %v9261_v57 }
  0x58   :  { %518 = vmatprep.subr.bf16.mxu0 %v9266_v58 }
  0x5b   :  { %519 = vmatpush1.bf16.msra.mxu0 %v9264_v59 }
  0x5c   :  { %520 = vmatprep.subr.bf16.mxu0 %v9269_v60 }
  0x5f   :  { %521 = vmatpush1.bf16.msra.mxu0 %v9267_v61 }
  0x60   :  { %522 = vmatprep.subr.bf16.mxu0 %v9272_v62 }
  0x63   :  { %523 = vmatpush1.bf16.msra.mxu0 %v9270_v63 }
  0x64   :  { %524 = vmatprep.subr.bf16.mxu0 %v9275_v0 }
  0x67   :  { %525 = vmatpush1.bf16.msra.mxu0 %v9273_v1 }
  0x68   :  { %526 = vmatprep.subr.bf16.mxu0 %v9278_v2 }
  0x6b   :  { %527 = vmatpush1.bf16.msra.mxu0 %v9276_v3 }
  0x6c   :  { %528 = vmatprep.subr.bf16.mxu0 %v9281_v4 }
  0x6f   :  { %529 = vmatpush1.bf16.msra.mxu0 %v9279_v5 }
  0x70   :  { %530 = vmatprep.subr.bf16.mxu0 %v9284_v6 }
  0x73   :  { %531 = vmatpush1.bf16.msra.mxu0 %v9282_v7 }
  0x74   :  { %532 = vmatprep.subr.bf16.mxu0 %v9287_v8 }
  0x77   :  { %533 = vmatpush1.bf16.msra.mxu0 %v9285_v9 }
  0x78   :  { %534 = vmatprep.subr.bf16.mxu0 %v9290_v10 }
  0x7b   :  { %535 = vmatpush1.bf16.msra.mxu0 %v9288_v11 }
  0x7c   :  { %536 = vmatprep.subr.bf16.mxu0 %v9293_v12 }
  0x7f   :  { %537 = vmatpush1.bf16.msra.mxu0 %v9291_v13 }
  0x80   :  { %2769 = vmatprep.subr.bf16.mxu0 %v8209_v49 }
  0x82   :  { %539 = vmatmul.mubr.bf16.vlgmr.msra.gmra.mrb[0].mxu0 %v139_v14 }
  0x83   :  { %2770 = vmatpush1.bf16.msra.mxu0 %v8208_v48 }
  0x84   :  { %2771 = vmatprep.subr.bf16.mxu0 %v8217_v52  ;;  %v9342_v52 = vld [vmem:[%s12913_s4 + $0x8] ss:$16 sps:$4 sm:$0xff]  }
  0x87   :  { %2772 = vmatpush1.bf16.msra.mxu0 %v8216_v56  ;;  %v9350_v56 = vld [vmem:[%s12913_s4 + $0x4c] ss:$16 sps:$4 sm:$0xff]  }
 0x155   :  { %v540_v53 = vpop.f32.mrb[0].mxu0 }
 0x156   :  { %v550_v54 = vsel %vm549_vm0, %v540_v53, 0.0  ;;  %v542_v55 = vpop.f32.mrb[1].mxu0 }
 0x157   :  { %v551_v57 = vrot.slane %v550_v54, 4  ;;  %v557_v58 = vsel %vm549_vm0, %v542_v55, 0.0  ;;  %v544_v59 = vpop.f32.mrb[2].mxu0 }
 0x158   :  { %v558_v60 = vrot.slane %v557_v58, 4  ;;  %v545_v61 = vpop.f32.mrb[3].mxu0  ;;  %v9351_v59 = vld [vmem:[%s12913_s4 + $0x68] ss:$16 sps:$4 sm:$0xff]  }
 0x159   :  { %v552_v62 = vadd.f32 %v551_v57, %v550_v54  ;;  %v9347_v54 = vld [vmem:[%s12913_s4 + $0x2c] ss:$16 sps:$4 sm:$0xff]   ;;  %v9348_v57 = vld [vmem:[%s12913_s4 + $0x48] ss:$16 sps:$4 sm:$0xff]  }
 0x15a   :  { %v559_v63 = vadd.f32 %v558_v60, %v557_v58  ;;  %v9353_v58 = vld [vmem:[%s12913_s4 + $0x6c] ss:$16 sps:$4 sm:$0xff]   ;;  %v9354_v61 = vld [vmem:[%s12913_s4 + $0x88] ss:$16 sps:$4 sm:$0xff]  }
 0x15b   :  { %v553_v0 = vrot.slane %v552_v62, 2  ;;  %v9356_v60 = vld [vmem:[%s12913_s4 + $0x8c] ss:$16 sps:$4 sm:$0xff]  }
 0x15c   :  { %v560_v1 = vrot.slane %v559_v63, 2 }
 0x15d   :  { %v554_v2 = vadd.f32 %v553_v0, %v552_v62  ;;  %v9359_v62 = vld [vmem:[%s12913_s4 + $0xac] ss:$16 sps:$4 sm:$0xff]  }
 0x15e   :  { %v561_v3 = vadd.f32 %v560_v1, %v559_v63  ;;  %v9357_v63 = vld [vmem:[%s12913_s4 + $0xa8] ss:$16 sps:$4 sm:$0xff]   ;;  %v9362_v0 = vld [vmem:[%s12913_s4 + $0xcc] ss:$16 sps:$4 sm:$0xff]  }
 0x15f   :  { %v555_v4 = vrot.slane %v554_v2, 1  ;;  %v9360_v1 = vld [vmem:[%s12913_s4 + $0xc8] ss:$16 sps:$4 sm:$0xff]  }
 0x160   :  { %v562_v5 = vrot.slane %v561_v3, 1 }
 0x161   :  { %v556_v6 = vadd.f32 %v555_v4, %v554_v2  ;;  %v9365_v2 = vld [vmem:[%s12913_s4 + $0xec] ss:$16 sps:$4 sm:$0xff]  }
 0x162   :  { %v563_v7 = vadd.f32 %v562_v5, %v561_v3  ;;  %v9363_v3 = vld [vmem:[%s12913_s4 + $0xe8] ss:$16 sps:$4 sm:$0xff]   ;;  %v9368_v4 = vld [vmem:[%s12913_s4 + $0x10c] ss:$16 sps:$4 sm:$0xff]  }
 0x163   :  { %v565_v8 = vmul.f32 0.5, %v556_v6  ;;  %v9366_v5 = vld [vmem:[%s12913_s4 + $0x108] ss:$16 sps:$4 sm:$0xff]   ;;  %v9371_v6 = vld [vmem:[%s12913_s4 + $0x12c] ss:$16 sps:$4 sm:$0xff]  }
 0x164   :  { %v566_v9 = vmul.f32 0.5, %v563_v7  ;;  %v9369_v7 = vld [vmem:[%s12913_s4 + $0x128] ss:$16 sps:$4 sm:$0xff]  }
 0x165   :  { %v567_v10 = vsub.f32 %v540_v53, %v565_v8  ;;  %v9374_v8 = vld [vmem:[%s12913_s4 + $0x14c] ss:$16 sps:$4 sm:$0xff]  }
 0x166   :  { %v568_v11 = vsub.f32 %v542_v55, %v566_v9  ;;  %v9345_v55 = vld [vmem:[%s12913_s4 + $0x28] ss:$16 sps:$4 sm:$0xff]  }
 0x167   :  { %v569_v12 = vmul.f32 %v567_v10, %v567_v10  ;;  %v9372_v9 = vld [vmem:[%s12913_s4 + $0x148] ss:$16 sps:$4 sm:$0xff]  }
 0x168   :  { %v570_v13 = vmul.f32 %v568_v11, %v568_v11 }
 0x169   :  { %v571_v14 = vsel %vm549_vm0, %v569_v12, 0.0  ;;  %v9380_v12 = vld [vmem:[%s12913_s4 + $0x18c] ss:$16 sps:$4 sm:$0xff]  }
 0x16a   :  { %v572_v16 = vrot.slane %v571_v14, 4  ;;  %v578_v17 = vsel %vm549_vm0, %v570_v13, 0.0  ;;  %v9378_v13 = vld [vmem:[%s12913_s4 + $0x188] ss:$16 sps:$4 sm:$0xff]  }
 0x16b   :  { %v579_v18 = vrot.slane %v578_v17, 4 }
 0x16c   :  { %v573_v19 = vadd.f32 %v572_v16, %v571_v14  ;;  %v9383_v14 = vld [vmem:[%s12913_s4 + $0x1ac] ss:$16 sps:$4 sm:$0xff]   ;;  %v9381_v16 = vld [vmem:[%s12913_s4 + $0x1a8] ss:$16 sps:$4 sm:$0xff]  }
 0x16d   :  { %v580_v20 = vadd.f32 %v579_v18, %v578_v17  ;;  %v9386_v17 = vld [vmem:[%s12913_s4 + $0x1cc] ss:$16 sps:$4 sm:$0xff]   ;;  %v9384_v18 = vld [vmem:[%s12913_s4 + $0x1c8] ss:$16 sps:$4 sm:$0xff]  }
 0x16e   :  { %v574_v21 = vrot.slane %v573_v19, 2 }
 0x16f   :  { %v581_v22 = vrot.slane %v580_v20, 2 }
 0x170   :  { %v575_v23 = vadd.f32 %v574_v21, %v573_v19  ;;  %v9389_v19 = vld [vmem:[%s12913_s4 + $0x1ec] ss:$16 sps:$4 sm:$0xff]  }
 0x171   :  { %v582_v24 = vadd.f32 %v581_v22, %v580_v20  ;;  %v1234_v20 = vld [vmem:[%s12914_s7 + $0x8] sm:$0xff] }
 0x172   :  { %v576_v25 = vrot.slane %v575_v23, 1  ;;  %v1238_v21 = vld [vmem:[%s12914_s7 + $0x28] sm:$0xff] }
 0x173   :  { %v583_v26 = vrot.slane %v582_v24, 1  ;;  %v9387_v22 = vld [vmem:[%s12913_s4 + $0x1e8] ss:$16 sps:$4 sm:$0xff]  }
 0x174   :  { %v577_v27 = vadd.f32 %v576_v25, %v575_v23  ;;  %v8211_v23 = vcombine.high %v1234_v20, %v1238_v21  ;;  %v1246_v25 = vld [vmem:[%s12914_s7 + $0x68] sm:$0xff] }
 0x175   :  { %v584_v28 = vadd.f32 %v583_v26, %v582_v24  ;;  %v1242_v24 = vld [vmem:[%s12914_s7 + $0x48] sm:$0xff]  ;;  %v8210_v26 = vcombine.low %v1234_v20, %v1238_v21 }
 0x176   :  { %v585_v29 = vmul.f32 0.5, %v577_v27  ;;  %v8219_v27 = vcombine.high %v1242_v24, %v1246_v25  ;;  %v1302_v20 = vld [vmem:[%s12914_s7 + $0x228] sm:$0xff] }
 0x177   :  { %v586_v30 = vmul.f32 0.5, %v584_v28  ;;  %v8218_v28 = vcombine.low %v1242_v24, %v1246_v25  ;;  %v1305_v24 = vld [vmem:[%s12914_s7 + $0x240] sm:$0xff] }
 0x178   :  { %v587_v31 = vadd.f32 1e-05, %v585_v29  ;;  %v1249_v29 = vld [vmem:[%s12914_s7 + $0x80] sm:$0xff] }
 0x179   :  { %v588_v32 = vadd.f32 1e-05, %v586_v30  ;;  %v1253_v30 = vld [vmem:[%s12914_s7 + $0xa0] sm:$0xff] }
 0x17a   :  { %9454 = vrsqrt.f32 %v587_v31  ;;  %v1250_v31 = vld [vmem:[%s12914_s7 + $0x88] sm:$0xff]  ;;  %v8224_v36 = vcombine.low %v1249_v29, %v1253_v30  ;;  %v1309_v25 = vld [vmem:[%s12914_s7 + $0x260] sm:$0xff] }
 0x17b   :  { %9456 = vrsqrt.f32 %v588_v32  ;;  %v8225_v32 = vcombine.high %v1249_v29, %v1253_v30  ;;  %v8280_v29 = vcombine.low %v1305_v24, %v1309_v25 }
 0x17d   :  { %2773 = vmatprep.subr.bf16.mxu0 %v8225_v32  ;;  %v1313_v32 = vld [vmem:[%s12914_s7 + $0x280] sm:$0xff] }
 0x17e   :  { %2774 = vmatpush1.bf16.msra.mxu0 %v8224_v36  ;;  %v1314_v36 = vld [vmem:[%s12914_s7 + $0x288] sm:$0xff] }
 0x184   :  { %v9455_v38 = vpop.eup %9454 }
 0x185   :  { %v9457_v40 = vpop.eup %9456  ;;  %v591_v41 = vmul.f32 %v9455_v38, %v567_v10  ;;  %v9377_v10 = vld [vmem:[%s12913_s4 + $0x16c] ss:$16 sps:$4 sm:$0xff]   ;;  %v8227_v38 = vcombine.high %v1250_v31, %v1254_v34 }
 0x186   :  { %v592_v43 = vmul.f32 %v9457_v40, %v568_v11  ;;  %v9375_v11 = vld [vmem:[%s12913_s4 + $0x168] ss:$16 sps:$4 sm:$0xff]   ;;  %v1261_v40 = vld [vmem:[%s12914_s7 + $0xe0] sm:$0xff] }
 0x187   :  { %v604_v45 = vmul.f32 %v597_v37, %v591_v41  ;;  %v8226_v37 = vcombine.low %v1250_v31, %v1254_v34  ;;  %v1258_v41 = vld [vmem:[%s12914_s7 + $0xc8] sm:$0xff]  ;;  %v1317_v34 = vld [vmem:[%s12914_s7 + $0x2a0] sm:$0xff] }
 0x188   :  { %v605_v46 = vmul.f32 %v601_v39, %v592_v43  ;;  %v1257_v39 = vld [vmem:[%s12914_s7 + $0xc0] sm:$0xff]  ;;  %v1262_v43 = vld [vmem:[%s12914_s7 + $0xe8] sm:$0xff] }
 0x189   :  { %v617_v47 = vadd.f32 %v610_v42, %v604_v45  ;;  %v8233_v42 = vcombine.high %v1257_v39, %v1261_v40  ;;  %v8234_v45 = vcombine.low %v1258_v41, %v1262_v43 }
 0x18a   :  { %v618_v48 = vadd.f32 %v614_v44, %v605_v46  ;;  %v8232_v44 = vcombine.low %v1257_v39, %v1261_v40  ;;  %v8235_v46 = vcombine.high %v1258_v41, %v1262_v43  ;;  %v8288_v39 = vcombine.low %v1313_v32, %v1317_v34  ;;  %v1325_v43 = vld [vmem:[%s12914_s7 + $0x2e0] sm:$0xff] }
 0x18b   :  { %v619_v49 = vmax.f32 %v617_v47, 0.0  ;;  %2775 = vmatprep.subr.bf16.mxu0 %v8233_v42  ;;  %v1265_v47 = vld [vmem:[%s12914_s7 + $0x100] sm:$0xff] }
 0x18c   :  { %v620_v50 = vmax.f32 %v618_v48, 0.0  ;;  %2776 = vmatpush1.bf16.msra.mxu0 %v8232_v44  ;;  %v1269_v48 = vld [vmem:[%s12914_s7 + $0x120] sm:$0xff]  ;;  %v1322_v44 = vld [vmem:[%s12914_s7 + $0x2c8] sm:$0xff] }
 0x18d   :  { %v9920_v53 = vpack.c.bf16 %v619_v49, %v619_v49  ;;  %v1266_v49 = vld [vmem:[%s12914_s7 + $0x108] sm:$0xff]  ;;  %v1321_v42 = vld [vmem:[%s12914_s7 + $0x2c0] sm:$0xff] }
 0x18e   :  { %v622_v51 = vpack.c.bf16 %v620_v50, %v620_v50  ;;  %v8241_v50 = vcombine.high %v1265_v47, %v1269_v48 }
 0x190   :  { %1039 = vmatprep.mubr.bf16.mxu1 %v622_v51  ;;  %2777 = vmatprep.subr.bf16.mxu0 %v8241_v50  ;;  %v1329_v50 = vld [vmem:[%s12914_s7 + $0x300] sm:$0xff] }
 0x191   :  { %1040 = vmatmul.mubr.bf16.vlgmr.msra.gmra.mrb[0].mxu1 %v9920_v53 }
 0x192   :  { %1049 = vmatpush1.bf16.msra.mxu1 %v9342_v52  ;;  %1080 = vmatprep.mubr.bf16.mxu1 %v622_v51  ;;  %v1270_v51 = vld [vmem:[%s12914_s7 + $0x128] sm:$0xff]  ;;  %v8240_v52 = vcombine.low %v1265_v47, %v1269_v48  ;;  %v8296_v47 = vcombine.low %v1321_v42, %v1325_v43 }
 0x193   :  { %1050 = vmatprep.subr.bf16.mxu1 %v9347_v54  ;;  %v8243_v54 = vcombine.high %v1266_v49, %v1270_v51 }
 0x194   :  { %2778 = vmatpush1.bf16.msra.mxu0 %v8240_v52  ;;  %v1330_v52 = vld [vmem:[%s12914_s7 + $0x308] sm:$0xff] }
 0x196   :  { %1051 = vmatpush1.bf16.msra.mxu1 %v9345_v55  ;;  %v1273_v55 = vld [vmem:[%s12914_s7 + $0x140] sm:$0xff] }
 0x197   :  { %1052 = vmatprep.subr.bf16.mxu1 %v9350_v56  ;;  %v1277_v56 = vld [vmem:[%s12914_s7 + $0x160] sm:$0xff] }
 0x19a   :  { %1053 = vmatpush1.bf16.msra.mxu1 %v9348_v57  ;;  %v1274_v57 = vld [vmem:[%s12914_s7 + $0x148] sm:$0xff] }
 0x19b   :  { %1054 = vmatprep.subr.bf16.mxu1 %v9353_v58  ;;  %v8249_v58 = vcombine.high %v1273_v55, %v1277_v56 }
 0x19d   :  { %2779 = vmatprep.subr.bf16.mxu0 %v8249_v58  ;;  %v1337_v58 = vld [vmem:[%s12914_s7 + $0x340] sm:$0xff] }
 0x19e   :  { %1055 = vmatpush1.bf16.msra.mxu1 %v9351_v59  ;;  %v1278_v59 = vld [vmem:[%s12914_s7 + $0x168] sm:$0xff] }
 0x19f   :  { %1056 = vmatprep.subr.bf16.mxu1 %v9356_v60  ;;  %v8248_v60 = vcombine.low %v1273_v55, %v1277_v56 }
 0x1a1   :  { %2780 = vmatpush1.bf16.msra.mxu0 %v8248_v60  ;;  %v1338_v60 = vld [vmem:[%s12914_s7 + $0x348] sm:$0xff] }
 0x1a2   :  { %1057 = vmatpush1.bf16.msra.mxu1 %v9354_v61  ;;  %v8250_v61 = vcombine.low %v1274_v57, %v1278_v59 }
 0x1a3   :  { %1058 = vmatprep.subr.bf16.mxu1 %v9359_v62  ;;  %v8251_v62 = vcombine.high %v1274_v57, %v1278_v59  ;;  %v1341_v59 = vld [vmem:[%s12914_s7 + $0x360] sm:$0xff] }
 0x1a6   :  { %1059 = vmatpush1.bf16.msra.mxu1 %v9357_v63  ;;  %v1281_v63 = vld [vmem:[%s12914_s7 + $0x180] sm:$0xff] }
 0x1a7   :  { %1060 = vmatprep.subr.bf16.mxu1 %v9362_v0  ;;  %v1285_v0 = vld [vmem:[%s12914_s7 + $0x1a0] sm:$0xff] }
 0x1aa   :  { %1061 = vmatpush1.bf16.msra.mxu1 %v9360_v1  ;;  %v1282_v1 = vld [vmem:[%s12914_s7 + $0x188] sm:$0xff] }
 0x1ab   :  { %1062 = vmatprep.subr.bf16.mxu1 %v9365_v2  ;;  %v8257_v2 = vcombine.high %v1281_v63, %v1285_v0 }
 0x1ad   :  { %2781 = vmatprep.subr.bf16.mxu0 %v8257_v2  ;;  %v1345_v2 = vld [vmem:[%s12914_s7 + $0x380] sm:$0xff] }
 0x1ae   :  { %1063 = vmatpush1.bf16.msra.mxu1 %v9363_v3  ;;  %v1286_v3 = vld [vmem:[%s12914_s7 + $0x1a8] sm:$0xff] }
 0x1af   :  { %1064 = vmatprep.subr.bf16.mxu1 %v9368_v4  ;;  %v8256_v4 = vcombine.low %v1281_v63, %v1285_v0  ;;  %v8312_v63 = vcombine.low %v1337_v58, %v1341_v59 }
 0x1b1   :  { %2782 = vmatpush1.bf16.msra.mxu0 %v8256_v4  ;;  %v1346_v4 = vld [vmem:[%s12914_s7 + $0x388] sm:$0xff] }
 0x1b2   :  { %1065 = vmatpush1.bf16.msra.mxu1 %v9366_v5  ;;  %v8258_v5 = vcombine.low %v1282_v1, %v1286_v3 }
 0x1b3   :  { %1066 = vmatprep.subr.bf16.mxu1 %v9371_v6  ;;  %v8259_v6 = vcombine.high %v1282_v1, %v1286_v3  ;;  %v1349_v3 = vld [vmem:[%s12914_s7 + $0x3a0] sm:$0xff] }
 0x1b6   :  { %1067 = vmatpush1.bf16.msra.mxu1 %v9369_v7  ;;  %v1289_v7 = vld [vmem:[%s12914_s7 + $0x1c0] sm:$0xff] }
 0x1b7   :  { %1068 = vmatprep.subr.bf16.mxu1 %v9374_v8  ;;  %v1293_v8 = vld [vmem:[%s12914_s7 + $0x1e0] sm:$0xff] }
 0x1ba   :  { %1069 = vmatpush1.bf16.msra.mxu1 %v9372_v9  ;;  %v1290_v9 = vld [vmem:[%s12914_s7 + $0x1c8] sm:$0xff] }
 0x1bb   :  { %1070 = vmatprep.subr.bf16.mxu1 %v9377_v10  ;;  %v8265_v10 = vcombine.high %v1289_v7, %v1293_v8 }
 0x1bd   :  { %2783 = vmatprep.subr.bf16.mxu0 %v8265_v10  ;;  %v1353_v10 = vld [vmem:[%s12914_s7 + $0x3c0] sm:$0xff] }
 0x1be   :  { %1071 = vmatpush1.bf16.msra.mxu1 %v9375_v11  ;;  %v1294_v11 = vld [vmem:[%s12914_s7 + $0x1e8] sm:$0xff] }
 0x1bf   :  { %1072 = vmatprep.subr.bf16.mxu1 %v9380_v12  ;;  %v8264_v12 = vcombine.low %v1289_v7, %v1293_v8  ;;  %v8320_v7 = vcombine.low %v1345_v2, %v1349_v3 }
 0x1c1   :  { %2784 = vmatpush1.bf16.msra.mxu0 %v8264_v12  ;;  %v1354_v12 = vld [vmem:[%s12914_s7 + $0x3c8] sm:$0xff] }
 0x1c2   :  { %1073 = vmatpush1.bf16.msra.mxu1 %v9378_v13  ;;  %v8266_v13 = vcombine.low %v1290_v9, %v1294_v11 }
 0x1c3   :  { %1074 = vmatprep.subr.bf16.mxu1 %v9383_v14  ;;  %v8267_v14 = vcombine.high %v1290_v9, %v1294_v11  ;;  %v1357_v11 = vld [vmem:[%s12914_s7 + $0x3e0] sm:$0xff] }
 0x1c6   :  { %1075 = vmatpush1.bf16.msra.mxu1 %v9381_v16  ;;  %v1297_v16 = vld [vmem:[%s12914_s7 + $0x200] sm:$0xff] }
 0x1c7   :  { %1076 = vmatprep.subr.bf16.mxu1 %v9386_v17  ;;  %v1301_v17 = vld [vmem:[%s12914_s7 + $0x220] sm:$0xff] }
 0x1c8   :  { %v8272_v21 = vcombine.low %v1297_v16, %v1301_v17 }
 0x1ca   :  { %1077 = vmatpush1.bf16.msra.mxu1 %v9384_v18  ;;  %v1298_v18 = vld [vmem:[%s12914_s7 + $0x208] sm:$0xff] }
 0x1cb   :  { %1078 = vmatprep.subr.bf16.mxu1 %v9389_v19  ;;  %v8273_v19 = vcombine.high %v1297_v16, %v1301_v17  ;;  %v1358_v16 = vld [vmem:[%s12914_s7 + $0x3e8] sm:$0xff] }
 0x1cc   :  { %v8330_v17 = vcombine.low %v1354_v12, %v1358_v16 }
 0x1cd   :  { %2785 = vmatprep.subr.bf16.mxu0 %v8273_v19  ;;  %v10197_v19 = vld [vmem:[%s12914_s7 + $0x400] sm:$0xff] }
 0x1ce   :  { %1079 = vmatpush1.bf16.msra.mxu1 %v9387_v22  ;;  %v8274_v22 = vcombine.low %v1298_v18, %v1302_v20  ;;  %2786 = vmatpush1.bf16.msra.mxu0 %v8272_v21  ;;  %v10207_v21 = vld [vmem:[%s12914_s7 + $0x408] sm:$0xff] }
 0x1cf   :  { %2851 = vmatprep.subr.bf16.mxu1 %v8211_v23  ;;  %v8275_v23 = vcombine.high %v1298_v18, %v1302_v20  ;;  %v8331_v18 = vcombine.high %v1354_v12, %v1358_v16  ;;  %v10202_v20 = vld [vmem:[%s12914_s7 + $0x420] sm:$0xff] }
 0x1d1   :  { %1081 = vmatmul.mubr.bf16.vlgmr.msra.gmra.mrb[4].mxu1 %v9920_v53  ;;  %v8242_v53 = vcombine.low %v1266_v49, %v1270_v51  ;;  %v1333_v51 = vld [vmem:[%s12914_s7 + $0x320] sm:$0xff] }
 0x1d2   :  { %2852 = vmatpush1.bf16.msra.mxu1 %v8210_v26  ;;  %v1306_v26 = vld [vmem:[%s12914_s7 + $0x248] sm:$0xff]  ;;  %v8304_v55 = vcombine.low %v1329_v50, %v1333_v51 }
 0x1d3   :  { %2853 = vmatprep.subr.bf16.mxu1 %v8219_v27  ;;  %v8281_v27 = vcombine.high %v1305_v24, %v1309_v25  ;;  %v8336_v24 = vcombine.low %v10197_v19, %v10202_v20 }
 0x1d5   :  { %2787 = vmatprep.subr.bf16.mxu0 %v8281_v27 }
 0x1d6   :  { %2854 = vmatpush1.bf16.msra.mxu1 %v8218_v28  ;;  %v1310_v28 = vld [vmem:[%s12914_s7 + $0x268] sm:$0xff]  ;;  %2788 = vmatpush1.bf16.msra.mxu0 %v8280_v29 }
 0x1d7   :  { %2855 = vmatprep.subr.bf16.mxu1 %v8227_v38  ;;  %v8282_v30 = vcombine.low %v1306_v26, %v1310_v28  ;;  %v8283_v31 = vcombine.high %v1306_v26, %v1310_v28  ;;  %v1318_v38 = vld [vmem:[%s12914_s7 + $0x2a8] sm:$0xff] }
 0x1d8   :  { %v8290_v40 = vcombine.low %v1314_v36, %v1318_v38  ;;  %v8291_v41 = vcombine.high %v1314_v36, %v1318_v38 }
 0x1da   :  { %2856 = vmatpush1.bf16.msra.mxu1 %v8226_v37  ;;  %v8289_v37 = vcombine.high %v1313_v32, %v1317_v34 }
 0x1db   :  { %2857 = vmatprep.subr.bf16.mxu1 %v8235_v46  ;;  %v1326_v46 = vld [vmem:[%s12914_s7 + $0x2e8] sm:$0xff] }
 0x1dc   :  { %2789 = vmatprep.subr.bf16.mxu0 %v8289_v37  ;;  %v8298_v48 = vcombine.low %v1322_v44, %v1326_v46  ;;  %v8299_v49 = vcombine.high %v1322_v44, %v1326_v46 }
 0x1dd   :  { %2790 = vmatpush1.bf16.msra.mxu0 %v8288_v39 }
 0x1de   :  { %2858 = vmatpush1.bf16.msra.mxu1 %v8234_v45  ;;  %v8297_v45 = vcombine.high %v1321_v42, %v1325_v43 }
 0x1df   :  { %2859 = vmatprep.subr.bf16.mxu1 %v8243_v54  ;;  %v1334_v54 = vld [vmem:[%s12914_s7 + $0x328] sm:$0xff] }
 0x1e0   :  { %2791 = vmatprep.subr.bf16.mxu0 %v8297_v45  ;;  %v8306_v56 = vcombine.low %v1330_v52, %v1334_v54  ;;  %v8307_v57 = vcombine.high %v1330_v52, %v1334_v54 }
 0x1e1   :  { %2792 = vmatpush1.bf16.msra.mxu0 %v8296_v47 }
 0x1e2   :  { %2860 = vmatpush1.bf16.msra.mxu1 %v8242_v53  ;;  %v8305_v53 = vcombine.high %v1329_v50, %v1333_v51 }
 0x1e3   :  { %2861 = vmatprep.subr.bf16.mxu1 %v8251_v62  ;;  %v1342_v62 = vld [vmem:[%s12914_s7 + $0x368] sm:$0xff] }
 0x1e4   :  { %2793 = vmatprep.subr.bf16.mxu0 %v8305_v53  ;;  %v8314_v0 = vcombine.low %v1338_v60, %v1342_v62  ;;  %v8315_v1 = vcombine.high %v1338_v60, %v1342_v62 }
 0x1e5   :  { %2794 = vmatpush1.bf16.msra.mxu0 %v8304_v55 }
 0x1e6   :  { %2862 = vmatpush1.bf16.msra.mxu1 %v8250_v61  ;;  %v8313_v61 = vcombine.high %v1337_v58, %v1341_v59 }
 0x1e7   :  { %2863 = vmatprep.subr.bf16.mxu1 %v8259_v6  ;;  %v1350_v6 = vld [vmem:[%s12914_s7 + $0x3a8] sm:$0xff] }
 0x1e8   :  { %2795 = vmatprep.subr.bf16.mxu0 %v8313_v61  ;;  %v8322_v8 = vcombine.low %v1346_v4, %v1350_v6  ;;  %v8323_v9 = vcombine.high %v1346_v4, %v1350_v6 }
 0x1e9   :  { %2796 = vmatpush1.bf16.msra.mxu0 %v8312_v63 }
 0x1ea   :  { %2864 = vmatpush1.bf16.msra.mxu1 %v8258_v5  ;;  %v8321_v5 = vcombine.high %v1345_v2, %v1349_v3 }
 0x1eb   :  { %2865 = vmatprep.subr.bf16.mxu1 %v8267_v14  ;;  %v8329_v14 = vcombine.high %v1353_v10, %v1357_v11 }
 0x1ec   :  { %2797 = vmatprep.subr.bf16.mxu0 %v8321_v5 }
 0x1ed   :  { %2798 = vmatpush1.bf16.msra.mxu0 %v8320_v7  ;;  %v10229_v7 = vld [vmem:[%s12917_s5] sm:$0xf] }
 0x1ee   :  { %2866 = vmatpush1.bf16.msra.mxu1 %v8266_v13  ;;  %v8328_v13 = vcombine.low %v1353_v10, %v1357_v11  ;;  %2799 = vmatprep.subr.bf16.mxu0 %v8329_v14  ;;  %v1183_v11 = vrot.slane %v10229_v7, %v9908_v35 }
 0x1ef   :  { %2867 = vmatprep.subr.bf16.mxu1 %v8275_v23  ;;  %v10214_v23 = vld [vmem:[%s12914_s7 + $0x428] sm:$0xff] }
 0x1f0   :  { %v8338_v25 = vcombine.low %v10207_v21, %v10214_v23  ;;  %v8339_v26 = vcombine.high %v10207_v21, %v10214_v23 }
 0x1f1   :  { %2800 = vmatpush1.bf16.msra.mxu0 %v8328_v13 }
 0x1f2   :  { %2868 = vmatpush1.bf16.msra.mxu1 %v8274_v22  ;;  %v8337_v22 = vcombine.high %v10197_v19, %v10202_v20  ;;  %v1386_v19 = vld [vmem:[%s12914_s7 + $0x4c8] sm:$0xff] }
 0x1f3   :  { %2869 = vmatprep.subr.bf16.mxu1 %v8283_v31  ;;  %v1390_v20 = vld [vmem:[%s12914_s7 + $0x4e8] sm:$0xff] }
 0x1f4   :  { %2810 = vmatprep.subr.bf16.mxu0 %v8337_v22 }
 0x1f6   :  { %2870 = vmatpush1.bf16.msra.mxu1 %v8282_v30 }
 0x1f7   :  { %2871 = vmatprep.subr.bf16.mxu1 %v8291_v41 }
 0x1fa   :  { %2872 = vmatpush1.bf16.msra.mxu1 %v8290_v40 }
 0x1fb   :  { %2873 = vmatprep.subr.bf16.mxu1 %v8299_v49 }
 0x1fe   :  { %2874 = vmatpush1.bf16.msra.mxu1 %v8298_v48 }
 0x1ff   :  { %2875 = vmatprep.subr.bf16.mxu1 %v8307_v57 }
 0x202   :  { %2876 = vmatpush1.bf16.msra.mxu1 %v8306_v56 }
 0x203   :  { %2877 = vmatprep.subr.bf16.mxu1 %v8315_v1 }
 0x206   :  { %2878 = vmatpush1.bf16.msra.mxu1 %v8314_v0 }
 0x207   :  { %2879 = vmatprep.subr.bf16.mxu1 %v8323_v9  ;;  %v1179_v9 = vrot.slane %v10229_v7, %v9902_v33 }
 0x20a   :  { %2880 = vmatpush1.bf16.msra.mxu1 %v8322_v8  ;;  %v10234_v8 = vld [vmem:[%s12918_s6] sm:$0xf] }
 0x20b   :  { %2881 = vmatprep.subr.bf16.mxu1 %v8331_v18  ;;  %v1204_v14 = vrot.slane %v10234_v8, %v9902_v33 }
 0x20e   :  { %2882 = vmatpush1.bf16.msra.mxu1 %v8330_v17  ;;  %v1208_v17 = vrot.slane %v10234_v8, %v9908_v35 }
 0x20f   :  { %2892 = vmatprep.subr.bf16.mxu1 %v8339_v26 }
 0x264   :  { %v1041_v27 = vpop.f32.mrb[0].mxu1 }
 0x265   :  { %v1091_v28 = vsel %vm549_vm0, %v1041_v27, 0.0  ;;  %v1043_v29 = vpop.f32.mrb[1].mxu1 }
 0x266   :  { %v1092_v30 = vrot.slane %v1091_v28, 4  ;;  %v1098_v31 = vsel %vm549_vm0, %v1043_v29, 0.0  ;;  %v1045_v32 = vpop.f32.mrb[2].mxu1 }
 0x267   :  { %v1099_v34 = vrot.slane %v1098_v31, 4  ;;  %v1046_v36 = vpop.f32.mrb[3].mxu1  ;;  %v1370_v32 = vld [vmem:[%s12914_s7 + $0x448] sm:$0xff] }
 0x268   :  { %v1093_v37 = vadd.f32 %v1092_v30, %v1091_v28 }
 0x269   :  { %v1100_v38 = vadd.f32 %v1099_v34, %v1098_v31  ;;  %v1373_v31 = vld [vmem:[%s12914_s7 + $0x460] sm:$0xff]  ;;  %v1374_v34 = vld [vmem:[%s12914_s7 + $0x468] sm:$0xff] }
 0x26a   :  { %v1094_v39 = vrot.slane %v1093_v37, 2 }
 0x26b   :  { %v1101_v40 = vrot.slane %v1100_v38, 2 }
 0x26c   :  { %v1095_v41 = vadd.f32 %v1094_v39, %v1093_v37  ;;  %v8347_v39 = vcombine.high %v1370_v32, %v1374_v34 }
 0x26d   :  { %v1102_v42 = vadd.f32 %v1101_v40, %v1100_v38  ;;  %v1377_v40 = vld [vmem:[%s12914_s7 + $0x480] sm:$0xff] }
 0x26e   :  { %v1096_v43 = vrot.slane %v1095_v41, 1 }
 0x26f   :  { %v1103_v44 = vrot.slane %v1102_v42, 1 }
 0x270   :  { %v1097_v45 = vadd.f32 %v1096_v43, %v1095_v41  ;;  %v1381_v41 = vld [vmem:[%s12914_s7 + $0x4a0] sm:$0xff]  ;;  %v1382_v43 = vld [vmem:[%s12914_s7 + $0x4a8] sm:$0xff] }
 0x271   :  { %v1104_v46 = vadd.f32 %v1103_v44, %v1102_v42  ;;  %v1378_v42 = vld [vmem:[%s12914_s7 + $0x488] sm:$0xff] }
 0x272   :  { %v1119_v47 = vmul.f32 0.5, %v1097_v45  ;;  %v8346_v45 = vcombine.low %v1370_v32, %v1374_v34 }
 0x273   :  { %v1120_v48 = vmul.f32 0.5, %v1104_v46  ;;  %v8353_v46 = vcombine.high %v1377_v40, %v1381_v41 }
 0x274   :  { %v1123_v49 = vsub.f32 %v1041_v27, %v1119_v47  ;;  %v8355_v47 = vcombine.high %v1378_v42, %v1382_v43 }
 0x275   :  { %v1124_v50 = vsub.f32 %v1043_v29, %v1120_v48  ;;  %v1369_v29 = vld [vmem:[%s12914_s7 + $0x440] sm:$0xff] }
 0x276   :  { %v1127_v51 = vmul.f32 %v1123_v49, %v1123_v49  ;;  %v8345_v38 = vcombine.high %v1369_v29, %v1373_v31  ;;  %v8344_v44 = vcombine.low %v1369_v29, %v1373_v31  ;;  %v1385_v48 = vld [vmem:[%s12914_s7 + $0x4c0] sm:$0xff]  ;;  %v1410_v29 = vld [vmem:[%s12914_s7 + $0x588] sm:$0xff] }
 0x277   :  { %v1128_v52 = vmul.f32 %v1124_v50, %v1124_v50 }
 0x278   :  { %v1131_v53 = vsel %vm549_vm0, %v1127_v51, 0.0 }
 0x279   :  { %v1132_v54 = vrot.slane %v1131_v53, 4  ;;  %v1138_v55 = vsel %vm549_vm0, %v1128_v52, 0.0 }
 0x27a   :  { %v1139_v56 = vrot.slane %v1138_v55, 4 }
 0x27b   :  { %v1133_v57 = vadd.f32 %v1132_v54, %v1131_v53 }
 0x27c   :  { %v1140_v58 = vadd.f32 %v1139_v56, %v1138_v55  ;;  %v8363_v55 = vcombine.high %v1386_v19, %v1390_v20  ;;  %v1393_v56 = vld [vmem:[%s12914_s7 + $0x500] sm:$0xff] }
 0x27d   :  { %v1134_v59 = vrot.slane %v1133_v57, 2 }
 0x27e   :  { %v1141_v60 = vrot.slane %v1140_v58, 2 }
 0x27f   :  { %v1135_v61 = vadd.f32 %v1134_v59, %v1133_v57  ;;  %v1397_v59 = vld [vmem:[%s12914_s7 + $0x520] sm:$0xff] }
 0x280   :  { %v1142_v62 = vadd.f32 %v1141_v60, %v1140_v58  ;;  %v1394_v60 = vld [vmem:[%s12914_s7 + $0x508] sm:$0xff] }
 0x281   :  { %v1136_v63 = vrot.slane %v1135_v61, 1 }
 0x282   :  { %v1143_v0 = vrot.slane %v1142_v62, 1 }
 0x283   :  { %v1137_v1 = vadd.f32 %v1136_v63, %v1135_v61  ;;  %v1398_v61 = vld [vmem:[%s12914_s7 + $0x528] sm:$0xff] }
 0x284   :  { %v1144_v2 = vadd.f32 %v1143_v0, %v1142_v62 }
 0x285   :  { %v1159_v3 = vmul.f32 0.5, %v1137_v1  ;;  %v8362_v1 = vcombine.low %v1386_v19, %v1390_v20 }
 0x286   :  { %v1160_v4 = vmul.f32 0.5, %v1144_v2 }
 0x287   :  { %v1163_v5 = vadd.f32 1e-05, %v1159_v3  ;;  %v8369_v3 = vcombine.high %v1393_v56, %v1397_v59 }
 0x288   :  { %v1164_v6 = vadd.f32 1e-05, %v1160_v4  ;;  %v8371_v4 = vcombine.high %v1394_v60, %v1398_v61 }
 0x289   :  { %9458 = vrsqrt.f32 %v1163_v5  ;;  %v1401_v5 = vld [vmem:[%s12914_s7 + $0x540] sm:$0xff] }
 0x28a   :  { %9460 = vrsqrt.f32 %v1164_v6 }
 0x293   :  { %v9459_v10 = vpop.eup %9458 }
 0x294   :  { %v9461_v12 = vpop.eup %9460  ;;  %v1171_v13 = vmul.f32 %v9459_v10, %v1123_v49  ;;  %v1389_v49 = vld [vmem:[%s12914_s7 + $0x4e0] sm:$0xff]  ;;  %v1402_v10 = vld [vmem:[%s12914_s7 + $0x548] sm:$0xff] }
 0x295   :  { %v1172_v16 = vmul.f32 %v9461_v12, %v1124_v50  ;;  %v8354_v50 = vcombine.low %v1378_v42, %v1382_v43  ;;  %v8361_v54 = vcombine.high %v1385_v48, %v1389_v49  ;;  %v8360_v0 = vcombine.low %v1385_v48, %v1389_v49  ;;  %v1417_v42 = vld [vmem:[%s12914_s7 + $0x5c0] sm:$0xff] }
 0x296   :  { %v1196_v18 = vmul.f32 %v1179_v9, %v1171_v13  ;;  %v1405_v9 = vld [vmem:[%s12914_s7 + $0x560] sm:$0xff] }
 0x297   :  { %v1197_v22 = vmul.f32 %v1183_v11, %v1172_v16  ;;  %v1406_v11 = vld [vmem:[%s12914_s7 + $0x568] sm:$0xff]  ;;  %v8370_v16 = vcombine.low %v1394_v60, %v1398_v61  ;;  %v8376_v34 = vcombine.low %v1401_v5, %v1405_v9  ;;  %v1433_v61 = vld [vmem:[%s12914_s7 + $0x640] sm:$0xff] }
 0x298   :  { %v1221_v26 = vadd.f32 %v1204_v14, %v1196_v18  ;;  %v8368_v14 = vcombine.low %v1393_v56, %v1397_v59  ;;  %v8377_v18 = vcombine.high %v1401_v5, %v1405_v9 }
 0x299   :  { %v1222_v27 = vadd.f32 %v1208_v17, %v1197_v22  ;;  %v8379_v22 = vcombine.high %v1402_v10, %v1406_v11 }
 0x29a   :  { %v1225_v28 = vmax.f32 %v1221_v26, 0.0  ;;  %v1409_v26 = vld [vmem:[%s12914_s7 + $0x580] sm:$0xff] }
 0x29b   :  { %v1226_v30 = vmax.f32 %v1222_v27, 0.0 }
 0x29c   :  { %v10258_v37 = vpack.c.bf16 %v1225_v28, %v1225_v28  ;;  %v1413_v28 = vld [vmem:[%s12914_s7 + $0x5a0] sm:$0xff] }
 0x29d   :  { %v10256_v36 = vpack.c.bf16 %v1226_v30, %v1226_v30  ;;  %v1414_v30 = vld [vmem:[%s12914_s7 + $0x5a8] sm:$0xff]  ;;  %v8384_v49 = vcombine.low %v1409_v26, %v1413_v28 }
 0x29e   :  { %v8386_v19 = vcombine.low %v1410_v29, %v1414_v30 }
 0x29f   :  { %2801 = vmatprep.mubr.bf16.mxu0 %v10256_v36  ;;  %2883 = vmatprep.mubr.bf16.mxu1 %v10256_v36 }
 0x2a0   :  { %2802 = vmatmul.mubr.bf16.vlgmr.msra.gmra.mrb[4].mxu0 %v10258_v37  ;;  %2884 = vmatmul.mubr.bf16.vlgmr.msra.gmra.mrb[8].mxu1 %v10258_v37 }
 0x2a1   :  { %2811 = vmatpush1.bf16.msra.mxu0 %v8336_v24  ;;  %2893 = vmatpush1.bf16.msra.mxu1 %v8338_v25  ;;  %v8352_v25 = vcombine.low %v1377_v40, %v1381_v41  ;;  %v8385_v40 = vcombine.high %v1409_v26, %v1413_v28  ;;  %v8387_v41 = vcombine.high %v1410_v29, %v1414_v30  ;;  %v1449_v30 = vld [vmem:[%s12914_s7 + $0x6c0] sm:$0xff] }
 0x2a2   :  { %2812 = vmatprep.subr.bf16.mxu0 %v8345_v38  ;;  %2894 = vmatprep.subr.bf16.mxu1 %v8347_v39  ;;  %v8378_v38 = vcombine.low %v1402_v10, %v1406_v11  ;;  %v1441_v11 = vld [vmem:[%s12914_s7 + $0x680] sm:$0xff] }
 0x2a4   :  { %v10294_v21 = vpop.f32.mrb[4].mxu1 }
 0x2a5   :  { %v1105_v23 = vsel %vm549_vm0, %v10294_v21, 0.0  ;;  %v10298_v24 = vpop.f32.mrb[5].mxu1  ;;  %2813 = vmatpush1.bf16.msra.mxu0 %v8344_v44  ;;  %2895 = vmatpush1.bf16.msra.mxu1 %v8346_v45  ;;  %v1421_v44 = vld [vmem:[%s12914_s7 + $0x5e0] sm:$0xff]  ;;  %v1418_v45 = vld [vmem:[%s12914_s7 + $0x5c8] sm:$0xff] }
 0x2a6   :  { %v1106_v51 = vrot.slane %v1105_v23, 4  ;;  %v1112_v52 = vsel %vm549_vm0, %v10298_v24, 0.0  ;;  %v1086_v53 = vpop.f32.mrb[6].mxu1  ;;  %2814 = vmatprep.subr.bf16.mxu0 %v8353_v46  ;;  %2896 = vmatprep.subr.bf16.mxu1 %v8355_v47  ;;  %v1422_v46 = vld [vmem:[%s12914_s7 + $0x5e8] sm:$0xff]  ;;  %v8392_v56 = vcombine.low %v1417_v42, %v1421_v44 }
 0x2a7   :  { %v1113_v57 = vrot.slane %v1112_v52, 4  ;;  %v1087_v58 = vpop.f32.mrb[7].mxu1 }
 0x2a8   :  { %v1107_v62 = vadd.f32 %v1106_v51, %v1105_v23  ;;  %v8393_v23 = vcombine.high %v1417_v42, %v1421_v44  ;;  %v1426_v51 = vld [vmem:[%s12914_s7 + $0x608] sm:$0xff] }
 0x2a9   :  { %v1114_v63 = vadd.f32 %v1113_v57, %v1112_v52  ;;  %2815 = vmatpush1.bf16.msra.mxu0 %v8352_v25  ;;  %2897 = vmatpush1.bf16.msra.mxu1 %v8354_v50  ;;  %v8395_v25 = vcombine.high %v1418_v45, %v1422_v46  ;;  %v1425_v50 = vld [vmem:[%s12914_s7 + $0x600] sm:$0xff]  ;;  %v1430_v52 = vld [vmem:[%s12914_s7 + $0x628] sm:$0xff]  ;;  %v8394_v57 = vcombine.low %v1418_v45, %v1422_v46 }
 0x2aa   :  { %v1108_v2 = vrot.slane %v1107_v62, 2  ;;  %2816 = vmatprep.subr.bf16.mxu0 %v8361_v54  ;;  %2898 = vmatprep.subr.bf16.mxu1 %v8363_v55  ;;  %v8403_v60 = vcombine.high %v1426_v51, %v1430_v52  ;;  %v8402_v5 = vcombine.low %v1426_v51, %v1430_v52  ;;  %v1457_v46 = vld [vmem:[%s12914_s7 + $0x700] sm:$0xff] }
 0x2ab   :  { %v1115_v6 = vrot.slane %v1114_v63, 2  ;;  %v1465_v52 = vld [vmem:[%s12914_s7 + $0x740] sm:$0xff] }
 0x2ac   :  { %v1109_v12 = vadd.f32 %v1108_v2, %v1107_v62 }
 0x2ad   :  { %v1116_v13 = vadd.f32 %v1115_v6, %v1114_v63  ;;  %2817 = vmatpush1.bf16.msra.mxu0 %v8360_v0  ;;  %2899 = vmatpush1.bf16.msra.mxu1 %v8362_v1  ;;  %v1437_v63 = vld [vmem:[%s12914_s7 + $0x660] sm:$0xff]  ;;  %v1434_v0 = vld [vmem:[%s12914_s7 + $0x648] sm:$0xff] }
 0x2ae   :  { %v1110_v17 = vrot.slane %v1109_v12, 1  ;;  %2818 = vmatprep.subr.bf16.mxu0 %v8369_v3  ;;  %2900 = vmatprep.subr.bf16.mxu1 %v8371_v4  ;;  %v1438_v1 = vld [vmem:[%s12914_s7 + $0x668] sm:$0xff]  ;;  %v8409_v9 = vcombine.high %v1433_v61, %v1437_v63 }
 0x2af   :  { %v1117_v27 = vrot.slane %v1116_v13, 1  ;;  %v8411_v10 = vcombine.high %v1434_v0, %v1438_v1  ;;  %v8410_v26 = vcombine.low %v1434_v0, %v1438_v1  ;;  %v1474_v0 = vld [vmem:[%s12914_s7 + $0x788] sm:$0xff] }
 0x2b0   :  { %v1111_v31 = vadd.f32 %v1110_v17, %v1109_v12  ;;  %v1478_v1 = vld [vmem:[%s12914_s7 + $0x7a8] sm:$0xff] }
 0x2b1   :  { %v1118_v32 = vadd.f32 %v1117_v27, %v1116_v13  ;;  %2819 = vmatpush1.bf16.msra.mxu0 %v8368_v14  ;;  %2901 = vmatpush1.bf16.msra.mxu1 %v8370_v16  ;;  %v1445_v13 = vld [vmem:[%s12914_s7 + $0x6a0] sm:$0xff]  ;;  %v1442_v14 = vld [vmem:[%s12914_s7 + $0x688] sm:$0xff] }
 0x2b2   :  { %v1121_v39 = vmul.f32 0.5, %v1111_v31  ;;  %2820 = vmatprep.subr.bf16.mxu0 %v8377_v18  ;;  %2902 = vmatprep.subr.bf16.mxu1 %v8379_v22  ;;  %v1446_v16 = vld [vmem:[%s12914_s7 + $0x6a8] sm:$0xff]  ;;  %v8408_v22 = vcombine.low %v1433_v61, %v1437_v63  ;;  %v8417_v28 = vcombine.high %v1441_v11, %v1445_v13  ;;  %v1473_v61 = vld [vmem:[%s12914_s7 + $0x780] sm:$0xff] }
 0x2b3   :  { %v1122_v43 = vmul.f32 0.5, %v1118_v32  ;;  %v8419_v29 = vcombine.high %v1442_v14, %v1446_v16  ;;  %v1453_v32 = vld [vmem:[%s12914_s7 + $0x6e0] sm:$0xff]  ;;  %v8418_v42 = vcombine.low %v1442_v14, %v1446_v16  ;;  %v1486_v14 = vld [vmem:[%s12914_s7 + $0x7e8] sm:$0xff] }
 0x2b4   :  { %v10351_v47 = vsub.f32 %v10294_v21, %v1121_v39  ;;  %v8425_v44 = vcombine.high %v1449_v30, %v1453_v32  ;;  %v1477_v63 = vld [vmem:[%s12914_s7 + $0x7a0] sm:$0xff] }
 0x2b5   :  { %v10354_v48 = vsub.f32 %v10298_v24, %v1122_v43  ;;  %2821 = vmatpush1.bf16.msra.mxu0 %v8376_v34  ;;  %2903 = vmatpush1.bf16.msra.mxu1 %v8378_v38  ;;  %v1429_v24 = vld [vmem:[%s12914_s7 + $0x620] sm:$0xff]  ;;  %v1450_v34 = vld [vmem:[%s12914_s7 + $0x6c8] sm:$0xff] }
 0x2b6   :  { %v1129_v20 = vmul.f32 %v10351_v47, %v10351_v47  ;;  %2822 = vmatprep.subr.bf16.mxu0 %v8385_v40  ;;  %2904 = vmatprep.subr.bf16.mxu1 %v8387_v41  ;;  %v8401_v59 = vcombine.high %v1425_v50, %v1429_v24  ;;  %v8400_v4 = vcombine.low %v1425_v50, %v1429_v24  ;;  %v1454_v38 = vld [vmem:[%s12914_s7 + $0x6e8] sm:$0xff] }
 0x2b7   :  { %v1130_v21 = vmul.f32 %v10354_v48, %v10354_v48  ;;  %v8416_v41 = vcombine.low %v1441_v11, %v1445_v13  ;;  %v8427_v45 = vcombine.high %v1450_v34, %v1454_v38  ;;  %v8424_v50 = vcombine.low %v1449_v30, %v1453_v32  ;;  %v1482_v13 = vld [vmem:[%s12914_s7 + $0x7c8] sm:$0xff]  ;;  %v1240_v32 = vld [vmem:[%s12914_s7 + $0x38] sm:$0xff] }
 0x2b8   :  { %v1145_v53 = vsel %vm549_vm0, %v1129_v20, 0.0  ;;  %v1458_v20 = vld [vmem:[%s12914_s7 + $0x708] sm:$0xff]  ;;  %v8459_v30 = vcombine.high %v1482_v13, %v1486_v14 }
 0x2b9   :  { %v1146_v54 = vrot.slane %v1145_v53, 4  ;;  %v1152_v55 = vsel %vm549_vm0, %v1130_v21, 0.0  ;;  %2823 = vmatpush1.bf16.msra.mxu0 %v8384_v49  ;;  %2905 = vmatpush1.bf16.msra.mxu1 %v8386_v19  ;;  %v1461_v19 = vld [vmem:[%s12914_s7 + $0x720] sm:$0xff]  ;;  %v8426_v21 = vcombine.low %v1450_v34, %v1454_v38 }
 0x2ba   :  { %v1153_v58 = vrot.slane %v1152_v55, 4  ;;  %2824 = vmatprep.subr.bf16.mxu0 %v8393_v23  ;;  %2906 = vmatprep.subr.bf16.mxu1 %v8395_v25  ;;  %v1462_v23 = vld [vmem:[%s12914_s7 + $0x728] sm:$0xff]  ;;  %v8433_v24 = vcombine.high %v1457_v46, %v1461_v19 }
 0x2bb   :  { %v1147_v62 = vadd.f32 %v1146_v54, %v1145_v53  ;;  %v8435_v51 = vcombine.high %v1458_v20, %v1462_v23  ;;  %v1469_v53 = vld [vmem:[%s12914_s7 + $0x760] sm:$0xff]  ;;  %v1466_v54 = vld [vmem:[%s12914_s7 + $0x748] sm:$0xff] }
 0x2bc   :  { %v1154_v2 = vadd.f32 %v1153_v58, %v1152_v55  ;;  %v1470_v55 = vld [vmem:[%s12914_s7 + $0x768] sm:$0xff]  ;;  %v10435_v58 = vsub.s32 2, %v9616_v15 }
 0x2bd   :  { %v1148_v3 = vrot.slane %v1147_v62, 2  ;;  %2825 = vmatpush1.bf16.msra.mxu0 %v8392_v56  ;;  %2907 = vmatpush1.bf16.msra.mxu1 %v8394_v57  ;;  %v8432_v56 = vcombine.low %v1457_v46, %v1461_v19  ;;  %v8434_v57 = vcombine.low %v1458_v20, %v1462_v23  ;;  %v1247_v46 = vld [vmem:[%s12914_s7 + $0x70] sm:$0xff]  ;;  %v1248_v19 = vld [vmem:[%s12914_s7 + $0x78] sm:$0xff] }
 0x2be   :  { %v1155_v6 = vrot.slane %v1154_v2, 2  ;;  %2826 = vmatprep.subr.bf16.mxu0 %v8401_v59  ;;  %2908 = vmatprep.subr.bf16.mxu1 %v8403_v60  ;;  %v8441_v59 = vcombine.high %v1465_v52, %v1469_v53  ;;  %v8443_v60 = vcombine.high %v1466_v54, %v1470_v55 }
 0x2bf   :  { %v1149_v12 = vadd.f32 %v1148_v3, %v1147_v62  ;;  %v10441_v62 = vsub.s32 3, %v9616_v15  ;;  %v8442_v3 = vcombine.low %v1466_v54, %v1470_v55  ;;  %v1256_v54 = vld [vmem:[%s12914_s7 + $0xb8] sm:$0xff] }
 0x2c0   :  { %v1156_v17 = vadd.f32 %v1155_v6, %v1154_v2  ;;  %v8440_v2 = vcombine.low %v1465_v52, %v1469_v53  ;;  %v8451_v6 = vcombine.high %v1474_v0, %v1478_v1  ;;  %v1255_v52 = vld [vmem:[%s12914_s7 + $0xb0] sm:$0xff]  ;;  %v1252_v53 = vld [vmem:[%s12914_s7 + $0x98] sm:$0xff] }
 0x2c1   :  { %v1150_v18 = vrot.slane %v1149_v12, 1  ;;  %2827 = vmatpush1.bf16.msra.mxu0 %v8400_v4  ;;  %2909 = vmatpush1.bf16.msra.mxu1 %v8402_v5  ;;  %v1187_v4 = vrot.slane %v10229_v7, %v10435_v58  ;;  %v8449_v5 = vcombine.high %v1473_v61, %v1477_v63  ;;  %v1191_v11 = vrot.slane %v10229_v7, %v10441_v62 }
 0x2c2   :  { %v1157_v27 = vrot.slane %v1156_v17, 1  ;;  %2828 = vmatprep.subr.bf16.mxu0 %v8409_v9  ;;  %2910 = vmatprep.subr.bf16.mxu1 %v8411_v10  ;;  %v1481_v9 = vld [vmem:[%s12914_s7 + $0x7c0] sm:$0xff]  ;;  %v1216_v7 = vrot.slane %v10234_v8, %v10441_v62 }
 0x2c3   :  { %v1151_v31 = vadd.f32 %v1150_v18, %v1149_v12  ;;  %v1485_v12 = vld [vmem:[%s12914_s7 + $0x7e0] sm:$0xff]  ;;  %v1212_v18 = vrot.slane %v10234_v8, %v10435_v58  ;;  %v1239_v8 = vld [vmem:[%s12914_s7 + $0x30] sm:$0xff] }
 0x2c4   :  { %v1158_v39 = vadd.f32 %v1157_v27, %v1156_v17  ;;  %v8450_v27 = vcombine.low %v1474_v0, %v1478_v1  ;;  %v8230_v1 = vcombine.low %v1252_v53, %v1256_v54 }
 0x2c5   :  { %v1161_v40 = vmul.f32 0.5, %v1151_v31  ;;  %2829 = vmatpush1.bf16.msra.mxu0 %v8408_v22  ;;  %2911 = vmatpush1.bf16.msra.mxu1 %v8410_v26  ;;  %v8448_v26 = vcombine.low %v1473_v61, %v1477_v63  ;;  %v1263_v61 = vld [vmem:[%s12914_s7 + $0xf0] sm:$0xff]  ;;  %v1260_v63 = vld [vmem:[%s12914_s7 + $0xd8] sm:$0xff] }
 0x2c6   :  { %v1162_v43 = vmul.f32 0.5, %v1158_v39  ;;  %2830 = vmatprep.subr.bf16.mxu0 %v8417_v28  ;;  %2912 = vmatprep.subr.bf16.mxu1 %v8419_v29  ;;  %v8457_v29 = vcombine.high %v1481_v9, %v1485_v12  ;;  %v8456_v39 = vcombine.low %v1481_v9, %v1485_v12  ;;  %v1272_v9 = vld [vmem:[%s12914_s7 + $0x138] sm:$0xff] }
 0x2c7   :  { %v1165_v49 = vadd.f32 1e-05, %v1161_v40  ;;  %v8458_v40 = vcombine.low %v1482_v13, %v1486_v14  ;;  %v1275_v14 = vld [vmem:[%s12914_s7 + $0x150] sm:$0xff] }
 0x2c8   :  { %v1166_v25 = vadd.f32 1e-05, %v1162_v43 }
 0x2c9   :  { %9462 = vrsqrt.f32 %v1165_v49  ;;  %2831 = vmatpush1.bf16.msra.mxu0 %v8416_v41  ;;  %2913 = vmatpush1.bf16.msra.mxu1 %v8418_v42  ;;  %v1244_v49 = vld [vmem:[%s12914_s7 + $0x58] sm:$0xff] }
 0x2ca   :  { %9464 = vrsqrt.f32 %v1166_v25  ;;  %2832 = vmatprep.subr.bf16.mxu0 %v8425_v44  ;;  %2914 = vmatprep.subr.bf16.mxu1 %v8427_v45  ;;  %v1243_v45 = vld [vmem:[%s12914_s7 + $0x50] sm:$0xff] }
 0x2cb   :  { %v8220_v55 = vcombine.low %v1243_v45, %v1247_v46 }
 0x2cd   :  { %2833 = vmatpush1.bf16.msra.mxu0 %v8424_v50  ;;  %2915 = vmatpush1.bf16.msra.mxu1 %v8426_v21  ;;  %v8221_v21 = vcombine.high %v1243_v45, %v1247_v46  ;;  %v1299_v45 = vld [vmem:[%s12914_s7 + $0x210] sm:$0xff] }
 0x2ce   :  { %2834 = vmatprep.subr.bf16.mxu0 %v8433_v24  ;;  %2916 = vmatprep.subr.bf16.mxu1 %v8435_v51  ;;  %v8223_v24 = vcombine.high %v1244_v49, %v1248_v19  ;;  %v1251_v51 = vld [vmem:[%s12914_s7 + $0x90] sm:$0xff] }
 0x2cf   :  { %v8228_v0 = vcombine.low %v1251_v51, %v1255_v52  ;;  %v1303_v46 = vld [vmem:[%s12914_s7 + $0x230] sm:$0xff] }
 0x2d1   :  { %2835 = vmatpush1.bf16.msra.mxu0 %v8432_v56  ;;  %2917 = vmatpush1.bf16.msra.mxu1 %v8434_v57  ;;  %v8222_v56 = vcombine.low %v1244_v49, %v1248_v19  ;;  %v8229_v57 = vcombine.high %v1251_v51, %v1255_v52  ;;  %v1300_v49 = vld [vmem:[%s12914_s7 + $0x218] sm:$0xff]  ;;  %v1307_v51 = vld [vmem:[%s12914_s7 + $0x250] sm:$0xff] }
 0x2d2   :  { %2836 = vmatprep.subr.bf16.mxu0 %v8441_v59  ;;  %2918 = vmatprep.subr.bf16.mxu1 %v8443_v60  ;;  %v8231_v59 = vcombine.high %v1252_v53, %v1256_v54  ;;  %v1259_v60 = vld [vmem:[%s12914_s7 + $0xd0] sm:$0xff]  ;;  %v1304_v19 = vld [vmem:[%s12914_s7 + $0x238] sm:$0xff] }
 0x2d3   :  { %v9463_v10 = vpop.eup %9462  ;;  %v1311_v52 = vld [vmem:[%s12914_s7 + $0x270] sm:$0xff]  ;;  %v1308_v53 = vld [vmem:[%s12914_s7 + $0x258] sm:$0xff] }
 0x2d4   :  { %v9465_v16 = vpop.eup %9464  ;;  %v1173_v17 = vmul.f32 %v9463_v10, %v10351_v47  ;;  %v1235_v47 = vld [vmem:[%s12914_s7 + $0x10] sm:$0xff]  ;;  %v8236_v10 = vcombine.low %v1259_v60, %v1263_v61  ;;  %v1312_v54 = vld [vmem:[%s12914_s7 + $0x278] sm:$0xff] }
 0x2d5   :  { %v1174_v22 = vmul.f32 %v9465_v16, %v10354_v48  ;;  %2837 = vmatpush1.bf16.msra.mxu0 %v8440_v2  ;;  %2919 = vmatpush1.bf16.msra.mxu1 %v8442_v3  ;;  %v1236_v48 = vld [vmem:[%s12914_s7 + $0x18] sm:$0xff]  ;;  %v8213_v42 = vcombine.high %v1235_v47, %v1239_v8  ;;  %v8212_v23 = vcombine.low %v1235_v47, %v1239_v8  ;;  %v1279_v16 = vld [vmem:[%s12914_s7 + $0x170] sm:$0xff] }
 0x2d6   :  { %v1198_v28 = vmul.f32 %v1187_v4, %v1173_v17  ;;  %2838 = vmatprep.subr.bf16.mxu0 %v8449_v5  ;;  %2920 = vmatprep.subr.bf16.mxu1 %v8451_v6  ;;  %v8215_v43 = vcombine.high %v1236_v48, %v1240_v32  ;;  %v8214_v50 = vcombine.low %v1236_v48, %v1240_v32  ;;  %v1267_v4 = vld [vmem:[%s12914_s7 + $0x110] sm:$0xff]  ;;  %v1268_v6 = vld [vmem:[%s12914_s7 + $0x118] sm:$0xff] }
 0x2d7   :  { %v1199_v31 = vmul.f32 %v1191_v11, %v1174_v22  ;;  %v8237_v2 = vcombine.high %v1259_v60, %v1263_v61  ;;  %v1271_v5 = vld [vmem:[%s12914_s7 + $0x130] sm:$0xff]  ;;  %v8247_v13 = vcombine.high %v1268_v6, %v1272_v9  ;;  %v1276_v17 = vld [vmem:[%s12914_s7 + $0x158] sm:$0xff]  ;;  %v8246_v22 = vcombine.low %v1268_v6, %v1272_v9 }
 0x2d8   :  { %v1223_v34 = vadd.f32 %v1212_v18, %v1198_v28  ;;  %v8245_v12 = vcombine.high %v1267_v4, %v1271_v5  ;;  %v1280_v18 = vld [vmem:[%s12914_s7 + $0x178] sm:$0xff]  ;;  %v1283_v28 = vld [vmem:[%s12914_s7 + $0x190] sm:$0xff] }
 0x2d9   :  { %v1224_v38 = vadd.f32 %v1216_v7, %v1199_v31  ;;  %2839 = vmatpush1.bf16.msra.mxu0 %v8448_v26  ;;  %2921 = vmatpush1.bf16.msra.mxu1 %v8450_v27  ;;  %v8244_v7 = vcombine.low %v1267_v4, %v1271_v5  ;;  %v8253_v26 = vcombine.high %v1275_v14, %v1279_v16  ;;  %v1288_v47 = vld [vmem:[%s12914_s7 + $0x1b8] sm:$0xff]  ;;  %v1315_v60 = vld [vmem:[%s12914_s7 + $0x290] sm:$0xff] }
 0x2da   :  { %2840 = vmatprep.subr.bf16.mxu0 %v8457_v29  ;;  %2922 = vmatprep.subr.bf16.mxu1 %v8459_v30  ;;  %v1227_v41 = vmax.f32 %v1223_v34, 0.0  ;;  %v8255_v27 = vcombine.high %v1276_v17, %v1280_v18  ;;  %v1287_v29 = vld [vmem:[%s12914_s7 + $0x1b0] sm:$0xff]  ;;  %v1284_v30 = vld [vmem:[%s12914_s7 + $0x198] sm:$0xff]  ;;  %v8252_v31 = vcombine.low %v1275_v14, %v1279_v16  ;;  %v8254_v8 = vcombine.low %v1276_v17, %v1280_v18 }
 0x2db   :  { %v1228_v44 = vmax.f32 %v1224_v38, 0.0  ;;  %v8261_v48 = vcombine.high %v1283_v28, %v1287_v29  ;;  %v8263_v32 = vcombine.high %v1284_v30, %v1288_v47  ;;  %v1291_v34 = vld [vmem:[%s12914_s7 + $0x1d0] sm:$0xff]  ;;  %v1324_v6 = vld [vmem:[%s12914_s7 + $0x2d8] sm:$0xff] }
 0x2dc   :  { %v10500_v25 = vpack.c.bf16 %v1227_v41, %v1227_v41  ;;  %v1295_v38 = vld [vmem:[%s12914_s7 + $0x1f0] sm:$0xff]  ;;  %v8260_v41 = vcombine.low %v1283_v28, %v1287_v29  ;;  %v1328_v9 = vld [vmem:[%s12914_s7 + $0x2f8] sm:$0xff] }
 0x2dd   :  { %2841 = vmatpush1.bf16.msra.mxu0 %v8456_v39  ;;  %2923 = vmatpush1.bf16.msra.mxu1 %v8458_v40  ;;  %v10498_v20 = vpack.c.bf16 %v1228_v44, %v1228_v44  ;;  %v1292_v39 = vld [vmem:[%s12914_s7 + $0x1d8] sm:$0xff]  ;;  %v1319_v61 = vld [vmem:[%s12914_s7 + $0x2b0] sm:$0xff] }
 0x2de   :  { %2933 = vmatprep.subr.bf16.mxu0 %v8213_v42  ;;  %3015 = vmatprep.subr.bf16.mxu1 %v8215_v43  ;;  %v1296_v40 = vld [vmem:[%s12914_s7 + $0x1f8] sm:$0xff]  ;;  %v8262_v42 = vcombine.low %v1284_v30, %v1288_v47  ;;  %v8269_v43 = vcombine.high %v1291_v34, %v1295_v38  ;;  %v1323_v4 = vld [vmem:[%s12914_s7 + $0x2d0] sm:$0xff] }
 0x2df   :  { %2842 = vmatprep.mubr.bf16.mxu0 %v10498_v20  ;;  %2924 = vmatprep.mubr.bf16.mxu1 %v10498_v20  ;;  %v8271_v44 = vcombine.high %v1292_v39, %v1296_v40  ;;  %v1327_v5 = vld [vmem:[%s12914_s7 + $0x2f0] sm:$0xff]  ;;  %v1332_v17 = vld [vmem:[%s12914_s7 + $0x318] sm:$0xff] }
 0x2e0   :  { %2843 = vmatmul.mubr.bf16.vlgmr.msra.gmra.mrb[4].mxu0 %v10500_v25  ;;  %2925 = vmatmul.mubr.bf16.vlgmr.msra.gmra.mrb[8].mxu1 %v10500_v25  ;;  %v1331_v14 = vld [vmem:[%s12914_s7 + $0x310] sm:$0xff]  ;;  %v1336_v18 = vld [vmem:[%s12914_s7 + $0x338] sm:$0xff] }
 0x2e1   :  { %2934 = vmatpush1.bf16.msra.mxu0 %v8212_v23  ;;  %2965 = vmatprep.mubr.bf16.mxu0 %v10256_v36  ;;  %v8268_v23 = vcombine.low %v1291_v34, %v1295_v38  ;;  %v1335_v16 = vld [vmem:[%s12914_s7 + $0x330] sm:$0xff]  ;;  %v1340_v30 = vld [vmem:[%s12914_s7 + $0x358] sm:$0xff] }
 0x2e2   :  { %3016 = vmatpush1.bf16.msra.mxu1 %v8214_v50  ;;  %3047 = vmatprep.mubr.bf16.mxu1 %v10256_v36  ;;  %v1264_v36 = vld [vmem:[%s12914_s7 + $0xf8] sm:$0xff]  ;;  %v8270_v50 = vcombine.low %v1292_v39, %v1296_v40  ;;  %v1339_v28 = vld [vmem:[%s12914_s7 + $0x350] sm:$0xff] }
 0x2e3   :  { %2935 = vmatprep.subr.bf16.mxu0 %v8221_v21  ;;  %3017 = vmatprep.subr.bf16.mxu1 %v8223_v24  ;;  %v8239_v3 = vcombine.high %v1260_v63, %v1264_v36  ;;  %v8238_v11 = vcombine.low %v1260_v63, %v1264_v36  ;;  %v8277_v21 = vcombine.high %v1299_v45, %v1303_v46  ;;  %v1316_v63 = vld [vmem:[%s12914_s7 + $0x298] sm:$0xff]  ;;  %v1343_v29 = vld [vmem:[%s12914_s7 + $0x370] sm:$0xff] }
 0x2e4   :  { %v8279_v24 = vcombine.high %v1300_v49, %v1304_v19  ;;  %v1320_v36 = vld [vmem:[%s12914_s7 + $0x2b8] sm:$0xff]  ;;  %v1347_v34 = vld [vmem:[%s12914_s7 + $0x390] sm:$0xff] }
 0x2e5   :  { %2936 = vmatpush1.bf16.msra.mxu0 %v8220_v55  ;;  %v8276_v55 = vcombine.low %v1299_v45, %v1303_v46  ;;  %v1344_v47 = vld [vmem:[%s12914_s7 + $0x378] sm:$0xff]  ;;  %v1351_v38 = vld [vmem:[%s12914_s7 + $0x3b0] sm:$0xff] }
 0x2e6   :  { %3018 = vmatpush1.bf16.msra.mxu1 %v8222_v56  ;;  %2937 = vmatprep.subr.bf16.mxu0 %v8229_v57  ;;  %v8278_v56 = vcombine.low %v1300_v49, %v1304_v19  ;;  %v8285_v57 = vcombine.high %v1307_v51, %v1311_v52  ;;  %v1348_v39 = vld [vmem:[%s12914_s7 + $0x398] sm:$0xff]  ;;  %v1355_v45 = vld [vmem:[%s12914_s7 + $0x3d0] sm:$0xff] }
 0x2e7   :  { %3019 = vmatprep.subr.bf16.mxu1 %v8231_v59  ;;  %v8287_v59 = vcombine.high %v1308_v53, %v1312_v54  ;;  %v1352_v40 = vld [vmem:[%s12914_s7 + $0x3b8] sm:$0xff]  ;;  %v1359_v46 = vld [vmem:[%s12914_s7 + $0x3f0] sm:$0xff] }
 0x2e8   :  { %v1356_v49 = vld [vmem:[%s12914_s7 + $0x3d8] sm:$0xff] }
 0x2e9   :  { %2938 = vmatpush1.bf16.msra.mxu0 %v8228_v0  ;;  %v8284_v0 = vcombine.low %v1307_v51, %v1311_v52  ;;  %v1360_v19 = vld [vmem:[%s12914_s7 + $0x3f8] sm:$0xff]  ;;  %v1363_v51 = vld [vmem:[%s12914_s7 + $0x410] sm:$0xff] }
 0x2ea   :  { %3020 = vmatpush1.bf16.msra.mxu1 %v8230_v1  ;;  %2939 = vmatprep.subr.bf16.mxu0 %v8237_v2  ;;  %v8286_v1 = vcombine.low %v1308_v53, %v1312_v54  ;;  %v8293_v2 = vcombine.high %v1315_v60, %v1319_v61  ;;  %v1367_v52 = vld [vmem:[%s12914_s7 + $0x430] sm:$0xff]  ;;  %v1364_v53 = vld [vmem:[%s12914_s7 + $0x418] sm:$0xff] }
 0x2eb   :  { %3021 = vmatprep.subr.bf16.mxu1 %v8239_v3  ;;  %v8295_v3 = vcombine.high %v1316_v63, %v1320_v36  ;;  %v1368_v54 = vld [vmem:[%s12914_s7 + $0x438] sm:$0xff] }
 0x2ed   :  { %2940 = vmatpush1.bf16.msra.mxu0 %v8236_v10  ;;  %v8292_v10 = vcombine.low %v1315_v60, %v1319_v61  ;;  %v1371_v60 = vld [vmem:[%s12914_s7 + $0x450] sm:$0xff] }
 0x2ee   :  { %3022 = vmatpush1.bf16.msra.mxu1 %v8238_v11  ;;  %2941 = vmatprep.subr.bf16.mxu0 %v8245_v12  ;;  %v8294_v11 = vcombine.low %v1316_v63, %v1320_v36  ;;  %v8301_v12 = vcombine.high %v1323_v4, %v1327_v5  ;;  %v1375_v61 = vld [vmem:[%s12914_s7 + $0x470] sm:$0xff]  ;;  %v8340_v63 = vcombine.low %v1363_v51, %v1367_v52  ;;  %v1372_v36 = vld [vmem:[%s12914_s7 + $0x458] sm:$0xff] }
 0x2ef   :  { %3023 = vmatprep.subr.bf16.mxu1 %v8247_v13  ;;  %v8303_v13 = vcombine.high %v1324_v6, %v1328_v9 }
 0x2f1   :  { %2942 = vmatpush1.bf16.msra.mxu0 %v8244_v7  ;;  %v8300_v7 = vcombine.low %v1323_v4, %v1327_v5  ;;  %v1383_v4 = vld [vmem:[%s12914_s7 + $0x4b0] sm:$0xff] }
 0x2f2   :  { %3024 = vmatpush1.bf16.msra.mxu1 %v8246_v22  ;;  %2943 = vmatprep.subr.bf16.mxu0 %v8253_v26  ;;  %v8302_v22 = vcombine.low %v1324_v6, %v1328_v9  ;;  %v8309_v26 = vcombine.high %v1331_v14, %v1335_v16  ;;  %v1380_v6 = vld [vmem:[%s12914_s7 + $0x498] sm:$0xff] }
 0x2f3   :  { %3025 = vmatprep.subr.bf16.mxu1 %v8255_v27  ;;  %v8311_v27 = vcombine.high %v1332_v17, %v1336_v18  ;;  %v1384_v9 = vld [vmem:[%s12914_s7 + $0x4b8] sm:$0xff] }
 0x2f5   :  { %2944 = vmatpush1.bf16.msra.mxu0 %v8252_v31  ;;  %v8308_v31 = vcombine.low %v1331_v14, %v1335_v16  ;;  %v1387_v14 = vld [vmem:[%s12914_s7 + $0x4d0] sm:$0xff] }
 0x2f6   :  { %3026 = vmatpush1.bf16.msra.mxu1 %v8254_v8  ;;  %2945 = vmatprep.subr.bf16.mxu0 %v8261_v48  ;;  %v8310_v8 = vcombine.low %v1332_v17, %v1336_v18  ;;  %v8317_v48 = vcombine.high %v1339_v28, %v1343_v29  ;;  %v1391_v16 = vld [vmem:[%s12914_s7 + $0x4f0] sm:$0xff]  ;;  %v1392_v17 = vld [vmem:[%s12914_s7 + $0x4f8] sm:$0xff]  ;;  %v8358_v18 = vcombine.low %v1380_v6, %v1384_v9 }
 0x2f7   :  { %3027 = vmatprep.subr.bf16.mxu1 %v8263_v32  ;;  %v8319_v32 = vcombine.high %v1340_v30, %v1344_v47 }
 0x2f9   :  { %2946 = vmatpush1.bf16.msra.mxu0 %v8260_v41  ;;  %v8316_v41 = vcombine.low %v1339_v28, %v1343_v29  ;;  %v1396_v28 = vld [vmem:[%s12914_s7 + $0x518] sm:$0xff] }
 0x2fa   :  { %3028 = vmatpush1.bf16.msra.mxu1 %v8262_v42  ;;  %2947 = vmatprep.subr.bf16.mxu0 %v8269_v43  ;;  %v8318_v42 = vcombine.low %v1340_v30, %v1344_v47  ;;  %v8325_v43 = vcombine.high %v1347_v34, %v1351_v38  ;;  %v1400_v29 = vld [vmem:[%s12914_s7 + $0x538] sm:$0xff]  ;;  %v8364_v30 = vcombine.low %v1387_v14, %v1391_v16 }
 0x2fb   :  { %3029 = vmatprep.subr.bf16.mxu1 %v8271_v44  ;;  %v8327_v44 = vcombine.high %v1348_v39, %v1352_v40 }
 0x2fd   :  { %2948 = vmatpush1.bf16.msra.mxu0 %v8268_v23  ;;  %v8324_v23 = vcombine.low %v1347_v34, %v1351_v38  ;;  %v1404_v34 = vld [vmem:[%s12914_s7 + $0x558] sm:$0xff] }
 0x2fe   :  { %3030 = vmatpush1.bf16.msra.mxu1 %v8270_v50  ;;  %2949 = vmatprep.subr.bf16.mxu0 %v8277_v21  ;;  %v8326_v50 = vcombine.low %v1348_v39, %v1352_v40  ;;  %v8333_v21 = vcombine.high %v1355_v45, %v1359_v46  ;;  %v1408_v38 = vld [vmem:[%s12914_s7 + $0x578] sm:$0xff]  ;;  %v8374_v40 = vcombine.low %v1396_v28, %v1400_v29 }
 0x2ff   :  { %3031 = vmatprep.subr.bf16.mxu1 %v8279_v24  ;;  %v8335_v24 = vcombine.high %v1356_v49, %v1360_v19 }
 0x301   :  { %2950 = vmatpush1.bf16.msra.mxu0 %v8276_v55  ;;  %v8332_v55 = vcombine.low %v1355_v45, %v1359_v46  ;;  %v1412_v45 = vld [vmem:[%s12914_s7 + $0x598] sm:$0xff] }
 0x302   :  { %3032 = vmatpush1.bf16.msra.mxu1 %v8278_v56  ;;  %2951 = vmatprep.subr.bf16.mxu0 %v8285_v57  ;;  %v8334_v56 = vcombine.low %v1356_v49, %v1360_v19  ;;  %v8341_v57 = vcombine.high %v1363_v51, %v1367_v52  ;;  %v1416_v46 = vld [vmem:[%s12914_s7 + $0x5b8] sm:$0xff]  ;;  %v8382_v19 = vcombine.low %v1404_v34, %v1408_v38 }
 0x303   :  { %3033 = vmatprep.subr.bf16.mxu1 %v8287_v59  ;;  %v8343_v59 = vcombine.high %v1364_v53, %v1368_v54  ;;  %v1420_v51 = vld [vmem:[%s12914_s7 + $0x5d8] sm:$0xff] }
 0x304   :  { %v1424_v52 = vld [vmem:[%s12914_s7 + $0x5f8] sm:$0xff] }
 0x305   :  { %2952 = vmatpush1.bf16.msra.mxu0 %v8284_v0  ;;  %v1376_v0 = vld [vmem:[%s12914_s7 + $0x478] sm:$0xff] }
 0x306   :  { %3034 = vmatpush1.bf16.msra.mxu1 %v8286_v1  ;;  %2953 = vmatprep.subr.bf16.mxu0 %v8293_v2  ;;  %v8342_v1 = vcombine.low %v1364_v53, %v1368_v54  ;;  %v8349_v2 = vcombine.high %v1371_v60, %v1375_v61  ;;  %v8351_v5 = vcombine.high %v1372_v36, %v1376_v0 }
 0x307   :  { %3035 = vmatprep.subr.bf16.mxu1 %v8295_v3  ;;  %v1379_v3 = vld [vmem:[%s12914_s7 + $0x490] sm:$0xff]  ;;  %v8390_v54 = vcombine.low %v1412_v45, %v1416_v46 }
 0x309   :  { %2954 = vmatpush1.bf16.msra.mxu0 %v8292_v10  ;;  %v8348_v10 = vcombine.low %v1371_v60, %v1375_v61  ;;  %v1428_v60 = vld [vmem:[%s12914_s7 + $0x618] sm:$0xff] }
 0x30a   :  { %3036 = vmatpush1.bf16.msra.mxu1 %v8294_v11  ;;  %2955 = vmatprep.subr.bf16.mxu0 %v8301_v12  ;;  %v8350_v11 = vcombine.low %v1372_v36, %v1376_v0  ;;  %v8357_v12 = vcombine.high %v1379_v3, %v1383_v4  ;;  %v1432_v61 = vld [vmem:[%s12914_s7 + $0x638] sm:$0xff]  ;;  %v8398_v36 = vcombine.low %v1420_v51, %v1424_v52 }
 0x30b   :  { %3037 = vmatprep.subr.bf16.mxu1 %v8303_v13  ;;  %v8359_v13 = vcombine.high %v1380_v6, %v1384_v9  ;;  %v8406_v9 = vcombine.low %v1428_v60, %v1432_v61 }
 0x30d   :  { %2956 = vmatpush1.bf16.msra.mxu0 %v8300_v7  ;;  %v8365_v7 = vcombine.high %v1387_v14, %v1391_v16  ;;  %v1444_v14 = vld [vmem:[%s12914_s7 + $0x698] sm:$0xff] }
 0x30e   :  { %3038 = vmatpush1.bf16.msra.mxu1 %v8302_v22  ;;  %2957 = vmatprep.subr.bf16.mxu0 %v8309_v26  ;;  %v1395_v26 = vld [vmem:[%s12914_s7 + $0x510] sm:$0xff]  ;;  %v1448_v16 = vld [vmem:[%s12914_s7 + $0x6b8] sm:$0xff] }
 0x30f   :  { %3039 = vmatprep.subr.bf16.mxu1 %v8311_v27  ;;  %v1399_v27 = vld [vmem:[%s12914_s7 + $0x530] sm:$0xff] }
 0x310   :  { %v8372_v39 = vcombine.low %v1395_v26, %v1399_v27 }
 0x311   :  { %2958 = vmatpush1.bf16.msra.mxu0 %v8308_v31  ;;  %v8373_v31 = vcombine.high %v1395_v26, %v1399_v27  ;;  %v1452_v26 = vld [vmem:[%s12914_s7 + $0x6d8] sm:$0xff] }
 0x312   :  { %3040 = vmatpush1.bf16.msra.mxu1 %v8310_v8  ;;  %2959 = vmatprep.subr.bf16.mxu0 %v8317_v48  ;;  %v8375_v8 = vcombine.high %v1396_v28, %v1400_v29  ;;  %v1403_v48 = vld [vmem:[%s12914_s7 + $0x550] sm:$0xff]  ;;  %v1456_v27 = vld [vmem:[%s12914_s7 + $0x6f8] sm:$0xff]  ;;  %v8422_v29 = vcombine.low %v1444_v14, %v1448_v16 }
 0x313   :  { %3041 = vmatprep.subr.bf16.mxu1 %v8319_v32  ;;  %v1407_v32 = vld [vmem:[%s12914_s7 + $0x570] sm:$0xff] }
 0x314   :  { %v8380_v49 = vcombine.low %v1403_v48, %v1407_v32 }
 0x315   :  { %2960 = vmatpush1.bf16.msra.mxu0 %v8316_v41  ;;  %v8381_v41 = vcombine.high %v1403_v48, %v1407_v32  ;;  %v1460_v48 = vld [vmem:[%s12914_s7 + $0x718] sm:$0xff] }
 0x316   :  { %3042 = vmatpush1.bf16.msra.mxu1 %v8318_v42  ;;  %2961 = vmatprep.subr.bf16.mxu0 %v8325_v43  ;;  %v8383_v42 = vcombine.high %v1404_v34, %v1408_v38  ;;  %v1411_v43 = vld [vmem:[%s12914_s7 + $0x590] sm:$0xff]  ;;  %v1464_v32 = vld [vmem:[%s12914_s7 + $0x738] sm:$0xff]  ;;  %v8430_v38 = vcombine.low %v1452_v26, %v1456_v27 }
 0x317   :  { %3043 = vmatprep.subr.bf16.mxu1 %v8327_v44  ;;  %v1415_v44 = vld [vmem:[%s12914_s7 + $0x5b0] sm:$0xff] }
 0x318   :  { %v8388_v53 = vcombine.low %v1411_v43, %v1415_v44 }
 0x319   :  { %2962 = vmatpush1.bf16.msra.mxu0 %v8324_v23  ;;  %v8389_v23 = vcombine.high %v1411_v43, %v1415_v44  ;;  %v1468_v43 = vld [vmem:[%s12914_s7 + $0x758] sm:$0xff] }
 0x31a   :  { %3044 = vmatpush1.bf16.msra.mxu1 %v8326_v50  ;;  %2963 = vmatprep.subr.bf16.mxu0 %v8333_v21  ;;  %v8391_v50 = vcombine.high %v1412_v45, %v1416_v46  ;;  %v1419_v21 = vld [vmem:[%s12914_s7 + $0x5d0] sm:$0xff]  ;;  %v1472_v44 = vld [vmem:[%s12914_s7 + $0x778] sm:$0xff]  ;;  %v8438_v46 = vcombine.low %v1460_v48, %v1464_v32 }
 0x31b   :  { %3045 = vmatprep.subr.bf16.mxu1 %v8335_v24  ;;  %v1423_v24 = vld [vmem:[%s12914_s7 + $0x5f0] sm:$0xff] }
 0x31d   :  { %2964 = vmatpush1.bf16.msra.mxu0 %v8332_v55  ;;  %v8397_v55 = vcombine.high %v1419_v21, %v1423_v24 }
 0x31e   :  { %3046 = vmatpush1.bf16.msra.mxu1 %v8334_v56  ;;  %2974 = vmatprep.subr.bf16.mxu0 %v8341_v57  ;;  %v8399_v56 = vcombine.high %v1420_v51, %v1424_v52  ;;  %v1427_v57 = vld [vmem:[%s12914_s7 + $0x610] sm:$0xff]  ;;  %v8446_v52 = vcombine.low %v1468_v43, %v1472_v44 }
 0x31f   :  { %3056 = vmatprep.subr.bf16.mxu1 %v8343_v59  ;;  %v1431_v59 = vld [vmem:[%s12914_s7 + $0x630] sm:$0xff] }
 0x320   :  { %2966 = vmatmul.mubr.bf16.vlgmr.msra.gmra.mrb[8].mxu0 %v10258_v37  ;;  %v8405_v0 = vcombine.high %v1427_v57, %v1431_v59  ;;  %v8404_v6 = vcombine.low %v1427_v57, %v1431_v59  ;;  %v1484_v57 = vld [vmem:[%s12914_s7 + $0x7d8] sm:$0xff] }
 0x321   :  { %3048 = vmatmul.mubr.bf16.vlgmr.msra.gmra.mrb[12].mxu1 %v10258_v37  ;;  %2975 = vmatpush1.bf16.msra.mxu0 %v8340_v63  ;;  %v1388_v37 = vld [vmem:[%s12914_s7 + $0x4d8] sm:$0xff]  ;;  %v8396_v63 = vcombine.low %v1419_v21, %v1423_v24 }
 0x322   :  { %3006 = vmatprep.mubr.bf16.mxu0 %v10498_v20  ;;  %3057 = vmatpush1.bf16.msra.mxu1 %v8342_v1  ;;  %v8367_v22 = vcombine.high %v1388_v37, %v1392_v17  ;;  %v8366_v47 = vcombine.low %v1388_v37, %v1392_v17  ;;  %v8407_v1 = vcombine.high %v1428_v60, %v1432_v61  ;;  %v1476_v21 = vld [vmem:[%s12914_s7 + $0x798] sm:$0xff] }
 0x323   :  { %3088 = vmatprep.mubr.bf16.mxu1 %v10498_v20  ;;  %2976 = vmatprep.subr.bf16.mxu0 %v8349_v2  ;;  %v8356_v20 = vcombine.low %v1379_v3, %v1383_v4  ;;  %v1435_v2 = vld [vmem:[%s12914_s7 + $0x650] sm:$0xff]  ;;  %v1436_v4 = vld [vmem:[%s12914_s7 + $0x658] sm:$0xff] }
 0x324   :  { %3058 = vmatprep.subr.bf16.mxu1 %v8351_v5  ;;  %v1439_v3 = vld [vmem:[%s12914_s7 + $0x670] sm:$0xff]  ;;  %v1440_v5 = vld [vmem:[%s12914_s7 + $0x678] sm:$0xff] }
 0x325   :  { %2977 = vmatpush1.bf16.msra.mxu0 %v8348_v10  ;;  %v8413_v10 = vcombine.high %v1435_v2, %v1439_v3  ;;  %v8412_v37 = vcombine.low %v1435_v2, %v1439_v3  ;;  %v8414_v17 = vcombine.low %v1436_v4, %v1440_v5  ;;  %v1480_v24 = vld [vmem:[%s12914_s7 + $0x7b8] sm:$0xff]  ;;  %v3382_v2 = vld [vmem:[%s12919_s10 + $0x8] sm:$0xff] }
 0x326   :  { %3059 = vmatpush1.bf16.msra.mxu1 %v8350_v11  ;;  %2978 = vmatprep.subr.bf16.mxu0 %v8357_v12  ;;  %v8415_v11 = vcombine.high %v1436_v4, %v1440_v5  ;;  %v1443_v12 = vld [vmem:[%s12914_s7 + $0x690] sm:$0xff]  ;;  %v1488_v59 = vld [vmem:[%s12914_s7 + $0x7f8] sm:$0xff]  ;;  %v8454_v61 = vcombine.low %v1476_v21, %v1480_v24  ;;  %v3386_v3 = vld [vmem:[%s12919_s10 + $0x28] sm:$0xff] }
 0x327   :  { %3060 = vmatprep.subr.bf16.mxu1 %v8359_v13  ;;  %v1447_v13 = vld [vmem:[%s12914_s7 + $0x6b0] sm:$0xff]  ;;  %v8462_v5 = vcombine.low %v1484_v57, %v1488_v59 }
 0x328   :  { %v8420_v28 = vcombine.low %v1443_v12, %v1447_v13 }
 0x329   :  { %2979 = vmatpush1.bf16.msra.mxu0 %v8356_v20  ;;  %v8421_v20 = vcombine.high %v1443_v12, %v1447_v13  ;;  %v3390_v12 = vld [vmem:[%s12919_s10 + $0x48] sm:$0xff] }
 0x32a   :  { %3061 = vmatpush1.bf16.msra.mxu1 %v8358_v18  ;;  %2980 = vmatprep.subr.bf16.mxu0 %v8365_v7  ;;  %v8423_v18 = vcombine.high %v1444_v14, %v1448_v16  ;;  %v1451_v7 = vld [vmem:[%s12914_s7 + $0x6d0] sm:$0xff]  ;;  %v3394_v13 = vld [vmem:[%s12919_s10 + $0x68] sm:$0xff]  ;;  %v8466_v16 = vcombine.low %v3382_v2, %v3386_v3 }
 0x32b   :  { %3062 = vmatprep.subr.bf16.mxu1 %v8367_v22  ;;  %v1455_v22 = vld [vmem:[%s12914_s7 + $0x6f0] sm:$0xff] }
 0x32c   :  { %v8428_v34 = vcombine.low %v1451_v7, %v1455_v22 }
 0x32d   :  { %2981 = vmatpush1.bf16.msra.mxu0 %v8364_v30  ;;  %v8429_v30 = vcombine.high %v1451_v7, %v1455_v22  ;;  %v3398_v7 = vld [vmem:[%s12919_s10 + $0x88] sm:$0xff] }
 0x32e   :  { %3063 = vmatpush1.bf16.msra.mxu1 %v8366_v47  ;;  %2982 = vmatprep.subr.bf16.mxu0 %v8373_v31  ;;  %v8431_v47 = vcombine.high %v1452_v26, %v1456_v27  ;;  %v1459_v31 = vld [vmem:[%s12914_s7 + $0x710] sm:$0xff]  ;;  %v3402_v22 = vld [vmem:[%s12919_s10 + $0xa8] sm:$0xff]  ;;  %v8474_v27 = vcombine.low %v3390_v12, %v3394_v13 }
 0x32f   :  { %3064 = vmatprep.subr.bf16.mxu1 %v8375_v8  ;;  %v1463_v8 = vld [vmem:[%s12914_s7 + $0x730] sm:$0xff] }
 0x330   :  { %v8436_v45 = vcombine.low %v1459_v31, %v1463_v8 }
 0x331   :  { %2983 = vmatpush1.bf16.msra.mxu0 %v8372_v39  ;;  %v8437_v39 = vcombine.high %v1459_v31, %v1463_v8  ;;  %v3410_v31 = vld [vmem:[%s12919_s10 + $0xe8] sm:$0xff] }
 0x332   :  { %3065 = vmatpush1.bf16.msra.mxu1 %v8374_v40  ;;  %2984 = vmatprep.subr.bf16.mxu0 %v8381_v41  ;;  %v8439_v40 = vcombine.high %v1460_v48, %v1464_v32  ;;  %v1467_v41 = vld [vmem:[%s12914_s7 + $0x750] sm:$0xff]  ;;  %v8482_v48 = vcombine.low %v3398_v7, %v3402_v22 }
 0x333   :  { %3066 = vmatprep.subr.bf16.mxu1 %v8383_v42  ;;  %v1471_v42 = vld [vmem:[%s12914_s7 + $0x770] sm:$0xff] }
 0x334   :  { %v8444_v51 = vcombine.low %v1467_v41, %v1471_v42 }
 0x335   :  { %2985 = vmatpush1.bf16.msra.mxu0 %v8380_v49  ;;  %v8445_v49 = vcombine.high %v1467_v41, %v1471_v42  ;;  %v3418_v41 = vld [vmem:[%s12919_s10 + $0x128] sm:$0xff] }
 0x336   :  { %3067 = vmatpush1.bf16.msra.mxu1 %v8382_v19  ;;  %2986 = vmatprep.subr.bf16.mxu0 %v8389_v23  ;;  %v8447_v19 = vcombine.high %v1468_v43, %v1472_v44  ;;  %v1475_v23 = vld [vmem:[%s12914_s7 + $0x790] sm:$0xff] }
 0x337   :  { %3068 = vmatprep.subr.bf16.mxu1 %v8391_v50  ;;  %v1479_v50 = vld [vmem:[%s12914_s7 + $0x7b0] sm:$0xff] }
 0x338   :  { %v8452_v60 = vcombine.low %v1475_v23, %v1479_v50 }
 0x339   :  { %2987 = vmatpush1.bf16.msra.mxu0 %v8388_v53  ;;  %v8453_v53 = vcombine.high %v1475_v23, %v1479_v50  ;;  %v3426_v23 = vld [vmem:[%s12919_s10 + $0x168] sm:$0xff] }
 0x33a   :  { %3069 = vmatpush1.bf16.msra.mxu1 %v8390_v54  ;;  %2988 = vmatprep.subr.bf16.mxu0 %v8397_v55  ;;  %v8455_v54 = vcombine.high %v1476_v21, %v1480_v24  ;;  %v1483_v55 = vld [vmem:[%s12914_s7 + $0x7d0] sm:$0xff]  ;;  %v10949_v21 = vld [vmem:[%s12919_s10 + $0x400] sm:$0xff] }
 0x33b   :  { %3070 = vmatprep.subr.bf16.mxu1 %v8399_v56  ;;  %v1487_v56 = vld [vmem:[%s12914_s7 + $0x7f0] sm:$0xff]  ;;  %v10954_v24 = vld [vmem:[%s12919_s10 + $0x420] sm:$0xff] }
 0x33c   :  { %v8460_v4 = vcombine.low %v1483_v55, %v1487_v56 }
 0x33d   :  { %2989 = vmatpush1.bf16.msra.mxu0 %v8396_v63  ;;  %v8461_v63 = vcombine.high %v1483_v55, %v1487_v56  ;;  %v3429_v56 = vld [vmem:[%s12919_s10 + $0x180] sm:$0xff] }
 0x33e   :  { %3071 = vmatpush1.bf16.msra.mxu1 %v8398_v36  ;;  %2990 = vmatprep.subr.bf16.mxu0 %v8405_v0  ;;  %v8463_v36 = vcombine.high %v1484_v57, %v1488_v59  ;;  %v3381_v0 = vld [vmem:[%s12919_s10] sm:$0xff]  ;;  %v8592_v59 = vcombine.low %v10949_v21, %v10954_v24 }
 0x33f   :  { %3072 = vmatprep.subr.bf16.mxu1 %v8407_v1  ;;  %v3385_v1 = vld [vmem:[%s12919_s10 + $0x20] sm:$0xff] }
 0x340   :  { %v8464_v14 = vcombine.low %v3381_v0, %v3385_v1  ;;  %v3433_v57 = vld [vmem:[%s12919_s10 + $0x1a0] sm:$0xff] }
 0x341   :  { %2991 = vmatpush1.bf16.msra.mxu0 %v8404_v6  ;;  %v8465_v6 = vcombine.high %v3381_v0, %v3385_v1  ;;  %v8513_v1 = vcombine.high %v3429_v56, %v3433_v57 }
 0x342   :  { %3073 = vmatpush1.bf16.msra.mxu1 %v8406_v9  ;;  %2992 = vmatprep.subr.bf16.mxu0 %v8413_v10  ;;  %v8467_v9 = vcombine.high %v3382_v2, %v3386_v3  ;;  %v3389_v10 = vld [vmem:[%s12919_s10 + $0x40] sm:$0xff] }
 0x343   :  { %3074 = vmatprep.subr.bf16.mxu1 %v8415_v11  ;;  %v3393_v11 = vld [vmem:[%s12919_s10 + $0x60] sm:$0xff] }
 0x344   :  { %v8472_v26 = vcombine.low %v3389_v10, %v3393_v11  ;;  %v3437_v3 = vld [vmem:[%s12919_s10 + $0x1c0] sm:$0xff] }
 0x345   :  { %2993 = vmatpush1.bf16.msra.mxu0 %v8412_v37  ;;  %v8473_v37 = vcombine.high %v3389_v10, %v3393_v11 }
 0x346   :  { %3075 = vmatpush1.bf16.msra.mxu1 %v8414_v17  ;;  %2994 = vmatprep.subr.bf16.mxu0 %v8421_v20  ;;  %v8475_v17 = vcombine.high %v3390_v12, %v3394_v13  ;;  %v3397_v20 = vld [vmem:[%s12919_s10 + $0x80] sm:$0xff] }
 0x347   :  { %3076 = vmatprep.subr.bf16.mxu1 %v8423_v18  ;;  %v3401_v18 = vld [vmem:[%s12919_s10 + $0xa0] sm:$0xff] }
 0x348   :  { %v8480_v8 = vcombine.low %v3397_v20, %v3401_v18  ;;  %v3445_v13 = vld [vmem:[%s12919_s10 + $0x200] sm:$0xff] }
 0x349   :  { %2995 = vmatpush1.bf16.msra.mxu0 %v8420_v28  ;;  %v8481_v28 = vcombine.high %v3397_v20, %v3401_v18 }
 0x34a   :  { %3077 = vmatpush1.bf16.msra.mxu1 %v8422_v29  ;;  %2996 = vmatprep.subr.bf16.mxu0 %v8429_v30  ;;  %v8483_v29 = vcombine.high %v3398_v7, %v3402_v22  ;;  %v3405_v30 = vld [vmem:[%s12919_s10 + $0xc0] sm:$0xff] }
 0x34b   :  { %3078 = vmatprep.subr.bf16.mxu1 %v8431_v47  ;;  %v3409_v47 = vld [vmem:[%s12919_s10 + $0xe0] sm:$0xff] }
 0x34c   :  { %v8489_v32 = vcombine.high %v3405_v30, %v3409_v47  ;;  %v8488_v42 = vcombine.low %v3405_v30, %v3409_v47  ;;  %v3453_v22 = vld [vmem:[%s12919_s10 + $0x240] sm:$0xff] }
 0x34d   :  { %2997 = vmatpush1.bf16.msra.mxu0 %v8428_v34 }
 0x34e   :  { %3079 = vmatpush1.bf16.msra.mxu1 %v8430_v38  ;;  %2998 = vmatprep.subr.bf16.mxu0 %v8437_v39  ;;  %v3413_v38 = vld [vmem:[%s12919_s10 + $0x100] sm:$0xff] }
 0x34f   :  { %3080 = vmatprep.subr.bf16.mxu1 %v8439_v40  ;;  %v3417_v39 = vld [vmem:[%s12919_s10 + $0x120] sm:$0xff]  ;;  %v3414_v40 = vld [vmem:[%s12919_s10 + $0x108] sm:$0xff] }
 0x350   :  { %v8497_v44 = vcombine.high %v3413_v38, %v3417_v39  ;;  %v8496_v50 = vcombine.low %v3413_v38, %v3417_v39 }
 0x351   :  { %2999 = vmatpush1.bf16.msra.mxu0 %v8436_v45  ;;  %v8499_v45 = vcombine.high %v3414_v40, %v3418_v41 }
 0x352   :  { %3081 = vmatpush1.bf16.msra.mxu1 %v8438_v46  ;;  %3000 = vmatprep.subr.bf16.mxu0 %v8445_v49  ;;  %v3421_v46 = vld [vmem:[%s12919_s10 + $0x140] sm:$0xff] }
 0x353   :  { %3082 = vmatprep.subr.bf16.mxu1 %v8447_v19  ;;  %v3425_v49 = vld [vmem:[%s12919_s10 + $0x160] sm:$0xff]  ;;  %v3422_v19 = vld [vmem:[%s12919_s10 + $0x148] sm:$0xff] }
 0x354   :  { %v8507_v55 = vcombine.high %v3422_v19, %v3426_v23  ;;  %v8506_v0 = vcombine.low %v3422_v19, %v3426_v23  ;;  %v3477_v23 = vld [vmem:[%s12919_s10 + $0x300] sm:$0xff] }
 0x355   :  { %3001 = vmatpush1.bf16.msra.mxu0 %v8444_v51  ;;  %v10959_v51 = vld [vmem:[%s12919_s10 + $0x408] sm:$0xff] }
 0x356   :  { %3083 = vmatpush1.bf16.msra.mxu1 %v8446_v52  ;;  %3002 = vmatprep.subr.bf16.mxu0 %v8453_v53  ;;  %v8498_v52 = vcombine.low %v3414_v40, %v3418_v41  ;;  %v8505_v53 = vcombine.high %v3421_v46, %v3425_v49  ;;  %v3469_v41 = vld [vmem:[%s12919_s10 + $0x2c0] sm:$0xff] }
 0x357   :  { %3084 = vmatprep.subr.bf16.mxu1 %v8455_v54  ;;  %v10964_v54 = vld [vmem:[%s12919_s10 + $0x428] sm:$0xff] }
 0x359   :  { %3003 = vmatpush1.bf16.msra.mxu0 %v8452_v60  ;;  %v8594_v60 = vcombine.low %v10959_v51, %v10964_v54 }
 0x35a   :  { %3085 = vmatpush1.bf16.msra.mxu1 %v8454_v61  ;;  %3004 = vmatprep.subr.bf16.mxu0 %v8461_v63  ;;  %v3430_v61 = vld [vmem:[%s12919_s10 + $0x188] sm:$0xff] }
 0x35b   :  { %3086 = vmatprep.subr.bf16.mxu1 %v8463_v36  ;;  %v3434_v63 = vld [vmem:[%s12919_s10 + $0x1a8] sm:$0xff]  ;;  %v8504_v36 = vcombine.low %v3421_v46, %v3425_v49 }
 0x35c   :  { %v8515_v2 = vcombine.high %v3430_v61, %v3434_v63  ;;  %v8514_v10 = vcombine.low %v3430_v61, %v3434_v63  ;;  %v3485_v63 = vld [vmem:[%s12919_s10 + $0x340] sm:$0xff] }
 0x35d   :  { %3005 = vmatpush1.bf16.msra.mxu0 %v8460_v4  ;;  %v3441_v4 = vld [vmem:[%s12919_s10 + $0x1e0] sm:$0xff] }
 0x35e   :  { %3087 = vmatpush1.bf16.msra.mxu1 %v8462_v5  ;;  %6453 = vmatprep.subr.bf16.mxu0 %v8465_v6  ;;  %v3438_v5 = vld [vmem:[%s12919_s10 + $0x1c8] sm:$0xff]  ;;  %v8521_v11 = vcombine.high %v3437_v3, %v3441_v4 }
 0x35f   :  { %6617 = vmatprep.subr.bf16.mxu1 %v8467_v9  ;;  %v3442_v6 = vld [vmem:[%s12919_s10 + $0x1e8] sm:$0xff]  ;;  %v8512_v9 = vcombine.low %v3429_v56, %v3433_v57 }
 0x360   :  { %3007 = vmatmul.mubr.bf16.vlgmr.msra.gmra.mrb[8].mxu0 %v10500_v25  ;;  %v8523_v12 = vcombine.high %v3438_v5, %v3442_v6  ;;  %v8522_v20 = vcombine.low %v3438_v5, %v3442_v6  ;;  %v3493_v6 = vld [vmem:[%s12919_s10 + $0x380] sm:$0xff] }
 0x361   :  { %3089 = vmatmul.mubr.bf16.vlgmr.msra.gmra.mrb[12].mxu1 %v10500_v25  ;;  %6454 = vmatpush1.bf16.msra.mxu0 %v8464_v14  ;;  %v3406_v25 = vld [vmem:[%s12919_s10 + $0xc8] sm:$0xff]  ;;  %v3449_v14 = vld [vmem:[%s12919_s10 + $0x220] sm:$0xff] }
 0x362   :  { %6618 = vmatpush1.bf16.msra.mxu1 %v8466_v16  ;;  %6455 = vmatprep.subr.bf16.mxu0 %v8473_v37  ;;  %v8491_v34 = vcombine.high %v3406_v25, %v3410_v31  ;;  %v8490_v43 = vcombine.low %v3406_v25, %v3410_v31  ;;  %v3446_v16 = vld [vmem:[%s12919_s10 + $0x208] sm:$0xff]  ;;  %v8529_v18 = vcombine.high %v3445_v13, %v3449_v14  ;;  %v3461_v31 = vld [vmem:[%s12919_s10 + $0x280] sm:$0xff] }
 0x363   :  { %6619 = vmatprep.subr.bf16.mxu1 %v8475_v17  ;;  %v3450_v37 = vld [vmem:[%s12919_s10 + $0x228] sm:$0xff]  ;;  %v8520_v17 = vcombine.low %v3437_v3, %v3441_v4 }
 0x364   :  { %v8531_v7 = vcombine.high %v3446_v16, %v3450_v37  ;;  %v8530_v30 = vcombine.low %v3446_v16, %v3450_v37  ;;  %v3501_v37 = vld [vmem:[%s12919_s10 + $0x3c0] sm:$0xff] }
 0x365   :  { %6456 = vmatpush1.bf16.msra.mxu0 %v8472_v26  ;;  %v3457_v26 = vld [vmem:[%s12919_s10 + $0x260] sm:$0xff] }
 0x366   :  { %6620 = vmatpush1.bf16.msra.mxu1 %v8474_v27  ;;  %6457 = vmatprep.subr.bf16.mxu0 %v8481_v28  ;;  %v3454_v27 = vld [vmem:[%s12919_s10 + $0x248] sm:$0xff]  ;;  %v8537_v47 = vcombine.high %v3453_v22, %v3457_v26 }
 0x367   :  { %6621 = vmatprep.subr.bf16.mxu1 %v8483_v29  ;;  %v3458_v28 = vld [vmem:[%s12919_s10 + $0x268] sm:$0xff]  ;;  %v8528_v29 = vcombine.low %v3445_v13, %v3449_v14 }
 0x368   :  { %v8539_v25 = vcombine.high %v3454_v27, %v3458_v28  ;;  %v8538_v38 = vcombine.low %v3454_v27, %v3458_v28 }
 0x369   :  { %6458 = vmatpush1.bf16.msra.mxu0 %v8480_v8  ;;  %v3465_v8 = vld [vmem:[%s12919_s10 + $0x2a0] sm:$0xff] }
 0x36a   :  { %6622 = vmatpush1.bf16.msra.mxu1 %v8482_v48  ;;  %6459 = vmatprep.subr.bf16.mxu0 %v8489_v32  ;;  %v3462_v48 = vld [vmem:[%s12919_s10 + $0x288] sm:$0xff]  ;;  %v8545_v39 = vcombine.high %v3461_v31, %v3465_v8 }
 0x36b   :  { %6623 = vmatprep.subr.bf16.mxu1 %v8491_v34  ;;  %v3466_v32 = vld [vmem:[%s12919_s10 + $0x2a8] sm:$0xff]  ;;  %v8536_v34 = vcombine.low %v3453_v22, %v3457_v26 }
 0x36c   :  { %v8547_v40 = vcombine.high %v3462_v48, %v3466_v32  ;;  %v8546_v46 = vcombine.low %v3462_v48, %v3466_v32 }
 0x36d   :  { %6460 = vmatpush1.bf16.msra.mxu0 %v8488_v42  ;;  %v3473_v42 = vld [vmem:[%s12919_s10 + $0x2e0] sm:$0xff] }
 0x36e   :  { %6624 = vmatpush1.bf16.msra.mxu1 %v8490_v43  ;;  %6461 = vmatprep.subr.bf16.mxu0 %v8497_v44  ;;  %v3470_v43 = vld [vmem:[%s12919_s10 + $0x2c8] sm:$0xff]  ;;  %v8553_v49 = vcombine.high %v3469_v41, %v3473_v42 }
 0x36f   :  { %6625 = vmatprep.subr.bf16.mxu1 %v8499_v45  ;;  %v3474_v44 = vld [vmem:[%s12919_s10 + $0x2e8] sm:$0xff]  ;;  %v8544_v45 = vcombine.low %v3461_v31, %v3465_v8 }
 0x370   :  { %v8555_v19 = vcombine.high %v3470_v43, %v3474_v44  ;;  %v8554_v56 = vcombine.low %v3470_v43, %v3474_v44 }
 0x371   :  { %6462 = vmatpush1.bf16.msra.mxu0 %v8496_v50  ;;  %v3481_v50 = vld [vmem:[%s12919_s10 + $0x320] sm:$0xff] }
 0x372   :  { %6626 = vmatpush1.bf16.msra.mxu1 %v8498_v52  ;;  %6463 = vmatprep.subr.bf16.mxu0 %v8505_v53  ;;  %v3478_v52 = vld [vmem:[%s12919_s10 + $0x308] sm:$0xff]  ;;  %v8561_v57 = vcombine.high %v3477_v23, %v3481_v50 }
 0x373   :  { %6627 = vmatprep.subr.bf16.mxu1 %v8507_v55  ;;  %v3482_v53 = vld [vmem:[%s12919_s10 + $0x328] sm:$0xff]  ;;  %v8552_v55 = vcombine.low %v3469_v41, %v3473_v42 }
 0x374   :  { %v8563_v61 = vcombine.high %v3478_v52, %v3482_v53  ;;  %v8562_v3 = vcombine.low %v3478_v52, %v3482_v53 }
 0x375   :  { %6464 = vmatpush1.bf16.msra.mxu0 %v8504_v36  ;;  %v3489_v36 = vld [vmem:[%s12919_s10 + $0x360] sm:$0xff] }
 0x376   :  { %6628 = vmatpush1.bf16.msra.mxu1 %v8506_v0  ;;  %6465 = vmatprep.subr.bf16.mxu0 %v8513_v1  ;;  %v3486_v0 = vld [vmem:[%s12919_s10 + $0x348] sm:$0xff]  ;;  %v8569_v4 = vcombine.high %v3485_v63, %v3489_v36 }
 0x377   :  { %6629 = vmatprep.subr.bf16.mxu1 %v8515_v2  ;;  %v3490_v1 = vld [vmem:[%s12919_s10 + $0x368] sm:$0xff]  ;;  %v8560_v2 = vcombine.low %v3477_v23, %v3481_v50 }
 0x378   :  { %v8571_v5 = vcombine.high %v3486_v0, %v3490_v1  ;;  %v8570_v13 = vcombine.low %v3486_v0, %v3490_v1 }
 0x379   :  { %6466 = vmatpush1.bf16.msra.mxu0 %v8512_v9  ;;  %v3497_v9 = vld [vmem:[%s12919_s10 + $0x3a0] sm:$0xff] }
 0x37a   :  { %6630 = vmatpush1.bf16.msra.mxu1 %v8514_v10  ;;  %6467 = vmatprep.subr.bf16.mxu0 %v8521_v11  ;;  %v3494_v10 = vld [vmem:[%s12919_s10 + $0x388] sm:$0xff]  ;;  %v8577_v14 = vcombine.high %v3493_v6, %v3497_v9 }
 0x37b   :  { %6631 = vmatprep.subr.bf16.mxu1 %v8523_v12  ;;  %v3498_v11 = vld [vmem:[%s12919_s10 + $0x3a8] sm:$0xff]  ;;  %v8568_v12 = vcombine.low %v3485_v63, %v3489_v36 }
 0x37c   :  { %v8579_v16 = vcombine.high %v3494_v10, %v3498_v11  ;;  %v8578_v22 = vcombine.low %v3494_v10, %v3498_v11 }
 0x37d   :  { %6468 = vmatpush1.bf16.msra.mxu0 %v8520_v17  ;;  %v3505_v17 = vld [vmem:[%s12919_s10 + $0x3e0] sm:$0xff] }
 0x37e   :  { %6632 = vmatpush1.bf16.msra.mxu1 %v8522_v20  ;;  %6469 = vmatprep.subr.bf16.mxu0 %v8529_v18  ;;  %v3502_v20 = vld [vmem:[%s12919_s10 + $0x3c8] sm:$0xff]  ;;  %v8585_v26 = vcombine.high %v3501_v37, %v3505_v17  ;;  %v8584_v28 = vcombine.low %v3501_v37, %v3505_v17 }
 0x37f   :  { %6633 = vmatprep.subr.bf16.mxu1 %v8531_v7  ;;  %v3506_v18 = vld [vmem:[%s12919_s10 + $0x3e8] sm:$0xff]  ;;  %v8576_v7 = vcombine.low %v3493_v6, %v3497_v9 }
 0x380   :  { %v8587_v27 = vcombine.high %v3502_v20, %v3506_v18 }
 0x381   :  { %6470 = vmatpush1.bf16.msra.mxu0 %v8528_v29  ;;  %v8586_v29 = vcombine.low %v3502_v20, %v3506_v18 }
 0x382   :  { %6634 = vmatpush1.bf16.msra.mxu1 %v8530_v30  ;;  %6471 = vmatprep.subr.bf16.mxu0 %v8537_v47  ;;  %v8593_v30 = vcombine.high %v10949_v21, %v10954_v24  ;;  %v8595_v47 = vcombine.high %v10959_v51, %v10964_v54  ;;  %v3537_v21 = vld [vmem:[%s12919_s10 + $0x4e0] sm:$0xff]  ;;  %v3534_v24 = vld [vmem:[%s12919_s10 + $0x4c8] sm:$0xff] }
 0x383   :  { %6635 = vmatprep.subr.bf16.mxu1 %v8539_v25  ;;  %v3538_v51 = vld [vmem:[%s12919_s10 + $0x4e8] sm:$0xff] }
 0x385   :  { %6472 = vmatpush1.bf16.msra.mxu0 %v8536_v34 }
 0x386   :  { %6636 = vmatpush1.bf16.msra.mxu1 %v8538_v38  ;;  %6473 = vmatprep.subr.bf16.mxu0 %v8545_v39 }
 0x387   :  { %6637 = vmatprep.subr.bf16.mxu1 %v8547_v40 }
 0x389   :  { %6474 = vmatpush1.bf16.msra.mxu0 %v8544_v45 }
 0x38a   :  { %6638 = vmatpush1.bf16.msra.mxu1 %v8546_v46  ;;  %6475 = vmatprep.subr.bf16.mxu0 %v8553_v49 }
 0x38b   :  { %6639 = vmatprep.subr.bf16.mxu1 %v8555_v19 }
 0x38d   :  { %6476 = vmatpush1.bf16.msra.mxu0 %v8552_v55 }
 0x38e   :  { %6640 = vmatpush1.bf16.msra.mxu1 %v8554_v56  ;;  %6477 = vmatprep.subr.bf16.mxu0 %v8561_v57 }
 0x38f   :  { %6641 = vmatprep.subr.bf16.mxu1 %v8563_v61 }
 0x391   :  { %6478 = vmatpush1.bf16.msra.mxu0 %v8560_v2 }
 0x392   :  { %6642 = vmatpush1.bf16.msra.mxu1 %v8562_v3  ;;  %6479 = vmatprep.subr.bf16.mxu0 %v8569_v4 }
 0x393   :  { %6643 = vmatprep.subr.bf16.mxu1 %v8571_v5 }
 0x395   :  { %6480 = vmatpush1.bf16.msra.mxu0 %v8568_v12 }
 0x396   :  { %6644 = vmatpush1.bf16.msra.mxu1 %v8570_v13  ;;  %6481 = vmatprep.subr.bf16.mxu0 %v8577_v14 }
 0x397   :  { %6645 = vmatprep.subr.bf16.mxu1 %v8579_v16 }
 0x399   :  { %6482 = vmatpush1.bf16.msra.mxu0 %v8576_v7 }
 0x39a   :  { %6646 = vmatpush1.bf16.msra.mxu1 %v8578_v22  ;;  %6483 = vmatprep.subr.bf16.mxu0 %v8585_v26 }
 0x39b   :  { %6647 = vmatprep.subr.bf16.mxu1 %v8587_v27 }
 0x39d   :  { %6484 = vmatpush1.bf16.msra.mxu0 %v8584_v28 }
 0x39e   :  { %6648 = vmatpush1.bf16.msra.mxu1 %v8586_v29  ;;  %6494 = vmatprep.subr.bf16.mxu0 %v8593_v30 }
 0x39f   :  { %6658 = vmatprep.subr.bf16.mxu1 %v8595_v47 }
 0x3b3   :  { %v2844_v25 = vpop.f32.mrb[4].mxu0  ;;  %v11094_v31 = vpop.f32.mrb[8].mxu1 }
 0x3b4   :  { %v3099_v8 = vsel %vm549_vm0, %v2844_v25, 0.0  ;;  %v2846_v48 = vpop.f32.mrb[5].mxu0  ;;  %v2928_v32 = vpop.f32.mrb[9].mxu1  ;;  %v3113_v14 = vsel %vm549_vm0, %v11094_v31, 0.0 }
 0x3b5   :  { %v3100_v34 = vrot.slane %v3099_v8, 4  ;;  %v3106_v38 = vsel %vm549_vm0, %v2846_v48, 0.0  ;;  %v3120_v39 = vsel %vm549_vm0, %v2928_v32, 0.0  ;;  %v2848_v40 = vpop.f32.mrb[6].mxu0  ;;  %v2930_v41 = vpop.f32.mrb[10].mxu1  ;;  %v3114_v22 = vrot.slane %v3113_v14, 4 }
 0x3b6   :  { %v3107_v42 = vrot.slane %v3106_v38, 4  ;;  %v3121_v43 = vrot.slane %v3120_v39, 4  ;;  %v2849_v44 = vpop.f32.mrb[7].mxu0  ;;  %v2931_v45 = vpop.f32.mrb[11].mxu1 }
 0x3b7   :  { %v3101_v46 = vadd.f32 %v3100_v34, %v3099_v8 }
 0x3b8   :  { %v3108_v49 = vadd.f32 %v3107_v42, %v3106_v38  ;;  %v3122_v19 = vadd.f32 %v3121_v43, %v3120_v39 }
 0x3b9   :  { %v3102_v23 = vrot.slane %v3101_v46, 2 }
 0x3ba   :  { %v3109_v50 = vrot.slane %v3108_v49, 2  ;;  %v3123_v52 = vrot.slane %v3122_v19, 2 }
 0x3bb   :  { %v3103_v53 = vadd.f32 %v3102_v23, %v3101_v46 }
 0x3bc   :  { %v3110_v55 = vadd.f32 %v3109_v50, %v3108_v49  ;;  %v3124_v56 = vadd.f32 %v3123_v52, %v3122_v19  ;;  %v11107_v52 = vld [vmem:[%s12920_s8] sm:$0xff] }
 0x3bd   :  { %v3104_v57 = vrot.slane %v3103_v53, 1 }
 0x3be   :  { %v3111_v61 = vrot.slane %v3110_v55, 1  ;;  %v3125_v63 = vrot.slane %v3124_v56, 1 }
 0x3bf   :  { %v3105_v36 = vadd.f32 %v3104_v57, %v3103_v53 }
 0x3c0   :  { %v3112_v0 = vadd.f32 %v3111_v61, %v3110_v55  ;;  %v3126_v1 = vadd.f32 %v3125_v63, %v3124_v56  ;;  %v11112_v55 = vld [vmem:[%s12921_s9] sm:$0xff]  ;;  %v3271_v56 = vrot.slane %v11107_v52, %v9902_v33 }
 0x3c1   :  { %v3155_v2 = vmul.f32 0.5, %v3105_v36  ;;  %v3320_v36 = vrot.slane %v11112_v55, %v9902_v33 }
 0x3c2   :  { %v3156_v3 = vmul.f32 0.5, %v3112_v0  ;;  %v3158_v4 = vmul.f32 0.5, %v3126_v1  ;;  %v3275_v0 = vrot.slane %v11107_v52, %v9908_v35 }
 0x3c3   :  { %v3163_v5 = vsub.f32 %v2844_v25, %v3155_v2  ;;  %v3115_v25 = vadd.f32 %v3114_v22, %v3113_v14  ;;  %v3283_v2 = vrot.slane %v11107_v52, %v10441_v62  ;;  %v3517_v22 = vld [vmem:[%s12919_s10 + $0x440] sm:$0xff] }
 0x3c4   :  { %v3164_v6 = vsub.f32 %v2846_v48, %v3156_v3  ;;  %v3166_v9 = vsub.f32 %v2928_v32, %v3158_v4 }
 0x3c5   :  { %v3171_v10 = vmul.f32 %v3163_v5, %v3163_v5  ;;  %v3116_v40 = vrot.slane %v3115_v25, 2 }
 0x3c6   :  { %v3172_v11 = vmul.f32 %v3164_v6, %v3164_v6  ;;  %v3174_v12 = vmul.f32 %v3166_v9, %v3166_v9 }
 0x3c7   :  { %v3179_v13 = vsel %vm549_vm0, %v3171_v10, 0.0  ;;  %v3117_v49 = vadd.f32 %v3116_v40, %v3115_v25 }
 0x3c8   :  { %v3180_v16 = vrot.slane %v3179_v13, 4  ;;  %v3186_v37 = vsel %vm549_vm0, %v3172_v11, 0.0  ;;  %v3200_v17 = vsel %vm549_vm0, %v3174_v12, 0.0  ;;  %v3324_v11 = vrot.slane %v11112_v55, %v9908_v35 }
 0x3c9   :  { %v3187_v20 = vrot.slane %v3186_v37, 4  ;;  %v3201_v18 = vrot.slane %v3200_v17, 4  ;;  %v3118_v50 = vrot.slane %v3117_v49, 1 }
 0x3ca   :  { %v3181_v7 = vadd.f32 %v3180_v16, %v3179_v13  ;;  %v3332_v13 = vrot.slane %v11112_v55, %v10441_v62 }
 0x3cb   :  { %v3188_v26 = vadd.f32 %v3187_v20, %v3186_v37  ;;  %v3202_v27 = vadd.f32 %v3201_v18, %v3200_v17  ;;  %v3119_v53 = vadd.f32 %v3118_v50, %v3117_v49  ;;  %v3541_v49 = vld [vmem:[%s12919_s10 + $0x500] sm:$0xff]  ;;  %v3546_v50 = vld [vmem:[%s12919_s10 + $0x528] sm:$0xff] }
 0x3cc   :  { %v3182_v28 = vrot.slane %v3181_v7, 2 }
 0x3cd   :  { %v3189_v29 = vrot.slane %v3188_v26, 2  ;;  %v3203_v30 = vrot.slane %v3202_v27, 2  ;;  %v3157_v61 = vmul.f32 0.5, %v3119_v53 }
 0x3ce   :  { %v3183_v47 = vadd.f32 %v3182_v28, %v3181_v7 }
 0x3cf   :  { %v3190_v8 = vadd.f32 %v3189_v29, %v3188_v26  ;;  %v3204_v48 = vadd.f32 %v3203_v30, %v3202_v27  ;;  %v11125_v12 = vsub.f32 %v11094_v31, %v3157_v61  ;;  %v3518_v26 = vld [vmem:[%s12919_s10 + $0x448] sm:$0xff] }
 0x3d0   :  { %v3184_v32 = vrot.slane %v3183_v47, 1  ;;  %v3522_v27 = vld [vmem:[%s12919_s10 + $0x468] sm:$0xff] }
 0x3d1   :  { %v3191_v34 = vrot.slane %v3190_v8, 1  ;;  %v3205_v38 = vrot.slane %v3204_v48, 1  ;;  %v3173_v20 = vmul.f32 %v11125_v12, %v11125_v12 }
 0x3d2   :  { %v3185_v39 = vadd.f32 %v3184_v32, %v3183_v47  ;;  %v3525_v47 = vld [vmem:[%s12919_s10 + $0x480] sm:$0xff]  ;;  %v3526_v32 = vld [vmem:[%s12919_s10 + $0x488] sm:$0xff] }
 0x3d3   :  { %v3192_v41 = vadd.f32 %v3191_v34, %v3190_v8  ;;  %v3206_v42 = vadd.f32 %v3205_v38, %v3204_v48  ;;  %v3193_v29 = vsel %vm549_vm0, %v3173_v20, 0.0  ;;  %v8603_v8 = vcombine.high %v3518_v26, %v3522_v27  ;;  %v3529_v48 = vld [vmem:[%s12919_s10 + $0x4a0] sm:$0xff]  ;;  %v3530_v34 = vld [vmem:[%s12919_s10 + $0x4a8] sm:$0xff] }
 0x3d4   :  { %v3235_v43 = vmul.f32 0.5, %v3185_v39  ;;  %v3194_v39 = vrot.slane %v3193_v29, 4 }
 0x3d5   :  { %v3236_v44 = vmul.f32 0.5, %v3192_v41  ;;  %v3238_v45 = vmul.f32 0.5, %v3206_v42  ;;  %v8602_v41 = vcombine.low %v3518_v26, %v3522_v27  ;;  %v8609_v42 = vcombine.high %v3525_v47, %v3529_v48  ;;  %v3570_v26 = vld [vmem:[%s12919_s10 + $0x5e8] sm:$0xff] }
 0x3d6   :  { %v3243_v46 = vadd.f32 1e-05, %v3235_v43  ;;  %v8611_v43 = vcombine.high %v3526_v32, %v3530_v34  ;;  %v3195_v54 = vadd.f32 %v3194_v39, %v3193_v29  ;;  %v3578_v39 = vld [vmem:[%s12919_s10 + $0x628] sm:$0xff] }
 0x3d7   :  { %v3244_v19 = vadd.f32 1e-05, %v3236_v44  ;;  %v3246_v23 = vadd.f32 1e-05, %v3238_v45  ;;  %v3533_v44 = vld [vmem:[%s12919_s10 + $0x4c0] sm:$0xff] }
 0x3d8   :  { %9466 = vrsqrt.f32 %v3243_v46  ;;  %v8617_v45 = vcombine.high %v3533_v44, %v3537_v21  ;;  %v8619_v46 = vcombine.high %v3534_v24, %v3538_v51  ;;  %v3196_v53 = vrot.slane %v3195_v54, 2 }
 0x3d9   :  { %9468 = vrsqrt.f32 %v3244_v19  ;;  %v3545_v19 = vld [vmem:[%s12919_s10 + $0x520] sm:$0xff] }
 0x3da   :  { %9470 = vrsqrt.f32 %v3246_v23  ;;  %v3542_v23 = vld [vmem:[%s12919_s10 + $0x508] sm:$0xff]  ;;  %v8625_v61 = vcombine.high %v3541_v49, %v3545_v19 }
 0x3e2   :  { %v9467_v57 = vpop.eup %9466 }
 0x3e3   :  { %v3259_v63 = vmul.f32 %v9467_v57, %v3163_v5  ;;  %v9469_v1 = vpop.eup %9468  ;;  %v8618_v57 = vcombine.low %v3534_v24, %v3538_v51  ;;  %v3585_v24 = vld [vmem:[%s12919_s10 + $0x660] sm:$0xff]  ;;  %v3582_v51 = vld [vmem:[%s12919_s10 + $0x648] sm:$0xff] }
 0x3e4   :  { %v9471_v3 = vpop.eup %9470  ;;  %v3260_v10 = vmul.f32 %v9469_v1, %v3164_v6  ;;  %v3550_v1 = vld [vmem:[%s12919_s10 + $0x548] sm:$0xff] }
 0x3e5   :  { %v3308_v4 = vmul.f32 %v3271_v56, %v3259_v63  ;;  %v3262_v5 = vmul.f32 %v9471_v3, %v3166_v9  ;;  %v3521_v9 = vld [vmem:[%s12919_s10 + $0x460] sm:$0xff]  ;;  %v8616_v56 = vcombine.low %v3533_v44, %v3537_v21  ;;  %v8627_v63 = vcombine.high %v3542_v23, %v3546_v50 }
 0x3e6   :  { %v3309_v16 = vmul.f32 %v3275_v0, %v3260_v10  ;;  %v8601_v25 = vcombine.high %v3517_v22, %v3521_v9  ;;  %v8600_v40 = vcombine.low %v3517_v22, %v3521_v9  ;;  %v3553_v0 = vld [vmem:[%s12919_s10 + $0x560] sm:$0xff]  ;;  %v3197_v3 = vadd.f32 %v3196_v53, %v3195_v54  ;;  %v3566_v9 = vld [vmem:[%s12919_s10 + $0x5c8] sm:$0xff] }
 0x3e7   :  { %v3357_v14 = vadd.f32 %v3320_v36, %v3308_v4  ;;  %v3311_v37 = vmul.f32 %v3283_v2, %v3262_v5  ;;  %v3549_v36 = vld [vmem:[%s12919_s10 + $0x540] sm:$0xff]  ;;  %v3554_v2 = vld [vmem:[%s12919_s10 + $0x568] sm:$0xff]  ;;  %v8624_v4 = vcombine.low %v3541_v49, %v3545_v19  ;;  %v8626_v10 = vcombine.low %v3542_v23, %v3546_v50 }
 0x3e8   :  { %v3358_v17 = vadd.f32 %v3324_v11, %v3309_v16  ;;  %v8633_v11 = vcombine.high %v3549_v36, %v3553_v0  ;;  %v8635_v5 = vcombine.high %v3550_v1, %v3554_v2  ;;  %v3558_v16 = vld [vmem:[%s12919_s10 + $0x588] sm:$0xff]  ;;  %v8632_v20 = vcombine.low %v3549_v36, %v3553_v0  ;;  %v3565_v22 = vld [vmem:[%s12919_s10 + $0x5c0] sm:$0xff] }
 0x3e9   :  { %v3360_v18 = vadd.f32 %v3332_v13, %v3311_v37  ;;  %v3365_v7 = vmax.f32 %v3357_v14, 0.0  ;;  %v3557_v13 = vld [vmem:[%s12919_s10 + $0x580] sm:$0xff]  ;;  %v3562_v37 = vld [vmem:[%s12919_s10 + $0x5a8] sm:$0xff] }
 0x3ea   :  { %v3366_v6 = vmax.f32 %v3358_v17, 0.0  ;;  %v3561_v14 = vld [vmem:[%s12919_s10 + $0x5a0] sm:$0xff]  ;;  %v3198_v17 = vrot.slane %v3197_v3, 1  ;;  %v3586_v54 = vld [vmem:[%s12919_s10 + $0x668] sm:$0xff] }
 0x3eb   :  { %v3368_v31 = vmax.f32 %v3360_v18, 0.0  ;;  %v11146_v30 = vpack.c.bf16 %v3365_v7, %v3365_v7  ;;  %v8634_v18 = vcombine.low %v3550_v1, %v3554_v2  ;;  %v8641_v7 = vcombine.high %v3557_v13, %v3561_v14  ;;  %v3581_v21 = vld [vmem:[%s12919_s10 + $0x640] sm:$0xff]  ;;  %v3590_v50 = vld [vmem:[%s12919_s10 + $0x688] sm:$0xff] }
 0x3ec   :  { %v11143_v28 = vpack.c.bf16 %v3366_v6, %v3366_v6  ;;  %v8643_v6 = vcombine.high %v3558_v16, %v3562_v37  ;;  %v3199_v27 = vadd.f32 %v3198_v17, %v3197_v3  ;;  %v8640_v29 = vcombine.low %v3557_v13, %v3561_v14  ;;  %v3589_v19 = vld [vmem:[%s12919_s10 + $0x680] sm:$0xff]  ;;  %v3594_v53 = vld [vmem:[%s12919_s10 + $0x6a8] sm:$0xff] }
 0x3ed   :  { %v11164_v38 = vpack.c.bf16 %v3368_v31, %v3368_v31  ;;  %v3569_v31 = vld [vmem:[%s12919_s10 + $0x5e0] sm:$0xff]  ;;  %v8667_v49 = vcombine.high %v3582_v51, %v3586_v54  ;;  %v3598_v1 = vld [vmem:[%s12919_s10 + $0x6c8] sm:$0xff] }
 0x3ee   :  { %6485 = vmatprep.mubr.bf16.mxu0 %v11143_v28  ;;  %6649 = vmatprep.mubr.bf16.mxu1 %v11143_v28  ;;  %v3593_v23 = vld [vmem:[%s12919_s10 + $0x6a0] sm:$0xff]  ;;  %v3602_v2 = vld [vmem:[%s12919_s10 + $0x6e8] sm:$0xff] }
 0x3ef   :  { %6486 = vmatmul.mubr.bf16.vlgmr.msra.gmra.mrb[12].mxu0 %v11146_v30  ;;  %6650 = vmatmul.mubr.bf16.vlgmr.msra.gmra.mrb[16].mxu1 %v11146_v30  ;;  %v3597_v36 = vld [vmem:[%s12919_s10 + $0x6c0] sm:$0xff]  ;;  %v8672_v3 = vcombine.low %v3589_v19, %v3593_v23  ;;  %v3606_v14 = vld [vmem:[%s12919_s10 + $0x708] sm:$0xff]  ;;  %v8682_v17 = vcombine.low %v3598_v1, %v3602_v2 }
 0x3f0   :  { %6495 = vmatpush1.bf16.msra.mxu0 %v8592_v59  ;;  %6659 = vmatpush1.bf16.msra.mxu1 %v8594_v60  ;;  %v8608_v59 = vcombine.low %v3525_v47, %v3529_v48  ;;  %v8610_v60 = vcombine.low %v3526_v32, %v3530_v34  ;;  %v8642_v47 = vcombine.low %v3558_v16, %v3562_v37  ;;  %v3573_v48 = vld [vmem:[%s12919_s10 + $0x600] sm:$0xff]  ;;  %v3574_v34 = vld [vmem:[%s12919_s10 + $0x608] sm:$0xff] }
 0x3f1   :  { %6526 = vmatprep.mubr.bf16.mxu0 %v11164_v38  ;;  %6690 = vmatprep.mubr.bf16.mxu1 %v11164_v38  ;;  %v3577_v32 = vld [vmem:[%s12919_s10 + $0x620] sm:$0xff]  ;;  %v8659_v44 = vcombine.high %v3574_v34, %v3578_v39  ;;  %v3610_v16 = vld [vmem:[%s12919_s10 + $0x728] sm:$0xff] }
 0x3f2   :  { %6496 = vmatprep.subr.bf16.mxu0 %v8601_v25  ;;  %6660 = vmatprep.subr.bf16.mxu1 %v8603_v8  ;;  %v8649_v25 = vcombine.high %v3565_v22, %v3569_v31  ;;  %v8651_v8 = vcombine.high %v3566_v9, %v3570_v26  ;;  %v3601_v0 = vld [vmem:[%s12919_s10 + $0x6e0] sm:$0xff] }
 0x3f3   :  { %v3609_v13 = vld [vmem:[%s12919_s10 + $0x720] sm:$0xff]  ;;  %v8680_v37 = vcombine.low %v3597_v36, %v3601_v0 }
 0x3f4   :  { %6497 = vmatpush1.bf16.msra.mxu0 %v8600_v40  ;;  %6661 = vmatpush1.bf16.msra.mxu1 %v8602_v41  ;;  %v3237_v40 = vmul.f32 0.5, %v3199_v27  ;;  %v8648_v41 = vcombine.low %v3565_v22, %v3569_v31  ;;  %v3617_v22 = vld [vmem:[%s12919_s10 + $0x760] sm:$0xff]  ;;  %v3614_v31 = vld [vmem:[%s12919_s10 + $0x748] sm:$0xff] }
 0x3f5   :  { %6498 = vmatprep.subr.bf16.mxu0 %v8609_v42  ;;  %6662 = vmatprep.subr.bf16.mxu1 %v8611_v43  ;;  %v8650_v42 = vcombine.low %v3566_v9, %v3570_v26  ;;  %v8657_v43 = vcombine.high %v3573_v48, %v3577_v32  ;;  %v3618_v9 = vld [vmem:[%s12919_s10 + $0x768] sm:$0xff]  ;;  %v3279_v26 = vrot.slane %v11107_v52, %v10435_v58 }
 0x3f8   :  { %6499 = vmatpush1.bf16.msra.mxu0 %v8608_v59  ;;  %6663 = vmatpush1.bf16.msra.mxu1 %v8610_v60  ;;  %v3245_v59 = vadd.f32 1e-05, %v3237_v40  ;;  %v8656_v60 = vcombine.low %v3573_v48, %v3577_v32  ;;  %v3621_v48 = vld [vmem:[%s12919_s10 + $0x780] sm:$0xff] }
 0x3f9   :  { %6500 = vmatprep.subr.bf16.mxu0 %v8617_v45  ;;  %6664 = vmatprep.subr.bf16.mxu1 %v8619_v46  ;;  %v8658_v45 = vcombine.low %v3574_v34, %v3578_v39  ;;  %v8665_v46 = vcombine.high %v3581_v21, %v3585_v24  ;;  %v3625_v32 = vld [vmem:[%s12919_s10 + $0x7a0] sm:$0xff]  ;;  %v3622_v34 = vld [vmem:[%s12919_s10 + $0x788] sm:$0xff]  ;;  %v3328_v39 = vrot.slane %v11112_v55, %v10435_v58 }
 0x3fa   :  { %9472 = vrsqrt.f32 %v3245_v59  ;;  %v8704_v59 = vcombine.low %v3621_v48, %v3625_v32 }
 0x3fc   :  { %6501 = vmatpush1.bf16.msra.mxu0 %v8616_v56  ;;  %6665 = vmatpush1.bf16.msra.mxu1 %v8618_v57  ;;  %v8664_v56 = vcombine.low %v3581_v21, %v3585_v24  ;;  %v8666_v57 = vcombine.low %v3582_v51, %v3586_v54  ;;  %v3629_v21 = vld [vmem:[%s12919_s10 + $0x7c0] sm:$0xff]  ;;  %v3630_v51 = vld [vmem:[%s12919_s10 + $0x7c8] sm:$0xff] }
 0x3fd   :  { %6502 = vmatprep.subr.bf16.mxu0 %v8625_v61  ;;  %6666 = vmatprep.subr.bf16.mxu1 %v8627_v63  ;;  %v8673_v61 = vcombine.high %v3589_v19, %v3593_v23  ;;  %v8675_v63 = vcombine.high %v3590_v50, %v3594_v53  ;;  %v3633_v24 = vld [vmem:[%s12919_s10 + $0x7e0] sm:$0xff]  ;;  %v3634_v54 = vld [vmem:[%s12919_s10 + $0x7e8] sm:$0xff] }
 0x3fe   :  { %v3637_v19 = vld [vmem:[%s12919_s10 + $0x800] sm:$0xff] }
 0x3ff   :  { %v3641_v23 = vld [vmem:[%s12919_s10 + $0x820] sm:$0xff] }
 0x400   :  { %6503 = vmatpush1.bf16.msra.mxu0 %v8624_v4  ;;  %6667 = vmatpush1.bf16.msra.mxu1 %v8626_v10  ;;  %v8674_v4 = vcombine.low %v3590_v50, %v3594_v53  ;;  %v8681_v10 = vcombine.high %v3597_v36, %v3601_v0  ;;  %v3638_v50 = vld [vmem:[%s12919_s10 + $0x808] sm:$0xff]  ;;  %v3645_v0 = vld [vmem:[%s12919_s10 + $0x840] sm:$0xff] }
 0x401   :  { %6504 = vmatprep.subr.bf16.mxu0 %v8633_v11  ;;  %6668 = vmatprep.subr.bf16.mxu1 %v8635_v5  ;;  %v8683_v11 = vcombine.high %v3598_v1, %v3602_v2  ;;  %v3605_v5 = vld [vmem:[%s12919_s10 + $0x700] sm:$0xff]  ;;  %v3642_v53 = vld [vmem:[%s12919_s10 + $0x828] sm:$0xff] }
 0x402   :  { %v8688_v27 = vcombine.low %v3605_v5, %v3609_v13  ;;  %v8723_v36 = vcombine.high %v3638_v50, %v3642_v53  ;;  %v3649_v1 = vld [vmem:[%s12919_s10 + $0x860] sm:$0xff]  ;;  %v3646_v2 = vld [vmem:[%s12919_s10 + $0x848] sm:$0xff] }
 0x404   :  { %6505 = vmatpush1.bf16.msra.mxu0 %v8632_v20  ;;  %6669 = vmatpush1.bf16.msra.mxu1 %v8634_v18  ;;  %v8689_v20 = vcombine.high %v3605_v5, %v3609_v13  ;;  %v8691_v18 = vcombine.high %v3606_v14, %v3610_v16  ;;  %v8729_v5 = vcombine.high %v3645_v0, %v3649_v1 }
 0x405   :  { %6506 = vmatprep.subr.bf16.mxu0 %v8641_v7  ;;  %6670 = vmatprep.subr.bf16.mxu1 %v8643_v6  ;;  %v3613_v7 = vld [vmem:[%s12919_s10 + $0x740] sm:$0xff]  ;;  %v9473_v6 = vpop.eup %9472 }
 0x406   :  { %v8696_v40 = vcombine.low %v3613_v7, %v3617_v22 }
 0x408   :  { %6507 = vmatpush1.bf16.msra.mxu0 %v8640_v29  ;;  %6671 = vmatpush1.bf16.msra.mxu1 %v8642_v47  ;;  %v8690_v29 = vcombine.low %v3606_v14, %v3610_v16  ;;  %v3261_v47 = vmul.f32 %v9473_v6, %v11125_v12  ;;  %v3626_v12 = vld [vmem:[%s12919_s10 + $0x7a8] sm:$0xff]  ;;  %v3653_v14 = vld [vmem:[%s12919_s10 + $0x880] sm:$0xff] }
 0x409   :  { %6508 = vmatprep.subr.bf16.mxu0 %v8649_v25  ;;  %6672 = vmatprep.subr.bf16.mxu1 %v8651_v8  ;;  %v8697_v25 = vcombine.high %v3613_v7, %v3617_v22  ;;  %v8699_v8 = vcombine.high %v3614_v31, %v3618_v9  ;;  %v3657_v16 = vld [vmem:[%s12919_s10 + $0x8a0] sm:$0xff] }
 0x40a   :  { %v8737_v7 = vcombine.high %v3653_v14, %v3657_v16  ;;  %v3661_v22 = vld [vmem:[%s12919_s10 + $0x8c0] sm:$0xff] }
 0x40c   :  { %6509 = vmatpush1.bf16.msra.mxu0 %v8648_v41  ;;  %6673 = vmatpush1.bf16.msra.mxu1 %v8650_v42  ;;  %v8698_v41 = vcombine.low %v3614_v31, %v3618_v9  ;;  %v3310_v42 = vmul.f32 %v3279_v26, %v3261_v47  ;;  %v3665_v9 = vld [vmem:[%s12919_s10 + $0x8e0] sm:$0xff]  ;;  %v3662_v26 = vld [vmem:[%s12919_s10 + $0x8c8] sm:$0xff] }
 0x40d   :  { %6510 = vmatprep.subr.bf16.mxu0 %v8657_v43  ;;  %6674 = vmatprep.subr.bf16.mxu1 %v8659_v44  ;;  %v8705_v43 = vcombine.high %v3621_v48, %v3625_v32  ;;  %v8707_v44 = vcombine.high %v3622_v34, %v3626_v12 }
 0x410   :  { %6511 = vmatpush1.bf16.msra.mxu0 %v8656_v60  ;;  %6675 = vmatpush1.bf16.msra.mxu1 %v8658_v45  ;;  %v8706_v60 = vcombine.low %v3622_v34, %v3626_v12  ;;  %v3359_v45 = vadd.f32 %v3328_v39, %v3310_v42  ;;  %v8736_v12 = vcombine.low %v3653_v14, %v3657_v16 }
 0x411   :  { %6512 = vmatprep.subr.bf16.mxu0 %v8665_v46  ;;  %6676 = vmatprep.subr.bf16.mxu1 %v8667_v49  ;;  %v8713_v46 = vcombine.high %v3629_v21, %v3633_v24  ;;  %v8715_v49 = vcombine.high %v3630_v51, %v3634_v54 }
 0x414   :  { %6513 = vmatpush1.bf16.msra.mxu0 %v8664_v56  ;;  %6677 = vmatpush1.bf16.msra.mxu1 %v8666_v57  ;;  %v8712_v56 = vcombine.low %v3629_v21, %v3633_v24  ;;  %v8714_v57 = vcombine.low %v3630_v51, %v3634_v54  ;;  %v3669_v24 = vld [vmem:[%s12919_s10 + $0x900] sm:$0xff] }
 0x415   :  { %6514 = vmatprep.subr.bf16.mxu0 %v8673_v61  ;;  %6678 = vmatprep.subr.bf16.mxu1 %v8675_v63  ;;  %v3367_v61 = vmax.f32 %v3359_v45, 0.0  ;;  %v8721_v63 = vcombine.high %v3637_v19, %v3641_v23  ;;  %v3670_v45 = vld [vmem:[%s12919_s10 + $0x908] sm:$0xff] }
 0x418   :  { %6515 = vmatpush1.bf16.msra.mxu0 %v8672_v3  ;;  %6679 = vmatpush1.bf16.msra.mxu1 %v8674_v4  ;;  %v3650_v3 = vld [vmem:[%s12919_s10 + $0x868] sm:$0xff]  ;;  %v8720_v4 = vcombine.low %v3637_v19, %v3641_v23 }
 0x419   :  { %6516 = vmatprep.subr.bf16.mxu0 %v8681_v10  ;;  %6680 = vmatprep.subr.bf16.mxu1 %v8683_v11  ;;  %v8722_v10 = vcombine.low %v3638_v50, %v3642_v53  ;;  %v11359_v11 = vpack.c.bf16 %v3367_v61, %v3367_v61  ;;  %v8731_v13 = vcombine.high %v3646_v2, %v3650_v3 }
 0x41a   :  { %v8744_v50 = vcombine.low %v3661_v22, %v3665_v9 }
 0x41c   :  { %6517 = vmatpush1.bf16.msra.mxu0 %v8680_v37  ;;  %6681 = vmatpush1.bf16.msra.mxu1 %v8682_v17  ;;  %v3654_v37 = vld [vmem:[%s12919_s10 + $0x888] sm:$0xff] }
 0x41d   :  { %6518 = vmatprep.subr.bf16.mxu0 %v8689_v20  ;;  %6682 = vmatprep.subr.bf16.mxu1 %v8691_v18  ;;  %v3658_v17 = vld [vmem:[%s12919_s10 + $0x8a8] sm:$0xff]  ;;  %v8728_v20 = vcombine.low %v3645_v0, %v3649_v1  ;;  %v8730_v18 = vcombine.low %v3646_v2, %v3650_v3  ;;  %v3681_v1 = vld [vmem:[%s12919_s10 + $0x960] sm:$0xff] }
 0x41e   :  { %v8739_v6 = vcombine.high %v3654_v37, %v3658_v17  ;;  %v8738_v39 = vcombine.low %v3654_v37, %v3658_v17  ;;  %v3678_v2 = vld [vmem:[%s12919_s10 + $0x948] sm:$0xff] }
 0x41f   :  { %v3682_v3 = vld [vmem:[%s12919_s10 + $0x968] sm:$0xff] }
 0x420   :  { %6519 = vmatpush1.bf16.msra.mxu0 %v8688_v27  ;;  %6683 = vmatpush1.bf16.msra.mxu1 %v8690_v29  ;;  %v3666_v27 = vld [vmem:[%s12919_s10 + $0x8e8] sm:$0xff]  ;;  %v8763_v17 = vcombine.high %v3678_v2, %v3682_v3 }
 0x421   :  { %6520 = vmatprep.subr.bf16.mxu0 %v8697_v25  ;;  %6684 = vmatprep.subr.bf16.mxu1 %v8699_v8  ;;  %v8747_v21 = vcombine.high %v3662_v26, %v3666_v27  ;;  %v8746_v53 = vcombine.low %v3662_v26, %v3666_v27 }
 0x424   :  { %6521 = vmatpush1.bf16.msra.mxu0 %v8696_v40  ;;  %6685 = vmatpush1.bf16.msra.mxu1 %v8698_v41 }
 0x425   :  { %6522 = vmatprep.subr.bf16.mxu0 %v8705_v43  ;;  %6686 = vmatprep.subr.bf16.mxu1 %v8707_v44  ;;  %v8745_v44 = vcombine.high %v3661_v22, %v3665_v9  ;;  %v3686_v22 = vld [vmem:[%s12919_s10 + $0x988] sm:$0xff] }
 0x426   :  { %v3690_v9 = vld [vmem:[%s12919_s10 + $0x9a8] sm:$0xff] }
 0x428   :  { %6523 = vmatpush1.bf16.msra.mxu0 %v8704_v59  ;;  %6687 = vmatpush1.bf16.msra.mxu1 %v8706_v60  ;;  %v3673_v60 = vld [vmem:[%s12919_s10 + $0x920] sm:$0xff] }
 0x429   :  { %6524 = vmatprep.subr.bf16.mxu0 %v8713_v46  ;;  %6688 = vmatprep.subr.bf16.mxu1 %v8715_v49  ;;  %v3674_v46 = vld [vmem:[%s12919_s10 + $0x928] sm:$0xff] }
 0x42a   :  { %v8755_v61 = vcombine.high %v3670_v45, %v3674_v46  ;;  %v8754_v14 = vcombine.low %v3670_v45, %v3674_v46 }
 0x42c   :  { %6525 = vmatpush1.bf16.msra.mxu0 %v8712_v56  ;;  %6689 = vmatpush1.bf16.msra.mxu1 %v8714_v57  ;;  %v8753_v57 = vcombine.high %v3669_v24, %v3673_v60 }
 0x42d   :  { %6535 = vmatprep.subr.bf16.mxu0 %v8721_v63  ;;  %6699 = vmatprep.subr.bf16.mxu1 %v8723_v36  ;;  %v3677_v63 = vld [vmem:[%s12919_s10 + $0x940] sm:$0xff] }
 0x42e   :  { %v8761_v37 = vcombine.high %v3677_v63, %v3681_v1 }
 0x42f   :  { %6527 = vmatmul.mubr.bf16.vlgmr.msra.gmra.mrb[12].mxu0 %v11359_v11  ;;  %6691 = vmatmul.mubr.bf16.vlgmr.msra.gmra.mrb[16].mxu1 %v11359_v11 }
 0x430   :  { %6536 = vmatpush1.bf16.msra.mxu0 %v8720_v4  ;;  %6700 = vmatpush1.bf16.msra.mxu1 %v8722_v10 }
 0x431   :  { %6537 = vmatprep.subr.bf16.mxu0 %v8729_v5  ;;  %6701 = vmatprep.subr.bf16.mxu1 %v8731_v13  ;;  %v8752_v13 = vcombine.low %v3669_v24, %v3673_v60 }
 0x433   :  { %v11378_v31 = vpop.f32.mrb[8].mxu0 }
 0x434   :  { %v3127_v29 = vsel %vm549_vm0, %v11378_v31, 0.0  ;;  %v11391_v47 = vpop.f32.mrb[12].mxu1  ;;  %v11393_v25 = vpop.f32.mrb[9].mxu0  ;;  %6538 = vmatpush1.bf16.msra.mxu0 %v8728_v20  ;;  %6702 = vmatpush1.bf16.msra.mxu1 %v8730_v18  ;;  %v3685_v20 = vld [vmem:[%s12919_s10 + $0x980] sm:$0xff] }
 0x435   :  { %v3128_v8 = vrot.slane %v3127_v29, 4  ;;  %v3134_v48 = vsel %vm549_vm0, %v11393_v25, 0.0  ;;  %v11397_v32 = vpop.f32.mrb[13].mxu1  ;;  %v3012_v34 = vpop.f32.mrb[10].mxu0  ;;  %6539 = vmatprep.subr.bf16.mxu0 %v8737_v7  ;;  %6703 = vmatprep.subr.bf16.mxu1 %v8739_v6  ;;  %v3689_v6 = vld [vmem:[%s12919_s10 + $0x9a0] sm:$0xff] }
 0x436   :  { %v3135_v40 = vrot.slane %v3134_v48, 4  ;;  %v3148_v41 = vsel %vm549_vm0, %v11397_v32, 0.0  ;;  %v3094_v42 = vpop.f32.mrb[14].mxu1  ;;  %v3013_v43 = vpop.f32.mrb[11].mxu0 }
 0x437   :  { %v3129_v51 = vadd.f32 %v3128_v8, %v3127_v29  ;;  %v3149_v54 = vrot.slane %v3148_v41, 4  ;;  %v3095_v59 = vpop.f32.mrb[15].mxu1  ;;  %v8760_v8 = vcombine.low %v3677_v63, %v3681_v1  ;;  %v3697_v43 = vld [vmem:[%s12919_s10 + $0x9e0] sm:$0xff] }
 0x438   :  { %v3136_v49 = vadd.f32 %v3135_v40, %v3134_v48  ;;  %6540 = vmatpush1.bf16.msra.mxu0 %v8736_v12  ;;  %6704 = vmatpush1.bf16.msra.mxu1 %v8738_v39  ;;  %v8762_v48 = vcombine.low %v3678_v2, %v3682_v3  ;;  %v8769_v12 = vcombine.high %v3685_v20, %v3689_v6  ;;  %v3693_v40 = vld [vmem:[%s12919_s10 + $0x9c0] sm:$0xff] }
 0x439   :  { %v3130_v19 = vrot.slane %v3129_v51, 2  ;;  %v3150_v23 = vadd.f32 %v3149_v54, %v3148_v41  ;;  %6541 = vmatprep.subr.bf16.mxu0 %v8745_v44  ;;  %6705 = vmatprep.subr.bf16.mxu1 %v8747_v21  ;;  %v8771_v39 = vcombine.high %v3686_v22, %v3690_v9  ;;  %v3694_v44 = vld [vmem:[%s12919_s10 + $0x9c8] sm:$0xff]  ;;  %v8770_v59 = vcombine.low %v3686_v22, %v3690_v9 }
 0x43a   :  { %v3137_v56 = vrot.slane %v3136_v49, 2  ;;  %v3698_v21 = vld [vmem:[%s12919_s10 + $0x9e8] sm:$0xff]  ;;  %v8777_v45 = vcombine.high %v3693_v40, %v3697_v43 }
 0x43b   :  { %v3131_v36 = vadd.f32 %v3130_v19, %v3129_v51  ;;  %v3151_v0 = vrot.slane %v3150_v23, 2  ;;  %v8768_v51 = vcombine.low %v3685_v20, %v3689_v6  ;;  %v8779_v46 = vcombine.high %v3694_v44, %v3698_v21 }
 0x43c   :  { %v3138_v4 = vadd.f32 %v3137_v56, %v3136_v49  ;;  %6542 = vmatpush1.bf16.msra.mxu0 %v8744_v50  ;;  %6706 = vmatpush1.bf16.msra.mxu1 %v8746_v53  ;;  %v3705_v49 = vld [vmem:[%s12919_s10 + $0xa20] sm:$0xff]  ;;  %v3141_v19 = vsel %vm549_vm0, %v11391_v47, 0.0  ;;  %v3702_v50 = vld [vmem:[%s12919_s10 + $0xa08] sm:$0xff] }
 0x43d   :  { %v3132_v10 = vrot.slane %v3131_v36, 1  ;;  %v3152_v5 = vadd.f32 %v3151_v0, %v3150_v23  ;;  %6543 = vmatprep.subr.bf16.mxu0 %v8753_v57  ;;  %6707 = vmatprep.subr.bf16.mxu1 %v8755_v61  ;;  %v3706_v53 = vld [vmem:[%s12919_s10 + $0xa28] sm:$0xff]  ;;  %v8776_v61 = vcombine.low %v3693_v40, %v3697_v43  ;;  %v8778_v0 = vcombine.low %v3694_v44, %v3698_v21 }
 0x43e   :  { %v3139_v16 = vrot.slane %v3138_v4, 1  ;;  %v3142_v3 = vrot.slane %v3141_v19, 4  ;;  %v8786_v6 = vcombine.low %v3702_v50, %v3706_v53 }
 0x43f   :  { %v3133_v18 = vadd.f32 %v3132_v10, %v3131_v36  ;;  %v3153_v7 = vrot.slane %v3152_v5, 1  ;;  %v8787_v10 = vcombine.high %v3702_v50, %v3706_v53 }
 0x440   :  { %v3140_v26 = vadd.f32 %v3139_v16, %v3138_v4  ;;  %6544 = vmatpush1.bf16.msra.mxu0 %v8752_v13  ;;  %6708 = vmatpush1.bf16.msra.mxu1 %v8754_v14  ;;  %v3713_v13 = vld [vmem:[%s12919_s10 + $0xa60] sm:$0xff]  ;;  %v3710_v16 = vld [vmem:[%s12919_s10 + $0xa48] sm:$0xff] }
 0x441   :  { %v3159_v27 = vmul.f32 0.5, %v3133_v18  ;;  %v3154_v29 = vadd.f32 %v3153_v7, %v3152_v5  ;;  %6545 = vmatprep.subr.bf16.mxu0 %v8761_v37  ;;  %6709 = vmatprep.subr.bf16.mxu1 %v8763_v17  ;;  %v3709_v5 = vld [vmem:[%s12919_s10 + $0xa40] sm:$0xff]  ;;  %v3714_v37 = vld [vmem:[%s12919_s10 + $0xa68] sm:$0xff] }
 0x442   :  { %v3160_v34 = vmul.f32 0.5, %v3140_v26  ;;  %v8793_v22 = vcombine.high %v3709_v5, %v3713_v13  ;;  %v3143_v26 = vadd.f32 %v3142_v3, %v3141_v19  ;;  %v8792_v44 = vcombine.low %v3709_v5, %v3713_v13  ;;  %v3730_v19 = vld [vmem:[%s12919_s10 + $0xae8] sm:$0xff] }
 0x443   :  { %v11441_v41 = vsub.f32 %v11378_v31, %v3159_v27  ;;  %v3162_v42 = vmul.f32 0.5, %v3154_v29  ;;  %v8795_v29 = vcombine.high %v3710_v16, %v3714_v37  ;;  %v8794_v21 = vcombine.low %v3710_v16, %v3714_v37  ;;  %v3738_v5 = vld [vmem:[%s12919_s10 + $0xb28] sm:$0xff] }
 0x444   :  { %v11453_v24 = vsub.f32 %v11393_v25, %v3160_v34  ;;  %6546 = vmatpush1.bf16.msra.mxu0 %v8760_v8  ;;  %6710 = vmatpush1.bf16.msra.mxu1 %v8762_v48  ;;  %v3701_v25 = vld [vmem:[%s12919_s10 + $0xa00] sm:$0xff] }
 0x445   :  { %v3175_v31 = vmul.f32 %v11441_v41, %v11441_v41  ;;  %v11458_v54 = vsub.f32 %v11397_v32, %v3162_v42  ;;  %6547 = vmatprep.subr.bf16.mxu0 %v8769_v12  ;;  %6711 = vmatprep.subr.bf16.mxu1 %v8771_v39  ;;  %v8785_v1 = vcombine.high %v3701_v25, %v3705_v49  ;;  %v3717_v8 = vld [vmem:[%s12919_s10 + $0xa80] sm:$0xff]  ;;  %v3718_v12 = vld [vmem:[%s12919_s10 + $0xa88] sm:$0xff] }
 0x446   :  { %v3176_v60 = vmul.f32 %v11453_v24, %v11453_v24  ;;  %v8784_v7 = vcombine.low %v3701_v25, %v3705_v49  ;;  %v3721_v48 = vld [vmem:[%s12919_s10 + $0xaa0] sm:$0xff]  ;;  %v3722_v39 = vld [vmem:[%s12919_s10 + $0xaa8] sm:$0xff] }
 0x447   :  { %v3207_v32 = vsel %vm549_vm0, %v3175_v31, 0.0  ;;  %v3178_v23 = vmul.f32 %v11458_v54, %v11458_v54  ;;  %v3729_v25 = vld [vmem:[%s12919_s10 + $0xae0] sm:$0xff] }
 0x448   :  { %v3208_v56 = vrot.slane %v3207_v32, 4  ;;  %v3214_v57 = vsel %vm549_vm0, %v3176_v60, 0.0  ;;  %6548 = vmatpush1.bf16.msra.mxu0 %v8768_v51  ;;  %6712 = vmatpush1.bf16.msra.mxu1 %v8770_v59  ;;  %v8801_v51 = vcombine.high %v3717_v8, %v3721_v48  ;;  %v3144_v59 = vrot.slane %v3143_v26, 2 }
 0x449   :  { %v3215_v63 = vrot.slane %v3214_v57, 4  ;;  %v3228_v36 = vsel %vm549_vm0, %v3178_v23, 0.0  ;;  %6549 = vmatprep.subr.bf16.mxu0 %v8777_v45  ;;  %6713 = vmatprep.subr.bf16.mxu1 %v8779_v46  ;;  %v8803_v45 = vcombine.high %v3718_v12, %v3722_v39  ;;  %v3725_v46 = vld [vmem:[%s12919_s10 + $0xac0] sm:$0xff] }
 0x44a   :  { %v3209_v2 = vadd.f32 %v3208_v56, %v3207_v32  ;;  %v3229_v4 = vrot.slane %v3228_v36, 4  ;;  %v3726_v32 = vld [vmem:[%s12919_s10 + $0xac8] sm:$0xff]  ;;  %v8800_v56 = vcombine.low %v3717_v8, %v3721_v48 }
 0x44b   :  { %v3216_v14 = vadd.f32 %v3215_v63, %v3214_v57  ;;  %v8802_v57 = vcombine.low %v3718_v12, %v3722_v39  ;;  %v8810_v16 = vcombine.low %v3726_v32, %v3730_v19  ;;  %v11548_v12 = vsub.s32 5, %v9616_v15 }
 0x44c   :  { %v3210_v17 = vrot.slane %v3209_v2, 2  ;;  %v3230_v20 = vadd.f32 %v3229_v4, %v3228_v36  ;;  %6550 = vmatpush1.bf16.msra.mxu0 %v8776_v61  ;;  %6714 = vmatpush1.bf16.msra.mxu1 %v8778_v0  ;;  %v8809_v61 = vcombine.high %v3725_v46, %v3729_v25  ;;  %v3145_v36 = vadd.f32 %v3144_v59, %v3143_v26  ;;  %v3737_v4 = vld [vmem:[%s12919_s10 + $0xb20] sm:$0xff] }
 0x44d   :  { %v3217_v18 = vrot.slane %v3216_v14, 2  ;;  %6551 = vmatprep.subr.bf16.mxu0 %v8785_v1  ;;  %6715 = vmatprep.subr.bf16.mxu1 %v8787_v10  ;;  %v8811_v1 = vcombine.high %v3726_v32, %v3730_v19  ;;  %v3734_v10 = vld [vmem:[%s12919_s10 + $0xb08] sm:$0xff]  ;;  %v11551_v39 = vsub.s32 7, %v9616_v15  ;;  %v3291_v19 = vrot.slane %v11107_v52, %v11548_v12 }
 0x44e   :  { %v3211_v9 = vadd.f32 %v3210_v17, %v3209_v2  ;;  %v3231_v27 = vrot.slane %v3230_v20, 2  ;;  %v3733_v2 = vld [vmem:[%s12919_s10 + $0xb00] sm:$0xff]  ;;  %v3146_v37 = vrot.slane %v3145_v36, 1 }
 0x44f   :  { %v3218_v34 = vadd.f32 %v3217_v18, %v3216_v14  ;;  %v8808_v14 = vcombine.low %v3725_v46, %v3729_v25  ;;  %v8817_v17 = vcombine.high %v3733_v2, %v3737_v4  ;;  %v3741_v18 = vld [vmem:[%s12919_s10 + $0xb40] sm:$0xff]  ;;  %v8816_v26 = vcombine.low %v3733_v2, %v3737_v4 }
 0x450   :  { %v3212_v40 = vrot.slane %v3211_v9, 1  ;;  %v3232_v42 = vadd.f32 %v3231_v27, %v3230_v20  ;;  %6552 = vmatpush1.bf16.msra.mxu0 %v8784_v7  ;;  %6716 = vmatpush1.bf16.msra.mxu1 %v8786_v6  ;;  %v8819_v20 = vcombine.high %v3734_v10, %v3738_v5  ;;  %v3745_v7 = vld [vmem:[%s12919_s10 + $0xb60] sm:$0xff]  ;;  %v3742_v6 = vld [vmem:[%s12919_s10 + $0xb48] sm:$0xff]  ;;  %v8818_v27 = vcombine.low %v3734_v10, %v3738_v5 }
 0x451   :  { %v3219_v43 = vrot.slane %v3218_v34, 1  ;;  %6553 = vmatprep.subr.bf16.mxu0 %v8793_v22  ;;  %6717 = vmatprep.subr.bf16.mxu1 %v8795_v29  ;;  %v3746_v22 = vld [vmem:[%s12919_s10 + $0xb68] sm:$0xff]  ;;  %v3147_v29 = vadd.f32 %v3146_v37, %v3145_v36  ;;  %v8825_v8 = vcombine.high %v3741_v18, %v3745_v7  ;;  %v3757_v46 = vld [vmem:[%s12919_s10 + $0xbc0] sm:$0xff] }
 0x452   :  { %v3213_v31 = vadd.f32 %v3212_v40, %v3211_v9  ;;  %v3233_v60 = vrot.slane %v3232_v42, 1  ;;  %v11542_v9 = vsub.s32 4, %v9616_v15  ;;  %v8827_v48 = vcombine.high %v3742_v6, %v3746_v22  ;;  %v3753_v40 = vld [vmem:[%s12919_s10 + $0xba0] sm:$0xff] }
 0x453   :  { %v3220_v49 = vadd.f32 %v3219_v43, %v3218_v34  ;;  %v3749_v34 = vld [vmem:[%s12919_s10 + $0xb80] sm:$0xff]  ;;  %v3754_v43 = vld [vmem:[%s12919_s10 + $0xba8] sm:$0xff]  ;;  %v3161_v59 = vmul.f32 0.5, %v3147_v29 }
 0x454   :  { %v3239_v23 = vmul.f32 0.5, %v3213_v31  ;;  %v3234_v50 = vadd.f32 %v3233_v60, %v3232_v42  ;;  %6554 = vmatpush1.bf16.msra.mxu0 %v8792_v44  ;;  %6718 = vmatpush1.bf16.msra.mxu1 %v8794_v21  ;;  %v3750_v42 = vld [vmem:[%s12919_s10 + $0xb88] sm:$0xff]  ;;  %v3287_v44 = vrot.slane %v11107_v52, %v11542_v9  ;;  %v8824_v21 = vcombine.low %v3741_v18, %v3745_v7  ;;  %v3761_v25 = vld [vmem:[%s12919_s10 + $0xbe0] sm:$0xff] }
 0x455   :  { %v3240_v53 = vmul.f32 0.5, %v3220_v49  ;;  %6555 = vmatprep.subr.bf16.mxu0 %v8801_v51  ;;  %6719 = vmatprep.subr.bf16.mxu1 %v8803_v45  ;;  %v8826_v51 = vcombine.low %v3742_v6, %v3746_v22  ;;  %v8833_v60 = vcombine.high %v3749_v34, %v3753_v40  ;;  %v8835_v45 = vcombine.high %v3750_v42, %v3754_v43  ;;  %v3769_v10 = vld [vmem:[%s12919_s10 + $0xc20] sm:$0xff] }
 0x456   :  { %v3247_v63 = vadd.f32 1e-05, %v3239_v23  ;;  %v3242_v0 = vmul.f32 0.5, %v3234_v50  ;;  %v3336_v32 = vrot.slane %v11112_v55, %v11542_v9  ;;  %v3299_v23 = vrot.slane %v11107_v52, %v11551_v39  ;;  %v3758_v50 = vld [vmem:[%s12919_s10 + $0xbc8] sm:$0xff]  ;;  %v3777_v29 = vld [vmem:[%s12919_s10 + $0xc60] sm:$0xff] }
 0x457   :  { %v3248_v3 = vadd.f32 1e-05, %v3240_v53  ;;  %v3762_v53 = vld [vmem:[%s12919_s10 + $0xbe8] sm:$0xff]  ;;  %v11589_v2 = vsub.f32 %v11391_v47, %v3161_v59  ;;  %v3785_v59 = vld [vmem:[%s12919_s10 + $0xca0] sm:$0xff] }
 0x458   :  { %9474 = vrsqrt.f32 %v3247_v63  ;;  %v3250_v13 = vadd.f32 1e-05, %v3242_v0  ;;  %6556 = vmatpush1.bf16.msra.mxu0 %v8800_v56  ;;  %6720 = vmatpush1.bf16.msra.mxu1 %v8802_v57  ;;  %v3348_v57 = vrot.slane %v11112_v55, %v11551_v39  ;;  %v8834_v63 = vcombine.low %v3750_v42, %v3754_v43  ;;  %v3766_v47 = vld [vmem:[%s12919_s10 + $0xc08] sm:$0xff] }
 0x459   :  { %9476 = vrsqrt.f32 %v3248_v3  ;;  %6557 = vmatprep.subr.bf16.mxu0 %v8809_v61  ;;  %6721 = vmatprep.subr.bf16.mxu1 %v8811_v1  ;;  %v8832_v61 = vcombine.low %v3749_v34, %v3753_v40  ;;  %v8841_v1 = vcombine.high %v3757_v46, %v3761_v25  ;;  %v8843_v4 = vcombine.high %v3758_v50, %v3762_v53 }
 0x45a   :  { %9478 = vrsqrt.f32 %v3250_v13  ;;  %v8842_v37 = vcombine.low %v3758_v50, %v3762_v53  ;;  %v3789_v50 = vld [vmem:[%s12919_s10 + $0xcc0] sm:$0xff] }
 0x45b   :  { %v3793_v53 = vld [vmem:[%s12919_s10 + $0xce0] sm:$0xff] }
 0x45c   :  { %6558 = vmatpush1.bf16.msra.mxu0 %v8808_v14  ;;  %6722 = vmatpush1.bf16.msra.mxu1 %v8810_v16  ;;  %v8840_v14 = vcombine.low %v3757_v46, %v3761_v25 }
 0x45d   :  { %6559 = vmatprep.subr.bf16.mxu0 %v8817_v17  ;;  %6723 = vmatprep.subr.bf16.mxu1 %v8819_v20  ;;  %v3177_v20 = vmul.f32 %v11589_v2, %v11589_v2 }
 0x45f   :  { %v3221_v43 = vsel %vm549_vm0, %v3177_v20, 0.0 }
 0x460   :  { %6560 = vmatpush1.bf16.msra.mxu0 %v8816_v26  ;;  %6724 = vmatpush1.bf16.msra.mxu1 %v8818_v27  ;;  %v3773_v26 = vld [vmem:[%s12919_s10 + $0xc40] sm:$0xff]  ;;  %v3222_v25 = vrot.slane %v3221_v43, 4 }
 0x461   :  { %6561 = vmatprep.subr.bf16.mxu0 %v8825_v8  ;;  %6725 = vmatprep.subr.bf16.mxu1 %v8827_v48  ;;  %v3774_v8 = vld [vmem:[%s12919_s10 + $0xc48] sm:$0xff] }
 0x462   :  { %v9475_v31 = vpop.eup %9474  ;;  %v3778_v48 = vld [vmem:[%s12919_s10 + $0xc68] sm:$0xff] }
 0x463   :  { %v3263_v49 = vmul.f32 %v9475_v31, %v11441_v41  ;;  %v9477_v56 = vpop.eup %9476  ;;  %v3340_v41 = vrot.slane %v11112_v55, %v11548_v12  ;;  %v3765_v55 = vld [vmem:[%s12919_s10 + $0xc00] sm:$0xff]  ;;  %v8859_v31 = vcombine.high %v3774_v8, %v3778_v48 }
 0x464   :  { %v9479_v36 = vpop.eup %9478  ;;  %v3264_v52 = vmul.f32 %v9477_v56, %v11453_v24  ;;  %6562 = vmatpush1.bf16.msra.mxu0 %v8824_v21  ;;  %6726 = vmatpush1.bf16.msra.mxu1 %v8826_v51  ;;  %v8849_v17 = vcombine.high %v3765_v55, %v3769_v10  ;;  %v8848_v40 = vcombine.low %v3765_v55, %v3769_v10  ;;  %v3781_v21 = vld [vmem:[%s12919_s10 + $0xc80] sm:$0xff]  ;;  %v3790_v56 = vld [vmem:[%s12919_s10 + $0xcc8] sm:$0xff] }
 0x465   :  { %v3312_v0 = vmul.f32 %v3287_v44, %v3263_v49  ;;  %v3266_v3 = vmul.f32 %v9479_v36, %v11458_v54  ;;  %6563 = vmatprep.subr.bf16.mxu0 %v8833_v60  ;;  %6727 = vmatprep.subr.bf16.mxu1 %v8835_v45  ;;  %v3770_v54 = vld [vmem:[%s12919_s10 + $0xc28] sm:$0xff]  ;;  %v8857_v51 = vcombine.high %v3773_v26, %v3777_v29 }
 0x466   :  { %v3313_v5 = vmul.f32 %v3291_v19, %v3264_v52  ;;  %v8851_v7 = vcombine.high %v3766_v47, %v3770_v54  ;;  %v8850_v42 = vcombine.low %v3766_v47, %v3770_v54  ;;  %v3782_v60 = vld [vmem:[%s12919_s10 + $0xc88] sm:$0xff]  ;;  %v8856_v49 = vcombine.low %v3773_v26, %v3777_v29  ;;  %v3797_v52 = vld [vmem:[%s12919_s10 + $0xd00] sm:$0xff] }
 0x467   :  { %v3361_v24 = vadd.f32 %v3336_v32, %v3312_v0  ;;  %v3315_v13 = vmul.f32 %v3299_v23, %v3266_v3  ;;  %v3786_v45 = vld [vmem:[%s12919_s10 + $0xca8] sm:$0xff]  ;;  %v8858_v32 = vcombine.low %v3774_v8, %v3778_v48  ;;  %v8865_v19 = vcombine.high %v3781_v21, %v3785_v59  ;;  %v3805_v54 = vld [vmem:[%s12919_s10 + $0xd40] sm:$0xff] }
 0x468   :  { %v3362_v16 = vadd.f32 %v3340_v41, %v3313_v5  ;;  %6564 = vmatpush1.bf16.msra.mxu0 %v8832_v61  ;;  %6728 = vmatpush1.bf16.msra.mxu1 %v8834_v63  ;;  %v8867_v23 = vcombine.high %v3782_v60, %v3786_v45  ;;  %v3794_v41 = vld [vmem:[%s12919_s10 + $0xce8] sm:$0xff]  ;;  %v8864_v61 = vcombine.low %v3781_v21, %v3785_v59  ;;  %v3825_v21 = vld [vmem:[%s12919_s10 + $0xde0] sm:$0xff] }
 0x469   :  { %v3364_v18 = vadd.f32 %v3348_v57, %v3315_v13  ;;  %6565 = vmatprep.subr.bf16.mxu0 %v8841_v1  ;;  %6729 = vmatprep.subr.bf16.mxu1 %v8843_v4  ;;  %v3369_v6 = vmax.f32 %v3361_v24, 0.0  ;;  %v3223_v57 = vadd.f32 %v3222_v25, %v3221_v43  ;;  %v8866_v63 = vcombine.low %v3782_v60, %v3786_v45  ;;  %v3801_v1 = vld [vmem:[%s12919_s10 + $0xd20] sm:$0xff]  ;;  %v3798_v3 = vld [vmem:[%s12919_s10 + $0xd08] sm:$0xff] }
 0x46a   :  { %v3370_v22 = vmax.f32 %v3362_v16, 0.0  ;;  %v8873_v36 = vcombine.high %v3789_v50, %v3793_v53  ;;  %v8875_v0 = vcombine.high %v3790_v56, %v3794_v41  ;;  %v3802_v4 = vld [vmem:[%s12919_s10 + $0xd28] sm:$0xff]  ;;  %v8872_v10 = vcombine.low %v3789_v50, %v3793_v53  ;;  %v3809_v13 = vld [vmem:[%s12919_s10 + $0xd60] sm:$0xff] }
 0x46b   :  { %v3372_v27 = vmax.f32 %v3364_v18, 0.0  ;;  %v11621_v44 = vpack.c.bf16 %v3369_v6, %v3369_v6  ;;  %v3224_v55 = vrot.slane %v3223_v57, 2  ;;  %v8874_v24 = vcombine.low %v3790_v56, %v3794_v41  ;;  %v3810_v16 = vld [vmem:[%s12919_s10 + $0xd68] sm:$0xff]  ;;  %v3813_v6 = vld [vmem:[%s12919_s10 + $0xd80] sm:$0xff] }
 0x46c   :  { %6566 = vmatpush1.bf16.msra.mxu0 %v8840_v14  ;;  %6730 = vmatpush1.bf16.msra.mxu1 %v8842_v37  ;;  %v11618_v34 = vpack.c.bf16 %v3370_v22, %v3370_v22  ;;  %v8881_v5 = vcombine.high %v3797_v52, %v3801_v1  ;;  %v8883_v47 = vcombine.high %v3798_v3, %v3802_v4  ;;  %v3806_v14 = vld [vmem:[%s12919_s10 + $0xd48] sm:$0xff]  ;;  %v3817_v22 = vld [vmem:[%s12919_s10 + $0xda0] sm:$0xff] }
 0x46d   :  { %6576 = vmatprep.subr.bf16.mxu0 %v8849_v17  ;;  %6740 = vmatprep.subr.bf16.mxu1 %v8851_v7  ;;  %v11639_v46 = vpack.c.bf16 %v3372_v27, %v3372_v27  ;;  %v3225_v37 = vadd.f32 %v3224_v55, %v3223_v57  ;;  %v8880_v17 = vcombine.low %v3797_v52, %v3801_v1  ;;  %v3814_v26 = vld [vmem:[%s12919_s10 + $0xd88] sm:$0xff]  ;;  %v3821_v43 = vld [vmem:[%s12919_s10 + $0xdc0] sm:$0xff] }
 0x46e   :  { %6567 = vmatprep.mubr.bf16.mxu0 %v11618_v34  ;;  %6731 = vmatprep.mubr.bf16.mxu1 %v11618_v34  ;;  %v8882_v20 = vcombine.low %v3798_v3, %v3802_v4  ;;  %v8889_v18 = vcombine.high %v3805_v54, %v3809_v13  ;;  %v8891_v7 = vcombine.high %v3806_v14, %v3810_v16  ;;  %v3818_v27 = vld [vmem:[%s12919_s10 + $0xda8] sm:$0xff] }
 0x46f   :  { %6568 = vmatmul.mubr.bf16.vlgmr.msra.gmra.mrb[12].mxu0 %v11621_v44  ;;  %6732 = vmatmul.mubr.bf16.vlgmr.msra.gmra.mrb[16].mxu1 %v11621_v44  ;;  %v3226_v29 = vrot.slane %v3225_v37, 1  ;;  %v8888_v8 = vcombine.low %v3805_v54, %v3809_v13  ;;  %v8890_v48 = vcombine.low %v3806_v14, %v3810_v16  ;;  %v8896_v60 = vcombine.low %v3813_v6, %v3817_v22  ;;  %v3834_v50 = vld [vmem:[%s12919_s10 + $0xe28] sm:$0xff] }
 0x470   :  { %6577 = vmatpush1.bf16.msra.mxu0 %v8848_v40  ;;  %6741 = vmatpush1.bf16.msra.mxu1 %v8850_v42  ;;  %v8897_v40 = vcombine.high %v3813_v6, %v3817_v22  ;;  %v8899_v42 = vcombine.high %v3814_v26, %v3818_v27  ;;  %v8898_v45 = vcombine.low %v3814_v26, %v3818_v27  ;;  %v3842_v52 = vld [vmem:[%s12919_s10 + $0xe68] sm:$0xff] }
 0x471   :  { %6608 = vmatprep.mubr.bf16.mxu0 %v11639_v46  ;;  %6772 = vmatprep.mubr.bf16.mxu1 %v11639_v46  ;;  %v3227_v59 = vadd.f32 %v3226_v29, %v3225_v37  ;;  %v8905_v25 = vcombine.high %v3821_v43, %v3825_v21  ;;  %v8904_v56 = vcombine.low %v3821_v43, %v3825_v21  ;;  %v3850_v54 = vld [vmem:[%s12919_s10 + $0xea8] sm:$0xff]  ;;  %v3861_v29 = vld [vmem:[%s12919_s10 + $0xf00] sm:$0xff] }
 0x472   :  { %6578 = vmatprep.subr.bf16.mxu0 %v8857_v51  ;;  %6742 = vmatprep.subr.bf16.mxu1 %v8859_v31  ;;  %v3822_v51 = vld [vmem:[%s12919_s10 + $0xdc8] sm:$0xff] }
 0x473   :  { %v3826_v31 = vld [vmem:[%s12919_s10 + $0xde8] sm:$0xff]  ;;  %v3241_v53 = vmul.f32 0.5, %v3227_v59  ;;  %v3869_v59 = vld [vmem:[%s12919_s10 + $0xf40] sm:$0xff] }
 0x474   :  { %6579 = vmatpush1.bf16.msra.mxu0 %v8856_v49  ;;  %6743 = vmatpush1.bf16.msra.mxu1 %v8858_v32  ;;  %v8907_v49 = vcombine.high %v3822_v51, %v3826_v31  ;;  %v3829_v32 = vld [vmem:[%s12919_s10 + $0xe00] sm:$0xff]  ;;  %v8906_v41 = vcombine.low %v3822_v51, %v3826_v31 }
 0x475   :  { %6580 = vmatprep.subr.bf16.mxu0 %v8865_v19  ;;  %6744 = vmatprep.subr.bf16.mxu1 %v8867_v23  ;;  %v3833_v19 = vld [vmem:[%s12919_s10 + $0xe20] sm:$0xff]  ;;  %v3830_v23 = vld [vmem:[%s12919_s10 + $0xe08] sm:$0xff]  ;;  %v3249_v1 = vadd.f32 1e-05, %v3241_v53 }
 0x476   :  { %v8913_v57 = vcombine.high %v3829_v32, %v3833_v19  ;;  %v8912_v3 = vcombine.low %v3829_v32, %v3833_v19  ;;  %v8914_v4 = vcombine.low %v3830_v23, %v3834_v50 }
 0x477   :  { %9480 = vrsqrt.f32 %v3249_v1 }
 0x478   :  { %6581 = vmatpush1.bf16.msra.mxu0 %v8864_v61  ;;  %6745 = vmatpush1.bf16.msra.mxu1 %v8866_v63  ;;  %v8915_v61 = vcombine.high %v3830_v23, %v3834_v50  ;;  %v3837_v63 = vld [vmem:[%s12919_s10 + $0xe40] sm:$0xff] }
 0x479   :  { %6582 = vmatprep.subr.bf16.mxu0 %v8873_v36  ;;  %6746 = vmatprep.subr.bf16.mxu1 %v8875_v0  ;;  %v3841_v36 = vld [vmem:[%s12919_s10 + $0xe60] sm:$0xff]  ;;  %v3838_v0 = vld [vmem:[%s12919_s10 + $0xe48] sm:$0xff] }
 0x47a   :  { %v8921_v55 = vcombine.high %v3837_v63, %v3841_v36  ;;  %v8920_v13 = vcombine.low %v3837_v63, %v3841_v36  ;;  %v8922_v14 = vcombine.low %v3838_v0, %v3842_v52  ;;  %v9501_v63 = vld [vmem:[%s12921_s9] sm:$0xff] }
 0x47c   :  { %6583 = vmatpush1.bf16.msra.mxu0 %v8872_v10  ;;  %6747 = vmatpush1.bf16.msra.mxu1 %v8874_v24  ;;  %v8923_v10 = vcombine.high %v3838_v0, %v3842_v52  ;;  %v3845_v24 = vld [vmem:[%s12919_s10 + $0xe80] sm:$0xff] }
 0x47d   :  { %6584 = vmatprep.subr.bf16.mxu0 %v8881_v5  ;;  %6748 = vmatprep.subr.bf16.mxu1 %v8883_v47  ;;  %v3849_v5 = vld [vmem:[%s12919_s10 + $0xea0] sm:$0xff]  ;;  %v3846_v47 = vld [vmem:[%s12919_s10 + $0xe88] sm:$0xff] }
 0x47e   :  { %v8929_v16 = vcombine.high %v3845_v24, %v3849_v5  ;;  %v8931_v37 = vcombine.high %v3846_v47, %v3850_v54  ;;  %v8928_v6 = vcombine.low %v3845_v24, %v3849_v5  ;;  %v8930_v22 = vcombine.low %v3846_v47, %v3850_v54  ;;  %v3886_v24 = vld [vmem:[%s12919_s10 + $0xfc8] sm:$0xff] }
 0x47f   :  { %v3890_v5 = vld [vmem:[%s12919_s10 + $0xfe8] sm:$0xff] }
 0x480   :  { %6585 = vmatpush1.bf16.msra.mxu0 %v8880_v17  ;;  %6749 = vmatpush1.bf16.msra.mxu1 %v8882_v20  ;;  %v3853_v17 = vld [vmem:[%s12919_s10 + $0xec0] sm:$0xff] }
 0x481   :  { %6586 = vmatprep.subr.bf16.mxu0 %v8889_v18  ;;  %6750 = vmatprep.subr.bf16.mxu1 %v8891_v7  ;;  %v3857_v20 = vld [vmem:[%s12919_s10 + $0xee0] sm:$0xff]  ;;  %v3854_v18 = vld [vmem:[%s12919_s10 + $0xec8] sm:$0xff] }
 0x482   :  { %v3858_v7 = vld [vmem:[%s12919_s10 + $0xee8] sm:$0xff]  ;;  %v8937_v26 = vcombine.high %v3853_v17, %v3857_v20  ;;  %v8936_v43 = vcombine.low %v3853_v17, %v3857_v20  ;;  %v3387_v17 = vld [vmem:[%s12919_s10 + $0x30] sm:$0xff]  ;;  %v3384_v20 = vld [vmem:[%s12919_s10 + $0x18] sm:$0xff] }
 0x483   :  { %v8939_v27 = vcombine.high %v3854_v18, %v3858_v7  ;;  %v8938_v21 = vcombine.low %v3854_v18, %v3858_v7  ;;  %v3388_v18 = vld [vmem:[%s12919_s10 + $0x38] sm:$0xff] }
 0x484   :  { %6587 = vmatpush1.bf16.msra.mxu0 %v8888_v8  ;;  %6751 = vmatpush1.bf16.msra.mxu1 %v8890_v48  ;;  %v3865_v8 = vld [vmem:[%s12919_s10 + $0xf20] sm:$0xff]  ;;  %v3862_v48 = vld [vmem:[%s12919_s10 + $0xf08] sm:$0xff] }
 0x485   :  { %6588 = vmatprep.subr.bf16.mxu0 %v8897_v40  ;;  %6752 = vmatprep.subr.bf16.mxu1 %v8899_v42  ;;  %v3866_v40 = vld [vmem:[%s12919_s10 + $0xf28] sm:$0xff]  ;;  %v11764_v42 = vsub.s32 6, %v9616_v15  ;;  %v8945_v51 = vcombine.high %v3861_v29, %v3865_v8  ;;  %v8944_v19 = vcombine.low %v3861_v29, %v3865_v8  ;;  %v3391_v29 = vld [vmem:[%s12919_s10 + $0x50] sm:$0xff] }
 0x486   :  { %v8947_v31 = vcombine.high %v3862_v48, %v3866_v40  ;;  %v3870_v15 = vld [vmem:[%s12919_s10 + $0xf48] sm:$0xff]  ;;  %v8946_v23 = vcombine.low %v3862_v48, %v3866_v40  ;;  %v3395_v8 = vld [vmem:[%s12919_s10 + $0x70] sm:$0xff]  ;;  %v3392_v48 = vld [vmem:[%s12919_s10 + $0x58] sm:$0xff] }
 0x487   :  { %v3344_v36 = vrot.slane %v9501_v63, %v11764_v42  ;;  %v3396_v40 = vld [vmem:[%s12919_s10 + $0x78] sm:$0xff]  ;;  %v3415_v63 = vld [vmem:[%s12919_s10 + $0x110] sm:$0xff] }
 0x488   :  { %6589 = vmatpush1.bf16.msra.mxu0 %v8896_v60  ;;  %6753 = vmatpush1.bf16.msra.mxu1 %v8898_v45  ;;  %v9481_v60 = vpop.eup %9480  ;;  %v3873_v45 = vld [vmem:[%s12919_s10 + $0xf60] sm:$0xff] }
 0x489   :  { %6590 = vmatprep.subr.bf16.mxu0 %v8905_v25  ;;  %6754 = vmatprep.subr.bf16.mxu1 %v8907_v49  ;;  %v3874_v25 = vld [vmem:[%s12919_s10 + $0xf68] sm:$0xff]  ;;  %v9500_v49 = vld [vmem:[%s12920_s8] sm:$0xff]  ;;  %v3265_v50 = vmul.f32 %v9481_v60, %v11589_v2  ;;  %v8953_v53 = vcombine.high %v3869_v59, %v3873_v45  ;;  %v8952_v0 = vcombine.low %v3869_v59, %v3873_v45  ;;  %v3399_v60 = vld [vmem:[%s12919_s10 + $0x90] sm:$0xff] }
 0x48a   :  { %v3295_v32 = vrot.slane %v9500_v49, %v11764_v42  ;;  %v3882_v2 = vld [vmem:[%s12919_s10 + $0xfa8] sm:$0xff]  ;;  %v8954_v52 = vcombine.low %v3870_v15, %v3874_v25  ;;  %v8479_v59 = vcombine.high %v3392_v48, %v3396_v40  ;;  %v3403_v45 = vld [vmem:[%s12919_s10 + $0xb0] sm:$0xff]  ;;  %v8476_v49 = vcombine.low %v3391_v29, %v3395_v8 }
 0x48c   :  { %6591 = vmatpush1.bf16.msra.mxu0 %v8904_v56  ;;  %6755 = vmatpush1.bf16.msra.mxu1 %v8906_v41  ;;  %v8955_v56 = vcombine.high %v3870_v15, %v3874_v25  ;;  %v3877_v41 = vld [vmem:[%s12919_s10 + $0xf80] sm:$0xff]  ;;  %v3314_v1 = vmul.f32 %v3295_v32, %v3265_v50  ;;  %v3400_v15 = vld [vmem:[%s12919_s10 + $0x98] sm:$0xff]  ;;  %v8478_v32 = vcombine.low %v3392_v48, %v3396_v40  ;;  %v3407_v50 = vld [vmem:[%s12919_s10 + $0xd0] sm:$0xff] }
 0x48d   :  { %6592 = vmatprep.subr.bf16.mxu0 %v8913_v57  ;;  %6756 = vmatprep.subr.bf16.mxu1 %v8915_v61  ;;  %v3881_v57 = vld [vmem:[%s12919_s10 + $0xfa0] sm:$0xff]  ;;  %v3878_v61 = vld [vmem:[%s12919_s10 + $0xf88] sm:$0xff]  ;;  %v3404_v25 = vld [vmem:[%s12919_s10 + $0xb8] sm:$0xff] }
 0x48e   :  { %v8960_v47 = vcombine.low %v3877_v41, %v3881_v57  ;;  %v8962_v54 = vcombine.low %v3878_v61, %v3882_v2  ;;  %v3444_v48 = vld [vmem:[%s12919_s10 + $0x1f8] sm:$0xff] }
 0x490   :  { %6593 = vmatpush1.bf16.msra.mxu0 %v8912_v3  ;;  %6757 = vmatpush1.bf16.msra.mxu1 %v8914_v4  ;;  %v8961_v3 = vcombine.high %v3877_v41, %v3881_v57  ;;  %v8963_v4 = vcombine.high %v3878_v61, %v3882_v2  ;;  %v8484_v41 = vcombine.low %v3399_v60, %v3403_v45 }
 0x491   :  { %6594 = vmatprep.subr.bf16.mxu0 %v8921_v55  ;;  %6758 = vmatprep.subr.bf16.mxu1 %v8923_v10  ;;  %v3885_v55 = vld [vmem:[%s12919_s10 + $0xfc0] sm:$0xff]  ;;  %v8486_v57 = vcombine.low %v3400_v15, %v3404_v25 }
 0x492   :  { %v3889_v10 = vld [vmem:[%s12919_s10 + $0xfe0] sm:$0xff] }
 0x493   :  { %v8968_v7 = vcombine.low %v3885_v55, %v3889_v10 }
 0x494   :  { %6595 = vmatpush1.bf16.msra.mxu0 %v8920_v13  ;;  %6759 = vmatpush1.bf16.msra.mxu1 %v8922_v14  ;;  %v3363_v13 = vadd.f32 %v3344_v36, %v3314_v1  ;;  %v8969_v14 = vcombine.high %v3885_v55, %v3889_v10  ;;  %v3419_v36 = vld [vmem:[%s12919_s10 + $0x130] sm:$0xff] }
 0x495   :  { %6596 = vmatprep.subr.bf16.mxu0 %v8929_v16  ;;  %6760 = vmatprep.subr.bf16.mxu1 %v8931_v37  ;;  %v8971_v16 = vcombine.high %v3886_v24, %v3890_v5  ;;  %v3383_v37 = vld [vmem:[%s12919_s10 + $0x10] sm:$0xff] }
 0x496   :  { %v3423_v10 = vld [vmem:[%s12919_s10 + $0x150] sm:$0xff] }
 0x498   :  { %6597 = vmatpush1.bf16.msra.mxu0 %v8928_v6  ;;  %6761 = vmatpush1.bf16.msra.mxu1 %v8930_v22  ;;  %v8970_v6 = vcombine.low %v3886_v24, %v3890_v5  ;;  %v3371_v22 = vmax.f32 %v3363_v13, 0.0  ;;  %v3427_v24 = vld [vmem:[%s12919_s10 + $0x170] sm:$0xff]  ;;  %v3424_v5 = vld [vmem:[%s12919_s10 + $0x158] sm:$0xff] }
 0x499   :  { %6598 = vmatprep.subr.bf16.mxu0 %v8937_v26  ;;  %6762 = vmatprep.subr.bf16.mxu1 %v8939_v27  ;;  %v8469_v26 = vcombine.high %v3383_v37, %v3387_v17  ;;  %v8471_v27 = vcombine.high %v3384_v20, %v3388_v18 }
 0x49c   :  { %6599 = vmatpush1.bf16.msra.mxu0 %v8936_v43  ;;  %6763 = vmatpush1.bf16.msra.mxu1 %v8938_v21  ;;  %v8468_v43 = vcombine.low %v3383_v37, %v3387_v17  ;;  %v11835_v21 = vpack.c.bf16 %v3371_v22, %v3371_v22  ;;  %v3431_v37 = vld [vmem:[%s12919_s10 + $0x190] sm:$0xff] }
 0x49d   :  { %6600 = vmatprep.subr.bf16.mxu0 %v8945_v51  ;;  %6764 = vmatprep.subr.bf16.mxu1 %v8947_v31  ;;  %v8470_v51 = vcombine.low %v3384_v20, %v3388_v18  ;;  %v8477_v31 = vcombine.high %v3391_v29, %v3395_v8  ;;  %v3435_v17 = vld [vmem:[%s12919_s10 + $0x1b0] sm:$0xff]  ;;  %v3432_v20 = vld [vmem:[%s12919_s10 + $0x198] sm:$0xff] }
 0x49e   :  { %v3436_v18 = vld [vmem:[%s12919_s10 + $0x1b8] sm:$0xff]  ;;  %v8517_v22 = vcombine.high %v3431_v37, %v3435_v17  ;;  %v3443_v29 = vld [vmem:[%s12919_s10 + $0x1f0] sm:$0xff]  ;;  %v8516_v40 = vcombine.low %v3431_v37, %v3435_v17 }
 0x49f   :  { %v3440_v8 = vld [vmem:[%s12919_s10 + $0x1d8] sm:$0xff]  ;;  %v3483_v37 = vld [vmem:[%s12919_s10 + $0x330] sm:$0xff] }
 0x4a0   :  { %6601 = vmatpush1.bf16.msra.mxu0 %v8944_v19  ;;  %6765 = vmatpush1.bf16.msra.mxu1 %v8946_v23  ;;  %v8485_v19 = vcombine.high %v3399_v60, %v3403_v45  ;;  %v8487_v23 = vcombine.high %v3400_v15, %v3404_v25  ;;  %v3451_v60 = vld [vmem:[%s12919_s10 + $0x230] sm:$0xff]  ;;  %v3448_v45 = vld [vmem:[%s12919_s10 + $0x218] sm:$0xff] }
 0x4a1   :  { %6602 = vmatprep.subr.bf16.mxu0 %v8953_v53  ;;  %6766 = vmatprep.subr.bf16.mxu1 %v8955_v56  ;;  %v3411_v53 = vld [vmem:[%s12919_s10 + $0xf0] sm:$0xff]  ;;  %v3408_v56 = vld [vmem:[%s12919_s10 + $0xd8] sm:$0xff] }
 0x4a2   :  { %v8493_v61 = vcombine.high %v3407_v50, %v3411_v53  ;;  %v8492_v1 = vcombine.low %v3407_v50, %v3411_v53  ;;  %v3452_v15 = vld [vmem:[%s12919_s10 + $0x238] sm:$0xff]  ;;  %v3459_v50 = vld [vmem:[%s12919_s10 + $0x270] sm:$0xff] }
 0x4a3   :  { %v3456_v53 = vld [vmem:[%s12919_s10 + $0x258] sm:$0xff] }
 0x4a4   :  { %6603 = vmatpush1.bf16.msra.mxu0 %v8952_v0  ;;  %6767 = vmatpush1.bf16.msra.mxu1 %v8954_v52  ;;  %v3416_v0 = vld [vmem:[%s12919_s10 + $0x118] sm:$0xff] }
 0x4a5   :  { %6604 = vmatprep.subr.bf16.mxu0 %v8961_v3  ;;  %6768 = vmatprep.subr.bf16.mxu1 %v8963_v4  ;;  %v3420_v52 = vld [vmem:[%s12919_s10 + $0x138] sm:$0xff]  ;;  %v8501_v4 = vcombine.high %v3415_v63, %v3419_v36 }
 0x4a6   :  { %v8503_v55 = vcombine.high %v3416_v0, %v3420_v52  ;;  %v8502_v13 = vcombine.low %v3416_v0, %v3420_v52  ;;  %v3468_v0 = vld [vmem:[%s12919_s10 + $0x2b8] sm:$0xff] }
 0x4a7   :  { %v3480_v17 = vld [vmem:[%s12919_s10 + $0x318] sm:$0xff] }
 0x4a8   :  { %6605 = vmatpush1.bf16.msra.mxu0 %v8960_v47  ;;  %6769 = vmatpush1.bf16.msra.mxu1 %v8962_v54  ;;  %v3428_v47 = vld [vmem:[%s12919_s10 + $0x178] sm:$0xff]  ;;  %v8500_v54 = vcombine.low %v3415_v63, %v3419_v36  ;;  %v3467_v63 = vld [vmem:[%s12919_s10 + $0x2b0] sm:$0xff] }
 0x4a9   :  { %6606 = vmatprep.subr.bf16.mxu0 %v8969_v14  ;;  %6770 = vmatprep.subr.bf16.mxu1 %v8971_v16  ;;  %v8509_v14 = vcombine.high %v3423_v10, %v3427_v24  ;;  %v8511_v16 = vcombine.high %v3424_v5, %v3428_v47  ;;  %v3464_v36 = vld [vmem:[%s12919_s10 + $0x298] sm:$0xff] }
 0x4ac   :  { %6607 = vmatpush1.bf16.msra.mxu0 %v8968_v7  ;;  %6771 = vmatpush1.bf16.msra.mxu1 %v8970_v6  ;;  %v8508_v7 = vcombine.low %v3423_v10, %v3427_v24  ;;  %v8510_v6 = vcombine.low %v3424_v5, %v3428_v47  ;;  %v3475_v10 = vld [vmem:[%s12919_s10 + $0x2f0] sm:$0xff]  ;;  %v3472_v24 = vld [vmem:[%s12919_s10 + $0x2d8] sm:$0xff] }
 0x4ad   :  { %6781 = vmatprep.subr.bf16.mxu0 %v8469_v26  ;;  %6945 = vmatprep.subr.bf16.mxu1 %v8471_v27  ;;  %v8519_v26 = vcombine.high %v3432_v20, %v3436_v18  ;;  %v3439_v27 = vld [vmem:[%s12919_s10 + $0x1d0] sm:$0xff]  ;;  %v3476_v5 = vld [vmem:[%s12919_s10 + $0x2f8] sm:$0xff] }
 0x4ae   :  { %v8524_v25 = vcombine.low %v3439_v27, %v3443_v29 }
 0x4af   :  { %6609 = vmatmul.mubr.bf16.vlgmr.msra.gmra.mrb[12].mxu0 %v11835_v21  ;;  %6773 = vmatmul.mubr.bf16.vlgmr.msra.gmra.mrb[16].mxu1 %v11835_v21 }
 0x4b0   :  { %6782 = vmatpush1.bf16.msra.mxu0 %v8468_v43  ;;  %6813 = vmatprep.mubr.bf16.mxu0 %v11143_v28  ;;  %v8518_v43 = vcombine.low %v3432_v20, %v3436_v18  ;;  %v3484_v20 = vld [vmem:[%s12919_s10 + $0x338] sm:$0xff] }
 0x4b1   :  { %6946 = vmatpush1.bf16.msra.mxu1 %v8470_v51  ;;  %6977 = vmatprep.mubr.bf16.mxu1 %v11143_v28  ;;  %v3412_v28 = vld [vmem:[%s12919_s10 + $0xf8] sm:$0xff]  ;;  %v8525_v51 = vcombine.high %v3439_v27, %v3443_v29  ;;  %v3491_v27 = vld [vmem:[%s12919_s10 + $0x370] sm:$0xff] }
 0x4b2   :  { %6783 = vmatprep.subr.bf16.mxu0 %v8477_v31  ;;  %6947 = vmatprep.subr.bf16.mxu1 %v8479_v59  ;;  %v8495_v2 = vcombine.high %v3408_v56, %v3412_v28  ;;  %v8494_v3 = vcombine.low %v3408_v56, %v3412_v28  ;;  %v8527_v31 = vcombine.high %v3440_v8, %v3444_v48  ;;  %v3447_v59 = vld [vmem:[%s12919_s10 + $0x210] sm:$0xff]  ;;  %v3460_v56 = vld [vmem:[%s12919_s10 + $0x278] sm:$0xff] }
 0x4b3   :  { %v8532_v28 = vcombine.low %v3447_v59, %v3451_v60  ;;  %v3488_v29 = vld [vmem:[%s12919_s10 + $0x358] sm:$0xff] }
 0x4b4   :  { %6784 = vmatpush1.bf16.msra.mxu0 %v8476_v49  ;;  %v8526_v49 = vcombine.low %v3440_v8, %v3444_v48  ;;  %v3492_v8 = vld [vmem:[%s12919_s10 + $0x378] sm:$0xff] }
 0x4b5   :  { %6948 = vmatpush1.bf16.msra.mxu1 %v8478_v32  ;;  %6785 = vmatprep.subr.bf16.mxu0 %v8485_v19  ;;  %v8533_v32 = vcombine.high %v3447_v59, %v3451_v60  ;;  %v8535_v19 = vcombine.high %v3448_v45, %v3452_v15  ;;  %v3499_v59 = vld [vmem:[%s12919_s10 + $0x3b0] sm:$0xff]  ;;  %v3496_v60 = vld [vmem:[%s12919_s10 + $0x398] sm:$0xff] }
 0x4b6   :  { %6949 = vmatprep.subr.bf16.mxu1 %v8487_v23  ;;  %v3455_v23 = vld [vmem:[%s12919_s10 + $0x250] sm:$0xff] }
 0x4b7   :  { %v8540_v52 = vcombine.low %v3455_v23, %v3459_v50 }
 0x4b8   :  { %6786 = vmatpush1.bf16.msra.mxu0 %v8484_v41  ;;  %v8534_v41 = vcombine.low %v3448_v45, %v3452_v15  ;;  %v3500_v45 = vld [vmem:[%s12919_s10 + $0x3b8] sm:$0xff] }
 0x4b9   :  { %6950 = vmatpush1.bf16.msra.mxu1 %v8486_v57  ;;  %6787 = vmatprep.subr.bf16.mxu0 %v8493_v61  ;;  %v8541_v57 = vcombine.high %v3455_v23, %v3459_v50  ;;  %v8543_v61 = vcombine.high %v3456_v53, %v3460_v56  ;;  %v3507_v23 = vld [vmem:[%s12919_s10 + $0x3f0] sm:$0xff]  ;;  %v3504_v50 = vld [vmem:[%s12919_s10 + $0x3d8] sm:$0xff] }
 0x4ba   :  { %6951 = vmatprep.subr.bf16.mxu1 %v8495_v2  ;;  %v3463_v2 = vld [vmem:[%s12919_s10 + $0x290] sm:$0xff] }
 0x4bb   :  { %v8548_v47 = vcombine.low %v3463_v2, %v3467_v63 }
 0x4bc   :  { %6788 = vmatpush1.bf16.msra.mxu0 %v8492_v1  ;;  %v8542_v1 = vcombine.low %v3456_v53, %v3460_v56  ;;  %v3508_v53 = vld [vmem:[%s12919_s10 + $0x3f8] sm:$0xff] }
 0x4bd   :  { %6952 = vmatpush1.bf16.msra.mxu1 %v8494_v3  ;;  %6789 = vmatprep.subr.bf16.mxu0 %v8501_v4  ;;  %v8549_v3 = vcombine.high %v3463_v2, %v3467_v63  ;;  %v8551_v4 = vcombine.high %v3464_v36, %v3468_v0  ;;  %v3515_v2 = vld [vmem:[%s12919_s10 + $0x430] sm:$0xff]  ;;  %v3512_v63 = vld [vmem:[%s12919_s10 + $0x418] sm:$0xff] }
 0x4be   :  { %6953 = vmatprep.subr.bf16.mxu1 %v8503_v55  ;;  %v3471_v55 = vld [vmem:[%s12919_s10 + $0x2d0] sm:$0xff] }
 0x4bf   :  { %v8556_v18 = vcombine.low %v3471_v55, %v3475_v10 }
 0x4c0   :  { %6790 = vmatpush1.bf16.msra.mxu0 %v8500_v54  ;;  %v8550_v54 = vcombine.low %v3464_v36, %v3468_v0  ;;  %v3516_v36 = vld [vmem:[%s12919_s10 + $0x438] sm:$0xff] }
 0x4c1   :  { %6954 = vmatpush1.bf16.msra.mxu1 %v8502_v13  ;;  %6791 = vmatprep.subr.bf16.mxu0 %v8509_v14  ;;  %v8557_v13 = vcombine.high %v3471_v55, %v3475_v10  ;;  %v8559_v14 = vcombine.high %v3472_v24, %v3476_v5  ;;  %v3523_v55 = vld [vmem:[%s12919_s10 + $0x470] sm:$0xff] }
 0x4c2   :  { %6955 = vmatprep.subr.bf16.mxu1 %v8511_v16  ;;  %v3479_v16 = vld [vmem:[%s12919_s10 + $0x310] sm:$0xff] }
 0x4c3   :  { %v8564_v48 = vcombine.low %v3479_v16, %v3483_v37 }
 0x4c4   :  { %6792 = vmatpush1.bf16.msra.mxu0 %v8508_v7  ;;  %v8558_v7 = vcombine.low %v3472_v24, %v3476_v5  ;;  %v3520_v24 = vld [vmem:[%s12919_s10 + $0x458] sm:$0xff] }
 0x4c5   :  { %6956 = vmatpush1.bf16.msra.mxu1 %v8510_v6  ;;  %6793 = vmatprep.subr.bf16.mxu0 %v8517_v22  ;;  %v8565_v6 = vcombine.high %v3479_v16, %v3483_v37  ;;  %v8567_v22 = vcombine.high %v3480_v17, %v3484_v20  ;;  %v3524_v5 = vld [vmem:[%s12919_s10 + $0x478] sm:$0xff] }
 0x4c6   :  { %6957 = vmatprep.subr.bf16.mxu1 %v8519_v26  ;;  %v3487_v26 = vld [vmem:[%s12919_s10 + $0x350] sm:$0xff]  ;;  %v8607_v16 = vcombine.high %v3520_v24, %v3524_v5  ;;  %v3528_v37 = vld [vmem:[%s12919_s10 + $0x498] sm:$0xff] }
 0x4c7   :  { %v8572_v15 = vcombine.low %v3487_v26, %v3491_v27 }
 0x4c8   :  { %6794 = vmatpush1.bf16.msra.mxu0 %v8516_v40  ;;  %v8566_v40 = vcombine.low %v3480_v17, %v3484_v20  ;;  %v3532_v17 = vld [vmem:[%s12919_s10 + $0x4b8] sm:$0xff] }
 0x4c9   :  { %6958 = vmatpush1.bf16.msra.mxu1 %v8518_v43  ;;  %6795 = vmatprep.subr.bf16.mxu0 %v8525_v51  ;;  %v8573_v43 = vcombine.high %v3487_v26, %v3491_v27  ;;  %v8575_v51 = vcombine.high %v3488_v29, %v3492_v8  ;;  %v3539_v26 = vld [vmem:[%s12919_s10 + $0x4f0] sm:$0xff]  ;;  %v3540_v27 = vld [vmem:[%s12919_s10 + $0x4f8] sm:$0xff] }
 0x4ca   :  { %6959 = vmatprep.subr.bf16.mxu1 %v8527_v31  ;;  %v3495_v31 = vld [vmem:[%s12919_s10 + $0x390] sm:$0xff] }
 0x4cb   :  { %v8580_v56 = vcombine.low %v3495_v31, %v3499_v59 }
 0x4cc   :  { %6796 = vmatpush1.bf16.msra.mxu0 %v8524_v25  ;;  %v8574_v25 = vcombine.low %v3488_v29, %v3492_v8  ;;  %v8614_v29 = vcombine.low %v3528_v37, %v3532_v17 }
 0x4cd   :  { %6960 = vmatpush1.bf16.msra.mxu1 %v8526_v49  ;;  %6797 = vmatprep.subr.bf16.mxu0 %v8533_v32  ;;  %v8581_v49 = vcombine.high %v3495_v31, %v3499_v59  ;;  %v8583_v32 = vcombine.high %v3496_v60, %v3500_v45  ;;  %v3548_v31 = vld [vmem:[%s12919_s10 + $0x538] sm:$0xff] }
 0x4ce   :  { %6961 = vmatprep.subr.bf16.mxu1 %v8535_v19  ;;  %v3503_v19 = vld [vmem:[%s12919_s10 + $0x3d0] sm:$0xff] }
 0x4cf   :  { %v8588_v0 = vcombine.low %v3503_v19, %v3507_v23 }
 0x4d0   :  { %6798 = vmatpush1.bf16.msra.mxu0 %v8532_v28  ;;  %v8582_v28 = vcombine.low %v3496_v60, %v3500_v45 }
 0x4d1   :  { %6962 = vmatpush1.bf16.msra.mxu1 %v8534_v41  ;;  %6799 = vmatprep.subr.bf16.mxu0 %v8541_v57  ;;  %v8589_v41 = vcombine.high %v3503_v19, %v3507_v23  ;;  %v8591_v57 = vcombine.high %v3504_v50, %v3508_v53  ;;  %v3556_v19 = vld [vmem:[%s12919_s10 + $0x578] sm:$0xff] }
 0x4d2   :  { %6963 = vmatprep.subr.bf16.mxu1 %v8543_v61  ;;  %v3511_v61 = vld [vmem:[%s12919_s10 + $0x410] sm:$0xff] }
 0x4d3   :  { %v8596_v10 = vcombine.low %v3511_v61, %v3515_v2 }
 0x4d4   :  { %6800 = vmatpush1.bf16.msra.mxu0 %v8540_v52  ;;  %v8590_v52 = vcombine.low %v3504_v50, %v3508_v53 }
 0x4d5   :  { %6964 = vmatpush1.bf16.msra.mxu1 %v8542_v1  ;;  %6801 = vmatprep.subr.bf16.mxu0 %v8549_v3  ;;  %v8597_v1 = vcombine.high %v3511_v61, %v3515_v2  ;;  %v8599_v3 = vcombine.high %v3512_v63, %v3516_v36  ;;  %v3564_v61 = vld [vmem:[%s12919_s10 + $0x5b8] sm:$0xff] }
 0x4d6   :  { %6965 = vmatprep.subr.bf16.mxu1 %v8551_v4  ;;  %v3519_v4 = vld [vmem:[%s12919_s10 + $0x450] sm:$0xff] }
 0x4d7   :  { %v8604_v20 = vcombine.low %v3519_v4, %v3523_v55 }
 0x4d8   :  { %6802 = vmatpush1.bf16.msra.mxu0 %v8548_v47  ;;  %v8598_v47 = vcombine.low %v3512_v63, %v3516_v36 }
 0x4d9   :  { %6966 = vmatpush1.bf16.msra.mxu1 %v8550_v54  ;;  %6803 = vmatprep.subr.bf16.mxu0 %v8557_v13  ;;  %v8605_v54 = vcombine.high %v3519_v4, %v3523_v55  ;;  %v3527_v13 = vld [vmem:[%s12919_s10 + $0x490] sm:$0xff]  ;;  %v3572_v4 = vld [vmem:[%s12919_s10 + $0x5f8] sm:$0xff] }
 0x4da   :  { %6967 = vmatprep.subr.bf16.mxu1 %v8559_v14  ;;  %v3531_v14 = vld [vmem:[%s12919_s10 + $0x4b0] sm:$0xff] }
 0x4dc   :  { %6804 = vmatpush1.bf16.msra.mxu0 %v8556_v18  ;;  %v8606_v18 = vcombine.low %v3520_v24, %v3524_v5 }
 0x4dd   :  { %6968 = vmatpush1.bf16.msra.mxu1 %v8558_v7  ;;  %6805 = vmatprep.subr.bf16.mxu0 %v8565_v6  ;;  %v8613_v7 = vcombine.high %v3527_v13, %v3531_v14  ;;  %v8615_v6 = vcombine.high %v3528_v37, %v3532_v17 }
 0x4de   :  { %6969 = vmatprep.subr.bf16.mxu1 %v8567_v22  ;;  %v3535_v22 = vld [vmem:[%s12919_s10 + $0x4d0] sm:$0xff] }
 0x4df   :  { %v8621_v8 = vcombine.high %v3535_v22, %v3539_v26  ;;  %v8620_v59 = vcombine.low %v3535_v22, %v3539_v26  ;;  %v3588_v22 = vld [vmem:[%s12919_s10 + $0x678] sm:$0xff] }
 0x4e0   :  { %6806 = vmatpush1.bf16.msra.mxu0 %v8564_v48 }
 0x4e1   :  { %6970 = vmatpush1.bf16.msra.mxu1 %v8566_v40  ;;  %6807 = vmatprep.subr.bf16.mxu0 %v8573_v43  ;;  %v3543_v40 = vld [vmem:[%s12919_s10 + $0x510] sm:$0xff] }
 0x4e2   :  { %6971 = vmatprep.subr.bf16.mxu1 %v8575_v51  ;;  %v3547_v43 = vld [vmem:[%s12919_s10 + $0x530] sm:$0xff]  ;;  %v3544_v51 = vld [vmem:[%s12919_s10 + $0x518] sm:$0xff] }
 0x4e3   :  { %v8629_v45 = vcombine.high %v3543_v40, %v3547_v43  ;;  %v8628_v23 = vcombine.low %v3543_v40, %v3547_v43  ;;  %v8630_v50 = vcombine.low %v3544_v51, %v3548_v31  ;;  %v3596_v40 = vld [vmem:[%s12919_s10 + $0x6b8] sm:$0xff] }
 0x4e4   :  { %6808 = vmatpush1.bf16.msra.mxu0 %v8572_v15  ;;  %v8631_v15 = vcombine.high %v3544_v51, %v3548_v31 }
 0x4e5   :  { %6972 = vmatpush1.bf16.msra.mxu1 %v8574_v25  ;;  %6809 = vmatprep.subr.bf16.mxu0 %v8581_v49  ;;  %v3551_v25 = vld [vmem:[%s12919_s10 + $0x550] sm:$0xff] }
 0x4e6   :  { %6973 = vmatprep.subr.bf16.mxu1 %v8583_v32  ;;  %v3555_v49 = vld [vmem:[%s12919_s10 + $0x570] sm:$0xff]  ;;  %v3552_v32 = vld [vmem:[%s12919_s10 + $0x558] sm:$0xff] }
 0x4e7   :  { %v8637_v53 = vcombine.high %v3551_v25, %v3555_v49  ;;  %v8636_v2 = vcombine.low %v3551_v25, %v3555_v49  ;;  %v8638_v63 = vcombine.low %v3552_v32, %v3556_v19  ;;  %v3604_v25 = vld [vmem:[%s12919_s10 + $0x6f8] sm:$0xff] }
 0x4e8   :  { %6810 = vmatpush1.bf16.msra.mxu0 %v8580_v56  ;;  %v8639_v56 = vcombine.high %v3552_v32, %v3556_v19 }
 0x4e9   :  { %6974 = vmatpush1.bf16.msra.mxu1 %v8582_v28  ;;  %6811 = vmatprep.subr.bf16.mxu0 %v8589_v41  ;;  %v3559_v28 = vld [vmem:[%s12919_s10 + $0x590] sm:$0xff] }
 0x4ea   :  { %6975 = vmatprep.subr.bf16.mxu1 %v8591_v57  ;;  %v3563_v41 = vld [vmem:[%s12919_s10 + $0x5b0] sm:$0xff]  ;;  %v3560_v57 = vld [vmem:[%s12919_s10 + $0x598] sm:$0xff] }
 0x4eb   :  { %v8645_v36 = vcombine.high %v3559_v28, %v3563_v41  ;;  %v8644_v55 = vcombine.low %v3559_v28, %v3563_v41  ;;  %v3612_v28 = vld [vmem:[%s12919_s10 + $0x738] sm:$0xff] }
 0x4ec   :  { %6812 = vmatpush1.bf16.msra.mxu0 %v8588_v0  ;;  %v8647_v0 = vcombine.high %v3560_v57, %v3564_v61 }
 0x4ed   :  { %6976 = vmatpush1.bf16.msra.mxu1 %v8590_v52  ;;  %6822 = vmatprep.subr.bf16.mxu0 %v8597_v1  ;;  %v3567_v52 = vld [vmem:[%s12919_s10 + $0x5d0] sm:$0xff] }
 0x4ee   :  { %6986 = vmatprep.subr.bf16.mxu1 %v8599_v3  ;;  %v3571_v1 = vld [vmem:[%s12919_s10 + $0x5f0] sm:$0xff]  ;;  %v3568_v3 = vld [vmem:[%s12919_s10 + $0x5d8] sm:$0xff] }
 0x4ef   :  { %6814 = vmatmul.mubr.bf16.vlgmr.msra.gmra.mrb[16].mxu0 %v11146_v30  ;;  %v8653_v24 = vcombine.high %v3567_v52, %v3571_v1  ;;  %v8655_v5 = vcombine.high %v3568_v3, %v3572_v4  ;;  %v8654_v37 = vcombine.low %v3568_v3, %v3572_v4 }
 0x4f0   :  { %6978 = vmatmul.mubr.bf16.vlgmr.msra.gmra.mrb[20].mxu1 %v11146_v30  ;;  %6823 = vmatpush1.bf16.msra.mxu0 %v8596_v10  ;;  %v3536_v30 = vld [vmem:[%s12919_s10 + $0x4d8] sm:$0xff]  ;;  %v8646_v10 = vcombine.low %v3560_v57, %v3564_v61 }
 0x4f1   :  { %6854 = vmatprep.mubr.bf16.mxu0 %v11164_v38  ;;  %6987 = vmatpush1.bf16.msra.mxu1 %v8598_v47  ;;  %v8623_v48 = vcombine.high %v3536_v30, %v3540_v27  ;;  %v8622_v60 = vcombine.low %v3536_v30, %v3540_v27  ;;  %v3575_v47 = vld [vmem:[%s12919_s10 + $0x610] sm:$0xff] }
 0x4f2   :  { %7018 = vmatprep.mubr.bf16.mxu1 %v11164_v38  ;;  %6824 = vmatprep.subr.bf16.mxu0 %v8605_v54  ;;  %v8612_v38 = vcombine.low %v3527_v13, %v3531_v14  ;;  %v3579_v54 = vld [vmem:[%s12919_s10 + $0x630] sm:$0xff]  ;;  %v3576_v13 = vld [vmem:[%s12919_s10 + $0x618] sm:$0xff] }
 0x4f3   :  { %6988 = vmatprep.subr.bf16.mxu1 %v8607_v16  ;;  %v3580_v14 = vld [vmem:[%s12919_s10 + $0x638] sm:$0xff]  ;;  %v8652_v16 = vcombine.low %v3567_v52, %v3571_v1  ;;  %v8661_v17 = vcombine.high %v3575_v47, %v3579_v54  ;;  %v8660_v26 = vcombine.low %v3575_v47, %v3579_v54 }
 0x4f4   :  { %6825 = vmatpush1.bf16.msra.mxu0 %v8604_v20  ;;  %v8663_v20 = vcombine.high %v3576_v13, %v3580_v14  ;;  %v8662_v30 = vcombine.low %v3576_v13, %v3580_v14  ;;  %v3620_v52 = vld [vmem:[%s12919_s10 + $0x778] sm:$0xff] }
 0x4f5   :  { %6989 = vmatpush1.bf16.msra.mxu1 %v8606_v18  ;;  %6826 = vmatprep.subr.bf16.mxu0 %v8613_v7  ;;  %v3583_v18 = vld [vmem:[%s12919_s10 + $0x650] sm:$0xff]  ;;  %v3628_v47 = vld [vmem:[%s12919_s10 + $0x7b8] sm:$0xff] }
 0x4f6   :  { %6990 = vmatprep.subr.bf16.mxu1 %v8615_v6  ;;  %v3587_v7 = vld [vmem:[%s12919_s10 + $0x670] sm:$0xff]  ;;  %v3584_v6 = vld [vmem:[%s12919_s10 + $0x658] sm:$0xff] }
 0x4f7   :  { %v8669_v27 = vcombine.high %v3583_v18, %v3587_v7  ;;  %v8668_v43 = vcombine.low %v3583_v18, %v3587_v7  ;;  %v8670_v51 = vcombine.low %v3584_v6, %v3588_v22  ;;  %v3636_v18 = vld [vmem:[%s12919_s10 + $0x7f8] sm:$0xff] }
 0x4f8   :  { %6827 = vmatpush1.bf16.msra.mxu0 %v8612_v38  ;;  %v8671_v38 = vcombine.high %v3584_v6, %v3588_v22 }
 0x4f9   :  { %6991 = vmatpush1.bf16.msra.mxu1 %v8614_v29  ;;  %6828 = vmatprep.subr.bf16.mxu0 %v8621_v8  ;;  %v3591_v29 = vld [vmem:[%s12919_s10 + $0x690] sm:$0xff] }
 0x4fa   :  { %6992 = vmatprep.subr.bf16.mxu1 %v8623_v48  ;;  %v3595_v8 = vld [vmem:[%s12919_s10 + $0x6b0] sm:$0xff]  ;;  %v3592_v48 = vld [vmem:[%s12919_s10 + $0x698] sm:$0xff] }
 0x4fb   :  { %v8677_v31 = vcombine.high %v3591_v29, %v3595_v8  ;;  %v8676_v49 = vcombine.low %v3591_v29, %v3595_v8  ;;  %v8678_v32 = vcombine.low %v3592_v48, %v3596_v40  ;;  %v3644_v29 = vld [vmem:[%s12919_s10 + $0x838] sm:$0xff] }
 0x4fc   :  { %6829 = vmatpush1.bf16.msra.mxu0 %v8620_v59  ;;  %v8679_v59 = vcombine.high %v3592_v48, %v3596_v40 }
 0x4fd   :  { %6993 = vmatpush1.bf16.msra.mxu1 %v8622_v60  ;;  %6830 = vmatprep.subr.bf16.mxu0 %v8629_v45  ;;  %v3599_v60 = vld [vmem:[%s12919_s10 + $0x6d0] sm:$0xff] }
 0x4fe   :  { %6994 = vmatprep.subr.bf16.mxu1 %v8631_v15  ;;  %v3603_v45 = vld [vmem:[%s12919_s10 + $0x6f0] sm:$0xff]  ;;  %v3600_v15 = vld [vmem:[%s12919_s10 + $0x6d8] sm:$0xff] }
 0x4ff   :  { %v8685_v19 = vcombine.high %v3599_v60, %v3603_v45  ;;  %v8684_v41 = vcombine.low %v3599_v60, %v3603_v45  ;;  %v8686_v57 = vcombine.low %v3600_v15, %v3604_v25  ;;  %v3648_v60 = vld [vmem:[%s12919_s10 + $0x858] sm:$0xff] }
 0x500   :  { %6831 = vmatpush1.bf16.msra.mxu0 %v8628_v23  ;;  %v8687_v23 = vcombine.high %v3600_v15, %v3604_v25  ;;  %v3652_v45 = vld [vmem:[%s12919_s10 + $0x878] sm:$0xff] }
 0x501   :  { %6995 = vmatpush1.bf16.msra.mxu1 %v8630_v50  ;;  %6832 = vmatprep.subr.bf16.mxu0 %v8637_v53  ;;  %v3607_v50 = vld [vmem:[%s12919_s10 + $0x710] sm:$0xff] }
 0x502   :  { %6996 = vmatprep.subr.bf16.mxu1 %v8639_v56  ;;  %v3611_v53 = vld [vmem:[%s12919_s10 + $0x730] sm:$0xff]  ;;  %v3608_v56 = vld [vmem:[%s12919_s10 + $0x718] sm:$0xff] }
 0x503   :  { %v8693_v61 = vcombine.high %v3607_v50, %v3611_v53  ;;  %v8692_v1 = vcombine.low %v3607_v50, %v3611_v53  ;;  %v8694_v3 = vcombine.low %v3608_v56, %v3612_v28  ;;  %v3660_v50 = vld [vmem:[%s12919_s10 + $0x8b8] sm:$0xff] }
 0x504   :  { %6833 = vmatpush1.bf16.msra.mxu0 %v8636_v2  ;;  %v8695_v2 = vcombine.high %v3608_v56, %v3612_v28  ;;  %v3663_v56 = vld [vmem:[%s12919_s10 + $0x8d0] sm:$0xff]  ;;  %v8734_v28 = vcombine.low %v3648_v60, %v3652_v45 }
 0x505   :  { %6997 = vmatpush1.bf16.msra.mxu1 %v8638_v63  ;;  %6834 = vmatprep.subr.bf16.mxu0 %v8645_v36  ;;  %v3615_v63 = vld [vmem:[%s12919_s10 + $0x750] sm:$0xff] }
 0x506   :  { %6998 = vmatprep.subr.bf16.mxu1 %v8647_v0  ;;  %v3619_v36 = vld [vmem:[%s12919_s10 + $0x770] sm:$0xff]  ;;  %v3616_v0 = vld [vmem:[%s12919_s10 + $0x758] sm:$0xff] }
 0x507   :  { %v8701_v4 = vcombine.high %v3615_v63, %v3619_v36  ;;  %v8700_v54 = vcombine.low %v3615_v63, %v3619_v36  ;;  %v8702_v13 = vcombine.low %v3616_v0, %v3620_v52  ;;  %v3671_v36 = vld [vmem:[%s12919_s10 + $0x910] sm:$0xff] }
 0x508   :  { %6835 = vmatpush1.bf16.msra.mxu0 %v8644_v55  ;;  %v8703_v55 = vcombine.high %v3616_v0, %v3620_v52  ;;  %v3675_v52 = vld [vmem:[%s12919_s10 + $0x930] sm:$0xff] }
 0x509   :  { %6999 = vmatpush1.bf16.msra.mxu1 %v8646_v10  ;;  %6836 = vmatprep.subr.bf16.mxu0 %v8653_v24  ;;  %v3623_v10 = vld [vmem:[%s12919_s10 + $0x790] sm:$0xff] }
 0x50a   :  { %7000 = vmatprep.subr.bf16.mxu1 %v8655_v5  ;;  %v3627_v24 = vld [vmem:[%s12919_s10 + $0x7b0] sm:$0xff]  ;;  %v3624_v5 = vld [vmem:[%s12919_s10 + $0x798] sm:$0xff] }
 0x50b   :  { %v8709_v14 = vcombine.high %v3623_v10, %v3627_v24  ;;  %v8708_v7 = vcombine.low %v3623_v10, %v3627_v24  ;;  %v8710_v6 = vcombine.low %v3624_v5, %v3628_v47  ;;  %v3679_v10 = vld [vmem:[%s12919_s10 + $0x950] sm:$0xff] }
 0x50c   :  { %6837 = vmatpush1.bf16.msra.mxu0 %v8652_v16  ;;  %v8711_v16 = vcombine.high %v3624_v5, %v3628_v47  ;;  %v8757_v5 = vcombine.high %v3671_v36, %v3675_v52  ;;  %v3683_v47 = vld [vmem:[%s12919_s10 + $0x970] sm:$0xff] }
 0x50d   :  { %7001 = vmatpush1.bf16.msra.mxu1 %v8654_v37  ;;  %6838 = vmatprep.subr.bf16.mxu0 %v8661_v17  ;;  %v3631_v37 = vld [vmem:[%s12919_s10 + $0x7d0] sm:$0xff] }
 0x50e   :  { %7002 = vmatprep.subr.bf16.mxu1 %v8663_v20  ;;  %v3635_v17 = vld [vmem:[%s12919_s10 + $0x7f0] sm:$0xff]  ;;  %v3632_v20 = vld [vmem:[%s12919_s10 + $0x7d8] sm:$0xff] }
 0x50f   :  { %v8717_v22 = vcombine.high %v3631_v37, %v3635_v17  ;;  %v8716_v8 = vcombine.low %v3631_v37, %v3635_v17  ;;  %v8718_v48 = vcombine.low %v3632_v20, %v3636_v18  ;;  %v3687_v37 = vld [vmem:[%s12919_s10 + $0x990] sm:$0xff] }
 0x510   :  { %6839 = vmatpush1.bf16.msra.mxu0 %v8660_v26  ;;  %v8719_v26 = vcombine.high %v3632_v20, %v3636_v18  ;;  %v8765_v20 = vcombine.high %v3679_v10, %v3683_v47  ;;  %v3691_v18 = vld [vmem:[%s12919_s10 + $0x9b0] sm:$0xff] }
 0x511   :  { %7003 = vmatpush1.bf16.msra.mxu1 %v8662_v30  ;;  %6840 = vmatprep.subr.bf16.mxu0 %v8669_v27  ;;  %v3639_v30 = vld [vmem:[%s12919_s10 + $0x810] sm:$0xff] }
 0x512   :  { %7004 = vmatprep.subr.bf16.mxu1 %v8671_v38  ;;  %v3643_v27 = vld [vmem:[%s12919_s10 + $0x830] sm:$0xff]  ;;  %v3640_v38 = vld [vmem:[%s12919_s10 + $0x818] sm:$0xff] }
 0x513   :  { %v8725_v40 = vcombine.high %v3639_v30, %v3643_v27  ;;  %v8726_v15 = vcombine.low %v3640_v38, %v3644_v29 }
 0x514   :  { %6841 = vmatpush1.bf16.msra.mxu0 %v8668_v43  ;;  %v8727_v43 = vcombine.high %v3640_v38, %v3644_v29  ;;  %v8773_v38 = vcombine.high %v3687_v37, %v3691_v18  ;;  %v3699_v29 = vld [vmem:[%s12919_s10 + $0x9f0] sm:$0xff] }
 0x515   :  { %7005 = vmatpush1.bf16.msra.mxu1 %v8670_v51  ;;  %6842 = vmatprep.subr.bf16.mxu0 %v8677_v31  ;;  %v3647_v51 = vld [vmem:[%s12919_s10 + $0x850] sm:$0xff] }
 0x516   :  { %7006 = vmatprep.subr.bf16.mxu1 %v8679_v59  ;;  %v3651_v31 = vld [vmem:[%s12919_s10 + $0x870] sm:$0xff]  ;;  %v8724_v59 = vcombine.low %v3639_v30, %v3643_v27 }
 0x517   :  { %v8733_v25 = vcombine.high %v3647_v51, %v3651_v31  ;;  %v8732_v53 = vcombine.low %v3647_v51, %v3651_v31  ;;  %v3695_v30 = vld [vmem:[%s12919_s10 + $0x9d0] sm:$0xff] }
 0x518   :  { %6843 = vmatpush1.bf16.msra.mxu0 %v8676_v49  ;;  %v3655_v49 = vld [vmem:[%s12919_s10 + $0x890] sm:$0xff] }
 0x519   :  { %7007 = vmatpush1.bf16.msra.mxu1 %v8678_v32  ;;  %6844 = vmatprep.subr.bf16.mxu0 %v8685_v19  ;;  %v3659_v32 = vld [vmem:[%s12919_s10 + $0x8b0] sm:$0xff]  ;;  %v3656_v19 = vld [vmem:[%s12919_s10 + $0x898] sm:$0xff] }
 0x51a   :  { %7008 = vmatprep.subr.bf16.mxu1 %v8687_v23  ;;  %v8735_v23 = vcombine.high %v3648_v60, %v3652_v45  ;;  %v8740_v63 = vcombine.low %v3655_v49, %v3659_v32  ;;  %v3703_v51 = vld [vmem:[%s12919_s10 + $0xa10] sm:$0xff] }
 0x51b   :  { %v3707_v60 = vld [vmem:[%s12919_s10 + $0xa30] sm:$0xff] }
 0x51c   :  { %6845 = vmatpush1.bf16.msra.mxu0 %v8684_v41  ;;  %v8741_v41 = vcombine.high %v3655_v49, %v3659_v32  ;;  %v8780_v49 = vcombine.low %v3695_v30, %v3699_v29  ;;  %v3711_v32 = vld [vmem:[%s12919_s10 + $0xa50] sm:$0xff] }
 0x51d   :  { %7009 = vmatpush1.bf16.msra.mxu1 %v8686_v57  ;;  %6846 = vmatprep.subr.bf16.mxu0 %v8693_v61  ;;  %v3667_v57 = vld [vmem:[%s12919_s10 + $0x8f0] sm:$0xff]  ;;  %v8743_v61 = vcombine.high %v3656_v19, %v3660_v50 }
 0x51e   :  { %7010 = vmatprep.subr.bf16.mxu1 %v8695_v2  ;;  %v3668_v2 = vld [vmem:[%s12919_s10 + $0x8f8] sm:$0xff]  ;;  %v8749_v0 = vcombine.high %v3663_v56, %v3667_v57 }
 0x520   :  { %6847 = vmatpush1.bf16.msra.mxu0 %v8692_v1 }
 0x521   :  { %7011 = vmatpush1.bf16.msra.mxu1 %v8694_v3  ;;  %6848 = vmatprep.subr.bf16.mxu0 %v8701_v4  ;;  %v3672_v3 = vld [vmem:[%s12919_s10 + $0x918] sm:$0xff] }
 0x522   :  { %7012 = vmatprep.subr.bf16.mxu1 %v8703_v55  ;;  %v3676_v4 = vld [vmem:[%s12919_s10 + $0x938] sm:$0xff]  ;;  %v8748_v55 = vcombine.low %v3663_v56, %v3667_v57  ;;  %v3719_v57 = vld [vmem:[%s12919_s10 + $0xa90] sm:$0xff] }
 0x523   :  { %v8758_v17 = vcombine.low %v3672_v3, %v3676_v4  ;;  %v3712_v56 = vld [vmem:[%s12919_s10 + $0xa58] sm:$0xff] }
 0x524   :  { %6849 = vmatpush1.bf16.msra.mxu0 %v8700_v54  ;;  %v8759_v54 = vcombine.high %v3672_v3, %v3676_v4 }
 0x525   :  { %7013 = vmatpush1.bf16.msra.mxu1 %v8702_v13  ;;  %6850 = vmatprep.subr.bf16.mxu0 %v8709_v14  ;;  %v3680_v13 = vld [vmem:[%s12919_s10 + $0x958] sm:$0xff] }
 0x526   :  { %7014 = vmatprep.subr.bf16.mxu1 %v8711_v16  ;;  %v3684_v14 = vld [vmem:[%s12919_s10 + $0x978] sm:$0xff]  ;;  %v8756_v16 = vcombine.low %v3671_v36, %v3675_v52  ;;  %v3727_v52 = vld [vmem:[%s12919_s10 + $0xad0] sm:$0xff] }
 0x527   :  { %v8766_v27 = vcombine.low %v3680_v13, %v3684_v14 }
 0x528   :  { %6851 = vmatpush1.bf16.msra.mxu0 %v8708_v7  ;;  %v8767_v7 = vcombine.high %v3680_v13, %v3684_v14 }
 0x529   :  { %7015 = vmatpush1.bf16.msra.mxu1 %v8710_v6  ;;  %6852 = vmatprep.subr.bf16.mxu0 %v8717_v22  ;;  %v3688_v6 = vld [vmem:[%s12919_s10 + $0x998] sm:$0xff] }
 0x52a   :  { %7016 = vmatprep.subr.bf16.mxu1 %v8719_v26  ;;  %v3692_v22 = vld [vmem:[%s12919_s10 + $0x9b8] sm:$0xff]  ;;  %v8764_v26 = vcombine.low %v3679_v10, %v3683_v47  ;;  %v3735_v47 = vld [vmem:[%s12919_s10 + $0xb10] sm:$0xff] }
 0x52b   :  { %v8774_v31 = vcombine.low %v3688_v6, %v3692_v22  ;;  %v3732_v10 = vld [vmem:[%s12919_s10 + $0xaf8] sm:$0xff] }
 0x52c   :  { %6853 = vmatpush1.bf16.msra.mxu0 %v8716_v8  ;;  %v8775_v8 = vcombine.high %v3688_v6, %v3692_v22 }
 0x52d   :  { %7017 = vmatpush1.bf16.msra.mxu1 %v8718_v48  ;;  %6863 = vmatprep.subr.bf16.mxu0 %v8725_v40  ;;  %v3696_v48 = vld [vmem:[%s12919_s10 + $0x9d8] sm:$0xff] }
 0x52e   :  { %7027 = vmatprep.subr.bf16.mxu1 %v8727_v43  ;;  %v3700_v40 = vld [vmem:[%s12919_s10 + $0x9f8] sm:$0xff]  ;;  %v8772_v43 = vcombine.low %v3687_v37, %v3691_v18  ;;  %v3743_v18 = vld [vmem:[%s12919_s10 + $0xb50] sm:$0xff] }
 0x52f   :  { %6855 = vmatmul.mubr.bf16.vlgmr.msra.gmra.mrb[16].mxu0 %v11359_v11  ;;  %v8783_v45 = vcombine.high %v3696_v48, %v3700_v40  ;;  %v3740_v37 = vld [vmem:[%s12919_s10 + $0xb38] sm:$0xff] }
 0x530   :  { %7019 = vmatmul.mubr.bf16.vlgmr.msra.gmra.mrb[20].mxu1 %v11359_v11  ;;  %6864 = vmatpush1.bf16.msra.mxu0 %v8724_v59  ;;  %v3664_v11 = vld [vmem:[%s12919_s10 + $0x8d8] sm:$0xff]  ;;  %v8781_v59 = vcombine.high %v3695_v30, %v3699_v29  ;;  %v3751_v29 = vld [vmem:[%s12919_s10 + $0xb90] sm:$0xff] }
 0x531   :  { %6895 = vmatprep.mubr.bf16.mxu0 %v11618_v34  ;;  %7028 = vmatpush1.bf16.msra.mxu1 %v8726_v15  ;;  %v8751_v1 = vcombine.high %v3664_v11, %v3668_v2  ;;  %v8750_v24 = vcombine.low %v3664_v11, %v3668_v2  ;;  %v3704_v15 = vld [vmem:[%s12919_s10 + $0xa18] sm:$0xff] }
 0x532   :  { %7059 = vmatprep.mubr.bf16.mxu1 %v11618_v34  ;;  %6865 = vmatprep.subr.bf16.mxu0 %v8733_v25  ;;  %v8742_v34 = vcombine.low %v3656_v19, %v3660_v50  ;;  %v3708_v25 = vld [vmem:[%s12919_s10 + $0xa38] sm:$0xff]  ;;  %v8782_v19 = vcombine.low %v3696_v48, %v3700_v40  ;;  %v3715_v50 = vld [vmem:[%s12919_s10 + $0xa70] sm:$0xff] }
 0x533   :  { %7029 = vmatprep.subr.bf16.mxu1 %v8735_v23  ;;  %v8789_v23 = vcombine.high %v3703_v51, %v3707_v60  ;;  %v8790_v11 = vcombine.low %v3704_v15, %v3708_v25  ;;  %v8797_v2 = vcombine.high %v3711_v32, %v3715_v50  ;;  %v3748_v30 = vld [vmem:[%s12919_s10 + $0xb78] sm:$0xff] }
 0x534   :  { %6866 = vmatpush1.bf16.msra.mxu0 %v8732_v53  ;;  %v8791_v53 = vcombine.high %v3704_v15, %v3708_v25 }
 0x535   :  { %7030 = vmatpush1.bf16.msra.mxu1 %v8734_v28  ;;  %6867 = vmatprep.subr.bf16.mxu0 %v8741_v41  ;;  %v3716_v28 = vld [vmem:[%s12919_s10 + $0xa78] sm:$0xff]  ;;  %v8788_v41 = vcombine.low %v3703_v51, %v3707_v60  ;;  %v3759_v60 = vld [vmem:[%s12919_s10 + $0xbd0] sm:$0xff] }
 0x536   :  { %7031 = vmatprep.subr.bf16.mxu1 %v8743_v61  ;;  %v3723_v61 = vld [vmem:[%s12919_s10 + $0xab0] sm:$0xff]  ;;  %v8799_v36 = vcombine.high %v3712_v56, %v3716_v28  ;;  %v8798_v3 = vcombine.low %v3712_v56, %v3716_v28  ;;  %v3756_v51 = vld [vmem:[%s12919_s10 + $0xbb8] sm:$0xff] }
 0x537   :  { %v8805_v4 = vcombine.high %v3719_v57, %v3723_v61  ;;  %v3767_v28 = vld [vmem:[%s12919_s10 + $0xc10] sm:$0xff] }
 0x538   :  { %6868 = vmatpush1.bf16.msra.mxu0 %v8740_v63  ;;  %v3720_v63 = vld [vmem:[%s12919_s10 + $0xa98] sm:$0xff] }
 0x539   :  { %7032 = vmatpush1.bf16.msra.mxu1 %v8742_v34  ;;  %6869 = vmatprep.subr.bf16.mxu0 %v8749_v0  ;;  %v3724_v34 = vld [vmem:[%s12919_s10 + $0xab8] sm:$0xff]  ;;  %v8796_v0 = vcombine.low %v3711_v32, %v3715_v50 }
 0x53a   :  { %7033 = vmatprep.subr.bf16.mxu1 %v8751_v1  ;;  %v3731_v1 = vld [vmem:[%s12919_s10 + $0xaf0] sm:$0xff]  ;;  %v8806_v13 = vcombine.low %v3720_v63, %v3724_v34  ;;  %v3764_v32 = vld [vmem:[%s12919_s10 + $0xbf8] sm:$0xff] }
 0x53b   :  { %v8813_v14 = vcombine.high %v3727_v52, %v3731_v1 }
 0x53c   :  { %6870 = vmatpush1.bf16.msra.mxu0 %v8748_v55  ;;  %v3728_v55 = vld [vmem:[%s12919_s10 + $0xad8] sm:$0xff] }
 0x53d   :  { %7034 = vmatpush1.bf16.msra.mxu1 %v8750_v24  ;;  %6871 = vmatprep.subr.bf16.mxu0 %v8757_v5  ;;  %v8807_v24 = vcombine.high %v3720_v63, %v3724_v34  ;;  %v8804_v5 = vcombine.low %v3719_v57, %v3723_v61  ;;  %v8814_v6 = vcombine.low %v3728_v55, %v3732_v10  ;;  %v3768_v57 = vld [vmem:[%s12919_s10 + $0xc18] sm:$0xff]  ;;  %v3775_v34 = vld [vmem:[%s12919_s10 + $0xc50] sm:$0xff] }
 0x53e   :  { %7035 = vmatprep.subr.bf16.mxu1 %v8759_v54  ;;  %v3739_v54 = vld [vmem:[%s12919_s10 + $0xb30] sm:$0xff]  ;;  %v3772_v61 = vld [vmem:[%s12919_s10 + $0xc38] sm:$0xff] }
 0x53f   :  { %v8821_v22 = vcombine.high %v3735_v47, %v3739_v54 }
 0x540   :  { %6872 = vmatpush1.bf16.msra.mxu0 %v8756_v16  ;;  %v3736_v16 = vld [vmem:[%s12919_s10 + $0xb18] sm:$0xff] }
 0x541   :  { %7036 = vmatpush1.bf16.msra.mxu1 %v8758_v17  ;;  %6873 = vmatprep.subr.bf16.mxu0 %v8765_v20  ;;  %v8815_v17 = vcombine.high %v3728_v55, %v3732_v10  ;;  %v8812_v20 = vcombine.low %v3727_v52, %v3731_v1  ;;  %v8822_v48 = vcombine.low %v3736_v16, %v3740_v37  ;;  %v3776_v1 = vld [vmem:[%s12919_s10 + $0xc58] sm:$0xff]  ;;  %v3783_v10 = vld [vmem:[%s12919_s10 + $0xc90] sm:$0xff] }
 0x542   :  { %7037 = vmatprep.subr.bf16.mxu1 %v8767_v7  ;;  %v3747_v7 = vld [vmem:[%s12919_s10 + $0xb70] sm:$0xff] }
 0x543   :  { %v8829_v40 = vcombine.high %v3743_v18, %v3747_v7 }
 0x544   :  { %6874 = vmatpush1.bf16.msra.mxu0 %v8764_v26  ;;  %v3744_v26 = vld [vmem:[%s12919_s10 + $0xb58] sm:$0xff] }
 0x545   :  { %7038 = vmatpush1.bf16.msra.mxu1 %v8766_v27  ;;  %6875 = vmatprep.subr.bf16.mxu0 %v8773_v38  ;;  %v8823_v27 = vcombine.high %v3736_v16, %v3740_v37  ;;  %v8820_v38 = vcombine.low %v3735_v47, %v3739_v54  ;;  %v8830_v15 = vcombine.low %v3744_v26, %v3748_v30  ;;  %v3784_v47 = vld [vmem:[%s12919_s10 + $0xc98] sm:$0xff] }
 0x546   :  { %7039 = vmatprep.subr.bf16.mxu1 %v8775_v8  ;;  %v3755_v8 = vld [vmem:[%s12919_s10 + $0xbb0] sm:$0xff]  ;;  %v3788_v54 = vld [vmem:[%s12919_s10 + $0xcb8] sm:$0xff] }
 0x547   :  { %v8837_v25 = vcombine.high %v3751_v29, %v3755_v8  ;;  %v8871_v37 = vcombine.high %v3784_v47, %v3788_v54 }
 0x548   :  { %6876 = vmatpush1.bf16.msra.mxu0 %v8772_v43  ;;  %v3752_v43 = vld [vmem:[%s12919_s10 + $0xb98] sm:$0xff] }
 0x549   :  { %7040 = vmatpush1.bf16.msra.mxu1 %v8774_v31  ;;  %6877 = vmatprep.subr.bf16.mxu0 %v8781_v59  ;;  %v8831_v31 = vcombine.high %v3744_v26, %v3748_v30  ;;  %v8828_v59 = vcombine.low %v3743_v18, %v3747_v7  ;;  %v8838_v50 = vcombine.low %v3752_v43, %v3756_v51  ;;  %v3796_v18 = vld [vmem:[%s12919_s10 + $0xcf8] sm:$0xff]  ;;  %v3799_v26 = vld [vmem:[%s12919_s10 + $0xd10] sm:$0xff] }
 0x54a   :  { %7041 = vmatprep.subr.bf16.mxu1 %v8783_v45  ;;  %v3763_v45 = vld [vmem:[%s12919_s10 + $0xbf0] sm:$0xff]  ;;  %v8870_v7 = vcombine.low %v3784_v47, %v3788_v54 }
 0x54b   :  { %v3803_v30 = vld [vmem:[%s12919_s10 + $0xd30] sm:$0xff] }
 0x54c   :  { %6878 = vmatpush1.bf16.msra.mxu0 %v8780_v49  ;;  %v3760_v49 = vld [vmem:[%s12919_s10 + $0xbd8] sm:$0xff] }
 0x54d   :  { %7042 = vmatpush1.bf16.msra.mxu1 %v8782_v19  ;;  %6879 = vmatprep.subr.bf16.mxu0 %v8789_v23  ;;  %v8839_v19 = vcombine.high %v3752_v43, %v3756_v51  ;;  %v8836_v23 = vcombine.low %v3751_v29, %v3755_v8  ;;  %v8847_v56 = vcombine.high %v3760_v49, %v3764_v32  ;;  %v3807_v43 = vld [vmem:[%s12919_s10 + $0xd50] sm:$0xff] }
 0x54e   :  { %7043 = vmatprep.subr.bf16.mxu1 %v8791_v53  ;;  %v8845_v53 = vcombine.high %v3759_v60, %v3763_v45  ;;  %v3811_v51 = vld [vmem:[%s12919_s10 + $0xd70] sm:$0xff] }
 0x550   :  { %6880 = vmatpush1.bf16.msra.mxu0 %v8788_v41  ;;  %v3771_v41 = vld [vmem:[%s12919_s10 + $0xc30] sm:$0xff] }
 0x551   :  { %7044 = vmatpush1.bf16.msra.mxu1 %v8790_v11  ;;  %6881 = vmatprep.subr.bf16.mxu0 %v8797_v2  ;;  %v8844_v11 = vcombine.low %v3759_v60, %v3763_v45  ;;  %v8846_v2 = vcombine.low %v3760_v49, %v3764_v32  ;;  %v8853_v63 = vcombine.high %v3767_v28, %v3771_v41  ;;  %v3815_v49 = vld [vmem:[%s12919_s10 + $0xd90] sm:$0xff] }
 0x552   :  { %7045 = vmatprep.subr.bf16.mxu1 %v8799_v36  ;;  %v8855_v36 = vcombine.high %v3768_v57, %v3772_v61  ;;  %v8852_v52 = vcombine.low %v3767_v28, %v3771_v41  ;;  %v8884_v60 = vcombine.low %v3799_v26, %v3803_v30  ;;  %v3819_v32 = vld [vmem:[%s12919_s10 + $0xdb0] sm:$0xff] }
 0x554   :  { %6882 = vmatpush1.bf16.msra.mxu0 %v8796_v0  ;;  %v3779_v0 = vld [vmem:[%s12919_s10 + $0xc70] sm:$0xff] }
 0x555   :  { %7046 = vmatpush1.bf16.msra.mxu1 %v8798_v3  ;;  %6883 = vmatprep.subr.bf16.mxu0 %v8805_v4  ;;  %v3780_v3 = vld [vmem:[%s12919_s10 + $0xc78] sm:$0xff]  ;;  %v8854_v4 = vcombine.low %v3768_v57, %v3772_v61  ;;  %v8861_v55 = vcombine.high %v3775_v34, %v3779_v0  ;;  %v3823_v61 = vld [vmem:[%s12919_s10 + $0xdd0] sm:$0xff] }
 0x556   :  { %7047 = vmatprep.subr.bf16.mxu1 %v8807_v24  ;;  %v3787_v24 = vld [vmem:[%s12919_s10 + $0xcb0] sm:$0xff] }
 0x557   :  { %v8869_v16 = vcombine.high %v3783_v10, %v3787_v24 }
 0x558   :  { %6884 = vmatpush1.bf16.msra.mxu0 %v8804_v5  ;;  %v8863_v5 = vcombine.high %v3776_v1, %v3780_v3 }
 0x559   :  { %7048 = vmatpush1.bf16.msra.mxu1 %v8806_v13  ;;  %6885 = vmatprep.subr.bf16.mxu0 %v8813_v14  ;;  %v8860_v13 = vcombine.low %v3775_v34, %v3779_v0  ;;  %v8862_v14 = vcombine.low %v3776_v1, %v3780_v3  ;;  %v8900_v0 = vcombine.low %v3815_v49, %v3819_v32  ;;  %v3828_v1 = vld [vmem:[%s12919_s10 + $0xdf8] sm:$0xff] }
 0x55a   :  { %7049 = vmatprep.subr.bf16.mxu1 %v8815_v17  ;;  %v3791_v17 = vld [vmem:[%s12919_s10 + $0xcd0] sm:$0xff] }
 0x55c   :  { %6886 = vmatpush1.bf16.msra.mxu0 %v8812_v20  ;;  %v3795_v20 = vld [vmem:[%s12919_s10 + $0xcf0] sm:$0xff] }
 0x55d   :  { %7050 = vmatpush1.bf16.msra.mxu1 %v8814_v6  ;;  %6887 = vmatprep.subr.bf16.mxu0 %v8821_v22  ;;  %v8877_v6 = vcombine.high %v3791_v17, %v3795_v20  ;;  %v8876_v29 = vcombine.low %v3791_v17, %v3795_v20 }
 0x55e   :  { %7051 = vmatprep.subr.bf16.mxu1 %v8823_v27  ;;  %v3800_v27 = vld [vmem:[%s12919_s10 + $0xd18] sm:$0xff] }
 0x560   :  { %6888 = vmatpush1.bf16.msra.mxu0 %v8820_v38  ;;  %v3804_v38 = vld [vmem:[%s12919_s10 + $0xd38] sm:$0xff] }
 0x561   :  { %7052 = vmatpush1.bf16.msra.mxu1 %v8822_v48  ;;  %6889 = vmatprep.subr.bf16.mxu0 %v8829_v40  ;;  %v8885_v48 = vcombine.high %v3799_v26, %v3803_v30  ;;  %v8887_v40 = vcombine.high %v3800_v27, %v3804_v38  ;;  %v8886_v45 = vcombine.low %v3800_v27, %v3804_v38  ;;  %v3836_v26 = vld [vmem:[%s12919_s10 + $0xe38] sm:$0xff] }
 0x562   :  { %7053 = vmatprep.subr.bf16.mxu1 %v8831_v31  ;;  %v3808_v31 = vld [vmem:[%s12919_s10 + $0xd58] sm:$0xff] }
 0x564   :  { %6890 = vmatpush1.bf16.msra.mxu0 %v8828_v59  ;;  %v3812_v59 = vld [vmem:[%s12919_s10 + $0xd78] sm:$0xff] }
 0x565   :  { %7054 = vmatpush1.bf16.msra.mxu1 %v8830_v15  ;;  %6891 = vmatprep.subr.bf16.mxu0 %v8837_v25  ;;  %v8893_v15 = vcombine.high %v3807_v43, %v3811_v51  ;;  %v8895_v25 = vcombine.high %v3808_v31, %v3812_v59 }
 0x566   :  { %7055 = vmatprep.subr.bf16.mxu1 %v8839_v19  ;;  %v3816_v19 = vld [vmem:[%s12919_s10 + $0xd98] sm:$0xff] }
 0x568   :  { %6892 = vmatpush1.bf16.msra.mxu0 %v8836_v23  ;;  %v3820_v23 = vld [vmem:[%s12919_s10 + $0xdb8] sm:$0xff] }
 0x569   :  { %7056 = vmatpush1.bf16.msra.mxu1 %v8838_v50  ;;  %6893 = vmatprep.subr.bf16.mxu0 %v8845_v53  ;;  %v8892_v50 = vcombine.low %v3807_v43, %v3811_v51  ;;  %v8894_v53 = vcombine.low %v3808_v31, %v3812_v59  ;;  %v8903_v57 = vcombine.high %v3816_v19, %v3820_v23  ;;  %v3839_v59 = vld [vmem:[%s12919_s10 + $0xe50] sm:$0xff] }
 0x56a   :  { %7057 = vmatprep.subr.bf16.mxu1 %v8847_v56  ;;  %v8901_v56 = vcombine.high %v3815_v49, %v3819_v32  ;;  %v3844_v49 = vld [vmem:[%s12919_s10 + $0xe78] sm:$0xff] }
 0x56c   :  { %6894 = vmatpush1.bf16.msra.mxu0 %v8844_v11  ;;  %v3827_v11 = vld [vmem:[%s12919_s10 + $0xdf0] sm:$0xff] }
 0x56d   :  { %7058 = vmatpush1.bf16.msra.mxu1 %v8846_v2  ;;  %6904 = vmatprep.subr.bf16.mxu0 %v8853_v63  ;;  %v8908_v38 = vcombine.low %v3823_v61, %v3827_v11 }
 0x56e   :  { %7068 = vmatprep.subr.bf16.mxu1 %v8855_v36 }
 0x56f   :  { %6896 = vmatmul.mubr.bf16.vlgmr.msra.gmra.mrb[16].mxu0 %v11621_v44 }
 0x570   :  { %7060 = vmatmul.mubr.bf16.vlgmr.msra.gmra.mrb[20].mxu1 %v11621_v44  ;;  %6905 = vmatpush1.bf16.msra.mxu0 %v8852_v52  ;;  %v3792_v44 = vld [vmem:[%s12919_s10 + $0xcd8] sm:$0xff] }
 0x571   :  { %6936 = vmatprep.mubr.bf16.mxu0 %v11639_v46  ;;  %7069 = vmatpush1.bf16.msra.mxu1 %v8854_v4  ;;  %v8879_v22 = vcombine.high %v3792_v44, %v3796_v18  ;;  %v8878_v8 = vcombine.low %v3792_v44, %v3796_v18  ;;  %v3824_v52 = vld [vmem:[%s12919_s10 + $0xdd8] sm:$0xff]  ;;  %v3831_v18 = vld [vmem:[%s12919_s10 + $0xe10] sm:$0xff] }
 0x572   :  { %7100 = vmatprep.mubr.bf16.mxu1 %v11639_v46  ;;  %6906 = vmatprep.subr.bf16.mxu0 %v8861_v55  ;;  %v8868_v46 = vcombine.low %v3783_v10, %v3787_v24  ;;  %v8911_v44 = vcombine.high %v3824_v52, %v3828_v1 }
 0x573   :  { %7070 = vmatprep.subr.bf16.mxu1 %v8863_v5 }
 0x574   :  { %6907 = vmatpush1.bf16.msra.mxu0 %v8860_v13 }
 0x575   :  { %7071 = vmatpush1.bf16.msra.mxu1 %v8862_v14  ;;  %6908 = vmatprep.subr.bf16.mxu0 %v8869_v16  ;;  %v8902_v16 = vcombine.low %v3816_v19, %v3820_v23 }
 0x576   :  { %7072 = vmatprep.subr.bf16.mxu1 %v8871_v37  ;;  %v8909_v37 = vcombine.high %v3823_v61, %v3827_v11 }
 0x578   :  { %6909 = vmatpush1.bf16.msra.mxu0 %v8868_v46  ;;  %v3835_v46 = vld [vmem:[%s12919_s10 + $0xe30] sm:$0xff] }
 0x579   :  { %7073 = vmatpush1.bf16.msra.mxu1 %v8870_v7  ;;  %6910 = vmatprep.subr.bf16.mxu0 %v8877_v6  ;;  %v8916_v23 = vcombine.low %v3831_v18, %v3835_v46 }
 0x57a   :  { %7074 = vmatprep.subr.bf16.mxu1 %v8879_v22  ;;  %v3832_v22 = vld [vmem:[%s12919_s10 + $0xe18] sm:$0xff] }
 0x57b   :  { %v8919_v31 = vcombine.high %v3832_v22, %v3836_v26 }
 0x57c   :  { %6911 = vmatpush1.bf16.msra.mxu0 %v8876_v29 }
 0x57d   :  { %7075 = vmatpush1.bf16.msra.mxu1 %v8878_v8  ;;  %6912 = vmatprep.subr.bf16.mxu0 %v8885_v48  ;;  %v8910_v48 = vcombine.low %v3824_v52, %v3828_v1 }
 0x57e   :  { %7076 = vmatprep.subr.bf16.mxu1 %v8887_v40  ;;  %v8917_v40 = vcombine.high %v3831_v18, %v3835_v46 }
 0x580   :  { %6913 = vmatpush1.bf16.msra.mxu0 %v8884_v60  ;;  %v3843_v60 = vld [vmem:[%s12919_s10 + $0xe70] sm:$0xff] }
 0x581   :  { %7077 = vmatpush1.bf16.msra.mxu1 %v8886_v45  ;;  %6914 = vmatprep.subr.bf16.mxu0 %v8893_v15 }
 0x582   :  { %v12489_v28 = vpop.f32.mrb[12].mxu0  ;;  %v12491_v41 = vpop.f32.mrb[16].mxu1  ;;  %7078 = vmatprep.subr.bf16.mxu1 %v8895_v25  ;;  %v3840_v25 = vld [vmem:[%s12919_s10 + $0xe58] sm:$0xff] }
 0x583   :  { %v7111_v2 = vsel %vm549_vm0, %v12489_v28, 0.0  ;;  %v7125_v63 = vsel %vm549_vm0, %v12491_v41, 0.0  ;;  %v12503_v36 = vpop.f32.mrb[13].mxu0  ;;  %v12505_v34 = vpop.f32.mrb[17].mxu1 }
 0x584   :  { %v7112_v3 = vrot.slane %v7111_v2, 4  ;;  %v7126_v4 = vrot.slane %v7125_v63, 4  ;;  %v7118_v55 = vsel %vm549_vm0, %v12503_v36, 0.0  ;;  %v7132_v10 = vsel %vm549_vm0, %v12505_v34, 0.0  ;;  %v6614_v24 = vpop.f32.mrb[14].mxu0  ;;  %v6778_v5 = vpop.f32.mrb[18].mxu1  ;;  %6915 = vmatpush1.bf16.msra.mxu0 %v8892_v50 }
 0x585   :  { %v7119_v47 = vrot.slane %v7118_v55, 4  ;;  %v7133_v54 = vrot.slane %v7132_v10, 4  ;;  %7079 = vmatpush1.bf16.msra.mxu1 %v8894_v53  ;;  %v6615_v13 = vpop.f32.mrb[15].mxu0  ;;  %v6779_v14 = vpop.f32.mrb[19].mxu1  ;;  %6916 = vmatprep.subr.bf16.mxu0 %v8901_v56  ;;  %v8918_v56 = vcombine.low %v3832_v22, %v3836_v26  ;;  %v8924_v24 = vcombine.low %v3839_v59, %v3843_v60 }
 0x586   :  { %v7113_v17 = vadd.f32 %v7112_v3, %v7111_v2  ;;  %v7127_v20 = vadd.f32 %v7126_v4, %v7125_v63  ;;  %7080 = vmatprep.subr.bf16.mxu1 %v8903_v57  ;;  %v8925_v57 = vcombine.high %v3839_v59, %v3843_v60  ;;  %v8927_v2 = vcombine.high %v3840_v25, %v3844_v49  ;;  %v3847_v63 = vld [vmem:[%s12919_s10 + $0xe90] sm:$0xff]  ;;  %v3848_v3 = vld [vmem:[%s12919_s10 + $0xe98] sm:$0xff] }
 0x587   :  { %v7120_v7 = vadd.f32 %v7119_v47, %v7118_v55  ;;  %v7134_v6 = vadd.f32 %v7133_v54, %v7132_v10  ;;  %v3852_v4 = vld [vmem:[%s12919_s10 + $0xeb8] sm:$0xff]  ;;  %v8926_v54 = vcombine.low %v3840_v25, %v3844_v49 }
 0x588   :  { %v7114_v30 = vrot.slane %v7113_v17, 2  ;;  %v7128_v27 = vrot.slane %v7127_v20, 2  ;;  %6917 = vmatpush1.bf16.msra.mxu0 %v8900_v0  ;;  %v3851_v0 = vld [vmem:[%s12919_s10 + $0xeb0] sm:$0xff]  ;;  %v3868_v59 = vld [vmem:[%s12919_s10 + $0xf38] sm:$0xff] }
 0x589   :  { %v7121_v29 = vrot.slane %v7120_v7, 2  ;;  %v7135_v8 = vrot.slane %v7134_v6, 2  ;;  %7081 = vmatpush1.bf16.msra.mxu1 %v8902_v16  ;;  %6918 = vmatprep.subr.bf16.mxu0 %v8909_v37  ;;  %v8933_v13 = vcombine.high %v3847_v63, %v3851_v0  ;;  %v8935_v37 = vcombine.high %v3848_v3, %v3852_v4 }
 0x58a   :  { %v7115_v43 = vadd.f32 %v7114_v30, %v7113_v17  ;;  %v7129_v51 = vadd.f32 %v7128_v27, %v7127_v20  ;;  %7082 = vmatprep.subr.bf16.mxu1 %v8911_v44  ;;  %v3855_v17 = vld [vmem:[%s12919_s10 + $0xed0] sm:$0xff] }
 0x58b   :  { %v7122_v45 = vadd.f32 %v7121_v29, %v7120_v7  ;;  %v7136_v15 = vadd.f32 %v7135_v8, %v7134_v6  ;;  %v3859_v20 = vld [vmem:[%s12919_s10 + $0xef0] sm:$0xff]  ;;  %v8934_v6 = vcombine.low %v3848_v3, %v3852_v4 }
 0x58c   :  { %v7116_v32 = vrot.slane %v7115_v43, 1  ;;  %v7130_v19 = vrot.slane %v7129_v51, 1  ;;  %6919 = vmatpush1.bf16.msra.mxu0 %v8908_v38  ;;  %v8941_v26 = vcombine.high %v3855_v17, %v3859_v20  ;;  %v3863_v29 = vld [vmem:[%s12919_s10 + $0xf10] sm:$0xff] }
 0x58d   :  { %v7123_v50 = vrot.slane %v7122_v45, 1  ;;  %v7137_v53 = vrot.slane %v7136_v15, 1  ;;  %7083 = vmatpush1.bf16.msra.mxu1 %v8910_v48  ;;  %6920 = vmatprep.subr.bf16.mxu0 %v8917_v40  ;;  %v3867_v8 = vld [vmem:[%s12919_s10 + $0xf30] sm:$0xff] }
 0x58e   :  { %v7117_v61 = vadd.f32 %v7116_v32, %v7115_v43  ;;  %v7131_v11 = vadd.f32 %v7130_v19, %v7129_v51  ;;  %7084 = vmatprep.subr.bf16.mxu1 %v8919_v31  ;;  %v3864_v31 = vld [vmem:[%s12919_s10 + $0xf18] sm:$0xff]  ;;  %v8949_v19 = vcombine.high %v3863_v29, %v3867_v8 }
 0x58f   :  { %v7124_v52 = vadd.f32 %v7123_v50, %v7122_v45  ;;  %v7138_v1 = vadd.f32 %v7137_v53, %v7136_v15  ;;  %v8940_v15 = vcombine.low %v3855_v17, %v3859_v20  ;;  %v8951_v53 = vcombine.high %v3864_v31, %v3868_v59  ;;  %v3884_v17 = vld [vmem:[%s12919_s10 + $0xfb8] sm:$0xff] }
 0x590   :  { %v7167_v55 = vmul.f32 0.5, %v7117_v61  ;;  %v7169_v10 = vmul.f32 0.5, %v7131_v11  ;;  %6921 = vmatpush1.bf16.msra.mxu0 %v8916_v23  ;;  %v8950_v3 = vcombine.low %v3864_v31, %v3868_v59 }
 0x591   :  { %v7168_v5 = vmul.f32 0.5, %v7124_v52  ;;  %v7170_v47 = vmul.f32 0.5, %v7138_v1  ;;  %7085 = vmatpush1.bf16.msra.mxu1 %v8918_v56  ;;  %6922 = vmatprep.subr.bf16.mxu0 %v8925_v57  ;;  %v3871_v56 = vld [vmem:[%s12919_s10 + $0xf50] sm:$0xff]  ;;  %v8948_v1 = vcombine.low %v3863_v29, %v3867_v8  ;;  %v3892_v29 = vld [vmem:[%s12919_s10 + $0xff8] sm:$0xff] }
 0x592   :  { %v12554_v14 = vsub.f32 %v12489_v28, %v7167_v55  ;;  %v12557_v16 = vsub.f32 %v12491_v41, %v7169_v10  ;;  %7086 = vmatprep.subr.bf16.mxu1 %v8927_v2  ;;  %v3856_v28 = vld [vmem:[%s12919_s10 + $0xed8] sm:$0xff]  ;;  %v3875_v57 = vld [vmem:[%s12919_s10 + $0xf70] sm:$0xff] }
 0x593   :  { %v12566_v44 = vsub.f32 %v12503_v36, %v7168_v5  ;;  %v12569_v18 = vsub.f32 %v12505_v34, %v7170_v47  ;;  %v3860_v41 = vld [vmem:[%s12919_s10 + $0xef8] sm:$0xff]  ;;  %v8932_v36 = vcombine.low %v3847_v63, %v3851_v0  ;;  %v8957_v10 = vcombine.high %v3871_v56, %v3875_v57 }
 0x594   :  { %v7183_v46 = vmul.f32 %v12554_v14, %v12554_v14  ;;  %v7185_v7 = vmul.f32 %v12557_v16, %v12557_v16  ;;  %6923 = vmatpush1.bf16.msra.mxu0 %v8924_v24  ;;  %v8943_v38 = vcombine.high %v3856_v28, %v3860_v41  ;;  %v8942_v25 = vcombine.low %v3856_v28, %v3860_v41  ;;  %v3872_v2 = vld [vmem:[%s12919_s10 + $0xf58] sm:$0xff] }
 0x595   :  { %v7184_v34 = vmul.f32 %v12566_v44, %v12566_v44  ;;  %v7186_v22 = vmul.f32 %v12569_v18, %v12569_v18  ;;  %7087 = vmatpush1.bf16.msra.mxu1 %v8926_v54  ;;  %6924 = vmatprep.subr.bf16.mxu0 %v8933_v13  ;;  %v3876_v63 = vld [vmem:[%s12919_s10 + $0xf78] sm:$0xff]  ;;  %v3879_v54 = vld [vmem:[%s12919_s10 + $0xf90] sm:$0xff] }
 0x596   :  { %v7191_v30 = vsel %vm549_vm0, %v7183_v46, 0.0  ;;  %v7205_v27 = vsel %vm549_vm0, %v7185_v7, 0.0  ;;  %7088 = vmatprep.subr.bf16.mxu1 %v8935_v37  ;;  %v8959_v47 = vcombine.high %v3872_v2, %v3876_v63  ;;  %v3883_v13 = vld [vmem:[%s12919_s10 + $0xfb0] sm:$0xff]  ;;  %v3880_v37 = vld [vmem:[%s12919_s10 + $0xf98] sm:$0xff]  ;;  %v8956_v46 = vcombine.low %v3871_v56, %v3875_v57  ;;  %v9392_v56 = vld [vmem:[%s12922_s13] sm:$0xff]  }
 0x597   :  { %v7192_v48 = vrot.slane %v7191_v30, 4  ;;  %v7206_v40 = vrot.slane %v7205_v27, 4  ;;  %v7198_v43 = vsel %vm549_vm0, %v7184_v34, 0.0  ;;  %v7212_v51 = vsel %vm549_vm0, %v7186_v22, 0.0 }
 0x598   :  { %v7199_v60 = vrot.slane %v7198_v43, 4  ;;  %v7213_v45 = vrot.slane %v7212_v51, 4  ;;  %6925 = vmatpush1.bf16.msra.mxu0 %v8932_v36  ;;  %v8958_v36 = vcombine.low %v3872_v2, %v3876_v63  ;;  %v8966_v31 = vcombine.low %v3880_v37, %v3884_v17  ;;  %v9395_v2 = vld [vmem:[%s12922_s13 + $0xc8] sm:$0xff]   ;;  %v12658_v63 = vld [vmem:[%s12923_s11] sm:$0xff] }
 0x599   :  { %v7193_v49 = vadd.f32 %v7192_v48, %v7191_v30  ;;  %v7207_v32 = vadd.f32 %v7206_v40, %v7205_v27  ;;  %7089 = vmatpush1.bf16.msra.mxu1 %v8934_v6  ;;  %6926 = vmatprep.subr.bf16.mxu0 %v8941_v26  ;;  %v8965_v6 = vcombine.high %v3879_v54, %v3883_v13  ;;  %v3887_v30 = vld [vmem:[%s12919_s10 + $0xfd0] sm:$0xff] }
 0x59a   :  { %v7200_v23 = vadd.f32 %v7199_v60, %v7198_v43  ;;  %v7214_v50 = vadd.f32 %v7213_v45, %v7212_v51  ;;  %7090 = vmatprep.subr.bf16.mxu1 %v8943_v38  ;;  %v8967_v26 = vcombine.high %v3880_v37, %v3884_v17  ;;  %v3891_v27 = vld [vmem:[%s12919_s10 + $0xff0] sm:$0xff]  ;;  %v3888_v38 = vld [vmem:[%s12919_s10 + $0xfd8] sm:$0xff]  ;;  %v8964_v43 = vcombine.low %v3879_v54, %v3883_v13 }
 0x59b   :  { %v7194_v61 = vrot.slane %v7193_v49, 2  ;;  %v7208_v11 = vrot.slane %v7207_v32, 2  ;;  %v8973_v59 = vcombine.high %v3887_v30, %v3891_v27  ;;  %v9401_v37 = vld [vmem:[%s12922_s13 + $0x90] sm:$0xff]  }
 0x59c   :  { %v7201_v0 = vrot.slane %v7200_v23, 2  ;;  %v7215_v52 = vrot.slane %v7214_v50, 2  ;;  %6927 = vmatpush1.bf16.msra.mxu0 %v8940_v15  ;;  %v8975_v15 = vcombine.high %v3888_v38, %v3892_v29 }
 0x59d   :  { %v7195_v4 = vadd.f32 %v7194_v61, %v7193_v49  ;;  %v7209_v55 = vadd.f32 %v7208_v11, %v7207_v32  ;;  %7091 = vmatpush1.bf16.msra.mxu1 %v8942_v25  ;;  %6928 = vmatprep.subr.bf16.mxu0 %v8949_v19  ;;  %v8972_v49 = vcombine.low %v3887_v30, %v3891_v27  ;;  %v9393_v61 = vld [vmem:[%s12922_s13 + $0x80] sm:$0xff]   ;;  %v9394_v11 = vld [vmem:[%s12922_s13 + $0x48] sm:$0xff]  }
 0x59e   :  { %v7202_v24 = vadd.f32 %v7201_v0, %v7200_v23  ;;  %v7216_v5 = vadd.f32 %v7215_v52, %v7214_v50  ;;  %7092 = vmatprep.subr.bf16.mxu1 %v8951_v53  ;;  %v8974_v19 = vcombine.low %v3888_v38, %v3892_v29  ;;  %v9390_v23 = vld [vmem:[%s12922_s13 + $0x40] sm:$0xff]   ;;  %v9396_v0 = vld [vmem:[%s12922_s13 + $0x8] sm:$0xff]   ;;  %v7283_v29 = vrot.slane %v12658_v63, %v9902_v33 }
 0x59f   :  { %v7196_v20 = vrot.slane %v7195_v4, 1  ;;  %v7210_v7 = vrot.slane %v7209_v55, 1  ;;  %v9391_v50 = vld [vmem:[%s12922_s13 + $0xc0] sm:$0xff]  }
 0x5a0   :  { %v7203_v28 = vrot.slane %v7202_v24, 1  ;;  %v7217_v41 = vrot.slane %v7216_v5, 1  ;;  %6929 = vmatpush1.bf16.msra.mxu0 %v8948_v1  ;;  %v12668_v52 = vld [vmem:[%s12924_s12] sm:$0xff]  ;;  %v9397_v1 = vld [vmem:[%s12922_s13 + $0x88] sm:$0xff]  }
 0x5a1   :  { %7093 = vmatpush1.bf16.msra.mxu1 %v8950_v3  ;;  %6930 = vmatprep.subr.bf16.mxu0 %v8957_v10  ;;  %v7197_v8 = vadd.f32 %v7196_v20, %v7195_v4  ;;  %v7211_v51 = vadd.f32 %v7210_v7, %v7209_v55  ;;  %v7287_v3 = vrot.slane %v12658_v63, %v9908_v35  ;;  %v9399_v4 = vld [vmem:[%s12922_s13 + $0xd0] sm:$0xff]   ;;  %v9406_v7 = vld [vmem:[%s12922_s13 + $0x60] sm:$0xff]  }
 0x5a2   :  { %v7204_v34 = vadd.f32 %v7203_v28, %v7202_v24  ;;  %v7218_v22 = vadd.f32 %v7217_v41, %v7216_v5  ;;  %7094 = vmatprep.subr.bf16.mxu1 %v8959_v47  ;;  %v7295_v10 = vrot.slane %v12658_v63, %v10441_v62  ;;  %v9400_v47 = vld [vmem:[%s12922_s13 + $0x10] sm:$0xff]   ;;  %v7336_v54 = vrot.slane %v12668_v52, %v9908_v35  ;;  %v9403_v35 = vld [vmem:[%s12922_s13 + $0xd8] sm:$0xff]   ;;  %v9408_v27 = vld [vmem:[%s12922_s13 + $0x20] sm:$0xff]  }
 0x5a3   :  { %v7247_v25 = vmul.f32 0.5, %v7197_v8  ;;  %v7249_v32 = vmul.f32 0.5, %v7211_v51  ;;  %v7344_v17 = vrot.slane %v12668_v52, %v10441_v62  ;;  %v9404_v28 = vld [vmem:[%s12922_s13 + $0x18] sm:$0xff]   ;;  %v7291_v51 = vrot.slane %v12658_v63, %v10435_v58 }
 0x5a4   :  { %v7248_v48 = vmul.f32 0.5, %v7204_v34  ;;  %v7250_v40 = vmul.f32 0.5, %v7218_v22  ;;  %6931 = vmatpush1.bf16.msra.mxu0 %v8956_v46  ;;  %v9405_v46 = vld [vmem:[%s12922_s13 + $0x98] sm:$0xff]   ;;  %v9407_v34 = vld [vmem:[%s12922_s13 + $0xe0] sm:$0xff]  }
 0x5a5   :  { %7095 = vmatpush1.bf16.msra.mxu1 %v8958_v36  ;;  %6932 = vmatprep.subr.bf16.mxu0 %v8965_v6  ;;  %v7255_v53 = vadd.f32 1e-05, %v7247_v25  ;;  %v7257_v57 = vadd.f32 1e-05, %v7249_v32  ;;  %v7340_v25 = vrot.slane %v12668_v52, %v10435_v58  ;;  %v9418_v58 = vld [vmem:[%s12922_s13 + $0x78] sm:$0xff]  }
 0x5a6   :  { %v7256_v60 = vadd.f32 1e-05, %v7248_v48  ;;  %v7258_v45 = vadd.f32 1e-05, %v7250_v40  ;;  %7096 = vmatprep.subr.bf16.mxu1 %v8967_v26  ;;  %v9409_v48 = vld [vmem:[%s12922_s13 + $0xa0] sm:$0xff]   ;;  %v9410_v40 = vld [vmem:[%s12922_s13 + $0x68] sm:$0xff]  }
 0x5a8   :  { %6933 = vmatpush1.bf16.msra.mxu0 %v8964_v43  ;;  %9482 = vrsqrt.f32 %v7256_v60  ;;  %v7332_v60 = vrot.slane %v12668_v52, %v9902_v33  ;;  %v9416_v33 = vld [vmem:[%s12922_s13 + $0x30] sm:$0xff]  }
 0x5a9   :  { %7097 = vmatpush1.bf16.msra.mxu1 %v8966_v31  ;;  %6934 = vmatprep.subr.bf16.mxu0 %v8973_v59  ;;  %9484 = vrsqrt.f32 %v7258_v45  ;;  %v9412_v31 = vld [vmem:[%s12922_s13 + $0x28] sm:$0xff]   ;;  %v9414_v45 = vld [vmem:[%s12922_s13 + $0x70] sm:$0xff]  }
 0x5aa   :  { %7098 = vmatprep.subr.bf16.mxu1 %v8975_v15  ;;  %9486 = vrsqrt.f32 %v7255_v53  ;;  %v9420_v53 = vld [vmem:[%s12922_s13 + $0x38] sm:$0xff]  }
 0x5ab   :  { %9488 = vrsqrt.f32 %v7257_v57 }
 0x5ac   :  { %6935 = vmatpush1.bf16.msra.mxu0 %v8972_v49  ;;  %v9415_v49 = vld [vmem:[%s12922_s13 + $0xf0] sm:$0xff]  }
 0x5ad   :  { %7099 = vmatpush1.bf16.msra.mxu1 %v8974_v19  ;;  %9041 = vmatprep.subr.bf16.mxu0 %v9390_v23  ;;  %v9417_v19 = vld [vmem:[%s12922_s13 + $0xb0] sm:$0xff]  }
 0x5ae   :  { %9063 = vmatprep.subr.bf16.mxu1 %v9391_v50  ;;  %v9419_v50 = vld [vmem:[%s12922_s13 + $0xf8] sm:$0xff]  }
 0x5af   :  { %6937 = vmatmul.mubr.bf16.vlgmr.msra.gmra.mrb[16].mxu0 %v11835_v21 }
 0x5b0   :  { %7101 = vmatmul.mubr.bf16.vlgmr.msra.gmra.mrb[20].mxu1 %v11835_v21  ;;  %9042 = vmatpush3.bf16.msra.mxu0 %v9392_v56  ;;  %v9398_v21 = vld [vmem:[%s12922_s13 + $0x50] sm:$0xff]   ;;  %v9421_v56 = vld [vmem:[%s12922_s13 + $0xb8] sm:$0xff]  }
 0x5b1   :  { %9064 = vmatpush3.bf16.msra.mxu1 %v9393_v61  ;;  %9043 = vmatprep.subr.bf16.mxu0 %v9394_v11 }
 0x5b2   :  { %9065 = vmatprep.subr.bf16.mxu1 %v9395_v2  ;;  %v9483_v55 = vpop.eup %9482 }
 0x5b3   :  { %v9485_v24 = vpop.eup %9484  ;;  %v7272_v5 = vmul.f32 %v9483_v55, %v12566_v44  ;;  %v9402_v44 = vld [vmem:[%s12922_s13 + $0x58] sm:$0xff]   ;;  %v9427_v55 = vld [vmem:[%s12922_s13 + $0x1c8] sm:$0xff]  }
 0x5b4   :  { %9044 = vmatpush3.bf16.msra.mxu0 %v9396_v0  ;;  %v7274_v13 = vmul.f32 %v9485_v24, %v12569_v18  ;;  %v9487_v36 = vpop.eup %9486  ;;  %v9422_v0 = vld [vmem:[%s12922_s13 + $0x140] sm:$0xff]   ;;  %v9429_v24 = vld [vmem:[%s12922_s13 + $0x188] sm:$0xff]  }
 0x5b5   :  { %9066 = vmatpush3.bf16.msra.mxu1 %v9397_v1  ;;  %9045 = vmatprep.subr.bf16.mxu0 %v9398_v21  ;;  %v7321_v20 = vmul.f32 %v7287_v3, %v7272_v5  ;;  %v9489_v22 = vpop.eup %9488  ;;  %v7271_v38 = vmul.f32 %v9487_v36, %v12554_v14  ;;  %v9411_v14 = vld [vmem:[%s12922_s13 + $0xe8] sm:$0xff]   ;;  %v9423_v1 = vld [vmem:[%s12922_s13 + $0x1c0] sm:$0xff]   ;;  %v9430_v5 = vld [vmem:[%s12922_s13 + $0x150] sm:$0xff]  }
 0x5b6   :  { %9067 = vmatprep.subr.bf16.mxu1 %v9399_v4  ;;  %v7323_v18 = vmul.f32 %v7295_v10, %v7274_v13  ;;  %v7273_v43 = vmul.f32 %v9489_v22, %v12557_v16  ;;  %v9413_v16 = vld [vmem:[%s12922_s13 + $0xa8] sm:$0xff]   ;;  %v9424_v21 = vld [vmem:[%s12922_s13 + $0x100] sm:$0xff]   ;;  %v9433_v13 = vld [vmem:[%s12922_s13 + $0x190] sm:$0xff]  }
 0x5b7   :  { %v7370_v41 = vadd.f32 %v7336_v54, %v7321_v20  ;;  %v7320_v59 = vmul.f32 %v7283_v29, %v7271_v38  ;;  %v9425_v3 = vld [vmem:[%s12922_s13 + $0x180] sm:$0xff]   ;;  %v9426_v4 = vld [vmem:[%s12922_s13 + $0x148] sm:$0xff]   ;;  %v9432_v54 = vld [vmem:[%s12922_s13 + $0x110] sm:$0xff]  }
 0x5b8   :  { %9046 = vmatpush3.bf16.msra.mxu0 %v9400_v47  ;;  %v7372_v62 = vadd.f32 %v7344_v17, %v7323_v18  ;;  %v7322_v15 = vmul.f32 %v7291_v51, %v7273_v43  ;;  %v9428_v10 = vld [vmem:[%s12922_s13 + $0x108] sm:$0xff]   ;;  %v9431_v47 = vld [vmem:[%s12922_s13 + $0x1d0] sm:$0xff]   ;;  %v9436_v17 = vld [vmem:[%s12922_s13 + $0x118] sm:$0xff]  }
 0x5b9   :  { %9068 = vmatpush3.bf16.msra.mxu1 %v9401_v37  ;;  %9047 = vmatprep.subr.bf16.mxu0 %v9402_v44  ;;  %v7378_v6 = vmax.f32 %v7370_v41, 0.0  ;;  %v7369_v32 = vadd.f32 %v7332_v60, %v7320_v59  ;;  %v9434_v37 = vld [vmem:[%s12922_s13 + $0x158] sm:$0xff]   ;;  %v9439_v18 = vld [vmem:[%s12922_s13 + $0x1e0] sm:$0xff]   ;;  %v9445_v36 = vld [vmem:[%s12922_s13 + $0x1a8] sm:$0xff]  }
 0x5ba   :  { %9069 = vmatprep.subr.bf16.mxu1 %v9403_v35  ;;  %v7380_v26 = vmax.f32 %v7372_v62, 0.0  ;;  %v7371_v23 = vadd.f32 %v7340_v25, %v7322_v15  ;;  %v9435_v44 = vld [vmem:[%s12922_s13 + $0x1d8] sm:$0xff]   ;;  %v9438_v35 = vld [vmem:[%s12922_s13 + $0x160] sm:$0xff]   ;;  %v9443_v62 = vld [vmem:[%s12922_s13 + $0x1e8] sm:$0xff]  }
 0x5bb   :  { %v7386_v30 = vpack.c.bf16 %v7378_v6, %v7378_v6  ;;  %v7377_v57 = vmax.f32 %v7369_v32, 0.0  ;;  %v9437_v20 = vld [vmem:[%s12922_s13 + $0x198] sm:$0xff]   ;;  %v9441_v41 = vld [vmem:[%s12922_s13 + $0x1a0] sm:$0xff]   ;;  %v9446_v6 = vld [vmem:[%s12922_s13 + $0x170] sm:$0xff]  }
 0x5bc   :  { %9048 = vmatpush3.bf16.msra.mxu0 %v9404_v28  ;;  %v7388_v8 = vpack.c.bf16 %v7380_v26, %v7380_v26  ;;  %v7379_v61 = vmax.f32 %v7371_v23, 0.0  ;;  %v9440_v28 = vld [vmem:[%s12922_s13 + $0x120] sm:$0xff]   ;;  %v9448_v22 = vld [vmem:[%s12922_s13 + $0x130] sm:$0xff]   ;;  %v9452_v38 = vld [vmem:[%s12922_s13 + $0x138] sm:$0xff]  }
 0x5bd   :  { %9070 = vmatpush3.bf16.msra.mxu1 %v9405_v46  ;;  %9049 = vmatprep.subr.bf16.mxu0 %v9406_v7  ;;  %v7385_v11 = vpack.c.bf16 %v7377_v57, %v7377_v57  ;;  %v9442_v46 = vld [vmem:[%s12922_s13 + $0x168] sm:$0xff]   ;;  %v9449_v26 = vld [vmem:[%s12922_s13 + $0x1b0] sm:$0xff]   ;;  %v9453_v29 = vld [vmem:[%s12922_s13 + $0x1b8] sm:$0xff]  }
 0x5be   :  { %7944 = vmatprep.mubr.bf16.mxu0 %v7386_v30  ;;  %9071 = vmatprep.subr.bf16.mxu1 %v9407_v34  ;;  %v7387_v2 = vpack.c.bf16 %v7379_v61, %v7379_v61  ;;  %v9444_v7 = vld [vmem:[%s12922_s13 + $0x128] sm:$0xff]   ;;  %v9447_v34 = vld [vmem:[%s12922_s13 + $0x1f0] sm:$0xff]   ;;  %v9450_v30 = vld [vmem:[%s12922_s13 + $0x178] sm:$0xff]  }
 0x5bf   :  { %7984 = vmatprep.mubr.bf16.mxu1 %v7388_v8 }
 0x5c0   :  { %9050 = vmatpush3.bf16.msra.mxu0 %v9408_v27  ;;  %v9451_v27 = vld [vmem:[%s12922_s13 + $0x1f8] sm:$0xff]  }
 0x5c1   :  { %9072 = vmatpush3.bf16.msra.mxu1 %v9409_v48  ;;  %9051 = vmatprep.subr.bf16.mxu0 %v9410_v40 }
 0x5c2   :  { %9073 = vmatprep.subr.bf16.mxu1 %v9411_v14 }
 0x5c4   :  { %9052 = vmatpush3.bf16.msra.mxu0 %v9412_v31 }
 0x5c5   :  { %9074 = vmatpush3.bf16.msra.mxu1 %v9413_v16  ;;  %9053 = vmatprep.subr.bf16.mxu0 %v9414_v45 }
 0x5c6   :  { %9075 = vmatprep.subr.bf16.mxu1 %v9415_v49 }
 0x5c8   :  { %9054 = vmatpush3.bf16.msra.mxu0 %v9416_v33 }
 0x5c9   :  { %9076 = vmatpush3.bf16.msra.mxu1 %v9417_v19  ;;  %9055 = vmatprep.subr.bf16.mxu0 %v9418_v58 }
 0x5ca   :  { %9077 = vmatprep.subr.bf16.mxu1 %v9419_v50 }
 0x5cc   :  { %9056 = vmatpush3.bf16.msra.mxu0 %v9420_v53 }
 0x5cd   :  { %9078 = vmatpush3.bf16.msra.mxu1 %v9421_v56  ;;  %9085 = vmatprep.subr.bf16.mxu0 %v9422_v0 }
 0x5ce   :  { %9107 = vmatprep.subr.bf16.mxu1 %v9423_v1 }
 0x5cf   :  { %7945 = vmatmul.mubr.bf16.vlgmr.msra.gmra.mrb[20].mxu0 %v7385_v11 }
 0x5d0   :  { %7985 = vmatmul.mubr.bf16.vlgmr.msra.gmra.mrb[24].mxu1 %v7387_v2  ;;  %9086 = vmatpush3.bf16.msra.mxu0 %v9424_v21 }
 0x5d1   :  { %9108 = vmatpush3.bf16.msra.mxu1 %v9425_v3  ;;  %9087 = vmatprep.subr.bf16.mxu0 %v9426_v4 }
 0x5d2   :  { %9109 = vmatprep.subr.bf16.mxu1 %v9427_v55 }
 0x5d4   :  { %9088 = vmatpush3.bf16.msra.mxu0 %v9428_v10 }
 0x5d5   :  { %9110 = vmatpush3.bf16.msra.mxu1 %v9429_v24  ;;  %9089 = vmatprep.subr.bf16.mxu0 %v9430_v5 }
 0x5d6   :  { %9111 = vmatprep.subr.bf16.mxu1 %v9431_v47 }
 0x5d8   :  { %9090 = vmatpush3.bf16.msra.mxu0 %v9432_v54 }
 0x5d9   :  { %9112 = vmatpush3.bf16.msra.mxu1 %v9433_v13  ;;  %9091 = vmatprep.subr.bf16.mxu0 %v9434_v37 }
 0x5da   :  { %9113 = vmatprep.subr.bf16.mxu1 %v9435_v44 }
 0x5dc   :  { %9092 = vmatpush3.bf16.msra.mxu0 %v9436_v17 }
 0x5dd   :  { %9114 = vmatpush3.bf16.msra.mxu1 %v9437_v20  ;;  %9093 = vmatprep.subr.bf16.mxu0 %v9438_v35 }
 0x5de   :  { %9115 = vmatprep.subr.bf16.mxu1 %v9439_v18 }
 0x5e0   :  { %9094 = vmatpush3.bf16.msra.mxu0 %v9440_v28 }
 0x5e1   :  { %9116 = vmatpush3.bf16.msra.mxu1 %v9441_v41  ;;  %9095 = vmatprep.subr.bf16.mxu0 %v9442_v46 }
 0x5e2   :  { %9117 = vmatprep.subr.bf16.mxu1 %v9443_v62 }
 0x5e4   :  { %9096 = vmatpush3.bf16.msra.mxu0 %v9444_v7 }
 0x5e5   :  { %9118 = vmatpush3.bf16.msra.mxu1 %v9445_v36  ;;  %9097 = vmatprep.subr.bf16.mxu0 %v9446_v6 }
 0x5e6   :  { %9119 = vmatprep.subr.bf16.mxu1 %v9447_v34 }
 0x5e8   :  { %9098 = vmatpush3.bf16.msra.mxu0 %v9448_v22 }
 0x5e9   :  { %9120 = vmatpush3.bf16.msra.mxu1 %v9449_v26  ;;  %9099 = vmatprep.subr.bf16.mxu0 %v9450_v30 }
 0x5ea   :  { %9121 = vmatprep.subr.bf16.mxu1 %v9451_v27 }
 0x5ec   :  { %9100 = vmatpush3.bf16.msra.mxu0 %v9452_v38 }
 0x5ed   :  { %9122 = vmatpush3.bf16.msra.mxu1 %v9453_v29 }
 0x682   :  { %v6938_v8 = vpop.f32.mrb[16].mxu0 }
 0x683   :  { %v7139_v48 = vsel %vm549_vm0, %v6938_v8, 0.0  ;;  %v7102_v40 = vpop.f32.mrb[20].mxu1  ;;  %v6940_v43 = vpop.f32.mrb[17].mxu0 }
 0x684   :  { %v7140_v51 = vrot.slane %v7139_v48, 4  ;;  %v7153_v14 = vsel %vm549_vm0, %v7102_v40, 0.0  ;;  %v7146_v31 = vsel %vm549_vm0, %v6940_v43, 0.0  ;;  %v7104_v59 = vpop.f32.mrb[21].mxu1  ;;  %v6942_v60 = vpop.f32.mrb[18].mxu0 }
 0x685   :  { %v7154_v16 = vrot.slane %v7153_v14, 4  ;;  %v7147_v45 = vrot.slane %v7146_v31, 4  ;;  %v7160_v15 = vsel %vm549_vm0, %v7104_v59, 0.0  ;;  %v7106_v25 = vpop.f32.mrb[22].mxu1  ;;  %v6943_v49 = vpop.f32.mrb[19].mxu0 }
 0x686   :  { %v7141_v33 = vadd.f32 %v7140_v51, %v7139_v48  ;;  %v7161_v32 = vrot.slane %v7160_v15, 4  ;;  %v7107_v19 = vpop.f32.mrb[23].mxu1 }
 0x687   :  { %v7155_v58 = vadd.f32 %v7154_v16, %v7153_v14  ;;  %v7148_v23 = vadd.f32 %v7147_v45, %v7146_v31 }
 0x688   :  { %v7142_v50 = vrot.slane %v7141_v33, 2  ;;  %v7162_v53 = vadd.f32 %v7161_v32, %v7160_v15 }
 0x689   :  { %v7156_v56 = vrot.slane %v7155_v58, 2  ;;  %v7149_v57 = vrot.slane %v7148_v23, 2 }
 0x68a   :  { %v7143_v61 = vadd.f32 %v7142_v50, %v7141_v33  ;;  %v7163_v11 = vrot.slane %v7162_v53, 2 }
 0x68b   :  { %v7157_v2 = vadd.f32 %v7156_v56, %v7155_v58  ;;  %v7150_v0 = vadd.f32 %v7149_v57, %v7148_v23  ;;  %v8976_v56 = vld [vmem:[%s12925_s14] ss:$0 sm:$0xff] }
 0x68c   :  { %v7144_v1 = vrot.slane %v7143_v61, 1  ;;  %v7164_v21 = vadd.f32 %v7163_v11, %v7162_v53 }
 0x68d   :  { %v7158_v3 = vrot.slane %v7157_v2, 1  ;;  %v7151_v4 = vrot.slane %v7150_v0, 1 }
 0x68e   :  { %v7145_v55 = vadd.f32 %v7144_v1, %v7143_v61  ;;  %v7165_v10 = vrot.slane %v7164_v21, 1 }
 0x68f   :  { %v7159_v24 = vadd.f32 %v7158_v3, %v7157_v2  ;;  %v7152_v5 = vadd.f32 %v7151_v4, %v7150_v0 }
 0x690   :  { %v7171_v47 = vmul.f32 0.5, %v7145_v55  ;;  %v7166_v54 = vadd.f32 %v7165_v10, %v7164_v21 }
 0x691   :  { %v7173_v13 = vmul.f32 0.5, %v7159_v24  ;;  %v7172_v37 = vmul.f32 0.5, %v7152_v5 }
 0x692   :  { %v12865_v44 = vsub.f32 %v6938_v8, %v7171_v47  ;;  %v7174_v17 = vmul.f32 0.5, %v7166_v54 }
 0x693   :  { %v12867_v20 = vsub.f32 %v7102_v40, %v7173_v13  ;;  %v12869_v35 = vsub.f32 %v6940_v43, %v7172_v37 }
 0x694   :  { %v7187_v18 = vmul.f32 %v12865_v44, %v12865_v44  ;;  %v12873_v28 = vsub.f32 %v7104_v59, %v7174_v17  ;;  %v7299_v17 = vrot.slane %v12658_v63, %v11542_v9 }
 0x695   :  { %v7189_v41 = vmul.f32 %v12867_v20, %v12867_v20  ;;  %v7188_v46 = vmul.f32 %v12869_v35, %v12869_v35 }
 0x696   :  { %v7219_v62 = vsel %vm549_vm0, %v7187_v18, 0.0  ;;  %v7190_v7 = vmul.f32 %v12873_v28, %v12873_v28 }
 0x697   :  { %v7220_v36 = vrot.slane %v7219_v62, 4  ;;  %v7233_v6 = vsel %vm549_vm0, %v7189_v41, 0.0  ;;  %v7226_v34 = vsel %vm549_vm0, %v7188_v46, 0.0  ;;  %v7307_v41 = vrot.slane %v12658_v63, %v11764_v42 }
 0x698   :  { %v7234_v22 = vrot.slane %v7233_v6, 4  ;;  %v7227_v26 = vrot.slane %v7226_v34, 4  ;;  %v7240_v30 = vsel %vm549_vm0, %v7190_v7, 0.0  ;;  %v7348_v7 = vrot.slane %v12668_v52, %v11542_v9 }
 0x699   :  { %v7221_v27 = vadd.f32 %v7220_v36, %v7219_v62  ;;  %v7241_v38 = vrot.slane %v7240_v30, 4  ;;  %v7303_v36 = vrot.slane %v12658_v63, %v11548_v12 }
 0x69a   :  { %v7235_v29 = vadd.f32 %v7234_v22, %v7233_v6  ;;  %v7228_v8 = vadd.f32 %v7227_v26, %v7226_v34  ;;  %v7356_v22 = vrot.slane %v12668_v52, %v11764_v42  ;;  %v7311_v26 = vrot.slane %v12658_v63, %v11551_v39 }
 0x69b   :  { %v7222_v48 = vrot.slane %v7221_v27, 2  ;;  %v7242_v40 = vadd.f32 %v7241_v38, %v7240_v30 }
 0x69c   :  { %v7236_v43 = vrot.slane %v7235_v29, 2  ;;  %v7229_v51 = vrot.slane %v7228_v8, 2 }
 0x69d   :  { %v7223_v14 = vadd.f32 %v7222_v48, %v7221_v27  ;;  %v7243_v31 = vrot.slane %v7242_v40, 2 }
 0x69e   :  { %v7237_v59 = vadd.f32 %v7236_v43, %v7235_v29  ;;  %v7230_v60 = vadd.f32 %v7229_v51, %v7228_v8  ;;  %v7360_v8 = vrot.slane %v12668_v52, %v11551_v39 }
 0x69f   :  { %v7224_v16 = vrot.slane %v7223_v14, 1  ;;  %v7244_v45 = vadd.f32 %v7243_v31, %v7242_v40 }
 0x6a0   :  { %v7238_v15 = vrot.slane %v7237_v59, 1  ;;  %v7231_v25 = vrot.slane %v7230_v60, 1 }
 0x6a1   :  { %v7225_v49 = vadd.f32 %v7224_v16, %v7223_v14  ;;  %v7245_v33 = vrot.slane %v7244_v45, 1 }
 0x6a2   :  { %v7239_v32 = vadd.f32 %v7238_v15, %v7237_v59  ;;  %v7232_v19 = vadd.f32 %v7231_v25, %v7230_v60  ;;  %v9057_v58 = vpop.f32.mrb[20].mxu0 }
 0x6a3   :  { %v7251_v23 = vmul.f32 0.5, %v7225_v49  ;;  %v7246_v50 = vadd.f32 %v7245_v33, %v7244_v45  ;;  %v9079_v53 = vpop.f32.mrb[24].mxu1  ;;  %v9058_v57 = vpop.f32.mrb[21].mxu0 }
 0x6a4   :  { %v7253_v61 = vmul.f32 0.5, %v7239_v32  ;;  %v7252_v11 = vmul.f32 0.5, %v7232_v19  ;;  %v9059_v2 = vadd.f32 %v9058_v57, %v9057_v58  ;;  %v9080_v0 = vpop.f32.mrb[25].mxu1  ;;  %v9060_v1 = vpop.f32.mrb[22].mxu0 }
 0x6a5   :  { %v7259_v21 = vadd.f32 1e-05, %v7251_v23  ;;  %v7254_v3 = vmul.f32 0.5, %v7246_v50  ;;  %v9081_v4 = vadd.f32 %v9080_v0, %v9079_v53  ;;  %v9082_v55 = vpop.f32.mrb[26].mxu1  ;;  %v9061_v10 = vpop.f32.mrb[23].mxu0 }
 0x6a6   :  { %v7261_v24 = vadd.f32 1e-05, %v7253_v61  ;;  %v7260_v5 = vadd.f32 1e-05, %v7252_v11  ;;  %v7947_v47 = vadd.f32 %v9059_v2, %v8976_v56  ;;  %v9083_v54 = vpop.f32.mrb[27].mxu1 }
 0x6a7   :  { %9490 = vrsqrt.f32 %v7259_v21  ;;  %v7262_v13 = vadd.f32 1e-05, %v7254_v3 }
 0x6a8   :  { %9492 = vrsqrt.f32 %v7261_v24  ;;  %v7987_v37 = vadd.f32 %v9081_v4, %v7947_v47 }
 0x6a9   :  { %9494 = vrsqrt.f32 %v7260_v5 }
 0x6aa   :  { %9496 = vrsqrt.f32 %v7262_v13 }
 0x6b1   :  { %v9491_v18 = vpop.eup %9490 }
 0x6b2   :  { %v9493_v46 = vpop.eup %9492  ;;  %v7275_v62 = vmul.f32 %v9491_v18, %v12865_v44  ;;  %v7352_v44 = vrot.slane %v12668_v52, %v11548_v12 }
 0x6b3   :  { %v9495_v6 = vpop.eup %9494  ;;  %v7277_v34 = vmul.f32 %v9493_v46, %v12867_v20 }
 0x6b4   :  { %v9497_v30 = vpop.eup %9496  ;;  %v7324_v27 = vmul.f32 %v7299_v17, %v7275_v62  ;;  %v7276_v38 = vmul.f32 %v9495_v6, %v12869_v35 }
 0x6b5   :  { %v7326_v9 = vmul.f32 %v7307_v41, %v7277_v34  ;;  %v7278_v29 = vmul.f32 %v9497_v30, %v12873_v28 }
 0x6b6   :  { %v7373_v20 = vadd.f32 %v7348_v7, %v7324_v27  ;;  %v7325_v48 = vmul.f32 %v7303_v36, %v7276_v38 }
 0x6b7   :  { %v7375_v40 = vadd.f32 %v7356_v22, %v7326_v9  ;;  %v7327_v42 = vmul.f32 %v7311_v26, %v7278_v29 }
 0x6b8   :  { %v7374_v43 = vadd.f32 %v7352_v44, %v7325_v48  ;;  %v7381_v63 = vmax.f32 %v7373_v20, 0.0 }
 0x6b9   :  { %v7376_v51 = vadd.f32 %v7360_v8, %v7327_v42  ;;  %v7383_v31 = vmax.f32 %v7375_v40, 0.0 }
 0x6ba   :  { %v7382_v14 = vmax.f32 %v7374_v43, 0.0  ;;  %v7389_v16 = vpack.c.bf16 %v7381_v63, %v7381_v63 }
 0x6bb   :  { %v7384_v59 = vmax.f32 %v7376_v51, 0.0  ;;  %v7391_v12 = vpack.c.bf16 %v7383_v31, %v7383_v31 }
 0x6bc   :  { %v7390_v35 = vpack.c.bf16 %v7382_v14, %v7382_v14 }
 0x6bd   :  { %v7392_v60 = vpack.c.bf16 %v7384_v59, %v7384_v59 }
 0x6be   :  { %8024 = vmatprep.mubr.bf16.mxu0 %v7390_v35 }
 0x6bf   :  { %8064 = vmatprep.mubr.bf16.mxu1 %v7392_v60  ;;  %8025 = vmatmul.mubr.bf16.vlgmr.msra.gmra.mrb[24].mxu0 %v7389_v16 }
 0x6c0   :  { %8065 = vmatmul.mubr.bf16.vlgmr.msra.gmra.mrb[28].mxu1 %v7391_v12 }
 0x792   :  { %v9101_v28 = vpop.f32.mrb[24].mxu0 }
 0x793   :  { %v9123_v39 = vpop.f32.mrb[28].mxu1  ;;  %v9102_v52 = vpop.f32.mrb[25].mxu0 }
 0x794   :  { %v9103_v45 = vadd.f32 %v9102_v52, %v9101_v28  ;;  %v9124_v15 = vpop.f32.mrb[29].mxu1  ;;  %v9104_v25 = vpop.f32.mrb[26].mxu0 }
 0x795   :  { %v9125_v49 = vadd.f32 %v9124_v15, %v9123_v39  ;;  %v9126_v33 = vpop.f32.mrb[30].mxu1  ;;  %v9105_v32 = vpop.f32.mrb[27].mxu0 }
 0x796   :  { %v8027_v19 = vadd.f32 %v9103_v45, %v7987_v37  ;;  %v9127_v58 = vpop.f32.mrb[31].mxu1 }
 0x798   :  { %v8067_v23 = vadd.f32 %v9125_v49, %v8027_v19 }
 0x79a   :  { %9498 = vtanh.f32 %v8067_v23 }
 0x7a4   :  { %v9499_v50 = vpop.eup %9498 }
 0x7a5   :  { %8074 = vst.msk [vmem:[%s12926_s15] sm:$0x3] %vm8073_vm1, %v9499_v50 }

</bundles_post_ra>
